<compile_context>
chip_gen: v5e
topology: v5e:2x2
jax: 0.10.0
libtpu: 0.0.40
codegen_flags: <defaults>
</compile_context>

<pallas_src>
import functools

import jax
import jax.numpy as jnp
import numpy as np
from jax.experimental import pallas as pl
from jax.experimental.pallas import tpu as pltpu


def _round_up(x, m):
    return (x + m - 1) // m * m


def _default_num_batch_tiles():
    """Best-effort: one batch tile per TensorCore (v7x has 2, v5e/v6e have 1)."""
    try:
        return max(1, int(getattr(jax.devices()[0], "num_cores", 1)))
    except Exception:
        return 1


def _lstm_disc_kernel(x_ref, wih_ref, whh_ref, b_ref, wo_ref, bo_ref,
                      out_ref, seq_ref, gx_ref,
                      *, num_layers, seq_len, h_dim, h_pad, tb):
    """One batch-tile grid step of the stacked LSTM + linear head.

    x_ref   : (S, TB, Hp)   f32   time-major, feature-padded input block
    wih_ref : (L, Hp, 4H)   bf16  input->gate weights (transposed, resident)
    whh_ref : (L, Hp, 4H)   bf16  hidden->gate weights (transposed, resident)
    b_ref   : (L, 1, 4H)    f32   b_ih + b_hh
    wo_ref  : (1, H)        f32   head weight
    bo_ref  : (1, 1)        f32   head bias
    out_ref : (TB, 1)       f32
    seq_ref : (S, TB, Hp)   f32   scratch: current layer's hidden sequence
    gx_ref  : (S, TB, 4H)   bf16  scratch: hoisted input projection
    Gate order along the packed 4H axis is [i, f, o, g].

    Scratch-reuse safety: seq_ref / gx_ref carry no state across grid steps
    (batch tiles) -- layer 0 reads x_ref (never seq_ref) and gx_ref is fully
    overwritten before any read, so stale data from a previous tile is dead.
    """
    S, H, Hp, TB = seq_len, h_dim, h_pad, tb
    G = 4 * H

    def pad_h(h):  # (TB, H) -> (TB, Hp); no-op when H == Hp (the common case)
        if H == Hp:
            return h
        return jnp.pad(h, ((0, 0), (0, Hp - H)))

    def gate_step(gates, c_prev):          # gates: (TB, 4H) f32
        sg = jax.nn.sigmoid(gates[:, :3 * H])
        i_g = sg[:, :H]
        f_g = sg[:, H:2 * H]
        o_g = sg[:, 2 * H:3 * H]
        g_g = jnp.tanh(gates[:, 3 * H:])
        c_new = f_g * c_prev + i_g * g_g
        h_new = o_g * jnp.tanh(c_new)
        return h_new, c_new

    # Partial unroll only if the batch tile is large enough to spill vregs.
    time_unroll = True if TB <= 32 else 2

    h = None
    # Layer loop folded into the body (weights resident; no grid overhead).
    for l in range(num_layers):
        w_ih = wih_ref[l]                  # (Hp, 4H) bf16
        w_hh = whh_ref[l]                  # (Hp, 4H) bf16
        bias = b_ref[l]                    # (1, 4H)  f32
        last = (l == num_layers - 1)

        # ---- Hoisted non-recurrent projection: one big MXU matmul per layer
        # (bias folded in once), cached in bf16 scratch.
        src = x_ref[...] if l == 0 else seq_ref[...]       # (S, TB, Hp) f32
        lhs = src.reshape(S * TB, Hp).astype(jnp.bfloat16)
        gx = jnp.dot(lhs, w_ih, preferred_element_type=jnp.float32) + bias
        gx_ref[...] = gx.reshape(S, TB, G).astype(gx_ref.dtype)

        # ---- Serial recurrence: only h @ W_hh + elementwise on the critical
        # path.  t = 0 peeled (h == 0 -> recurrent matmul skipped).
        h, c = gate_step(gx_ref[0].astype(jnp.float32),
                         jnp.zeros((TB, H), jnp.float32))
        if not last:
            seq_ref[0] = pad_h(h).astype(seq_ref.dtype)

        def body(t, carry):
            h, c = carry
            rec = jnp.dot(pad_h(h).astype(jnp.bfloat16), w_hh,
                          preferred_element_type=jnp.float32)
            h, c = gate_step(gx_ref[t].astype(jnp.float32) + rec, c)
            if not last:
                seq_ref[t] = pad_h(h).astype(seq_ref.dtype)
            return h, c

        h, c = jax.lax.fori_loop(1, S, body, (h, c), unroll=time_unroll)

    # ---- Linear head on hidden[-1] of the last layer.  N=1, so use a VPU
    # multiply + lane reduction instead of a one-column MXU matmul.
    out_ref[...] = (jnp.sum(h * wo_ref[...], axis=-1, keepdims=True)
                    + bo_ref[...])


def pack_lstm_params(layer_params, w_out, b_out, h_dim):
    """Pack PyTorch-layout LSTM + head params into the kernel layout.

    layer_params: list of (w_ih (4H,in), w_hh (4H,H), b_ih (4H,), b_hh (4H,))
                  in PyTorch gate order [i, f, g, o].
    Returns (wih, whh, b, wo, bo, Hp):
      wih/whh : (L, Hp, 4H) bf16, transposed, gate order [i, f, o, g].  The
                contraction dim is padded to Hp = round_up(max(in_dim, H), 8);
                the gate axis stays at native 4H (no gate-column padding).
      b       : (L, 1, 4H) f32   (b_ih + b_hh)
      wo      : (1, H) f32,  bo : (1, 1) f32
    Zero padding of the contraction rows makes padded input features inert.
    """
    L = len(layer_params)
    H = h_dim
    G = 4 * H
    max_in = max(int(p[0].shape[1]) for p in layer_params)
    Hp = _round_up(max(H, max_in), 8)
    perm = (0, 1, 3, 2)                     # [i,f,g,o] -> [i,f,o,g]

    wih = np.zeros((L, Hp, G), np.float32)
    whh = np.zeros((L, Hp, G), np.float32)
    b = np.zeros((L, 1, G), np.float32)
    for l, (w_ih_l, w_hh_l, b_ih_l, b_hh_l) in enumerate(layer_params):
        in_dim = int(w_ih_l.shape[1])
        w_ih_t = np.asarray(w_ih_l, np.float32).T      # (in_dim, 4H)
        w_hh_t = np.asarray(w_hh_l, np.float32).T      # (H, 4H)
        b_sum = np.asarray(b_ih_l, np.float32) + np.asarray(b_hh_l, np.float32)
        for g_new, g_old in enumerate(perm):
            src = slice(g_old * H, (g_old + 1) * H)
            dst = slice(g_new * H, (g_new + 1) * H)
            wih[l, :in_dim, dst] = w_ih_t[:, src]
            whh[l, :H, dst] = w_hh_t[:, src]
            b[l, 0, dst] = b_sum[src]

    wo = np.asarray(w_out, np.float32).reshape(1, H)
    bo = np.asarray(b_out, np.float32).reshape(1, 1)

    return (jnp.asarray(wih, jnp.bfloat16), jnp.asarray(whh, jnp.bfloat16),
            jnp.asarray(b), jnp.asarray(wo), jnp.asarray(bo), Hp)


def lstm_discriminator_forward(x, layer_params, w_out, b_out, *, h_dim,
                               num_batch_tiles=None):
    """x: (B, S, dim) f32, PyTorch-layout params.  Returns (B, 1) f32 logits."""
    B, S, dim = x.shape
    L = len(layer_params)
    H = h_dim
    G = 4 * H
    wih, whh, b, wo, bo, Hp = pack_lstm_params(layer_params, w_out, b_out, h_dim)

    # Batch tiling: one tile for single-TC chips (v5e/v6e), one tile per TC
    # on v7x.  Each tile is sublane-aligned (multiple of 8 rows).
    if num_batch_tiles is None:
        num_batch_tiles = _default_num_batch_tiles()
    tiles = max(1, min(int(num_batch_tiles), max(1, _round_up(B, 8) // 8)))
    TB = _round_up(-(-B // tiles), 8)
    tiles = -(-B // TB)
    Bp = TB * tiles

    # Time-major, batch-padded, feature-padded-to-Hp input (padded W_ih rows
    # are zero, so padded features are inert; padded batch rows are sliced off).
    x_pad = jnp.pad(jnp.asarray(x, jnp.float32),
                    ((0, Bp - B), (0, 0), (0, Hp - dim)))
    x_tm = jnp.transpose(x_pad, (1, 0, 2))                 # (S, Bp, Hp)

    kernel = functools.partial(_lstm_disc_kernel, num_layers=L, seq_len=S,
                               h_dim=H, h_pad=Hp, tb=TB)

    # VMEM budget for the resident-weights layout, ~25% headroom, small floor.
    lane = lambda n: _round_up(n, 128)
    sub = lambda n: _round_up(n, 8)
    vmem_bytes = (
        2 * S * sub(TB) * lane(Hp) * 4          # x block (f32), double-buffered
        + 2 * 2 * L * sub(Hp) * lane(G) * 2     # wih + whh (bf16), double-buffered
        + 2 * L * sub(1) * lane(G) * 4          # bias
        + 2 * sub(1) * lane(H) * 4              # wo
        + 2 * sub(1) * lane(1) * 4              # bo
        + 2 * sub(TB) * lane(1) * 4             # out block
        + S * sub(TB) * lane(Hp) * 4            # seq scratch (f32)
        + S * sub(TB) * lane(G) * 2             # gx scratch (bf16)
    )
    vmem_bytes = max(int(vmem_bytes * 1.25), 4 << 20)

    out_pad = pl.pallas_call(
        kernel,
        out_shape=jax.ShapeDtypeStruct((Bp, 1), jnp.float32),
        grid_spec=pltpu.PrefetchScalarGridSpec(
            num_scalar_prefetch=0,
            grid=(tiles,),
            in_specs=[
                pl.BlockSpec((S, TB, Hp), lambda bt: (0, bt, 0)),   # x
                pl.BlockSpec((L, Hp, G), lambda bt: (0, 0, 0)),     # wih (resident)
                pl.BlockSpec((L, Hp, G), lambda bt: (0, 0, 0)),     # whh (resident)
                pl.BlockSpec((L, 1, G), lambda bt: (0, 0, 0)),      # b
                pl.BlockSpec((1, H), lambda bt: (0, 0)),            # wo
                pl.BlockSpec((1, 1), lambda bt: (0, 0)),            # bo
            ],
            out_specs=pl.BlockSpec((TB, 1), lambda bt: (bt, 0)),
            scratch_shapes=[
                pltpu.VMEM((S, TB, Hp), jnp.float32),     # hidden sequence
                pltpu.VMEM((S, TB, G), jnp.bfloat16),     # hoisted projection
            ],
        ),
        compiler_params=pltpu.CompilerParams(
            dimension_semantics=("parallel",),
            vmem_limit_bytes=vmem_bytes,
        ),
    )(x_tm, wih, whh, b, wo, bo)
    return out_pad[:B]


# ---------------------------------------------------------------------------
# Pure-JAX f32 reference (mirrors torch.nn.LSTM + Linear) for validation.
# ---------------------------------------------------------------------------
def _reference(x, layer_params, w_out, b_out, *, h_dim):
    B, S, _ = x.shape
    layer_in = x
    h = None
    for (w_ih, w_hh, b_ih, b_hh) in layer_params:
        h = jnp.zeros((B, h_dim), jnp.float32)
        c = jnp.zeros((B, h_dim), jnp.float32)
        outs = []
        for t in range(S):
            xt = layer_in[:, t, :]
            g = xt @ w_ih.T + b_ih + h @ w_hh.T + b_hh
            i_g = jax.nn.sigmoid(g[:, 0 * h_dim:1 * h_dim])
            f_g = jax.nn.sigmoid(g[:, 1 * h_dim:2 * h_dim])
            g_g = jnp.tanh(g[:, 2 * h_dim:3 * h_dim])
            o_g = jax.nn.sigmoid(g[:, 3 * h_dim:4 * h_dim])
            c = f_g * c + i_g * g_g
            h = o_g * jnp.tanh(c)
            outs.append(h)
        layer_in = jnp.stack(outs, axis=1)
    return h @ w_out.T + b_out


if __name__ == "__main__":
    # Small shapes consistent with the module defaults (h_dim=64, dim=4, 4 layers).
    B, S, DIM, H, L = 16, 8, 4, 64, 4

    key = jax.random.PRNGKey(0)
    keys = iter(jax.random.split(key, 4 * L + 3))
    k_lstm = 1.0 / np.sqrt(H)

    layer_params = []
    for l in range(L):
        in_dim = DIM if l == 0 else H
        w_ih = jax.random.uniform(next(keys), (4 * H, in_dim),
                                  minval=-k_lstm, maxval=k_lstm)
        w_hh = jax.random.uniform(next(keys), (4 * H, H),
                                  minval=-k_lstm, maxval=k_lstm)
        b_ih = jax.random.uniform(next(keys), (4 * H,),
                                  minval=-k_lstm, maxval=k_lstm)
        b_hh = jax.random.uniform(next(keys), (4 * H,),
                                  minval=-k_lstm, maxval=k_lstm)
        layer_params.append((w_ih, w_hh, b_ih, b_hh))

    k_lin = 1.0 / np.sqrt(H)
    w_out = jax.random.uniform(next(keys), (1, H), minval=-k_lin, maxval=k_lin)
    b_out = jax.random.uniform(next(keys), (1,), minval=-k_lin, maxval=k_lin)

    x = jax.random.normal(next(keys), (B, S, DIM), jnp.float32)

    out = lstm_discriminator_forward(x, layer_params, w_out, b_out, h_dim=H)
    out = jax.block_until_ready(out)

    ref = _reference(x, layer_params, w_out, b_out, h_dim=H)
    # Intentionally loosened tolerance: weights / matmul operands / gx cache
    # are bf16 (accumulation in f32).
    np.testing.assert_allclose(np.asarray(out), np.asarray(ref),
                               rtol=5e-2, atol=5e-2)
    assert out.shape == (B, 1)
    print("KERNEL_OK")
</pallas_src>

<mosaic_0001>
module attributes {stable_mosaic.version = 11 : i64} {
  func.func @_lstm_disc_kernel(%arg0: i32, %arg1: memref<8x16x64xf32, #tpu.memory_space<vmem>>, %arg2: memref<4x64x256xbf16, #tpu.memory_space<vmem>>, %arg3: memref<4x64x256xbf16, #tpu.memory_space<vmem>>, %arg4: memref<4x1x256xf32, #tpu.memory_space<vmem>>, %arg5: memref<1x64xf32, #tpu.memory_space<vmem>>, %arg6: memref<1x1xf32, #tpu.memory_space<vmem>>, %arg7: memref<16x1xf32, #tpu.memory_space<vmem>>, %arg8: memref<8x16x64xf32, #tpu.memory_space<vmem>>, %arg9: memref<8x16x256xbf16, #tpu.memory_space<vmem>>) attributes {dimension_semantics = [#tpu.dimension_semantics<parallel>], iteration_bounds = array<i64: 1>, scalar_prefetch = 0 : i64, scratch_operands = 2 : i64, tpu.core_type = #tpu.core_type<tc>, window_params = [{transform_indices = @transform_0, window_bounds = array<i64: 8, 16, 64>}, {pipeline_mode = #tpu.pipeline_mode<synchronous>, transform_indices = @transform_1, window_bounds = array<i64: 4, 64, 256>}, {pipeline_mode = #tpu.pipeline_mode<synchronous>, transform_indices = @transform_2, window_bounds = array<i64: 4, 64, 256>}, {pipeline_mode = #tpu.pipeline_mode<synchronous>, transform_indices = @transform_3, window_bounds = array<i64: 4, 1, 256>}, {pipeline_mode = #tpu.pipeline_mode<synchronous>, transform_indices = @transform_4, window_bounds = array<i64: 1, 64>}, {pipeline_mode = #tpu.pipeline_mode<synchronous>, transform_indices = @transform_5, window_bounds = array<i64: 1, 1>}, {transform_indices = @transform_6, window_bounds = array<i64: 16, 1>}]} {
    %c0 = arith.constant 0 : index
    %c0_0 = arith.constant 0 : index
    %c0_1 = arith.constant 0 : index
    %0 = vector.load %arg2[%c0, %c0_0, %c0_1] : memref<4x64x256xbf16, #tpu.memory_space<vmem>>, vector<1x64x256xbf16>
    %1 = vector.shape_cast %0 : vector<1x64x256xbf16> to vector<64x256xbf16>
    %c0_2 = arith.constant 0 : index
    %c0_3 = arith.constant 0 : index
    %c0_4 = arith.constant 0 : index
    %2 = vector.load %arg3[%c0_2, %c0_3, %c0_4] : memref<4x64x256xbf16, #tpu.memory_space<vmem>>, vector<1x64x256xbf16>
    %3 = vector.shape_cast %2 : vector<1x64x256xbf16> to vector<64x256xbf16>
    %c0_5 = arith.constant 0 : index
    %c0_6 = arith.constant 0 : index
    %c0_7 = arith.constant 0 : index
    %4 = vector.load %arg4[%c0_5, %c0_6, %c0_7] : memref<4x1x256xf32, #tpu.memory_space<vmem>>, vector<1x1x256xf32>
    %5 = vector.shape_cast %4 : vector<1x1x256xf32> to vector<1x256xf32>
    %c0_8 = arith.constant 0 : index
    %c0_9 = arith.constant 0 : index
    %c0_10 = arith.constant 0 : index
    %6 = vector.load %arg1[%c0_8, %c0_9, %c0_10] : memref<8x16x64xf32, #tpu.memory_space<vmem>>, vector<8x16x64xf32>
    %7 = vector.shape_cast %6 : vector<8x16x64xf32> to vector<128x64xf32>
    %8 = arith.truncf %7 : vector<128x64xf32> to vector<128x64xbf16>
    %cst = arith.constant dense<0.000000e+00> : vector<128x256xf32>
    %9 = tpu.matmul %8, %1, %cst {dimension_numbers = #tpu.dot_dimension_numbers<[1], [0], [0], [1], [0, 0, 1, 1], [], []>} : vector<128x64xbf16>, vector<64x256xbf16>, vector<128x256xf32> -> vector<128x256xf32>
    %10 = vector.broadcast %5 : vector<1x256xf32> to vector<128x256xf32>
    %11 = arith.addf %9, %10 : vector<128x256xf32>
    %12 = vector.shape_cast %11 : vector<128x256xf32> to vector<8x16x256xf32>
    %13 = arith.truncf %12 : vector<8x16x256xf32> to vector<8x16x256xbf16>
    %c0_11 = arith.constant 0 : index
    %c0_12 = arith.constant 0 : index
    %c0_13 = arith.constant 0 : index
    %14 = vector.load %arg9[%c0_11, %c0_12, %c0_13] : memref<8x16x256xbf16, #tpu.memory_space<vmem>>, vector<8x16x256xbf16>
    tpu.vector_store %arg9[%c0_11, %c0_12, %c0_13], %13 {strides = array<i32>} : memref<8x16x256xbf16, #tpu.memory_space<vmem>>, vector<8x16x256xbf16>,
    %c0_14 = arith.constant 0 : index
    %c0_15 = arith.constant 0 : index
    %c0_16 = arith.constant 0 : index
    %15 = vector.load %arg9[%c0_14, %c0_15, %c0_16] : memref<8x16x256xbf16, #tpu.memory_space<vmem>>, vector<1x16x256xbf16>
    %16 = vector.shape_cast %15 : vector<1x16x256xbf16> to vector<16x256xbf16>
    %17 = arith.extf %16 : vector<16x256xbf16> to vector<16x256xf32>
    %cst_17 = arith.constant 0.000000e+00 : f32
    %18 = vector.broadcast %cst_17 : f32 to vector<16x64xf32>
    %19 = vector.extract_strided_slice %17 {offsets = [0, 0], sizes = [16, 192], strides = [1, 1]} : vector<16x256xf32> to vector<16x192xf32>
    %20 = arith.negf %19 : vector<16x192xf32>
    %21 = math.exp %20 : vector<16x192xf32>
    %cst_18 = arith.constant 1.000000e+00 : f32
    %22 = vector.broadcast %cst_18 : f32 to vector<16x192xf32>
    %23 = arith.addf %22, %21 : vector<16x192xf32>
    %24 = arith.divf %22, %23 : vector<16x192xf32>
    %25 = vector.extract_strided_slice %24 {offsets = [0, 0], sizes = [16, 64], strides = [1, 1]} : vector<16x192xf32> to vector<16x64xf32>
    %26 = vector.extract_strided_slice %24 {offsets = [0, 64], sizes = [16, 64], strides = [1, 1]} : vector<16x192xf32> to vector<16x64xf32>
    %27 = vector.extract_strided_slice %24 {offsets = [0, 128], sizes = [16, 64], strides = [1, 1]} : vector<16x192xf32> to vector<16x64xf32>
    %28 = vector.extract_strided_slice %17 {offsets = [0, 192], sizes = [16, 64], strides = [1, 1]} : vector<16x256xf32> to vector<16x64xf32>
    %29 = math.tanh %28 : vector<16x64xf32>
    %30 = arith.mulf %26, %18 : vector<16x64xf32>
    %31 = arith.mulf %25, %29 : vector<16x64xf32>
    %32 = arith.addf %30, %31 : vector<16x64xf32>
    %33 = math.tanh %32 : vector<16x64xf32>
    %34 = arith.mulf %27, %33 : vector<16x64xf32>
    %c0_19 = arith.constant 0 : index
    %c0_20 = arith.constant 0 : index
    %c0_21 = arith.constant 0 : index
    %35 = vector.load %arg8[%c0_19, %c0_20, %c0_21] : memref<8x16x64xf32, #tpu.memory_space<vmem>>, vector<1x16x64xf32>
    %36 = vector.shape_cast %35 : vector<1x16x64xf32> to vector<16x64xf32>
    %37 = vector.shape_cast %34 : vector<16x64xf32> to vector<1x16x64xf32>
    tpu.vector_store %arg8[%c0_19, %c0_20, %c0_21], %37 {strides = array<i32>} : memref<8x16x64xf32, #tpu.memory_space<vmem>>, vector<1x16x64xf32>,
    %c1_i32 = arith.constant 1 : i32
    %38 = arith.truncf %34 : vector<16x64xf32> to vector<16x64xbf16>
    %cst_22 = arith.constant dense<0.000000e+00> : vector<16x256xf32>
    %39 = tpu.matmul %38, %3, %cst_22 {dimension_numbers = #tpu.dot_dimension_numbers<[1], [0], [0], [1], [0, 0, 1, 1], [], []>} : vector<16x64xbf16>, vector<64x256xbf16>, vector<16x256xf32> -> vector<16x256xf32>
    %40 = arith.index_cast %c1_i32 : i32 to index
    %c0_23 = arith.constant 0 : index
    %c0_24 = arith.constant 0 : index
    %41 = vector.load %arg9[%40, %c0_23, %c0_24] : memref<8x16x256xbf16, #tpu.memory_space<vmem>>, vector<1x16x256xbf16>
    %42 = vector.shape_cast %41 : vector<1x16x256xbf16> to vector<16x256xbf16>
    %43 = arith.extf %42 : vector<16x256xbf16> to vector<16x256xf32>
    %44 = arith.addf %43, %39 : vector<16x256xf32>
    %45 = vector.extract_strided_slice %44 {offsets = [0, 0], sizes = [16, 192], strides = [1, 1]} : vector<16x256xf32> to vector<16x192xf32>
    %46 = arith.negf %45 : vector<16x192xf32>
    %47 = math.exp %46 : vector<16x192xf32>
    %cst_25 = arith.constant 1.000000e+00 : f32
    %48 = vector.broadcast %cst_25 : f32 to vector<16x192xf32>
    %49 = arith.addf %48, %47 : vector<16x192xf32>
    %50 = arith.divf %48, %49 : vector<16x192xf32>
    %51 = vector.extract_strided_slice %50 {offsets = [0, 0], sizes = [16, 64], strides = [1, 1]} : vector<16x192xf32> to vector<16x64xf32>
    %52 = vector.extract_strided_slice %50 {offsets = [0, 64], sizes = [16, 64], strides = [1, 1]} : vector<16x192xf32> to vector<16x64xf32>
    %53 = vector.extract_strided_slice %50 {offsets = [0, 128], sizes = [16, 64], strides = [1, 1]} : vector<16x192xf32> to vector<16x64xf32>
    %54 = vector.extract_strided_slice %44 {offsets = [0, 192], sizes = [16, 64], strides = [1, 1]} : vector<16x256xf32> to vector<16x64xf32>
    %55 = math.tanh %54 : vector<16x64xf32>
    %56 = arith.mulf %52, %32 : vector<16x64xf32>
    %57 = arith.mulf %51, %55 : vector<16x64xf32>
    %58 = arith.addf %56, %57 : vector<16x64xf32>
    %59 = math.tanh %58 : vector<16x64xf32>
    %60 = arith.mulf %53, %59 : vector<16x64xf32>
    %61 = arith.index_cast %c1_i32 : i32 to index
    %c0_26 = arith.constant 0 : index
    %c0_27 = arith.constant 0 : index
    %62 = vector.load %arg8[%61, %c0_26, %c0_27] : memref<8x16x64xf32, #tpu.memory_space<vmem>>, vector<1x16x64xf32>
    %63 = vector.shape_cast %62 : vector<1x16x64xf32> to vector<16x64xf32>
    %64 = vector.shape_cast %60 : vector<16x64xf32> to vector<1x16x64xf32>
    tpu.vector_store %arg8[%61, %c0_26, %c0_27], %64 {strides = array<i32>} : memref<8x16x64xf32, #tpu.memory_space<vmem>>, vector<1x16x64xf32>,
    %c2_i32 = arith.constant 2 : i32
    %65 = arith.truncf %60 : vector<16x64xf32> to vector<16x64xbf16>
    %cst_28 = arith.constant dense<0.000000e+00> : vector<16x256xf32>
    %66 = tpu.matmul %65, %3, %cst_28 {dimension_numbers = #tpu.dot_dimension_numbers<[1], [0], [0], [1], [0, 0, 1, 1], [], []>} : vector<16x64xbf16>, vector<64x256xbf16>, vector<16x256xf32> -> vector<16x256xf32>
    %67 = arith.index_cast %c2_i32 : i32 to index
    %c0_29 = arith.constant 0 : index
    %c0_30 = arith.constant 0 : index
    %68 = vector.load %arg9[%67, %c0_29, %c0_30] : memref<8x16x256xbf16, #tpu.memory_space<vmem>>, vector<1x16x256xbf16>
    %69 = vector.shape_cast %68 : vector<1x16x256xbf16> to vector<16x256xbf16>
    %70 = arith.extf %69 : vector<16x256xbf16> to vector<16x256xf32>
    %71 = arith.addf %70, %66 : vector<16x256xf32>
    %72 = vector.extract_strided_slice %71 {offsets = [0, 0], sizes = [16, 192], strides = [1, 1]} : vector<16x256xf32> to vector<16x192xf32>
    %73 = arith.negf %72 : vector<16x192xf32>
    %74 = math.exp %73 : vector<16x192xf32>
    %cst_31 = arith.constant 1.000000e+00 : f32
    %75 = vector.broadcast %cst_31 : f32 to vector<16x192xf32>
    %76 = arith.addf %75, %74 : vector<16x192xf32>
    %77 = arith.divf %75, %76 : vector<16x192xf32>
    %78 = vector.extract_strided_slice %77 {offsets = [0, 0], sizes = [16, 64], strides = [1, 1]} : vector<16x192xf32> to vector<16x64xf32>
    %79 = vector.extract_strided_slice %77 {offsets = [0, 64], sizes = [16, 64], strides = [1, 1]} : vector<16x192xf32> to vector<16x64xf32>
    %80 = vector.extract_strided_slice %77 {offsets = [0, 128], sizes = [16, 64], strides = [1, 1]} : vector<16x192xf32> to vector<16x64xf32>
    %81 = vector.extract_strided_slice %71 {offsets = [0, 192], sizes = [16, 64], strides = [1, 1]} : vector<16x256xf32> to vector<16x64xf32>
    %82 = math.tanh %81 : vector<16x64xf32>
    %83 = arith.mulf %79, %58 : vector<16x64xf32>
    %84 = arith.mulf %78, %82 : vector<16x64xf32>
    %85 = arith.addf %83, %84 : vector<16x64xf32>
    %86 = math.tanh %85 : vector<16x64xf32>
    %87 = arith.mulf %80, %86 : vector<16x64xf32>
    %88 = arith.index_cast %c2_i32 : i32 to index
    %c0_32 = arith.constant 0 : index
    %c0_33 = arith.constant 0 : index
    %89 = vector.load %arg8[%88, %c0_32, %c0_33] : memref<8x16x64xf32, #tpu.memory_space<vmem>>, vector<1x16x64xf32>
    %90 = vector.shape_cast %89 : vector<1x16x64xf32> to vector<16x64xf32>
    %91 = vector.shape_cast %87 : vector<16x64xf32> to vector<1x16x64xf32>
    tpu.vector_store %arg8[%88, %c0_32, %c0_33], %91 {strides = array<i32>} : memref<8x16x64xf32, #tpu.memory_space<vmem>>, vector<1x16x64xf32>,
    %c3_i32 = arith.constant 3 : i32
    %92 = arith.truncf %87 : vector<16x64xf32> to vector<16x64xbf16>
    %cst_34 = arith.constant dense<0.000000e+00> : vector<16x256xf32>
    %93 = tpu.matmul %92, %3, %cst_34 {dimension_numbers = #tpu.dot_dimension_numbers<[1], [0], [0], [1], [0, 0, 1, 1], [], []>} : vector<16x64xbf16>, vector<64x256xbf16>, vector<16x256xf32> -> vector<16x256xf32>
    %94 = arith.index_cast %c3_i32 : i32 to index
    %c0_35 = arith.constant 0 : index
    %c0_36 = arith.constant 0 : index
    %95 = vector.load %arg9[%94, %c0_35, %c0_36] : memref<8x16x256xbf16, #tpu.memory_space<vmem>>, vector<1x16x256xbf16>
    %96 = vector.shape_cast %95 : vector<1x16x256xbf16> to vector<16x256xbf16>
    %97 = arith.extf %96 : vector<16x256xbf16> to vector<16x256xf32>
    %98 = arith.addf %97, %93 : vector<16x256xf32>
    %99 = vector.extract_strided_slice %98 {offsets = [0, 0], sizes = [16, 192], strides = [1, 1]} : vector<16x256xf32> to vector<16x192xf32>
    %100 = arith.negf %99 : vector<16x192xf32>
    %101 = math.exp %100 : vector<16x192xf32>
    %cst_37 = arith.constant 1.000000e+00 : f32
    %102 = vector.broadcast %cst_37 : f32 to vector<16x192xf32>
    %103 = arith.addf %102, %101 : vector<16x192xf32>
    %104 = arith.divf %102, %103 : vector<16x192xf32>
    %105 = vector.extract_strided_slice %104 {offsets = [0, 0], sizes = [16, 64], strides = [1, 1]} : vector<16x192xf32> to vector<16x64xf32>
    %106 = vector.extract_strided_slice %104 {offsets = [0, 64], sizes = [16, 64], strides = [1, 1]} : vector<16x192xf32> to vector<16x64xf32>
    %107 = vector.extract_strided_slice %104 {offsets = [0, 128], sizes = [16, 64], strides = [1, 1]} : vector<16x192xf32> to vector<16x64xf32>
    %108 = vector.extract_strided_slice %98 {offsets = [0, 192], sizes = [16, 64], strides = [1, 1]} : vector<16x256xf32> to vector<16x64xf32>
    %109 = math.tanh %108 : vector<16x64xf32>
    %110 = arith.mulf %106, %85 : vector<16x64xf32>
    %111 = arith.mulf %105, %109 : vector<16x64xf32>
    %112 = arith.addf %110, %111 : vector<16x64xf32>
    %113 = math.tanh %112 : vector<16x64xf32>
    %114 = arith.mulf %107, %113 : vector<16x64xf32>
    %115 = arith.index_cast %c3_i32 : i32 to index
    %c0_38 = arith.constant 0 : index
    %c0_39 = arith.constant 0 : index
    %116 = vector.load %arg8[%115, %c0_38, %c0_39] : memref<8x16x64xf32, #tpu.memory_space<vmem>>, vector<1x16x64xf32>
    %117 = vector.shape_cast %116 : vector<1x16x64xf32> to vector<16x64xf32>
    %118 = vector.shape_cast %114 : vector<16x64xf32> to vector<1x16x64xf32>
    tpu.vector_store %arg8[%115, %c0_38, %c0_39], %118 {strides = array<i32>} : memref<8x16x64xf32, #tpu.memory_space<vmem>>, vector<1x16x64xf32>,
    %c4_i32 = arith.constant 4 : i32
    %119 = arith.truncf %114 : vector<16x64xf32> to vector<16x64xbf16>
    %cst_40 = arith.constant dense<0.000000e+00> : vector<16x256xf32>
    %120 = tpu.matmul %119, %3, %cst_40 {dimension_numbers = #tpu.dot_dimension_numbers<[1], [0], [0], [1], [0, 0, 1, 1], [], []>} : vector<16x64xbf16>, vector<64x256xbf16>, vector<16x256xf32> -> vector<16x256xf32>
    %121 = arith.index_cast %c4_i32 : i32 to index
    %c0_41 = arith.constant 0 : index
    %c0_42 = arith.constant 0 : index
    %122 = vector.load %arg9[%121, %c0_41, %c0_42] : memref<8x16x256xbf16, #tpu.memory_space<vmem>>, vector<1x16x256xbf16>
    %123 = vector.shape_cast %122 : vector<1x16x256xbf16> to vector<16x256xbf16>
    %124 = arith.extf %123 : vector<16x256xbf16> to vector<16x256xf32>
    %125 = arith.addf %124, %120 : vector<16x256xf32>
    %126 = vector.extract_strided_slice %125 {offsets = [0, 0], sizes = [16, 192], strides = [1, 1]} : vector<16x256xf32> to vector<16x192xf32>
    %127 = arith.negf %126 : vector<16x192xf32>
    %128 = math.exp %127 : vector<16x192xf32>
    %cst_43 = arith.constant 1.000000e+00 : f32
    %129 = vector.broadcast %cst_43 : f32 to vector<16x192xf32>
    %130 = arith.addf %129, %128 : vector<16x192xf32>
    %131 = arith.divf %129, %130 : vector<16x192xf32>
    %132 = vector.extract_strided_slice %131 {offsets = [0, 0], sizes = [16, 64], strides = [1, 1]} : vector<16x192xf32> to vector<16x64xf32>
    %133 = vector.extract_strided_slice %131 {offsets = [0, 64], sizes = [16, 64], strides = [1, 1]} : vector<16x192xf32> to vector<16x64xf32>
    %134 = vector.extract_strided_slice %131 {offsets = [0, 128], sizes = [16, 64], strides = [1, 1]} : vector<16x192xf32> to vector<16x64xf32>
    %135 = vector.extract_strided_slice %125 {offsets = [0, 192], sizes = [16, 64], strides = [1, 1]} : vector<16x256xf32> to vector<16x64xf32>
    %136 = math.tanh %135 : vector<16x64xf32>
    %137 = arith.mulf %133, %112 : vector<16x64xf32>
    %138 = arith.mulf %132, %136 : vector<16x64xf32>
    %139 = arith.addf %137, %138 : vector<16x64xf32>
    %140 = math.tanh %139 : vector<16x64xf32>
    %141 = arith.mulf %134, %140 : vector<16x64xf32>
    %142 = arith.index_cast %c4_i32 : i32 to index
    %c0_44 = arith.constant 0 : index
    %c0_45 = arith.constant 0 : index
    %143 = vector.load %arg8[%142, %c0_44, %c0_45] : memref<8x16x64xf32, #tpu.memory_space<vmem>>, vector<1x16x64xf32>
    %144 = vector.shape_cast %143 : vector<1x16x64xf32> to vector<16x64xf32>
    %145 = vector.shape_cast %141 : vector<16x64xf32> to vector<1x16x64xf32>
    tpu.vector_store %arg8[%142, %c0_44, %c0_45], %145 {strides = array<i32>} : memref<8x16x64xf32, #tpu.memory_space<vmem>>, vector<1x16x64xf32>,
    %c5_i32 = arith.constant 5 : i32
    %146 = arith.truncf %141 : vector<16x64xf32> to vector<16x64xbf16>
    %cst_46 = arith.constant dense<0.000000e+00> : vector<16x256xf32>
    %147 = tpu.matmul %146, %3, %cst_46 {dimension_numbers = #tpu.dot_dimension_numbers<[1], [0], [0], [1], [0, 0, 1, 1], [], []>} : vector<16x64xbf16>, vector<64x256xbf16>, vector<16x256xf32> -> vector<16x256xf32>
    %148 = arith.index_cast %c5_i32 : i32 to index
    %c0_47 = arith.constant 0 : index
    %c0_48 = arith.constant 0 : index
    %149 = vector.load %arg9[%148, %c0_47, %c0_48] : memref<8x16x256xbf16, #tpu.memory_space<vmem>>, vector<1x16x256xbf16>
    %150 = vector.shape_cast %149 : vector<1x16x256xbf16> to vector<16x256xbf16>
    %151 = arith.extf %150 : vector<16x256xbf16> to vector<16x256xf32>
    %152 = arith.addf %151, %147 : vector<16x256xf32>
    %153 = vector.extract_strided_slice %152 {offsets = [0, 0], sizes = [16, 192], strides = [1, 1]} : vector<16x256xf32> to vector<16x192xf32>
    %154 = arith.negf %153 : vector<16x192xf32>
    %155 = math.exp %154 : vector<16x192xf32>
    %cst_49 = arith.constant 1.000000e+00 : f32
    %156 = vector.broadcast %cst_49 : f32 to vector<16x192xf32>
    %157 = arith.addf %156, %155 : vector<16x192xf32>
    %158 = arith.divf %156, %157 : vector<16x192xf32>
    %159 = vector.extract_strided_slice %158 {offsets = [0, 0], sizes = [16, 64], strides = [1, 1]} : vector<16x192xf32> to vector<16x64xf32>
    %160 = vector.extract_strided_slice %158 {offsets = [0, 64], sizes = [16, 64], strides = [1, 1]} : vector<16x192xf32> to vector<16x64xf32>
    %161 = vector.extract_strided_slice %158 {offsets = [0, 128], sizes = [16, 64], strides = [1, 1]} : vector<16x192xf32> to vector<16x64xf32>
    %162 = vector.extract_strided_slice %152 {offsets = [0, 192], sizes = [16, 64], strides = [1, 1]} : vector<16x256xf32> to vector<16x64xf32>
    %163 = math.tanh %162 : vector<16x64xf32>
    %164 = arith.mulf %160, %139 : vector<16x64xf32>
    %165 = arith.mulf %159, %163 : vector<16x64xf32>
    %166 = arith.addf %164, %165 : vector<16x64xf32>
    %167 = math.tanh %166 : vector<16x64xf32>
    %168 = arith.mulf %161, %167 : vector<16x64xf32>
    %169 = arith.index_cast %c5_i32 : i32 to index
    %c0_50 = arith.constant 0 : index
    %c0_51 = arith.constant 0 : index
    %170 = vector.load %arg8[%169, %c0_50, %c0_51] : memref<8x16x64xf32, #tpu.memory_space<vmem>>, vector<1x16x64xf32>
    %171 = vector.shape_cast %170 : vector<1x16x64xf32> to vector<16x64xf32>
    %172 = vector.shape_cast %168 : vector<16x64xf32> to vector<1x16x64xf32>
    tpu.vector_store %arg8[%169, %c0_50, %c0_51], %172 {strides = array<i32>} : memref<8x16x64xf32, #tpu.memory_space<vmem>>, vector<1x16x64xf32>,
    %c6_i32 = arith.constant 6 : i32
    %173 = arith.truncf %168 : vector<16x64xf32> to vector<16x64xbf16>
    %cst_52 = arith.constant dense<0.000000e+00> : vector<16x256xf32>
    %174 = tpu.matmul %173, %3, %cst_52 {dimension_numbers = #tpu.dot_dimension_numbers<[1], [0], [0], [1], [0, 0, 1, 1], [], []>} : vector<16x64xbf16>, vector<64x256xbf16>, vector<16x256xf32> -> vector<16x256xf32>
    %175 = arith.index_cast %c6_i32 : i32 to index
    %c0_53 = arith.constant 0 : index
    %c0_54 = arith.constant 0 : index
    %176 = vector.load %arg9[%175, %c0_53, %c0_54] : memref<8x16x256xbf16, #tpu.memory_space<vmem>>, vector<1x16x256xbf16>
    %177 = vector.shape_cast %176 : vector<1x16x256xbf16> to vector<16x256xbf16>
    %178 = arith.extf %177 : vector<16x256xbf16> to vector<16x256xf32>
    %179 = arith.addf %178, %174 : vector<16x256xf32>
    %180 = vector.extract_strided_slice %179 {offsets = [0, 0], sizes = [16, 192], strides = [1, 1]} : vector<16x256xf32> to vector<16x192xf32>
    %181 = arith.negf %180 : vector<16x192xf32>
    %182 = math.exp %181 : vector<16x192xf32>
    %cst_55 = arith.constant 1.000000e+00 : f32
    %183 = vector.broadcast %cst_55 : f32 to vector<16x192xf32>
    %184 = arith.addf %183, %182 : vector<16x192xf32>
    %185 = arith.divf %183, %184 : vector<16x192xf32>
    %186 = vector.extract_strided_slice %185 {offsets = [0, 0], sizes = [16, 64], strides = [1, 1]} : vector<16x192xf32> to vector<16x64xf32>
    %187 = vector.extract_strided_slice %185 {offsets = [0, 64], sizes = [16, 64], strides = [1, 1]} : vector<16x192xf32> to vector<16x64xf32>
    %188 = vector.extract_strided_slice %185 {offsets = [0, 128], sizes = [16, 64], strides = [1, 1]} : vector<16x192xf32> to vector<16x64xf32>
    %189 = vector.extract_strided_slice %179 {offsets = [0, 192], sizes = [16, 64], strides = [1, 1]} : vector<16x256xf32> to vector<16x64xf32>
    %190 = math.tanh %189 : vector<16x64xf32>
    %191 = arith.mulf %187, %166 : vector<16x64xf32>
    %192 = arith.mulf %186, %190 : vector<16x64xf32>
    %193 = arith.addf %191, %192 : vector<16x64xf32>
    %194 = math.tanh %193 : vector<16x64xf32>
    %195 = arith.mulf %188, %194 : vector<16x64xf32>
    %196 = arith.index_cast %c6_i32 : i32 to index
    %c0_56 = arith.constant 0 : index
    %c0_57 = arith.constant 0 : index
    %197 = vector.load %arg8[%196, %c0_56, %c0_57] : memref<8x16x64xf32, #tpu.memory_space<vmem>>, vector<1x16x64xf32>
    %198 = vector.shape_cast %197 : vector<1x16x64xf32> to vector<16x64xf32>
    %199 = vector.shape_cast %195 : vector<16x64xf32> to vector<1x16x64xf32>
    tpu.vector_store %arg8[%196, %c0_56, %c0_57], %199 {strides = array<i32>} : memref<8x16x64xf32, #tpu.memory_space<vmem>>, vector<1x16x64xf32>,
    %c7_i32 = arith.constant 7 : i32
    %200 = arith.truncf %195 : vector<16x64xf32> to vector<16x64xbf16>
    %cst_58 = arith.constant dense<0.000000e+00> : vector<16x256xf32>
    %201 = tpu.matmul %200, %3, %cst_58 {dimension_numbers = #tpu.dot_dimension_numbers<[1], [0], [0], [1], [0, 0, 1, 1], [], []>} : vector<16x64xbf16>, vector<64x256xbf16>, vector<16x256xf32> -> vector<16x256xf32>
    %202 = arith.index_cast %c7_i32 : i32 to index
    %c0_59 = arith.constant 0 : index
    %c0_60 = arith.constant 0 : index
    %203 = vector.load %arg9[%202, %c0_59, %c0_60] : memref<8x16x256xbf16, #tpu.memory_space<vmem>>, vector<1x16x256xbf16>
    %204 = vector.shape_cast %203 : vector<1x16x256xbf16> to vector<16x256xbf16>
    %205 = arith.extf %204 : vector<16x256xbf16> to vector<16x256xf32>
    %206 = arith.addf %205, %201 : vector<16x256xf32>
    %207 = vector.extract_strided_slice %206 {offsets = [0, 0], sizes = [16, 192], strides = [1, 1]} : vector<16x256xf32> to vector<16x192xf32>
    %208 = arith.negf %207 : vector<16x192xf32>
    %209 = math.exp %208 : vector<16x192xf32>
    %cst_61 = arith.constant 1.000000e+00 : f32
    %210 = vector.broadcast %cst_61 : f32 to vector<16x192xf32>
    %211 = arith.addf %210, %209 : vector<16x192xf32>
    %212 = arith.divf %210, %211 : vector<16x192xf32>
    %213 = vector.extract_strided_slice %212 {offsets = [0, 0], sizes = [16, 64], strides = [1, 1]} : vector<16x192xf32> to vector<16x64xf32>
    %214 = vector.extract_strided_slice %212 {offsets = [0, 64], sizes = [16, 64], strides = [1, 1]} : vector<16x192xf32> to vector<16x64xf32>
    %215 = vector.extract_strided_slice %212 {offsets = [0, 128], sizes = [16, 64], strides = [1, 1]} : vector<16x192xf32> to vector<16x64xf32>
    %216 = vector.extract_strided_slice %206 {offsets = [0, 192], sizes = [16, 64], strides = [1, 1]} : vector<16x256xf32> to vector<16x64xf32>
    %217 = math.tanh %216 : vector<16x64xf32>
    %218 = arith.mulf %214, %193 : vector<16x64xf32>
    %219 = arith.mulf %213, %217 : vector<16x64xf32>
    %220 = arith.addf %218, %219 : vector<16x64xf32>
    %221 = math.tanh %220 : vector<16x64xf32>
    %222 = arith.mulf %215, %221 : vector<16x64xf32>
    %223 = arith.index_cast %c7_i32 : i32 to index
    %c0_62 = arith.constant 0 : index
    %c0_63 = arith.constant 0 : index
    %224 = vector.load %arg8[%223, %c0_62, %c0_63] : memref<8x16x64xf32, #tpu.memory_space<vmem>>, vector<1x16x64xf32>
    %225 = vector.shape_cast %224 : vector<1x16x64xf32> to vector<16x64xf32>
    %226 = vector.shape_cast %222 : vector<16x64xf32> to vector<1x16x64xf32>
    tpu.vector_store %arg8[%223, %c0_62, %c0_63], %226 {strides = array<i32>} : memref<8x16x64xf32, #tpu.memory_space<vmem>>, vector<1x16x64xf32>,
    %c7_i32_64 = arith.constant 7 : i32
    %c1 = arith.constant 1 : index
    %c0_65 = arith.constant 0 : index
    %c0_66 = arith.constant 0 : index
    %227 = vector.load %arg2[%c1, %c0_65, %c0_66] : memref<4x64x256xbf16, #tpu.memory_space<vmem>>, vector<1x64x256xbf16>
    %228 = vector.shape_cast %227 : vector<1x64x256xbf16> to vector<64x256xbf16>
    %c1_67 = arith.constant 1 : index
    %c0_68 = arith.constant 0 : index
    %c0_69 = arith.constant 0 : index
    %229 = vector.load %arg3[%c1_67, %c0_68, %c0_69] : memref<4x64x256xbf16, #tpu.memory_space<vmem>>, vector<1x64x256xbf16>
    %230 = vector.shape_cast %229 : vector<1x64x256xbf16> to vector<64x256xbf16>
    %c1_70 = arith.constant 1 : index
    %c0_71 = arith.constant 0 : index
    %c0_72 = arith.constant 0 : index
    %231 = vector.load %arg4[%c1_70, %c0_71, %c0_72] : memref<4x1x256xf32, #tpu.memory_space<vmem>>, vector<1x1x256xf32>
    %232 = vector.shape_cast %231 : vector<1x1x256xf32> to vector<1x256xf32>
    %c0_73 = arith.constant 0 : index
    %c0_74 = arith.constant 0 : index
    %c0_75 = arith.constant 0 : index
    %233 = vector.load %arg8[%c0_73, %c0_74, %c0_75] : memref<8x16x64xf32, #tpu.memory_space<vmem>>, vector<8x16x64xf32>
    %234 = vector.shape_cast %233 : vector<8x16x64xf32> to vector<128x64xf32>
    %235 = arith.truncf %234 : vector<128x64xf32> to vector<128x64xbf16>
    %cst_76 = arith.constant dense<0.000000e+00> : vector<128x256xf32>
    %236 = tpu.matmul %235, %228, %cst_76 {dimension_numbers = #tpu.dot_dimension_numbers<[1], [0], [0], [1], [0, 0, 1, 1], [], []>} : vector<128x64xbf16>, vector<64x256xbf16>, vector<128x256xf32> -> vector<128x256xf32>
    %237 = vector.broadcast %232 : vector<1x256xf32> to vector<128x256xf32>
    %238 = arith.addf %236, %237 : vector<128x256xf32>
    %239 = vector.shape_cast %238 : vector<128x256xf32> to vector<8x16x256xf32>
    %240 = arith.truncf %239 : vector<8x16x256xf32> to vector<8x16x256xbf16>
    %c0_77 = arith.constant 0 : index
    %c0_78 = arith.constant 0 : index
    %c0_79 = arith.constant 0 : index
    %241 = vector.load %arg9[%c0_77, %c0_78, %c0_79] : memref<8x16x256xbf16, #tpu.memory_space<vmem>>, vector<8x16x256xbf16>
    tpu.vector_store %arg9[%c0_77, %c0_78, %c0_79], %240 {strides = array<i32>} : memref<8x16x256xbf16, #tpu.memory_space<vmem>>, vector<8x16x256xbf16>,
    %c0_80 = arith.constant 0 : index
    %c0_81 = arith.constant 0 : index
    %c0_82 = arith.constant 0 : index
    %242 = vector.load %arg9[%c0_80, %c0_81, %c0_82] : memref<8x16x256xbf16, #tpu.memory_space<vmem>>, vector<1x16x256xbf16>
    %243 = vector.shape_cast %242 : vector<1x16x256xbf16> to vector<16x256xbf16>
    %244 = arith.extf %243 : vector<16x256xbf16> to vector<16x256xf32>
    %cst_83 = arith.constant 0.000000e+00 : f32
    %245 = vector.broadcast %cst_83 : f32 to vector<16x64xf32>
    %246 = vector.extract_strided_slice %244 {offsets = [0, 0], sizes = [16, 192], strides = [1, 1]} : vector<16x256xf32> to vector<16x192xf32>
    %247 = arith.negf %246 : vector<16x192xf32>
    %248 = math.exp %247 : vector<16x192xf32>
    %cst_84 = arith.constant 1.000000e+00 : f32
    %249 = vector.broadcast %cst_84 : f32 to vector<16x192xf32>
    %250 = arith.addf %249, %248 : vector<16x192xf32>
    %251 = arith.divf %249, %250 : vector<16x192xf32>
    %252 = vector.extract_strided_slice %251 {offsets = [0, 0], sizes = [16, 64], strides = [1, 1]} : vector<16x192xf32> to vector<16x64xf32>
    %253 = vector.extract_strided_slice %251 {offsets = [0, 64], sizes = [16, 64], strides = [1, 1]} : vector<16x192xf32> to vector<16x64xf32>
    %254 = vector.extract_strided_slice %251 {offsets = [0, 128], sizes = [16, 64], strides = [1, 1]} : vector<16x192xf32> to vector<16x64xf32>
    %255 = vector.extract_strided_slice %244 {offsets = [0, 192], sizes = [16, 64], strides = [1, 1]} : vector<16x256xf32> to vector<16x64xf32>
    %256 = math.tanh %255 : vector<16x64xf32>
    %257 = arith.mulf %253, %245 : vector<16x64xf32>
    %258 = arith.mulf %252, %256 : vector<16x64xf32>
    %259 = arith.addf %257, %258 : vector<16x64xf32>
    %260 = math.tanh %259 : vector<16x64xf32>
    %261 = arith.mulf %254, %260 : vector<16x64xf32>
    %c0_85 = arith.constant 0 : index
    %c0_86 = arith.constant 0 : index
    %c0_87 = arith.constant 0 : index
    %262 = vector.load %arg8[%c0_85, %c0_86, %c0_87] : memref<8x16x64xf32, #tpu.memory_space<vmem>>, vector<1x16x64xf32>
    %263 = vector.shape_cast %262 : vector<1x16x64xf32> to vector<16x64xf32>
    %264 = vector.shape_cast %261 : vector<16x64xf32> to vector<1x16x64xf32>
    tpu.vector_store %arg8[%c0_85, %c0_86, %c0_87], %264 {strides = array<i32>} : memref<8x16x64xf32, #tpu.memory_space<vmem>>, vector<1x16x64xf32>,
    %c1_i32_88 = arith.constant 1 : i32
    %265 = arith.truncf %261 : vector<16x64xf32> to vector<16x64xbf16>
    %cst_89 = arith.constant dense<0.000000e+00> : vector<16x256xf32>
    %266 = tpu.matmul %265, %230, %cst_89 {dimension_numbers = #tpu.dot_dimension_numbers<[1], [0], [0], [1], [0, 0, 1, 1], [], []>} : vector<16x64xbf16>, vector<64x256xbf16>, vector<16x256xf32> -> vector<16x256xf32>
    %267 = arith.index_cast %c1_i32_88 : i32 to index
    %c0_90 = arith.constant 0 : index
    %c0_91 = arith.constant 0 : index
    %268 = vector.load %arg9[%267, %c0_90, %c0_91] : memref<8x16x256xbf16, #tpu.memory_space<vmem>>, vector<1x16x256xbf16>
    %269 = vector.shape_cast %268 : vector<1x16x256xbf16> to vector<16x256xbf16>
    %270 = arith.extf %269 : vector<16x256xbf16> to vector<16x256xf32>
    %271 = arith.addf %270, %266 : vector<16x256xf32>
    %272 = vector.extract_strided_slice %271 {offsets = [0, 0], sizes = [16, 192], strides = [1, 1]} : vector<16x256xf32> to vector<16x192xf32>
    %273 = arith.negf %272 : vector<16x192xf32>
    %274 = math.exp %273 : vector<16x192xf32>
    %cst_92 = arith.constant 1.000000e+00 : f32
    %275 = vector.broadcast %cst_92 : f32 to vector<16x192xf32>
    %276 = arith.addf %275, %274 : vector<16x192xf32>
    %277 = arith.divf %275, %276 : vector<16x192xf32>
    %278 = vector.extract_strided_slice %277 {offsets = [0, 0], sizes = [16, 64], strides = [1, 1]} : vector<16x192xf32> to vector<16x64xf32>
    %279 = vector.extract_strided_slice %277 {offsets = [0, 64], sizes = [16, 64], strides = [1, 1]} : vector<16x192xf32> to vector<16x64xf32>
    %280 = vector.extract_strided_slice %277 {offsets = [0, 128], sizes = [16, 64], strides = [1, 1]} : vector<16x192xf32> to vector<16x64xf32>
    %281 = vector.extract_strided_slice %271 {offsets = [0, 192], sizes = [16, 64], strides = [1, 1]} : vector<16x256xf32> to vector<16x64xf32>
    %282 = math.tanh %281 : vector<16x64xf32>
    %283 = arith.mulf %279, %259 : vector<16x64xf32>
    %284 = arith.mulf %278, %282 : vector<16x64xf32>
    %285 = arith.addf %283, %284 : vector<16x64xf32>
    %286 = math.tanh %285 : vector<16x64xf32>
    %287 = arith.mulf %280, %286 : vector<16x64xf32>
    %288 = arith.index_cast %c1_i32_88 : i32 to index
    %c0_93 = arith.constant 0 : index
    %c0_94 = arith.constant 0 : index
    %289 = vector.load %arg8[%288, %c0_93, %c0_94] : memref<8x16x64xf32, #tpu.memory_space<vmem>>, vector<1x16x64xf32>
    %290 = vector.shape_cast %289 : vector<1x16x64xf32> to vector<16x64xf32>
    %291 = vector.shape_cast %287 : vector<16x64xf32> to vector<1x16x64xf32>
    tpu.vector_store %arg8[%288, %c0_93, %c0_94], %291 {strides = array<i32>} : memref<8x16x64xf32, #tpu.memory_space<vmem>>, vector<1x16x64xf32>,
    %c2_i32_95 = arith.constant 2 : i32
    %292 = arith.truncf %287 : vector<16x64xf32> to vector<16x64xbf16>
    %cst_96 = arith.constant dense<0.000000e+00> : vector<16x256xf32>
    %293 = tpu.matmul %292, %230, %cst_96 {dimension_numbers = #tpu.dot_dimension_numbers<[1], [0], [0], [1], [0, 0, 1, 1], [], []>} : vector<16x64xbf16>, vector<64x256xbf16>, vector<16x256xf32> -> vector<16x256xf32>
    %294 = arith.index_cast %c2_i32_95 : i32 to index
    %c0_97 = arith.constant 0 : index
    %c0_98 = arith.constant 0 : index
    %295 = vector.load %arg9[%294, %c0_97, %c0_98] : memref<8x16x256xbf16, #tpu.memory_space<vmem>>, vector<1x16x256xbf16>
    %296 = vector.shape_cast %295 : vector<1x16x256xbf16> to vector<16x256xbf16>
    %297 = arith.extf %296 : vector<16x256xbf16> to vector<16x256xf32>
    %298 = arith.addf %297, %293 : vector<16x256xf32>
    %299 = vector.extract_strided_slice %298 {offsets = [0, 0], sizes = [16, 192], strides = [1, 1]} : vector<16x256xf32> to vector<16x192xf32>
    %300 = arith.negf %299 : vector<16x192xf32>
    %301 = math.exp %300 : vector<16x192xf32>
    %cst_99 = arith.constant 1.000000e+00 : f32
    %302 = vector.broadcast %cst_99 : f32 to vector<16x192xf32>
    %303 = arith.addf %302, %301 : vector<16x192xf32>
    %304 = arith.divf %302, %303 : vector<16x192xf32>
    %305 = vector.extract_strided_slice %304 {offsets = [0, 0], sizes = [16, 64], strides = [1, 1]} : vector<16x192xf32> to vector<16x64xf32>
    %306 = vector.extract_strided_slice %304 {offsets = [0, 64], sizes = [16, 64], strides = [1, 1]} : vector<16x192xf32> to vector<16x64xf32>
    %307 = vector.extract_strided_slice %304 {offsets = [0, 128], sizes = [16, 64], strides = [1, 1]} : vector<16x192xf32> to vector<16x64xf32>
    %308 = vector.extract_strided_slice %298 {offsets = [0, 192], sizes = [16, 64], strides = [1, 1]} : vector<16x256xf32> to vector<16x64xf32>
    %309 = math.tanh %308 : vector<16x64xf32>
    %310 = arith.mulf %306, %285 : vector<16x64xf32>
    %311 = arith.mulf %305, %309 : vector<16x64xf32>
    %312 = arith.addf %310, %311 : vector<16x64xf32>
    %313 = math.tanh %312 : vector<16x64xf32>
    %314 = arith.mulf %307, %313 : vector<16x64xf32>
    %315 = arith.index_cast %c2_i32_95 : i32 to index
    %c0_100 = arith.constant 0 : index
    %c0_101 = arith.constant 0 : index
    %316 = vector.load %arg8[%315, %c0_100, %c0_101] : memref<8x16x64xf32, #tpu.memory_space<vmem>>, vector<1x16x64xf32>
    %317 = vector.shape_cast %316 : vector<1x16x64xf32> to vector<16x64xf32>
    %318 = vector.shape_cast %314 : vector<16x64xf32> to vector<1x16x64xf32>
    tpu.vector_store %arg8[%315, %c0_100, %c0_101], %318 {strides = array<i32>} : memref<8x16x64xf32, #tpu.memory_space<vmem>>, vector<1x16x64xf32>,
    %c3_i32_102 = arith.constant 3 : i32
    %319 = arith.truncf %314 : vector<16x64xf32> to vector<16x64xbf16>
    %cst_103 = arith.constant dense<0.000000e+00> : vector<16x256xf32>
    %320 = tpu.matmul %319, %230, %cst_103 {dimension_numbers = #tpu.dot_dimension_numbers<[1], [0], [0], [1], [0, 0, 1, 1], [], []>} : vector<16x64xbf16>, vector<64x256xbf16>, vector<16x256xf32> -> vector<16x256xf32>
    %321 = arith.index_cast %c3_i32_102 : i32 to index
    %c0_104 = arith.constant 0 : index
    %c0_105 = arith.constant 0 : index
    %322 = vector.load %arg9[%321, %c0_104, %c0_105] : memref<8x16x256xbf16, #tpu.memory_space<vmem>>, vector<1x16x256xbf16>
    %323 = vector.shape_cast %322 : vector<1x16x256xbf16> to vector<16x256xbf16>
    %324 = arith.extf %323 : vector<16x256xbf16> to vector<16x256xf32>
    %325 = arith.addf %324, %320 : vector<16x256xf32>
    %326 = vector.extract_strided_slice %325 {offsets = [0, 0], sizes = [16, 192], strides = [1, 1]} : vector<16x256xf32> to vector<16x192xf32>
    %327 = arith.negf %326 : vector<16x192xf32>
    %328 = math.exp %327 : vector<16x192xf32>
    %cst_106 = arith.constant 1.000000e+00 : f32
    %329 = vector.broadcast %cst_106 : f32 to vector<16x192xf32>
    %330 = arith.addf %329, %328 : vector<16x192xf32>
    %331 = arith.divf %329, %330 : vector<16x192xf32>
    %332 = vector.extract_strided_slice %331 {offsets = [0, 0], sizes = [16, 64], strides = [1, 1]} : vector<16x192xf32> to vector<16x64xf32>
    %333 = vector.extract_strided_slice %331 {offsets = [0, 64], sizes = [16, 64], strides = [1, 1]} : vector<16x192xf32> to vector<16x64xf32>
    %334 = vector.extract_strided_slice %331 {offsets = [0, 128], sizes = [16, 64], strides = [1, 1]} : vector<16x192xf32> to vector<16x64xf32>
    %335 = vector.extract_strided_slice %325 {offsets = [0, 192], sizes = [16, 64], strides = [1, 1]} : vector<16x256xf32> to vector<16x64xf32>
    %336 = math.tanh %335 : vector<16x64xf32>
    %337 = arith.mulf %333, %312 : vector<16x64xf32>
    %338 = arith.mulf %332, %336 : vector<16x64xf32>
    %339 = arith.addf %337, %338 : vector<16x64xf32>
    %340 = math.tanh %339 : vector<16x64xf32>
    %341 = arith.mulf %334, %340 : vector<16x64xf32>
    %342 = arith.index_cast %c3_i32_102 : i32 to index
    %c0_107 = arith.constant 0 : index
    %c0_108 = arith.constant 0 : index
    %343 = vector.load %arg8[%342, %c0_107, %c0_108] : memref<8x16x64xf32, #tpu.memory_space<vmem>>, vector<1x16x64xf32>
    %344 = vector.shape_cast %343 : vector<1x16x64xf32> to vector<16x64xf32>
    %345 = vector.shape_cast %341 : vector<16x64xf32> to vector<1x16x64xf32>
    tpu.vector_store %arg8[%342, %c0_107, %c0_108], %345 {strides = array<i32>} : memref<8x16x64xf32, #tpu.memory_space<vmem>>, vector<1x16x64xf32>,
    %c4_i32_109 = arith.constant 4 : i32
    %346 = arith.truncf %341 : vector<16x64xf32> to vector<16x64xbf16>
    %cst_110 = arith.constant dense<0.000000e+00> : vector<16x256xf32>
    %347 = tpu.matmul %346, %230, %cst_110 {dimension_numbers = #tpu.dot_dimension_numbers<[1], [0], [0], [1], [0, 0, 1, 1], [], []>} : vector<16x64xbf16>, vector<64x256xbf16>, vector<16x256xf32> -> vector<16x256xf32>
    %348 = arith.index_cast %c4_i32_109 : i32 to index
    %c0_111 = arith.constant 0 : index
    %c0_112 = arith.constant 0 : index
    %349 = vector.load %arg9[%348, %c0_111, %c0_112] : memref<8x16x256xbf16, #tpu.memory_space<vmem>>, vector<1x16x256xbf16>
    %350 = vector.shape_cast %349 : vector<1x16x256xbf16> to vector<16x256xbf16>
    %351 = arith.extf %350 : vector<16x256xbf16> to vector<16x256xf32>
    %352 = arith.addf %351, %347 : vector<16x256xf32>
    %353 = vector.extract_strided_slice %352 {offsets = [0, 0], sizes = [16, 192], strides = [1, 1]} : vector<16x256xf32> to vector<16x192xf32>
    %354 = arith.negf %353 : vector<16x192xf32>
    %355 = math.exp %354 : vector<16x192xf32>
    %cst_113 = arith.constant 1.000000e+00 : f32
    %356 = vector.broadcast %cst_113 : f32 to vector<16x192xf32>
    %357 = arith.addf %356, %355 : vector<16x192xf32>
    %358 = arith.divf %356, %357 : vector<16x192xf32>
    %359 = vector.extract_strided_slice %358 {offsets = [0, 0], sizes = [16, 64], strides = [1, 1]} : vector<16x192xf32> to vector<16x64xf32>
    %360 = vector.extract_strided_slice %358 {offsets = [0, 64], sizes = [16, 64], strides = [1, 1]} : vector<16x192xf32> to vector<16x64xf32>
    %361 = vector.extract_strided_slice %358 {offsets = [0, 128], sizes = [16, 64], strides = [1, 1]} : vector<16x192xf32> to vector<16x64xf32>
    %362 = vector.extract_strided_slice %352 {offsets = [0, 192], sizes = [16, 64], strides = [1, 1]} : vector<16x256xf32> to vector<16x64xf32>
    %363 = math.tanh %362 : vector<16x64xf32>
    %364 = arith.mulf %360, %339 : vector<16x64xf32>
    %365 = arith.mulf %359, %363 : vector<16x64xf32>
    %366 = arith.addf %364, %365 : vector<16x64xf32>
    %367 = math.tanh %366 : vector<16x64xf32>
    %368 = arith.mulf %361, %367 : vector<16x64xf32>
    %369 = arith.index_cast %c4_i32_109 : i32 to index
    %c0_114 = arith.constant 0 : index
    %c0_115 = arith.constant 0 : index
    %370 = vector.load %arg8[%369, %c0_114, %c0_115] : memref<8x16x64xf32, #tpu.memory_space<vmem>>, vector<1x16x64xf32>
    %371 = vector.shape_cast %370 : vector<1x16x64xf32> to vector<16x64xf32>
    %372 = vector.shape_cast %368 : vector<16x64xf32> to vector<1x16x64xf32>
    tpu.vector_store %arg8[%369, %c0_114, %c0_115], %372 {strides = array<i32>} : memref<8x16x64xf32, #tpu.memory_space<vmem>>, vector<1x16x64xf32>,
    %c5_i32_116 = arith.constant 5 : i32
    %373 = arith.truncf %368 : vector<16x64xf32> to vector<16x64xbf16>
    %cst_117 = arith.constant dense<0.000000e+00> : vector<16x256xf32>
    %374 = tpu.matmul %373, %230, %cst_117 {dimension_numbers = #tpu.dot_dimension_numbers<[1], [0], [0], [1], [0, 0, 1, 1], [], []>} : vector<16x64xbf16>, vector<64x256xbf16>, vector<16x256xf32> -> vector<16x256xf32>
    %375 = arith.index_cast %c5_i32_116 : i32 to index
    %c0_118 = arith.constant 0 : index
    %c0_119 = arith.constant 0 : index
    %376 = vector.load %arg9[%375, %c0_118, %c0_119] : memref<8x16x256xbf16, #tpu.memory_space<vmem>>, vector<1x16x256xbf16>
    %377 = vector.shape_cast %376 : vector<1x16x256xbf16> to vector<16x256xbf16>
    %378 = arith.extf %377 : vector<16x256xbf16> to vector<16x256xf32>
    %379 = arith.addf %378, %374 : vector<16x256xf32>
    %380 = vector.extract_strided_slice %379 {offsets = [0, 0], sizes = [16, 192], strides = [1, 1]} : vector<16x256xf32> to vector<16x192xf32>
    %381 = arith.negf %380 : vector<16x192xf32>
    %382 = math.exp %381 : vector<16x192xf32>
    %cst_120 = arith.constant 1.000000e+00 : f32
    %383 = vector.broadcast %cst_120 : f32 to vector<16x192xf32>
    %384 = arith.addf %383, %382 : vector<16x192xf32>
    %385 = arith.divf %383, %384 : vector<16x192xf32>
    %386 = vector.extract_strided_slice %385 {offsets = [0, 0], sizes = [16, 64], strides = [1, 1]} : vector<16x192xf32> to vector<16x64xf32>
    %387 = vector.extract_strided_slice %385 {offsets = [0, 64], sizes = [16, 64], strides = [1, 1]} : vector<16x192xf32> to vector<16x64xf32>
    %388 = vector.extract_strided_slice %385 {offsets = [0, 128], sizes = [16, 64], strides = [1, 1]} : vector<16x192xf32> to vector<16x64xf32>
    %389 = vector.extract_strided_slice %379 {offsets = [0, 192], sizes = [16, 64], strides = [1, 1]} : vector<16x256xf32> to vector<16x64xf32>
    %390 = math.tanh %389 : vector<16x64xf32>
    %391 = arith.mulf %387, %366 : vector<16x64xf32>
    %392 = arith.mulf %386, %390 : vector<16x64xf32>
    %393 = arith.addf %391, %392 : vector<16x64xf32>
    %394 = math.tanh %393 : vector<16x64xf32>
    %395 = arith.mulf %388, %394 : vector<16x64xf32>
    %396 = arith.index_cast %c5_i32_116 : i32 to index
    %c0_121 = arith.constant 0 : index
    %c0_122 = arith.constant 0 : index
    %397 = vector.load %arg8[%396, %c0_121, %c0_122] : memref<8x16x64xf32, #tpu.memory_space<vmem>>, vector<1x16x64xf32>
    %398 = vector.shape_cast %397 : vector<1x16x64xf32> to vector<16x64xf32>
    %399 = vector.shape_cast %395 : vector<16x64xf32> to vector<1x16x64xf32>
    tpu.vector_store %arg8[%396, %c0_121, %c0_122], %399 {strides = array<i32>} : memref<8x16x64xf32, #tpu.memory_space<vmem>>, vector<1x16x64xf32>,
    %c6_i32_123 = arith.constant 6 : i32
    %400 = arith.truncf %395 : vector<16x64xf32> to vector<16x64xbf16>
    %cst_124 = arith.constant dense<0.000000e+00> : vector<16x256xf32>
    %401 = tpu.matmul %400, %230, %cst_124 {dimension_numbers = #tpu.dot_dimension_numbers<[1], [0], [0], [1], [0, 0, 1, 1], [], []>} : vector<16x64xbf16>, vector<64x256xbf16>, vector<16x256xf32> -> vector<16x256xf32>
    %402 = arith.index_cast %c6_i32_123 : i32 to index
    %c0_125 = arith.constant 0 : index
    %c0_126 = arith.constant 0 : index
    %403 = vector.load %arg9[%402, %c0_125, %c0_126] : memref<8x16x256xbf16, #tpu.memory_space<vmem>>, vector<1x16x256xbf16>
    %404 = vector.shape_cast %403 : vector<1x16x256xbf16> to vector<16x256xbf16>
    %405 = arith.extf %404 : vector<16x256xbf16> to vector<16x256xf32>
    %406 = arith.addf %405, %401 : vector<16x256xf32>
    %407 = vector.extract_strided_slice %406 {offsets = [0, 0], sizes = [16, 192], strides = [1, 1]} : vector<16x256xf32> to vector<16x192xf32>
    %408 = arith.negf %407 : vector<16x192xf32>
    %409 = math.exp %408 : vector<16x192xf32>
    %cst_127 = arith.constant 1.000000e+00 : f32
    %410 = vector.broadcast %cst_127 : f32 to vector<16x192xf32>
    %411 = arith.addf %410, %409 : vector<16x192xf32>
    %412 = arith.divf %410, %411 : vector<16x192xf32>
    %413 = vector.extract_strided_slice %412 {offsets = [0, 0], sizes = [16, 64], strides = [1, 1]} : vector<16x192xf32> to vector<16x64xf32>
    %414 = vector.extract_strided_slice %412 {offsets = [0, 64], sizes = [16, 64], strides = [1, 1]} : vector<16x192xf32> to vector<16x64xf32>
    %415 = vector.extract_strided_slice %412 {offsets = [0, 128], sizes = [16, 64], strides = [1, 1]} : vector<16x192xf32> to vector<16x64xf32>
    %416 = vector.extract_strided_slice %406 {offsets = [0, 192], sizes = [16, 64], strides = [1, 1]} : vector<16x256xf32> to vector<16x64xf32>
    %417 = math.tanh %416 : vector<16x64xf32>
    %418 = arith.mulf %414, %393 : vector<16x64xf32>
    %419 = arith.mulf %413, %417 : vector<16x64xf32>
    %420 = arith.addf %418, %419 : vector<16x64xf32>
    %421 = math.tanh %420 : vector<16x64xf32>
    %422 = arith.mulf %415, %421 : vector<16x64xf32>
    %423 = arith.index_cast %c6_i32_123 : i32 to index
    %c0_128 = arith.constant 0 : index
    %c0_129 = arith.constant 0 : index
    %424 = vector.load %arg8[%423, %c0_128, %c0_129] : memref<8x16x64xf32, #tpu.memory_space<vmem>>, vector<1x16x64xf32>
    %425 = vector.shape_cast %424 : vector<1x16x64xf32> to vector<16x64xf32>
    %426 = vector.shape_cast %422 : vector<16x64xf32> to vector<1x16x64xf32>
    tpu.vector_store %arg8[%423, %c0_128, %c0_129], %426 {strides = array<i32>} : memref<8x16x64xf32, #tpu.memory_space<vmem>>, vector<1x16x64xf32>,
    %c7_i32_130 = arith.constant 7 : i32
    %427 = arith.truncf %422 : vector<16x64xf32> to vector<16x64xbf16>
    %cst_131 = arith.constant dense<0.000000e+00> : vector<16x256xf32>
    %428 = tpu.matmul %427, %230, %cst_131 {dimension_numbers = #tpu.dot_dimension_numbers<[1], [0], [0], [1], [0, 0, 1, 1], [], []>} : vector<16x64xbf16>, vector<64x256xbf16>, vector<16x256xf32> -> vector<16x256xf32>
    %429 = arith.index_cast %c7_i32_130 : i32 to index
    %c0_132 = arith.constant 0 : index
    %c0_133 = arith.constant 0 : index
    %430 = vector.load %arg9[%429, %c0_132, %c0_133] : memref<8x16x256xbf16, #tpu.memory_space<vmem>>, vector<1x16x256xbf16>
    %431 = vector.shape_cast %430 : vector<1x16x256xbf16> to vector<16x256xbf16>
    %432 = arith.extf %431 : vector<16x256xbf16> to vector<16x256xf32>
    %433 = arith.addf %432, %428 : vector<16x256xf32>
    %434 = vector.extract_strided_slice %433 {offsets = [0, 0], sizes = [16, 192], strides = [1, 1]} : vector<16x256xf32> to vector<16x192xf32>
    %435 = arith.negf %434 : vector<16x192xf32>
    %436 = math.exp %435 : vector<16x192xf32>
    %cst_134 = arith.constant 1.000000e+00 : f32
    %437 = vector.broadcast %cst_134 : f32 to vector<16x192xf32>
    %438 = arith.addf %437, %436 : vector<16x192xf32>
    %439 = arith.divf %437, %438 : vector<16x192xf32>
    %440 = vector.extract_strided_slice %439 {offsets = [0, 0], sizes = [16, 64], strides = [1, 1]} : vector<16x192xf32> to vector<16x64xf32>
    %441 = vector.extract_strided_slice %439 {offsets = [0, 64], sizes = [16, 64], strides = [1, 1]} : vector<16x192xf32> to vector<16x64xf32>
    %442 = vector.extract_strided_slice %439 {offsets = [0, 128], sizes = [16, 64], strides = [1, 1]} : vector<16x192xf32> to vector<16x64xf32>
    %443 = vector.extract_strided_slice %433 {offsets = [0, 192], sizes = [16, 64], strides = [1, 1]} : vector<16x256xf32> to vector<16x64xf32>
    %444 = math.tanh %443 : vector<16x64xf32>
    %445 = arith.mulf %441, %420 : vector<16x64xf32>
    %446 = arith.mulf %440, %444 : vector<16x64xf32>
    %447 = arith.addf %445, %446 : vector<16x64xf32>
    %448 = math.tanh %447 : vector<16x64xf32>
    %449 = arith.mulf %442, %448 : vector<16x64xf32>
    %450 = arith.index_cast %c7_i32_130 : i32 to index
    %c0_135 = arith.constant 0 : index
    %c0_136 = arith.constant 0 : index
    %451 = vector.load %arg8[%450, %c0_135, %c0_136] : memref<8x16x64xf32, #tpu.memory_space<vmem>>, vector<1x16x64xf32>
    %452 = vector.shape_cast %451 : vector<1x16x64xf32> to vector<16x64xf32>
    %453 = vector.shape_cast %449 : vector<16x64xf32> to vector<1x16x64xf32>
    tpu.vector_store %arg8[%450, %c0_135, %c0_136], %453 {strides = array<i32>} : memref<8x16x64xf32, #tpu.memory_space<vmem>>, vector<1x16x64xf32>,
    %c7_i32_137 = arith.constant 7 : i32
    %c2 = arith.constant 2 : index
    %c0_138 = arith.constant 0 : index
    %c0_139 = arith.constant 0 : index
    %454 = vector.load %arg2[%c2, %c0_138, %c0_139] : memref<4x64x256xbf16, #tpu.memory_space<vmem>>, vector<1x64x256xbf16>
    %455 = vector.shape_cast %454 : vector<1x64x256xbf16> to vector<64x256xbf16>
    %c2_140 = arith.constant 2 : index
    %c0_141 = arith.constant 0 : index
    %c0_142 = arith.constant 0 : index
    %456 = vector.load %arg3[%c2_140, %c0_141, %c0_142] : memref<4x64x256xbf16, #tpu.memory_space<vmem>>, vector<1x64x256xbf16>
    %457 = vector.shape_cast %456 : vector<1x64x256xbf16> to vector<64x256xbf16>
    %c2_143 = arith.constant 2 : index
    %c0_144 = arith.constant 0 : index
    %c0_145 = arith.constant 0 : index
    %458 = vector.load %arg4[%c2_143, %c0_144, %c0_145] : memref<4x1x256xf32, #tpu.memory_space<vmem>>, vector<1x1x256xf32>
    %459 = vector.shape_cast %458 : vector<1x1x256xf32> to vector<1x256xf32>
    %c0_146 = arith.constant 0 : index
    %c0_147 = arith.constant 0 : index
    %c0_148 = arith.constant 0 : index
    %460 = vector.load %arg8[%c0_146, %c0_147, %c0_148] : memref<8x16x64xf32, #tpu.memory_space<vmem>>, vector<8x16x64xf32>
    %461 = vector.shape_cast %460 : vector<8x16x64xf32> to vector<128x64xf32>
    %462 = arith.truncf %461 : vector<128x64xf32> to vector<128x64xbf16>
    %cst_149 = arith.constant dense<0.000000e+00> : vector<128x256xf32>
    %463 = tpu.matmul %462, %455, %cst_149 {dimension_numbers = #tpu.dot_dimension_numbers<[1], [0], [0], [1], [0, 0, 1, 1], [], []>} : vector<128x64xbf16>, vector<64x256xbf16>, vector<128x256xf32> -> vector<128x256xf32>
    %464 = vector.broadcast %459 : vector<1x256xf32> to vector<128x256xf32>
    %465 = arith.addf %463, %464 : vector<128x256xf32>
    %466 = vector.shape_cast %465 : vector<128x256xf32> to vector<8x16x256xf32>
    %467 = arith.truncf %466 : vector<8x16x256xf32> to vector<8x16x256xbf16>
    %c0_150 = arith.constant 0 : index
    %c0_151 = arith.constant 0 : index
    %c0_152 = arith.constant 0 : index
    %468 = vector.load %arg9[%c0_150, %c0_151, %c0_152] : memref<8x16x256xbf16, #tpu.memory_space<vmem>>, vector<8x16x256xbf16>
    tpu.vector_store %arg9[%c0_150, %c0_151, %c0_152], %467 {strides = array<i32>} : memref<8x16x256xbf16, #tpu.memory_space<vmem>>, vector<8x16x256xbf16>,
    %c0_153 = arith.constant 0 : index
    %c0_154 = arith.constant 0 : index
    %c0_155 = arith.constant 0 : index
    %469 = vector.load %arg9[%c0_153, %c0_154, %c0_155] : memref<8x16x256xbf16, #tpu.memory_space<vmem>>, vector<1x16x256xbf16>
    %470 = vector.shape_cast %469 : vector<1x16x256xbf16> to vector<16x256xbf16>
    %471 = arith.extf %470 : vector<16x256xbf16> to vector<16x256xf32>
    %cst_156 = arith.constant 0.000000e+00 : f32
    %472 = vector.broadcast %cst_156 : f32 to vector<16x64xf32>
    %473 = vector.extract_strided_slice %471 {offsets = [0, 0], sizes = [16, 192], strides = [1, 1]} : vector<16x256xf32> to vector<16x192xf32>
    %474 = arith.negf %473 : vector<16x192xf32>
    %475 = math.exp %474 : vector<16x192xf32>
    %cst_157 = arith.constant 1.000000e+00 : f32
    %476 = vector.broadcast %cst_157 : f32 to vector<16x192xf32>
    %477 = arith.addf %476, %475 : vector<16x192xf32>
    %478 = arith.divf %476, %477 : vector<16x192xf32>
    %479 = vector.extract_strided_slice %478 {offsets = [0, 0], sizes = [16, 64], strides = [1, 1]} : vector<16x192xf32> to vector<16x64xf32>
    %480 = vector.extract_strided_slice %478 {offsets = [0, 64], sizes = [16, 64], strides = [1, 1]} : vector<16x192xf32> to vector<16x64xf32>
    %481 = vector.extract_strided_slice %478 {offsets = [0, 128], sizes = [16, 64], strides = [1, 1]} : vector<16x192xf32> to vector<16x64xf32>
    %482 = vector.extract_strided_slice %471 {offsets = [0, 192], sizes = [16, 64], strides = [1, 1]} : vector<16x256xf32> to vector<16x64xf32>
    %483 = math.tanh %482 : vector<16x64xf32>
    %484 = arith.mulf %480, %472 : vector<16x64xf32>
    %485 = arith.mulf %479, %483 : vector<16x64xf32>
    %486 = arith.addf %484, %485 : vector<16x64xf32>
    %487 = math.tanh %486 : vector<16x64xf32>
    %488 = arith.mulf %481, %487 : vector<16x64xf32>
    %c0_158 = arith.constant 0 : index
    %c0_159 = arith.constant 0 : index
    %c0_160 = arith.constant 0 : index
    %489 = vector.load %arg8[%c0_158, %c0_159, %c0_160] : memref<8x16x64xf32, #tpu.memory_space<vmem>>, vector<1x16x64xf32>
    %490 = vector.shape_cast %489 : vector<1x16x64xf32> to vector<16x64xf32>
    %491 = vector.shape_cast %488 : vector<16x64xf32> to vector<1x16x64xf32>
    tpu.vector_store %arg8[%c0_158, %c0_159, %c0_160], %491 {strides = array<i32>} : memref<8x16x64xf32, #tpu.memory_space<vmem>>, vector<1x16x64xf32>,
    %c1_i32_161 = arith.constant 1 : i32
    %492 = arith.truncf %488 : vector<16x64xf32> to vector<16x64xbf16>
    %cst_162 = arith.constant dense<0.000000e+00> : vector<16x256xf32>
    %493 = tpu.matmul %492, %457, %cst_162 {dimension_numbers = #tpu.dot_dimension_numbers<[1], [0], [0], [1], [0, 0, 1, 1], [], []>} : vector<16x64xbf16>, vector<64x256xbf16>, vector<16x256xf32> -> vector<16x256xf32>
    %494 = arith.index_cast %c1_i32_161 : i32 to index
    %c0_163 = arith.constant 0 : index
    %c0_164 = arith.constant 0 : index
    %495 = vector.load %arg9[%494, %c0_163, %c0_164] : memref<8x16x256xbf16, #tpu.memory_space<vmem>>, vector<1x16x256xbf16>
    %496 = vector.shape_cast %495 : vector<1x16x256xbf16> to vector<16x256xbf16>
    %497 = arith.extf %496 : vector<16x256xbf16> to vector<16x256xf32>
    %498 = arith.addf %497, %493 : vector<16x256xf32>
    %499 = vector.extract_strided_slice %498 {offsets = [0, 0], sizes = [16, 192], strides = [1, 1]} : vector<16x256xf32> to vector<16x192xf32>
    %500 = arith.negf %499 : vector<16x192xf32>
    %501 = math.exp %500 : vector<16x192xf32>
    %cst_165 = arith.constant 1.000000e+00 : f32
    %502 = vector.broadcast %cst_165 : f32 to vector<16x192xf32>
    %503 = arith.addf %502, %501 : vector<16x192xf32>
    %504 = arith.divf %502, %503 : vector<16x192xf32>
    %505 = vector.extract_strided_slice %504 {offsets = [0, 0], sizes = [16, 64], strides = [1, 1]} : vector<16x192xf32> to vector<16x64xf32>
    %506 = vector.extract_strided_slice %504 {offsets = [0, 64], sizes = [16, 64], strides = [1, 1]} : vector<16x192xf32> to vector<16x64xf32>
    %507 = vector.extract_strided_slice %504 {offsets = [0, 128], sizes = [16, 64], strides = [1, 1]} : vector<16x192xf32> to vector<16x64xf32>
    %508 = vector.extract_strided_slice %498 {offsets = [0, 192], sizes = [16, 64], strides = [1, 1]} : vector<16x256xf32> to vector<16x64xf32>
    %509 = math.tanh %508 : vector<16x64xf32>
    %510 = arith.mulf %506, %486 : vector<16x64xf32>
    %511 = arith.mulf %505, %509 : vector<16x64xf32>
    %512 = arith.addf %510, %511 : vector<16x64xf32>
    %513 = math.tanh %512 : vector<16x64xf32>
    %514 = arith.mulf %507, %513 : vector<16x64xf32>
    %515 = arith.index_cast %c1_i32_161 : i32 to index
    %c0_166 = arith.constant 0 : index
    %c0_167 = arith.constant 0 : index
    %516 = vector.load %arg8[%515, %c0_166, %c0_167] : memref<8x16x64xf32, #tpu.memory_space<vmem>>, vector<1x16x64xf32>
    %517 = vector.shape_cast %516 : vector<1x16x64xf32> to vector<16x64xf32>
    %518 = vector.shape_cast %514 : vector<16x64xf32> to vector<1x16x64xf32>
    tpu.vector_store %arg8[%515, %c0_166, %c0_167], %518 {strides = array<i32>} : memref<8x16x64xf32, #tpu.memory_space<vmem>>, vector<1x16x64xf32>,
    %c2_i32_168 = arith.constant 2 : i32
    %519 = arith.truncf %514 : vector<16x64xf32> to vector<16x64xbf16>
    %cst_169 = arith.constant dense<0.000000e+00> : vector<16x256xf32>
    %520 = tpu.matmul %519, %457, %cst_169 {dimension_numbers = #tpu.dot_dimension_numbers<[1], [0], [0], [1], [0, 0, 1, 1], [], []>} : vector<16x64xbf16>, vector<64x256xbf16>, vector<16x256xf32> -> vector<16x256xf32>
    %521 = arith.index_cast %c2_i32_168 : i32 to index
    %c0_170 = arith.constant 0 : index
    %c0_171 = arith.constant 0 : index
    %522 = vector.load %arg9[%521, %c0_170, %c0_171] : memref<8x16x256xbf16, #tpu.memory_space<vmem>>, vector<1x16x256xbf16>
    %523 = vector.shape_cast %522 : vector<1x16x256xbf16> to vector<16x256xbf16>
    %524 = arith.extf %523 : vector<16x256xbf16> to vector<16x256xf32>
    %525 = arith.addf %524, %520 : vector<16x256xf32>
    %526 = vector.extract_strided_slice %525 {offsets = [0, 0], sizes = [16, 192], strides = [1, 1]} : vector<16x256xf32> to vector<16x192xf32>
    %527 = arith.negf %526 : vector<16x192xf32>
    %528 = math.exp %527 : vector<16x192xf32>
    %cst_172 = arith.constant 1.000000e+00 : f32
    %529 = vector.broadcast %cst_172 : f32 to vector<16x192xf32>
    %530 = arith.addf %529, %528 : vector<16x192xf32>
    %531 = arith.divf %529, %530 : vector<16x192xf32>
    %532 = vector.extract_strided_slice %531 {offsets = [0, 0], sizes = [16, 64], strides = [1, 1]} : vector<16x192xf32> to vector<16x64xf32>
    %533 = vector.extract_strided_slice %531 {offsets = [0, 64], sizes = [16, 64], strides = [1, 1]} : vector<16x192xf32> to vector<16x64xf32>
    %534 = vector.extract_strided_slice %531 {offsets = [0, 128], sizes = [16, 64], strides = [1, 1]} : vector<16x192xf32> to vector<16x64xf32>
    %535 = vector.extract_strided_slice %525 {offsets = [0, 192], sizes = [16, 64], strides = [1, 1]} : vector<16x256xf32> to vector<16x64xf32>
    %536 = math.tanh %535 : vector<16x64xf32>
    %537 = arith.mulf %533, %512 : vector<16x64xf32>
    %538 = arith.mulf %532, %536 : vector<16x64xf32>
    %539 = arith.addf %537, %538 : vector<16x64xf32>
    %540 = math.tanh %539 : vector<16x64xf32>
    %541 = arith.mulf %534, %540 : vector<16x64xf32>
    %542 = arith.index_cast %c2_i32_168 : i32 to index
    %c0_173 = arith.constant 0 : index
    %c0_174 = arith.constant 0 : index
    %543 = vector.load %arg8[%542, %c0_173, %c0_174] : memref<8x16x64xf32, #tpu.memory_space<vmem>>, vector<1x16x64xf32>
    %544 = vector.shape_cast %543 : vector<1x16x64xf32> to vector<16x64xf32>
    %545 = vector.shape_cast %541 : vector<16x64xf32> to vector<1x16x64xf32>
    tpu.vector_store %arg8[%542, %c0_173, %c0_174], %545 {strides = array<i32>} : memref<8x16x64xf32, #tpu.memory_space<vmem>>, vector<1x16x64xf32>,
    %c3_i32_175 = arith.constant 3 : i32
    %546 = arith.truncf %541 : vector<16x64xf32> to vector<16x64xbf16>
    %cst_176 = arith.constant dense<0.000000e+00> : vector<16x256xf32>
    %547 = tpu.matmul %546, %457, %cst_176 {dimension_numbers = #tpu.dot_dimension_numbers<[1], [0], [0], [1], [0, 0, 1, 1], [], []>} : vector<16x64xbf16>, vector<64x256xbf16>, vector<16x256xf32> -> vector<16x256xf32>
    %548 = arith.index_cast %c3_i32_175 : i32 to index
    %c0_177 = arith.constant 0 : index
    %c0_178 = arith.constant 0 : index
    %549 = vector.load %arg9[%548, %c0_177, %c0_178] : memref<8x16x256xbf16, #tpu.memory_space<vmem>>, vector<1x16x256xbf16>
    %550 = vector.shape_cast %549 : vector<1x16x256xbf16> to vector<16x256xbf16>
    %551 = arith.extf %550 : vector<16x256xbf16> to vector<16x256xf32>
    %552 = arith.addf %551, %547 : vector<16x256xf32>
    %553 = vector.extract_strided_slice %552 {offsets = [0, 0], sizes = [16, 192], strides = [1, 1]} : vector<16x256xf32> to vector<16x192xf32>
    %554 = arith.negf %553 : vector<16x192xf32>
    %555 = math.exp %554 : vector<16x192xf32>
    %cst_179 = arith.constant 1.000000e+00 : f32
    %556 = vector.broadcast %cst_179 : f32 to vector<16x192xf32>
    %557 = arith.addf %556, %555 : vector<16x192xf32>
    %558 = arith.divf %556, %557 : vector<16x192xf32>
    %559 = vector.extract_strided_slice %558 {offsets = [0, 0], sizes = [16, 64], strides = [1, 1]} : vector<16x192xf32> to vector<16x64xf32>
    %560 = vector.extract_strided_slice %558 {offsets = [0, 64], sizes = [16, 64], strides = [1, 1]} : vector<16x192xf32> to vector<16x64xf32>
    %561 = vector.extract_strided_slice %558 {offsets = [0, 128], sizes = [16, 64], strides = [1, 1]} : vector<16x192xf32> to vector<16x64xf32>
    %562 = vector.extract_strided_slice %552 {offsets = [0, 192], sizes = [16, 64], strides = [1, 1]} : vector<16x256xf32> to vector<16x64xf32>
    %563 = math.tanh %562 : vector<16x64xf32>
    %564 = arith.mulf %560, %539 : vector<16x64xf32>
    %565 = arith.mulf %559, %563 : vector<16x64xf32>
    %566 = arith.addf %564, %565 : vector<16x64xf32>
    %567 = math.tanh %566 : vector<16x64xf32>
    %568 = arith.mulf %561, %567 : vector<16x64xf32>
    %569 = arith.index_cast %c3_i32_175 : i32 to index
    %c0_180 = arith.constant 0 : index
    %c0_181 = arith.constant 0 : index
    %570 = vector.load %arg8[%569, %c0_180, %c0_181] : memref<8x16x64xf32, #tpu.memory_space<vmem>>, vector<1x16x64xf32>
    %571 = vector.shape_cast %570 : vector<1x16x64xf32> to vector<16x64xf32>
    %572 = vector.shape_cast %568 : vector<16x64xf32> to vector<1x16x64xf32>
    tpu.vector_store %arg8[%569, %c0_180, %c0_181], %572 {strides = array<i32>} : memref<8x16x64xf32, #tpu.memory_space<vmem>>, vector<1x16x64xf32>,
    %c4_i32_182 = arith.constant 4 : i32
    %573 = arith.truncf %568 : vector<16x64xf32> to vector<16x64xbf16>
    %cst_183 = arith.constant dense<0.000000e+00> : vector<16x256xf32>
    %574 = tpu.matmul %573, %457, %cst_183 {dimension_numbers = #tpu.dot_dimension_numbers<[1], [0], [0], [1], [0, 0, 1, 1], [], []>} : vector<16x64xbf16>, vector<64x256xbf16>, vector<16x256xf32> -> vector<16x256xf32>
    %575 = arith.index_cast %c4_i32_182 : i32 to index
    %c0_184 = arith.constant 0 : index
    %c0_185 = arith.constant 0 : index
    %576 = vector.load %arg9[%575, %c0_184, %c0_185] : memref<8x16x256xbf16, #tpu.memory_space<vmem>>, vector<1x16x256xbf16>
    %577 = vector.shape_cast %576 : vector<1x16x256xbf16> to vector<16x256xbf16>
    %578 = arith.extf %577 : vector<16x256xbf16> to vector<16x256xf32>
    %579 = arith.addf %578, %574 : vector<16x256xf32>
    %580 = vector.extract_strided_slice %579 {offsets = [0, 0], sizes = [16, 192], strides = [1, 1]} : vector<16x256xf32> to vector<16x192xf32>
    %581 = arith.negf %580 : vector<16x192xf32>
    %582 = math.exp %581 : vector<16x192xf32>
    %cst_186 = arith.constant 1.000000e+00 : f32
    %583 = vector.broadcast %cst_186 : f32 to vector<16x192xf32>
    %584 = arith.addf %583, %582 : vector<16x192xf32>
    %585 = arith.divf %583, %584 : vector<16x192xf32>
    %586 = vector.extract_strided_slice %585 {offsets = [0, 0], sizes = [16, 64], strides = [1, 1]} : vector<16x192xf32> to vector<16x64xf32>
    %587 = vector.extract_strided_slice %585 {offsets = [0, 64], sizes = [16, 64], strides = [1, 1]} : vector<16x192xf32> to vector<16x64xf32>
    %588 = vector.extract_strided_slice %585 {offsets = [0, 128], sizes = [16, 64], strides = [1, 1]} : vector<16x192xf32> to vector<16x64xf32>
    %589 = vector.extract_strided_slice %579 {offsets = [0, 192], sizes = [16, 64], strides = [1, 1]} : vector<16x256xf32> to vector<16x64xf32>
    %590 = math.tanh %589 : vector<16x64xf32>
    %591 = arith.mulf %587, %566 : vector<16x64xf32>
    %592 = arith.mulf %586, %590 : vector<16x64xf32>
    %593 = arith.addf %591, %592 : vector<16x64xf32>
    %594 = math.tanh %593 : vector<16x64xf32>
    %595 = arith.mulf %588, %594 : vector<16x64xf32>
    %596 = arith.index_cast %c4_i32_182 : i32 to index
    %c0_187 = arith.constant 0 : index
    %c0_188 = arith.constant 0 : index
    %597 = vector.load %arg8[%596, %c0_187, %c0_188] : memref<8x16x64xf32, #tpu.memory_space<vmem>>, vector<1x16x64xf32>
    %598 = vector.shape_cast %597 : vector<1x16x64xf32> to vector<16x64xf32>
    %599 = vector.shape_cast %595 : vector<16x64xf32> to vector<1x16x64xf32>
    tpu.vector_store %arg8[%596, %c0_187, %c0_188], %599 {strides = array<i32>} : memref<8x16x64xf32, #tpu.memory_space<vmem>>, vector<1x16x64xf32>,
    %c5_i32_189 = arith.constant 5 : i32
    %600 = arith.truncf %595 : vector<16x64xf32> to vector<16x64xbf16>
    %cst_190 = arith.constant dense<0.000000e+00> : vector<16x256xf32>
    %601 = tpu.matmul %600, %457, %cst_190 {dimension_numbers = #tpu.dot_dimension_numbers<[1], [0], [0], [1], [0, 0, 1, 1], [], []>} : vector<16x64xbf16>, vector<64x256xbf16>, vector<16x256xf32> -> vector<16x256xf32>
    %602 = arith.index_cast %c5_i32_189 : i32 to index
    %c0_191 = arith.constant 0 : index
    %c0_192 = arith.constant 0 : index
    %603 = vector.load %arg9[%602, %c0_191, %c0_192] : memref<8x16x256xbf16, #tpu.memory_space<vmem>>, vector<1x16x256xbf16>
    %604 = vector.shape_cast %603 : vector<1x16x256xbf16> to vector<16x256xbf16>
    %605 = arith.extf %604 : vector<16x256xbf16> to vector<16x256xf32>
    %606 = arith.addf %605, %601 : vector<16x256xf32>
    %607 = vector.extract_strided_slice %606 {offsets = [0, 0], sizes = [16, 192], strides = [1, 1]} : vector<16x256xf32> to vector<16x192xf32>
    %608 = arith.negf %607 : vector<16x192xf32>
    %609 = math.exp %608 : vector<16x192xf32>
    %cst_193 = arith.constant 1.000000e+00 : f32
    %610 = vector.broadcast %cst_193 : f32 to vector<16x192xf32>
    %611 = arith.addf %610, %609 : vector<16x192xf32>
    %612 = arith.divf %610, %611 : vector<16x192xf32>
    %613 = vector.extract_strided_slice %612 {offsets = [0, 0], sizes = [16, 64], strides = [1, 1]} : vector<16x192xf32> to vector<16x64xf32>
    %614 = vector.extract_strided_slice %612 {offsets = [0, 64], sizes = [16, 64], strides = [1, 1]} : vector<16x192xf32> to vector<16x64xf32>
    %615 = vector.extract_strided_slice %612 {offsets = [0, 128], sizes = [16, 64], strides = [1, 1]} : vector<16x192xf32> to vector<16x64xf32>
    %616 = vector.extract_strided_slice %606 {offsets = [0, 192], sizes = [16, 64], strides = [1, 1]} : vector<16x256xf32> to vector<16x64xf32>
    %617 = math.tanh %616 : vector<16x64xf32>
    %618 = arith.mulf %614, %593 : vector<16x64xf32>
    %619 = arith.mulf %613, %617 : vector<16x64xf32>
    %620 = arith.addf %618, %619 : vector<16x64xf32>
    %621 = math.tanh %620 : vector<16x64xf32>
    %622 = arith.mulf %615, %621 : vector<16x64xf32>
    %623 = arith.index_cast %c5_i32_189 : i32 to index
    %c0_194 = arith.constant 0 : index
    %c0_195 = arith.constant 0 : index
    %624 = vector.load %arg8[%623, %c0_194, %c0_195] : memref<8x16x64xf32, #tpu.memory_space<vmem>>, vector<1x16x64xf32>
    %625 = vector.shape_cast %624 : vector<1x16x64xf32> to vector<16x64xf32>
    %626 = vector.shape_cast %622 : vector<16x64xf32> to vector<1x16x64xf32>
    tpu.vector_store %arg8[%623, %c0_194, %c0_195], %626 {strides = array<i32>} : memref<8x16x64xf32, #tpu.memory_space<vmem>>, vector<1x16x64xf32>,
    %c6_i32_196 = arith.constant 6 : i32
    %627 = arith.truncf %622 : vector<16x64xf32> to vector<16x64xbf16>
    %cst_197 = arith.constant dense<0.000000e+00> : vector<16x256xf32>
    %628 = tpu.matmul %627, %457, %cst_197 {dimension_numbers = #tpu.dot_dimension_numbers<[1], [0], [0], [1], [0, 0, 1, 1], [], []>} : vector<16x64xbf16>, vector<64x256xbf16>, vector<16x256xf32> -> vector<16x256xf32>
    %629 = arith.index_cast %c6_i32_196 : i32 to index
    %c0_198 = arith.constant 0 : index
    %c0_199 = arith.constant 0 : index
    %630 = vector.load %arg9[%629, %c0_198, %c0_199] : memref<8x16x256xbf16, #tpu.memory_space<vmem>>, vector<1x16x256xbf16>
    %631 = vector.shape_cast %630 : vector<1x16x256xbf16> to vector<16x256xbf16>
    %632 = arith.extf %631 : vector<16x256xbf16> to vector<16x256xf32>
    %633 = arith.addf %632, %628 : vector<16x256xf32>
    %634 = vector.extract_strided_slice %633 {offsets = [0, 0], sizes = [16, 192], strides = [1, 1]} : vector<16x256xf32> to vector<16x192xf32>
    %635 = arith.negf %634 : vector<16x192xf32>
    %636 = math.exp %635 : vector<16x192xf32>
    %cst_200 = arith.constant 1.000000e+00 : f32
    %637 = vector.broadcast %cst_200 : f32 to vector<16x192xf32>
    %638 = arith.addf %637, %636 : vector<16x192xf32>
    %639 = arith.divf %637, %638 : vector<16x192xf32>
    %640 = vector.extract_strided_slice %639 {offsets = [0, 0], sizes = [16, 64], strides = [1, 1]} : vector<16x192xf32> to vector<16x64xf32>
    %641 = vector.extract_strided_slice %639 {offsets = [0, 64], sizes = [16, 64], strides = [1, 1]} : vector<16x192xf32> to vector<16x64xf32>
    %642 = vector.extract_strided_slice %639 {offsets = [0, 128], sizes = [16, 64], strides = [1, 1]} : vector<16x192xf32> to vector<16x64xf32>
    %643 = vector.extract_strided_slice %633 {offsets = [0, 192], sizes = [16, 64], strides = [1, 1]} : vector<16x256xf32> to vector<16x64xf32>
    %644 = math.tanh %643 : vector<16x64xf32>
    %645 = arith.mulf %641, %620 : vector<16x64xf32>
    %646 = arith.mulf %640, %644 : vector<16x64xf32>
    %647 = arith.addf %645, %646 : vector<16x64xf32>
    %648 = math.tanh %647 : vector<16x64xf32>
    %649 = arith.mulf %642, %648 : vector<16x64xf32>
    %650 = arith.index_cast %c6_i32_196 : i32 to index
    %c0_201 = arith.constant 0 : index
    %c0_202 = arith.constant 0 : index
    %651 = vector.load %arg8[%650, %c0_201, %c0_202] : memref<8x16x64xf32, #tpu.memory_space<vmem>>, vector<1x16x64xf32>
    %652 = vector.shape_cast %651 : vector<1x16x64xf32> to vector<16x64xf32>
    %653 = vector.shape_cast %649 : vector<16x64xf32> to vector<1x16x64xf32>
    tpu.vector_store %arg8[%650, %c0_201, %c0_202], %653 {strides = array<i32>} : memref<8x16x64xf32, #tpu.memory_space<vmem>>, vector<1x16x64xf32>,
    %c7_i32_203 = arith.constant 7 : i32
    %654 = arith.truncf %649 : vector<16x64xf32> to vector<16x64xbf16>
    %cst_204 = arith.constant dense<0.000000e+00> : vector<16x256xf32>
    %655 = tpu.matmul %654, %457, %cst_204 {dimension_numbers = #tpu.dot_dimension_numbers<[1], [0], [0], [1], [0, 0, 1, 1], [], []>} : vector<16x64xbf16>, vector<64x256xbf16>, vector<16x256xf32> -> vector<16x256xf32>
    %656 = arith.index_cast %c7_i32_203 : i32 to index
    %c0_205 = arith.constant 0 : index
    %c0_206 = arith.constant 0 : index
    %657 = vector.load %arg9[%656, %c0_205, %c0_206] : memref<8x16x256xbf16, #tpu.memory_space<vmem>>, vector<1x16x256xbf16>
    %658 = vector.shape_cast %657 : vector<1x16x256xbf16> to vector<16x256xbf16>
    %659 = arith.extf %658 : vector<16x256xbf16> to vector<16x256xf32>
    %660 = arith.addf %659, %655 : vector<16x256xf32>
    %661 = vector.extract_strided_slice %660 {offsets = [0, 0], sizes = [16, 192], strides = [1, 1]} : vector<16x256xf32> to vector<16x192xf32>
    %662 = arith.negf %661 : vector<16x192xf32>
    %663 = math.exp %662 : vector<16x192xf32>
    %cst_207 = arith.constant 1.000000e+00 : f32
    %664 = vector.broadcast %cst_207 : f32 to vector<16x192xf32>
    %665 = arith.addf %664, %663 : vector<16x192xf32>
    %666 = arith.divf %664, %665 : vector<16x192xf32>
    %667 = vector.extract_strided_slice %666 {offsets = [0, 0], sizes = [16, 64], strides = [1, 1]} : vector<16x192xf32> to vector<16x64xf32>
    %668 = vector.extract_strided_slice %666 {offsets = [0, 64], sizes = [16, 64], strides = [1, 1]} : vector<16x192xf32> to vector<16x64xf32>
    %669 = vector.extract_strided_slice %666 {offsets = [0, 128], sizes = [16, 64], strides = [1, 1]} : vector<16x192xf32> to vector<16x64xf32>
    %670 = vector.extract_strided_slice %660 {offsets = [0, 192], sizes = [16, 64], strides = [1, 1]} : vector<16x256xf32> to vector<16x64xf32>
    %671 = math.tanh %670 : vector<16x64xf32>
    %672 = arith.mulf %668, %647 : vector<16x64xf32>
    %673 = arith.mulf %667, %671 : vector<16x64xf32>
    %674 = arith.addf %672, %673 : vector<16x64xf32>
    %675 = math.tanh %674 : vector<16x64xf32>
    %676 = arith.mulf %669, %675 : vector<16x64xf32>
    %677 = arith.index_cast %c7_i32_203 : i32 to index
    %c0_208 = arith.constant 0 : index
    %c0_209 = arith.constant 0 : index
    %678 = vector.load %arg8[%677, %c0_208, %c0_209] : memref<8x16x64xf32, #tpu.memory_space<vmem>>, vector<1x16x64xf32>
    %679 = vector.shape_cast %678 : vector<1x16x64xf32> to vector<16x64xf32>
    %680 = vector.shape_cast %676 : vector<16x64xf32> to vector<1x16x64xf32>
    tpu.vector_store %arg8[%677, %c0_208, %c0_209], %680 {strides = array<i32>} : memref<8x16x64xf32, #tpu.memory_space<vmem>>, vector<1x16x64xf32>,
    %c7_i32_210 = arith.constant 7 : i32
    %c3 = arith.constant 3 : index
    %c0_211 = arith.constant 0 : index
    %c0_212 = arith.constant 0 : index
    %681 = vector.load %arg2[%c3, %c0_211, %c0_212] : memref<4x64x256xbf16, #tpu.memory_space<vmem>>, vector<1x64x256xbf16>
    %682 = vector.shape_cast %681 : vector<1x64x256xbf16> to vector<64x256xbf16>
    %c3_213 = arith.constant 3 : index
    %c0_214 = arith.constant 0 : index
    %c0_215 = arith.constant 0 : index
    %683 = vector.load %arg3[%c3_213, %c0_214, %c0_215] : memref<4x64x256xbf16, #tpu.memory_space<vmem>>, vector<1x64x256xbf16>
    %684 = vector.shape_cast %683 : vector<1x64x256xbf16> to vector<64x256xbf16>
    %c3_216 = arith.constant 3 : index
    %c0_217 = arith.constant 0 : index
    %c0_218 = arith.constant 0 : index
    %685 = vector.load %arg4[%c3_216, %c0_217, %c0_218] : memref<4x1x256xf32, #tpu.memory_space<vmem>>, vector<1x1x256xf32>
    %686 = vector.shape_cast %685 : vector<1x1x256xf32> to vector<1x256xf32>
    %c0_219 = arith.constant 0 : index
    %c0_220 = arith.constant 0 : index
    %c0_221 = arith.constant 0 : index
    %687 = vector.load %arg8[%c0_219, %c0_220, %c0_221] : memref<8x16x64xf32, #tpu.memory_space<vmem>>, vector<8x16x64xf32>
    %688 = vector.shape_cast %687 : vector<8x16x64xf32> to vector<128x64xf32>
    %689 = arith.truncf %688 : vector<128x64xf32> to vector<128x64xbf16>
    %cst_222 = arith.constant dense<0.000000e+00> : vector<128x256xf32>
    %690 = tpu.matmul %689, %682, %cst_222 {dimension_numbers = #tpu.dot_dimension_numbers<[1], [0], [0], [1], [0, 0, 1, 1], [], []>} : vector<128x64xbf16>, vector<64x256xbf16>, vector<128x256xf32> -> vector<128x256xf32>
    %691 = vector.broadcast %686 : vector<1x256xf32> to vector<128x256xf32>
    %692 = arith.addf %690, %691 : vector<128x256xf32>
    %693 = vector.shape_cast %692 : vector<128x256xf32> to vector<8x16x256xf32>
    %694 = arith.truncf %693 : vector<8x16x256xf32> to vector<8x16x256xbf16>
    %c0_223 = arith.constant 0 : index
    %c0_224 = arith.constant 0 : index
    %c0_225 = arith.constant 0 : index
    %695 = vector.load %arg9[%c0_223, %c0_224, %c0_225] : memref<8x16x256xbf16, #tpu.memory_space<vmem>>, vector<8x16x256xbf16>
    tpu.vector_store %arg9[%c0_223, %c0_224, %c0_225], %694 {strides = array<i32>} : memref<8x16x256xbf16, #tpu.memory_space<vmem>>, vector<8x16x256xbf16>,
    %c0_226 = arith.constant 0 : index
    %c0_227 = arith.constant 0 : index
    %c0_228 = arith.constant 0 : index
    %696 = vector.load %arg9[%c0_226, %c0_227, %c0_228] : memref<8x16x256xbf16, #tpu.memory_space<vmem>>, vector<1x16x256xbf16>
    %697 = vector.shape_cast %696 : vector<1x16x256xbf16> to vector<16x256xbf16>
    %698 = arith.extf %697 : vector<16x256xbf16> to vector<16x256xf32>
    %cst_229 = arith.constant 0.000000e+00 : f32
    %699 = vector.broadcast %cst_229 : f32 to vector<16x64xf32>
    %700 = vector.extract_strided_slice %698 {offsets = [0, 0], sizes = [16, 192], strides = [1, 1]} : vector<16x256xf32> to vector<16x192xf32>
    %701 = arith.negf %700 : vector<16x192xf32>
    %702 = math.exp %701 : vector<16x192xf32>
    %cst_230 = arith.constant 1.000000e+00 : f32
    %703 = vector.broadcast %cst_230 : f32 to vector<16x192xf32>
    %704 = arith.addf %703, %702 : vector<16x192xf32>
    %705 = arith.divf %703, %704 : vector<16x192xf32>
    %706 = vector.extract_strided_slice %705 {offsets = [0, 0], sizes = [16, 64], strides = [1, 1]} : vector<16x192xf32> to vector<16x64xf32>
    %707 = vector.extract_strided_slice %705 {offsets = [0, 64], sizes = [16, 64], strides = [1, 1]} : vector<16x192xf32> to vector<16x64xf32>
    %708 = vector.extract_strided_slice %705 {offsets = [0, 128], sizes = [16, 64], strides = [1, 1]} : vector<16x192xf32> to vector<16x64xf32>
    %709 = vector.extract_strided_slice %698 {offsets = [0, 192], sizes = [16, 64], strides = [1, 1]} : vector<16x256xf32> to vector<16x64xf32>
    %710 = math.tanh %709 : vector<16x64xf32>
    %711 = arith.mulf %707, %699 : vector<16x64xf32>
    %712 = arith.mulf %706, %710 : vector<16x64xf32>
    %713 = arith.addf %711, %712 : vector<16x64xf32>
    %714 = math.tanh %713 : vector<16x64xf32>
    %715 = arith.mulf %708, %714 : vector<16x64xf32>
    %c1_i32_231 = arith.constant 1 : i32
    %716 = arith.truncf %715 : vector<16x64xf32> to vector<16x64xbf16>
    %cst_232 = arith.constant dense<0.000000e+00> : vector<16x256xf32>
    %717 = tpu.matmul %716, %684, %cst_232 {dimension_numbers = #tpu.dot_dimension_numbers<[1], [0], [0], [1], [0, 0, 1, 1], [], []>} : vector<16x64xbf16>, vector<64x256xbf16>, vector<16x256xf32> -> vector<16x256xf32>
    %718 = arith.index_cast %c1_i32_231 : i32 to index
    %c0_233 = arith.constant 0 : index
    %c0_234 = arith.constant 0 : index
    %719 = vector.load %arg9[%718, %c0_233, %c0_234] : memref<8x16x256xbf16, #tpu.memory_space<vmem>>, vector<1x16x256xbf16>
    %720 = vector.shape_cast %719 : vector<1x16x256xbf16> to vector<16x256xbf16>
    %721 = arith.extf %720 : vector<16x256xbf16> to vector<16x256xf32>
    %722 = arith.addf %721, %717 : vector<16x256xf32>
    %723 = vector.extract_strided_slice %722 {offsets = [0, 0], sizes = [16, 192], strides = [1, 1]} : vector<16x256xf32> to vector<16x192xf32>
    %724 = arith.negf %723 : vector<16x192xf32>
    %725 = math.exp %724 : vector<16x192xf32>
    %cst_235 = arith.constant 1.000000e+00 : f32
    %726 = vector.broadcast %cst_235 : f32 to vector<16x192xf32>
    %727 = arith.addf %726, %725 : vector<16x192xf32>
    %728 = arith.divf %726, %727 : vector<16x192xf32>
    %729 = vector.extract_strided_slice %728 {offsets = [0, 0], sizes = [16, 64], strides = [1, 1]} : vector<16x192xf32> to vector<16x64xf32>
    %730 = vector.extract_strided_slice %728 {offsets = [0, 64], sizes = [16, 64], strides = [1, 1]} : vector<16x192xf32> to vector<16x64xf32>
    %731 = vector.extract_strided_slice %728 {offsets = [0, 128], sizes = [16, 64], strides = [1, 1]} : vector<16x192xf32> to vector<16x64xf32>
    %732 = vector.extract_strided_slice %722 {offsets = [0, 192], sizes = [16, 64], strides = [1, 1]} : vector<16x256xf32> to vector<16x64xf32>
    %733 = math.tanh %732 : vector<16x64xf32>
    %734 = arith.mulf %730, %713 : vector<16x64xf32>
    %735 = arith.mulf %729, %733 : vector<16x64xf32>
    %736 = arith.addf %734, %735 : vector<16x64xf32>
    %737 = math.tanh %736 : vector<16x64xf32>
    %738 = arith.mulf %731, %737 : vector<16x64xf32>
    %c2_i32_236 = arith.constant 2 : i32
    %739 = arith.truncf %738 : vector<16x64xf32> to vector<16x64xbf16>
    %cst_237 = arith.constant dense<0.000000e+00> : vector<16x256xf32>
    %740 = tpu.matmul %739, %684, %cst_237 {dimension_numbers = #tpu.dot_dimension_numbers<[1], [0], [0], [1], [0, 0, 1, 1], [], []>} : vector<16x64xbf16>, vector<64x256xbf16>, vector<16x256xf32> -> vector<16x256xf32>
    %741 = arith.index_cast %c2_i32_236 : i32 to index
    %c0_238 = arith.constant 0 : index
    %c0_239 = arith.constant 0 : index
    %742 = vector.load %arg9[%741, %c0_238, %c0_239] : memref<8x16x256xbf16, #tpu.memory_space<vmem>>, vector<1x16x256xbf16>
    %743 = vector.shape_cast %742 : vector<1x16x256xbf16> to vector<16x256xbf16>
    %744 = arith.extf %743 : vector<16x256xbf16> to vector<16x256xf32>
    %745 = arith.addf %744, %740 : vector<16x256xf32>
    %746 = vector.extract_strided_slice %745 {offsets = [0, 0], sizes = [16, 192], strides = [1, 1]} : vector<16x256xf32> to vector<16x192xf32>
    %747 = arith.negf %746 : vector<16x192xf32>
    %748 = math.exp %747 : vector<16x192xf32>
    %cst_240 = arith.constant 1.000000e+00 : f32
    %749 = vector.broadcast %cst_240 : f32 to vector<16x192xf32>
    %750 = arith.addf %749, %748 : vector<16x192xf32>
    %751 = arith.divf %749, %750 : vector<16x192xf32>
    %752 = vector.extract_strided_slice %751 {offsets = [0, 0], sizes = [16, 64], strides = [1, 1]} : vector<16x192xf32> to vector<16x64xf32>
    %753 = vector.extract_strided_slice %751 {offsets = [0, 64], sizes = [16, 64], strides = [1, 1]} : vector<16x192xf32> to vector<16x64xf32>
    %754 = vector.extract_strided_slice %751 {offsets = [0, 128], sizes = [16, 64], strides = [1, 1]} : vector<16x192xf32> to vector<16x64xf32>
    %755 = vector.extract_strided_slice %745 {offsets = [0, 192], sizes = [16, 64], strides = [1, 1]} : vector<16x256xf32> to vector<16x64xf32>
    %756 = math.tanh %755 : vector<16x64xf32>
    %757 = arith.mulf %753, %736 : vector<16x64xf32>
    %758 = arith.mulf %752, %756 : vector<16x64xf32>
    %759 = arith.addf %757, %758 : vector<16x64xf32>
    %760 = math.tanh %759 : vector<16x64xf32>
    %761 = arith.mulf %754, %760 : vector<16x64xf32>
    %c3_i32_241 = arith.constant 3 : i32
    %762 = arith.truncf %761 : vector<16x64xf32> to vector<16x64xbf16>
    %cst_242 = arith.constant dense<0.000000e+00> : vector<16x256xf32>
    %763 = tpu.matmul %762, %684, %cst_242 {dimension_numbers = #tpu.dot_dimension_numbers<[1], [0], [0], [1], [0, 0, 1, 1], [], []>} : vector<16x64xbf16>, vector<64x256xbf16>, vector<16x256xf32> -> vector<16x256xf32>
    %764 = arith.index_cast %c3_i32_241 : i32 to index
    %c0_243 = arith.constant 0 : index
    %c0_244 = arith.constant 0 : index
    %765 = vector.load %arg9[%764, %c0_243, %c0_244] : memref<8x16x256xbf16, #tpu.memory_space<vmem>>, vector<1x16x256xbf16>
    %766 = vector.shape_cast %765 : vector<1x16x256xbf16> to vector<16x256xbf16>
    %767 = arith.extf %766 : vector<16x256xbf16> to vector<16x256xf32>
    %768 = arith.addf %767, %763 : vector<16x256xf32>
    %769 = vector.extract_strided_slice %768 {offsets = [0, 0], sizes = [16, 192], strides = [1, 1]} : vector<16x256xf32> to vector<16x192xf32>
    %770 = arith.negf %769 : vector<16x192xf32>
    %771 = math.exp %770 : vector<16x192xf32>
    %cst_245 = arith.constant 1.000000e+00 : f32
    %772 = vector.broadcast %cst_245 : f32 to vector<16x192xf32>
    %773 = arith.addf %772, %771 : vector<16x192xf32>
    %774 = arith.divf %772, %773 : vector<16x192xf32>
    %775 = vector.extract_strided_slice %774 {offsets = [0, 0], sizes = [16, 64], strides = [1, 1]} : vector<16x192xf32> to vector<16x64xf32>
    %776 = vector.extract_strided_slice %774 {offsets = [0, 64], sizes = [16, 64], strides = [1, 1]} : vector<16x192xf32> to vector<16x64xf32>
    %777 = vector.extract_strided_slice %774 {offsets = [0, 128], sizes = [16, 64], strides = [1, 1]} : vector<16x192xf32> to vector<16x64xf32>
    %778 = vector.extract_strided_slice %768 {offsets = [0, 192], sizes = [16, 64], strides = [1, 1]} : vector<16x256xf32> to vector<16x64xf32>
    %779 = math.tanh %778 : vector<16x64xf32>
    %780 = arith.mulf %776, %759 : vector<16x64xf32>
    %781 = arith.mulf %775, %779 : vector<16x64xf32>
    %782 = arith.addf %780, %781 : vector<16x64xf32>
    %783 = math.tanh %782 : vector<16x64xf32>
    %784 = arith.mulf %777, %783 : vector<16x64xf32>
    %c4_i32_246 = arith.constant 4 : i32
    %785 = arith.truncf %784 : vector<16x64xf32> to vector<16x64xbf16>
    %cst_247 = arith.constant dense<0.000000e+00> : vector<16x256xf32>
    %786 = tpu.matmul %785, %684, %cst_247 {dimension_numbers = #tpu.dot_dimension_numbers<[1], [0], [0], [1], [0, 0, 1, 1], [], []>} : vector<16x64xbf16>, vector<64x256xbf16>, vector<16x256xf32> -> vector<16x256xf32>
    %787 = arith.index_cast %c4_i32_246 : i32 to index
    %c0_248 = arith.constant 0 : index
    %c0_249 = arith.constant 0 : index
    %788 = vector.load %arg9[%787, %c0_248, %c0_249] : memref<8x16x256xbf16, #tpu.memory_space<vmem>>, vector<1x16x256xbf16>
    %789 = vector.shape_cast %788 : vector<1x16x256xbf16> to vector<16x256xbf16>
    %790 = arith.extf %789 : vector<16x256xbf16> to vector<16x256xf32>
    %791 = arith.addf %790, %786 : vector<16x256xf32>
    %792 = vector.extract_strided_slice %791 {offsets = [0, 0], sizes = [16, 192], strides = [1, 1]} : vector<16x256xf32> to vector<16x192xf32>
    %793 = arith.negf %792 : vector<16x192xf32>
    %794 = math.exp %793 : vector<16x192xf32>
    %cst_250 = arith.constant 1.000000e+00 : f32
    %795 = vector.broadcast %cst_250 : f32 to vector<16x192xf32>
    %796 = arith.addf %795, %794 : vector<16x192xf32>
    %797 = arith.divf %795, %796 : vector<16x192xf32>
    %798 = vector.extract_strided_slice %797 {offsets = [0, 0], sizes = [16, 64], strides = [1, 1]} : vector<16x192xf32> to vector<16x64xf32>
    %799 = vector.extract_strided_slice %797 {offsets = [0, 64], sizes = [16, 64], strides = [1, 1]} : vector<16x192xf32> to vector<16x64xf32>
    %800 = vector.extract_strided_slice %797 {offsets = [0, 128], sizes = [16, 64], strides = [1, 1]} : vector<16x192xf32> to vector<16x64xf32>
    %801 = vector.extract_strided_slice %791 {offsets = [0, 192], sizes = [16, 64], strides = [1, 1]} : vector<16x256xf32> to vector<16x64xf32>
    %802 = math.tanh %801 : vector<16x64xf32>
    %803 = arith.mulf %799, %782 : vector<16x64xf32>
    %804 = arith.mulf %798, %802 : vector<16x64xf32>
    %805 = arith.addf %803, %804 : vector<16x64xf32>
    %806 = math.tanh %805 : vector<16x64xf32>
    %807 = arith.mulf %800, %806 : vector<16x64xf32>
    %c5_i32_251 = arith.constant 5 : i32
    %808 = arith.truncf %807 : vector<16x64xf32> to vector<16x64xbf16>
    %cst_252 = arith.constant dense<0.000000e+00> : vector<16x256xf32>
    %809 = tpu.matmul %808, %684, %cst_252 {dimension_numbers = #tpu.dot_dimension_numbers<[1], [0], [0], [1], [0, 0, 1, 1], [], []>} : vector<16x64xbf16>, vector<64x256xbf16>, vector<16x256xf32> -> vector<16x256xf32>
    %810 = arith.index_cast %c5_i32_251 : i32 to index
    %c0_253 = arith.constant 0 : index
    %c0_254 = arith.constant 0 : index
    %811 = vector.load %arg9[%810, %c0_253, %c0_254] : memref<8x16x256xbf16, #tpu.memory_space<vmem>>, vector<1x16x256xbf16>
    %812 = vector.shape_cast %811 : vector<1x16x256xbf16> to vector<16x256xbf16>
    %813 = arith.extf %812 : vector<16x256xbf16> to vector<16x256xf32>
    %814 = arith.addf %813, %809 : vector<16x256xf32>
    %815 = vector.extract_strided_slice %814 {offsets = [0, 0], sizes = [16, 192], strides = [1, 1]} : vector<16x256xf32> to vector<16x192xf32>
    %816 = arith.negf %815 : vector<16x192xf32>
    %817 = math.exp %816 : vector<16x192xf32>
    %cst_255 = arith.constant 1.000000e+00 : f32
    %818 = vector.broadcast %cst_255 : f32 to vector<16x192xf32>
    %819 = arith.addf %818, %817 : vector<16x192xf32>
    %820 = arith.divf %818, %819 : vector<16x192xf32>
    %821 = vector.extract_strided_slice %820 {offsets = [0, 0], sizes = [16, 64], strides = [1, 1]} : vector<16x192xf32> to vector<16x64xf32>
    %822 = vector.extract_strided_slice %820 {offsets = [0, 64], sizes = [16, 64], strides = [1, 1]} : vector<16x192xf32> to vector<16x64xf32>
    %823 = vector.extract_strided_slice %820 {offsets = [0, 128], sizes = [16, 64], strides = [1, 1]} : vector<16x192xf32> to vector<16x64xf32>
    %824 = vector.extract_strided_slice %814 {offsets = [0, 192], sizes = [16, 64], strides = [1, 1]} : vector<16x256xf32> to vector<16x64xf32>
    %825 = math.tanh %824 : vector<16x64xf32>
    %826 = arith.mulf %822, %805 : vector<16x64xf32>
    %827 = arith.mulf %821, %825 : vector<16x64xf32>
    %828 = arith.addf %826, %827 : vector<16x64xf32>
    %829 = math.tanh %828 : vector<16x64xf32>
    %830 = arith.mulf %823, %829 : vector<16x64xf32>
    %c6_i32_256 = arith.constant 6 : i32
    %831 = arith.truncf %830 : vector<16x64xf32> to vector<16x64xbf16>
    %cst_257 = arith.constant dense<0.000000e+00> : vector<16x256xf32>
    %832 = tpu.matmul %831, %684, %cst_257 {dimension_numbers = #tpu.dot_dimension_numbers<[1], [0], [0], [1], [0, 0, 1, 1], [], []>} : vector<16x64xbf16>, vector<64x256xbf16>, vector<16x256xf32> -> vector<16x256xf32>
    %833 = arith.index_cast %c6_i32_256 : i32 to index
    %c0_258 = arith.constant 0 : index
    %c0_259 = arith.constant 0 : index
    %834 = vector.load %arg9[%833, %c0_258, %c0_259] : memref<8x16x256xbf16, #tpu.memory_space<vmem>>, vector<1x16x256xbf16>
    %835 = vector.shape_cast %834 : vector<1x16x256xbf16> to vector<16x256xbf16>
    %836 = arith.extf %835 : vector<16x256xbf16> to vector<16x256xf32>
    %837 = arith.addf %836, %832 : vector<16x256xf32>
    %838 = vector.extract_strided_slice %837 {offsets = [0, 0], sizes = [16, 192], strides = [1, 1]} : vector<16x256xf32> to vector<16x192xf32>
    %839 = arith.negf %838 : vector<16x192xf32>
    %840 = math.exp %839 : vector<16x192xf32>
    %cst_260 = arith.constant 1.000000e+00 : f32
    %841 = vector.broadcast %cst_260 : f32 to vector<16x192xf32>
    %842 = arith.addf %841, %840 : vector<16x192xf32>
    %843 = arith.divf %841, %842 : vector<16x192xf32>
    %844 = vector.extract_strided_slice %843 {offsets = [0, 0], sizes = [16, 64], strides = [1, 1]} : vector<16x192xf32> to vector<16x64xf32>
    %845 = vector.extract_strided_slice %843 {offsets = [0, 64], sizes = [16, 64], strides = [1, 1]} : vector<16x192xf32> to vector<16x64xf32>
    %846 = vector.extract_strided_slice %843 {offsets = [0, 128], sizes = [16, 64], strides = [1, 1]} : vector<16x192xf32> to vector<16x64xf32>
    %847 = vector.extract_strided_slice %837 {offsets = [0, 192], sizes = [16, 64], strides = [1, 1]} : vector<16x256xf32> to vector<16x64xf32>
    %848 = math.tanh %847 : vector<16x64xf32>
    %849 = arith.mulf %845, %828 : vector<16x64xf32>
    %850 = arith.mulf %844, %848 : vector<16x64xf32>
    %851 = arith.addf %849, %850 : vector<16x64xf32>
    %852 = math.tanh %851 : vector<16x64xf32>
    %853 = arith.mulf %846, %852 : vector<16x64xf32>
    %c7_i32_261 = arith.constant 7 : i32
    %854 = arith.truncf %853 : vector<16x64xf32> to vector<16x64xbf16>
    %cst_262 = arith.constant dense<0.000000e+00> : vector<16x256xf32>
    %855 = tpu.matmul %854, %684, %cst_262 {dimension_numbers = #tpu.dot_dimension_numbers<[1], [0], [0], [1], [0, 0, 1, 1], [], []>} : vector<16x64xbf16>, vector<64x256xbf16>, vector<16x256xf32> -> vector<16x256xf32>
    %856 = arith.index_cast %c7_i32_261 : i32 to index
    %c0_263 = arith.constant 0 : index
    %c0_264 = arith.constant 0 : index
    %857 = vector.load %arg9[%856, %c0_263, %c0_264] : memref<8x16x256xbf16, #tpu.memory_space<vmem>>, vector<1x16x256xbf16>
    %858 = vector.shape_cast %857 : vector<1x16x256xbf16> to vector<16x256xbf16>
    %859 = arith.extf %858 : vector<16x256xbf16> to vector<16x256xf32>
    %860 = arith.addf %859, %855 : vector<16x256xf32>
    %861 = vector.extract_strided_slice %860 {offsets = [0, 0], sizes = [16, 192], strides = [1, 1]} : vector<16x256xf32> to vector<16x192xf32>
    %862 = arith.negf %861 : vector<16x192xf32>
    %863 = math.exp %862 : vector<16x192xf32>
    %cst_265 = arith.constant 1.000000e+00 : f32
    %864 = vector.broadcast %cst_265 : f32 to vector<16x192xf32>
    %865 = arith.addf %864, %863 : vector<16x192xf32>
    %866 = arith.divf %864, %865 : vector<16x192xf32>
    %867 = vector.extract_strided_slice %866 {offsets = [0, 0], sizes = [16, 64], strides = [1, 1]} : vector<16x192xf32> to vector<16x64xf32>
    %868 = vector.extract_strided_slice %866 {offsets = [0, 64], sizes = [16, 64], strides = [1, 1]} : vector<16x192xf32> to vector<16x64xf32>
    %869 = vector.extract_strided_slice %866 {offsets = [0, 128], sizes = [16, 64], strides = [1, 1]} : vector<16x192xf32> to vector<16x64xf32>
    %870 = vector.extract_strided_slice %860 {offsets = [0, 192], sizes = [16, 64], strides = [1, 1]} : vector<16x256xf32> to vector<16x64xf32>
    %871 = math.tanh %870 : vector<16x64xf32>
    %872 = arith.mulf %868, %851 : vector<16x64xf32>
    %873 = arith.mulf %867, %871 : vector<16x64xf32>
    %874 = arith.addf %872, %873 : vector<16x64xf32>
    %875 = math.tanh %874 : vector<16x64xf32>
    %876 = arith.mulf %869, %875 : vector<16x64xf32>
    %c7_i32_266 = arith.constant 7 : i32
    %c0_267 = arith.constant 0 : index
    %c0_268 = arith.constant 0 : index
    %877 = vector.load %arg5[%c0_267, %c0_268] : memref<1x64xf32, #tpu.memory_space<vmem>>, vector<1x64xf32>
    %878 = vector.broadcast %877 : vector<1x64xf32> to vector<16x64xf32>
    %879 = arith.mulf %876, %878 : vector<16x64xf32>
    %cst_269 = arith.constant dense<0.000000e+00> : vector<16xf32>
    %880 = vector.multi_reduction <add>, %879, %cst_269 [1] : vector<16x64xf32> to vector<16xf32>
    %881 = vector.shape_cast %880 : vector<16xf32> to vector<16x1xf32>
    %c0_270 = arith.constant 0 : index
    %c0_271 = arith.constant 0 : index
    %882 = vector.load %arg6[%c0_270, %c0_271] : memref<1x1xf32, #tpu.memory_space<vmem>>, vector<1x1xf32>
    %883 = vector.broadcast %882 : vector<1x1xf32> to vector<16x1xf32>
    %884 = arith.addf %881, %883 : vector<16x1xf32>
    %c0_272 = arith.constant 0 : index
    %c0_273 = arith.constant 0 : index
    %885 = vector.load %arg7[%c0_272, %c0_273] : memref<16x1xf32, #tpu.memory_space<vmem>>, vector<16x1xf32>
    tpu.vector_store %arg7[%c0_272, %c0_273], %884 {strides = array<i32>} : memref<16x1xf32, #tpu.memory_space<vmem>>, vector<16x1xf32>,
    return
  }
  func.func @transform_0(%arg0: i32) -> (i32, i32, i32) {
    %c0_i32 = arith.constant 0 : i32
    %c0_i32_0 = arith.constant 0 : i32
    %c0_i32_1 = arith.constant 0 : i32
    return %c0_i32, %arg0, %c0_i32_0 : i32, i32, i32
  }
  func.func @transform_1(%arg0: i32) -> (i32, i32, i32) {
    %c0_i32 = arith.constant 0 : i32
    %c0_i32_0 = arith.constant 0 : i32
    %c0_i32_1 = arith.constant 0 : i32
    %c0_i32_2 = arith.constant 0 : i32
    return %c0_i32, %c0_i32_0, %c0_i32_1 : i32, i32, i32
  }
  func.func @transform_2(%arg0: i32) -> (i32, i32, i32) {
    %c0_i32 = arith.constant 0 : i32
    %c0_i32_0 = arith.constant 0 : i32
    %c0_i32_1 = arith.constant 0 : i32
    %c0_i32_2 = arith.constant 0 : i32
    return %c0_i32, %c0_i32_0, %c0_i32_1 : i32, i32, i32
  }
  func.func @transform_3(%arg0: i32) -> (i32, i32, i32) {
    %c0_i32 = arith.constant 0 : i32
    %c0_i32_0 = arith.constant 0 : i32
    %c0_i32_1 = arith.constant 0 : i32
    %c0_i32_2 = arith.constant 0 : i32
    return %c0_i32, %c0_i32_0, %c0_i32_1 : i32, i32, i32
  }
  func.func @transform_4(%arg0: i32) -> (i32, i32) {
    %c0_i32 = arith.constant 0 : i32
    %c0_i32_0 = arith.constant 0 : i32
    %c0_i32_1 = arith.constant 0 : i32
    return %c0_i32, %c0_i32_0 : i32, i32
  }
  func.func @transform_5(%arg0: i32) -> (i32, i32) {
    %c0_i32 = arith.constant 0 : i32
    %c0_i32_0 = arith.constant 0 : i32
    %c0_i32_1 = arith.constant 0 : i32
    return %c0_i32, %c0_i32_0 : i32, i32
  }
  func.func @transform_6(%arg0: i32) -> (i32, i32) {
    %c0_i32 = arith.constant 0 : i32
    %c0_i32_0 = arith.constant 0 : i32
    return %arg0, %c0_i32 : i32, i32
  }
}

</mosaic_0001>

<bundles_post_ra>
// kernel: tpu_custom_call.1
= control target key start
LH: loop header
LB: loop body
LE: loop exit
PB: predicated region body
PF: predicated region fallthrough
CT: control target
= control target key end

     0   :  { %s9020_s0 = inlined_call_operand.hbm [shape: f32[8,16,64], index: 0, kind: input, shape index: {}]   ;;  %s9021_s1 = inlined_call_operand.hbm [shape: bf16[4,64,256], index: 1, kind: input, shape index: {}]   ;;  %s9022_s2 = inlined_call_operand.hbm [shape: bf16[4,64,256], index: 2, kind: input, shape index: {}]   ;;  %s9023_s3 = inlined_call_operand.hbm [shape: f32[4,1,256], index: 3, kind: input, shape index: {}]   ;;  %s9024_s4 = inlined_call_operand.vmem [shape: f32[1,64], index: 4, kind: input, shape index: {}]   ;;  %s9025_s5 = inlined_call_operand.<no memory space> [shape: f32[1,1], index: 5, kind: input, shape index: {}]   ;;  %s9026_s6 = inlined_call_operand.vmem [shape: f32[16,1], index: 6, kind: output, shape index: {}]  }
   0x1   :  { %v11_v0 = vstv %s9025_s5 }
   0x2   :  { %12 = vst [vmem:[#allocation4] sm:$0x1] %v11_v0 }
   0x3   :  { %13 = vsyncpa [#allocation6], 0 }
   0x4   :  { %14 = vsyncpa [#allocation8], 0 }
   0x5   :  { %15 = vsyncpa [#allocation11], 0  ;;  %s33_s25 = sshll.u32 %s9021_s1, 4  ;;  %s7542_s26 = smov [#allocation7]   ;;  %s34_s25 = int_to_ptr.hbm [resolvable:$true] %s33_s25 }
   0x6   :  { %s35_s27 = sshll.u32 %s7542_s26, 4  ;;  %s20_s30 = sshll.u32 %s9020_s0, 4  ;;  %s36_s27 = int_to_ptr.vmem [resolvable:$true] %s35_s27  ;;  %s21_s30 = int_to_ptr.hbm [resolvable:$true] %s20_s30 }
   0x7   :  { %s7543_s7 = smov 128   ;;  %s7544_s8 = smov 8  }
   0x8   :  { %41 = dma.hbm_to_vmem [thread:$0]  %s34_s25, 4096, %s36_s27, [#allocation8], %s7543_s7, %s7543_s7, %s7544_s8  }
   0x9   :  { %s7545_s5 = smov [#allocation5]   ;;  %s46_s12 = sshll.u32 %s9022_s2, 4  ;;  %s47_s12 = int_to_ptr.hbm [resolvable:$true] %s46_s12 }
   0xa   :  { %s22_s9 = sshll.u32 %s7545_s5, 4  ;;  %s59_s14 = sshll.u32 %s9023_s3, 4  ;;  %s23_s9 = int_to_ptr.vmem [resolvable:$true] %s22_s9  ;;  %s60_s14 = int_to_ptr.hbm [resolvable:$true] %s59_s14 }
   0xb   :  { %28 = dma.hbm_to_vmem [thread:$0]  %s21_s30, 2048, %s23_s9, [#allocation6], %s7543_s7, %s7543_s7, %s7544_s8  }
   0xc   :  { %s7546_s15 = smov [#allocation9]   ;;  %s7547_s0 = smov [#allocation10]  }
   0xd   :  { %s48_s16 = sshll.u32 %s7546_s15, 4  ;;  %s61_s17 = sshll.u32 %s7547_s0, 4  ;;  %s49_s16 = int_to_ptr.vmem [resolvable:$true] %s48_s16  ;;  %s62_s17 = int_to_ptr.vmem [resolvable:$true] %s61_s17 }
   0xe   :  { %54 = dma.hbm_to_vmem [thread:$0]  %s47_s12, 4096, %s49_s16, [#allocation8], %s7543_s7, %s7543_s7, %s7544_s8  }
   0xf   :  { %s7548_s18 = smov 32   ;;  %s7549_s19 = smov 2  }
  0x10   :  { %67 = dma.hbm_to_vmem [thread:$0]  %s60_s14, 128, %s62_s17, [#allocation11], %s7548_s18, %s7548_s18, %s7549_s19  }
  0x11   :  { %7536 = dma.done.wait [#allocation6], 2048  }
  0x12   :  { %7537 = vsyncadd [#allocation6], 4294965248 }
  0x13   :  { %7538 = dma.done.wait [#allocation8], 8192  }
  0x14   :  { %7539 = vsyncadd [#allocation8], 4294959104 }
  0x15   :  { %7540 = dma.done.wait [#allocation11], 128  }
  0x16   :  { %7541 = vsyncadd [#allocation11], 4294967168  ;;  %v6119_v1 = vld [vmem:[#allocation7 + $0x30] sm:$0xf]  ;;  %v6604_v2 = vld [vmem:[#allocation7 + $0x34] sm:$0xf0] }
  0x17   :  { %v6603_v3 = vld [vmem:[#allocation7 + $0x34] sm:$0xf]  ;;  %v6120_v4 = vor.u32 %v6604_v2, %v6119_v1  ;;  %v6121_v5 = vld [vmem:[#allocation7 + $0x38] sm:$0xf0]  ;;  %v6111_v6 = vld [vmem:[#allocation7 + $0x20] sm:$0xf] }
  0x18   :  { %v6602_v7 = vld [vmem:[#allocation7 + $0x24] sm:$0xf0]  ;;  %v6124_v8 = vor.u32 %v6603_v3, %v6121_v5  ;;  %v6601_v9 = vld [vmem:[#allocation7 + $0x24] sm:$0xf]  ;;  %v6113_v10 = vld [vmem:[#allocation7 + $0x28] sm:$0xf0] }
  0x19   :  { %204 = vmatpush.bf16.msra.mxu0 %v6120_v4  ;;  %v6112_v11 = vor.u32 %v6602_v7, %v6111_v6  ;;  %v6116_v12 = vor.u32 %v6601_v9, %v6113_v10  ;;  %v6103_v13 = vld [vmem:[#allocation7 + $0x10] sm:$0xf]  ;;  %v6600_v14 = vld [vmem:[#allocation7 + $0x14] sm:$0xf0]  ;;  %v6599_v15 = vld [vmem:[#allocation7 + $0x14] sm:$0xf] }
  0x1a   :  { %253 = vmatpush.bf16.msra.mxu1 %v6124_v8  ;;  %v6105_v16 = vld [vmem:[#allocation7 + $0x18] sm:$0xf0]  ;;  %v6104_v17 = vor.u32 %v6600_v14, %v6103_v13  ;;  %v6095_v19 = vld [vmem:[#allocation7] sm:$0xf]  ;;  %v6598_v20 = vld [vmem:[#allocation7 + $0x4] sm:$0xf0] }
  0x1b   :  { %v6108_v18 = vor.u32 %v6599_v15, %v6105_v16  ;;  %v6597_v21 = vld [vmem:[#allocation7 + $0x4] sm:$0xf]  ;;  %v6097_v22 = vld [vmem:[#allocation7 + $0x8] sm:$0xf0]  ;;  %v6096_v23 = vor.u32 %v6598_v20, %v6095_v19  ;;  %vm175_vm0 = vcmask 523264   ;;  %s7550_s2 = smov 64  }
  0x1c   :  { %v106_v24 = vld [vmem:[#allocation5] sm:$0xff]  ;;  %v107_v25 = vld [vmem:[#allocation5 + $0x8] sm:$0xff]  ;;  %v6100_v26 = vor.u32 %v6597_v21, %v6097_v22  ;;  %v6171_v13 = vld [vmem:[#allocation9 + $0x30] sm:$0xf] }
  0x1d   :  { %205 = vmatpush.bf16.msra.mxu0 %v6112_v11  ;;  %v122_v27 = vpack.c.bf16 %v107_v25, %v106_v24  ;;  %v105_v28 = vld [vmem:[#allocation10] sm:$0x3]  ;;  %v6612_v14 = vld [vmem:[#allocation9 + $0x34] sm:$0xf0]  ;;  %v6611_v15 = vld [vmem:[#allocation9 + $0x34] sm:$0xf] }
  0x1e   :  { %254 = vmatpush.bf16.msra.mxu1 %v6116_v12  ;;  %v7603_v29 = vperm.slane %v105_v28, 0  ;;  %v7605_v30 = vperm.slane %v105_v28, 1  ;;  %v7627_v16 = vor.u32 %v6612_v14, %v6171_v13 }
  0x20   :  { %498 = vmatpush.bf16.msra.mxu2 %v7627_v16 }
  0x21   :  { %206 = vmatpush.bf16.msra.mxu0 %v6104_v17  ;;  %v6173_v17 = vld [vmem:[#allocation9 + $0x38] sm:$0xf0] }
  0x22   :  { %255 = vmatpush.bf16.msra.mxu1 %v6108_v18  ;;  %v7629_v18 = vor.u32 %v6611_v15, %v6173_v17 }
  0x24   :  { %512 = vmatpush.bf16.msra.mxu3 %v7629_v18 }
  0x25   :  { %207 = vmatpush.bf16.msra.mxu0 %v6096_v23 }
  0x26   :  { %256 = vmatpush.bf16.msra.mxu1 %v6100_v26 }
  0x28   :  { %6125 = vmatmul.msk.bf16.vlgmr.msra.gmra.mxu0 %vm175_vm0, %v122_v27 }
  0x29   :  { %6133 = vmatmul.msk.bf16.vlgmr.msra.gmra.mxu1 %vm175_vm0, %v122_v27 }
  0xa5   :  { %v209_v31 = vpop.f32.mrf.mxu0 }
  0xa6   :  { %v210_v32 = vadd.f32 %v209_v31, %v7603_v29  ;;  %v258_v33 = vpop.f32.mrf.mxu1 }
  0xa7   :  { %v259_v34 = vadd.f32 %v258_v33, %v7605_v30  ;;  %v6163_v33 = vld [vmem:[#allocation9 + $0x20] sm:$0xf] }
  0xa9   :  { %v7609_v35 = vpack.c.bf16 %v259_v34, %v210_v32  ;;  %v6610_v34 = vld [vmem:[#allocation9 + $0x24] sm:$0xf0] }
  0xab   :  { %v333_v36 = vunpack.c.h.bf16 %v7609_v35  ;;  %v332_v45 = vunpack.c.l.bf16 %v7609_v35 }
  0xad   :  { %v211_v37 = vpop.f32.mrf.mxu0  ;;  %6672 = vtanh.f32 %v333_v36  ;;  %v6141_v46 = vmul.f32 -1.442695, %v332_v45  ;;  %v6142_v27 = vmul.f32 -1.442695, %v333_v36  ;;  %v6155_v36 = vld [vmem:[#allocation9 + $0x10] sm:$0xf] }
  0xae   :  { %v212_v38 = vadd.f32 %v211_v37, %v7603_v29  ;;  %v260_v39 = vpop.f32.mrf.mxu1  ;;  %v6609_v37 = vld [vmem:[#allocation9 + $0x24] sm:$0xf]  ;;  %v6608_v45 = vld [vmem:[#allocation9 + $0x14] sm:$0xf0] }
  0xaf   :  { %v261_v40 = vadd.f32 %v260_v39, %v7605_v30  ;;  %v6165_v39 = vld [vmem:[#allocation9 + $0x28] sm:$0xf0] }
  0xb1   :  { %v7616_v41 = vpack.c.bf16 %v261_v40, %v212_v38  ;;  %v7645_v38 = vor.u32 %v6610_v34, %v6163_v33  ;;  %v108_v40 = vld [vmem:[#allocation5 + $0x10] sm:$0xff] }
  0xb3   :  { %v6673_v42 = vpop.eup %6672  ;;  %v335_v43 = vunpack.c.h.bf16 %v7616_v41  ;;  %v334_v47 = vunpack.c.l.bf16 %v7616_v41  ;;  %499 = vmatpush.bf16.msra.mxu2 %v7645_v38 }
  0xb4   :  { %418 = vrot.lane.b32.xlu0 %v6673_v42, %s7550_s2  ;;  %v109_v42 = vld [vmem:[#allocation5 + $0x18] sm:$0xff] }
  0xb5   :  { %6674 = vtanh.f32 %v335_v43  ;;  %v6143_v48 = vmul.f32 -1.442695, %v334_v47  ;;  %v6144_v28 = vmul.f32 -1.442695, %v335_v43  ;;  %v123_v35 = vpack.c.bf16 %v109_v42, %v108_v40  ;;  %v6157_v47 = vld [vmem:[#allocation9 + $0x18] sm:$0xf0] }
  0xb6   :  { %6676 = vpow2.f32 %v6141_v46  ;;  %v6607_v46 = vld [vmem:[#allocation9 + $0x14] sm:$0xf]  ;;  %v7650_v43 = vor.u32 %v6608_v45, %v6155_v36 }
  0xb7   :  { %6678 = vpow2.f32 %v6143_v48  ;;  %6126 = vmatmul.msk.bf16.gmra.mxu0 %vm175_vm0, %v123_v35  ;;  %v7654_v48 = vor.u32 %v6607_v46, %v6157_v47  ;;  %6134 = vmatmul.msk.bf16.gmra.mxu1 %vm175_vm0, %v123_v35 }
  0xb8   :  { %500 = vmatpush.bf16.msra.mxu2 %v7650_v43 }
  0xbb   :  { %v6675_v44 = vpop.eup %6674 }
  0xbc   :  { %420 = vrot.lane.b32.xlu0 %v6675_v44, %s7550_s2  ;;  %v6677_v49 = vpop.eup %6676  ;;  %v7647_v44 = vor.u32 %v6609_v37, %v6165_v39 }
  0xbd   :  { %v348_v50 = vadd.f32 1.0, %v6677_v49  ;;  %v6679_v51 = vpop.eup %6678 }
  0xbe   :  { %v350_v52 = vadd.f32 1.0, %v6679_v51  ;;  %513 = vmatpush.bf16.msra.mxu3 %v7647_v44  ;;  %v6147_v51 = vld [vmem:[#allocation9] sm:$0xf] }
  0xbf   :  { %6680 = vrcp.f32 %v348_v50  ;;  %v363_v61 = vand.u32 2147483648, %v348_v50  ;;  %vm357_vm2 = vweird.f32 %v348_v50  ;;  %v361_v62 = vand.u32 2147483647, %v348_v50 }
  0xc0   :  { %6682 = vrcp.f32 %v350_v52  ;;  %v393_v6 = vand.u32 2147483648, %v350_v52  ;;  %vm387_vm6 = vweird.f32 %v350_v52  ;;  %v391_v7 = vand.u32 2147483647, %v350_v52 }
  0xc1   :  { %v364_v1 = vor.u32 1.1754944e-38, %v363_v61  ;;  %vm362_vm4 = vcmp.eq.f32.partialorder %v361_v62, 8.507059e+37 }
  0xc2   :  { %v394_v9 = vor.u32 1.1754944e-38, %v393_v6  ;;  %vm392_vm8 = vcmp.eq.f32.partialorder %v391_v7, 8.507059e+37  ;;  %514 = vmatpush.bf16.msra.mxu3 %v7654_v48 }
  0xc5   :  { %v6681_v53 = vpop.eup %6680 }
  0xc6   :  { %v353_v54 = vmul.f32 %v6681_v53, %v348_v50  ;;  %v6683_v56 = vpop.eup %6682  ;;  %vm358_vm1 = vweird.f32 %v6681_v53 }
  0xc7   :  { %v383_v58 = vmul.f32 %v6683_v56, %v350_v52  ;;  %vm359_vm3 = vmor %vm357_vm2, %vm358_vm1  ;;  %vm388_vm5 = vweird.f32 %v6683_v56  ;;  %v6606_v52 = vld [vmem:[#allocation9 + $0x4] sm:$0xf0] }
  0xc8   :  { %v354_v55 = vsub.f32 1.0, %v353_v54  ;;  %vm389_vm7 = vmor %vm387_vm6, %vm388_vm5  ;;  %v7659_v54 = vor.u32 %v6606_v52, %v6147_v51 }
  0xc9   :  { %v384_v60 = vsub.f32 1.0, %v383_v58 }
  0xca   :  { %v355_v57 = vmul.f32 %v6681_v53, %v354_v55  ;;  %v6149_v55 = vld [vmem:[#allocation9 + $0x8] sm:$0xf0]  ;;  %501 = vmatpush.bf16.msra.mxu2 %v7659_v54 }
  0xcb   :  { %v385_v0 = vmul.f32 %v6683_v56, %v384_v60 }
  0xcc   :  { %v356_v59 = vadd.f32 %v6681_v53, %v355_v57 }
  0xcd   :  { %v386_v5 = vadd.f32 %v6683_v56, %v385_v0 }
  0xce   :  { %v360_v63 = vsel %vm359_vm3, %v6681_v53, %v356_v59  ;;  %v6605_v53 = vld [vmem:[#allocation9 + $0x4] sm:$0xf]  ;;  %656 = vmatpush.bf16.msrb.mxu2 %v7627_v16 }
  0xcf   :  { %v365_v3 = vsel %vm362_vm4, %v364_v1, %v360_v63  ;;  %v390_v8 = vsel %vm389_vm7, %v6683_v56, %v386_v5  ;;  %v7661_v57 = vor.u32 %v6605_v53, %v6149_v55 }
  0xd0   :  { %v395_v10 = vsel %vm392_vm8, %v394_v9, %v390_v8  ;;  %v414_v19 = vmul.f32 0.0, %v365_v3 }
  0xd1   :  { %v415_v22 = vmul.f32 0.0, %v395_v10  ;;  %515 = vmatpush.bf16.msra.mxu3 %v7661_v57 }
  0xd2   :  { %657 = vmatpush.bf16.msrb.mxu2 %v7645_v38 }
  0xd5   :  { %670 = vmatpush.bf16.msrb.mxu3 %v7629_v18 }
  0xd6   :  { %658 = vmatpush.bf16.msrb.mxu2 %v7650_v43 }
  0xd9   :  { %671 = vmatpush.bf16.msrb.mxu3 %v7647_v44 }
  0xda   :  { %659 = vmatpush.bf16.msrb.mxu2 %v7659_v54 }
  0xdd   :  { %672 = vmatpush.bf16.msrb.mxu3 %v7654_v48 }
  0xe1   :  { %673 = vmatpush.bf16.msrb.mxu3 %v7661_v57 }
 0x126   :  { %v419_v2 = vpop.permute.xlu0 %418 }
 0x127   :  { %v424_v4 = vmul.f32 %v419_v2, %v365_v3 }
 0x129   :  { %428 = vrot.lane.b32.xlu1 %v424_v4, %s7550_s2 }
 0x12e   :  { %v421_v11 = vpop.permute.xlu0 %420 }
 0x12f   :  { %v425_v12 = vmul.f32 %v421_v11, %v395_v10 }
 0x131   :  { %430 = vrot.lane.b32.xlu1 %v425_v12, %s7550_s2 }
 0x19b   :  { %v429_v20 = vpop.permute.xlu1 %428 }
 0x19c   :  { %v7633_v21 = vadd.f32 %v429_v20, %v414_v19  ;;  %v214_v19 = vpop.f32.mrf.mxu0  ;;  %v263_v20 = vpop.f32.mrf.mxu1 }
 0x19e   :  { %6684 = vtanh.f32 %v7633_v21 }
 0x1a3   :  { %v431_v23 = vpop.permute.xlu1 %430 }
 0x1a4   :  { %v6685_v24 = vpop.eup %6684  ;;  %v7636_v25 = vadd.f32 %v431_v23, %v415_v22  ;;  %v215_v22 = vadd.f32 %v214_v19, %v7603_v29  ;;  %v264_v23 = vadd.f32 %v263_v20, %v7605_v30 }
 0x1a5   :  { %440 = vrot.lane.b32.xlu2 %v6685_v24, %s7550_s2 }
 0x1a6   :  { %6686 = vtanh.f32 %v7636_v25  ;;  %v300_v24 = vpack.c.bf16 %v264_v23, %v215_v22 }
 0x1a7   :  { %6688 = vpow2.f32 %v6142_v27  ;;  %v265_v27 = vpop.f32.mrf.mxu1 }
 0x1a8   :  { %6690 = vpow2.f32 %v6144_v28  ;;  %v526_v28 = vunpack.c.h.bf16 %v300_v24  ;;  %v525_v46 = vunpack.c.l.bf16 %v300_v24 }
 0x1ac   :  { %v6687_v26 = vpop.eup %6686 }
 0x1ad   :  { %442 = vrot.lane.b32.xlu2 %v6687_v26, %s7550_s2  ;;  %v6689_v31 = vpop.eup %6688  ;;  %v216_v26 = vpop.f32.mrf.mxu0 }
 0x1ae   :  { %v349_v32 = vadd.f32 1.0, %v6689_v31  ;;  %v6691_v41 = vpop.eup %6690  ;;  %v217_v31 = vadd.f32 %v216_v26, %v7603_v29 }
 0x1af   :  { %v351_v49 = vadd.f32 1.0, %v6691_v41 }
 0x1b0   :  { %6692 = vrcp.f32 %v349_v32  ;;  %v378_v0 = vand.u32 2147483648, %v349_v32  ;;  %vm372_vm10 = vweird.f32 %v349_v32  ;;  %v376_v1 = vand.u32 2147483647, %v349_v32 }
 0x1b1   :  { %6694 = vrcp.f32 %v351_v49  ;;  %v408_v9 = vand.u32 2147483648, %v351_v49  ;;  %vm402_vm14 = vweird.f32 %v351_v49  ;;  %v406_v10 = vand.u32 2147483647, %v351_v49 }
 0x1b2   :  { %v379_v4 = vor.u32 1.1754944e-38, %v378_v0  ;;  %vm377_vm12 = vcmp.eq.f32.partialorder %v376_v1, 8.507059e+37 }
 0x1b3   :  { %v409_v12 = vor.u32 1.1754944e-38, %v408_v9  ;;  %vm407_vm1 = vcmp.eq.f32.partialorder %v406_v10, 8.507059e+37 }
 0x1b6   :  { %v6693_v50 = vpop.eup %6692 }
 0x1b7   :  { %v368_v56 = vmul.f32 %v6693_v50, %v349_v32  ;;  %v6695_v59 = vpop.eup %6694  ;;  %vm373_vm9 = vweird.f32 %v6693_v50  ;;  %v266_v32 = vadd.f32 %v265_v27, %v7605_v30 }
 0x1b8   :  { %v398_v61 = vmul.f32 %v6695_v59, %v351_v49  ;;  %vm374_vm11 = vmor %vm372_vm10, %vm373_vm9  ;;  %vm403_vm13 = vweird.f32 %v6695_v59 }
 0x1b9   :  { %v369_v58 = vsub.f32 1.0, %v368_v56  ;;  %vm404_vm15 = vmor %vm402_vm14, %vm403_vm13  ;;  %v301_v37 = vpack.c.bf16 %v266_v32, %v217_v31 }
 0x1ba   :  { %v399_v63 = vsub.f32 1.0, %v398_v61 }
 0x1bb   :  { %v370_v60 = vmul.f32 %v6693_v50, %v369_v58  ;;  %v528_v39 = vunpack.c.h.bf16 %v301_v37 }
 0x1bc   :  { %v400_v3 = vmul.f32 %v6695_v59, %v399_v63 }
 0x1bd   :  { %v371_v62 = vadd.f32 %v6693_v50, %v370_v60 }
 0x1be   :  { %v401_v8 = vadd.f32 %v6695_v59, %v400_v3 }
 0x1bf   :  { %v375_v2 = vsel %vm374_vm11, %v6693_v50, %v371_v62  ;;  %v527_v50 = vunpack.c.l.bf16 %v301_v37 }
 0x1c0   :  { %v380_v5 = vsel %vm377_vm12, %v379_v4, %v375_v2  ;;  %v405_v11 = vsel %vm404_vm15, %v6695_v59, %v401_v8 }
 0x1c1   :  { %v410_v13 = vsel %vm407_vm1, %v409_v12, %v405_v11 }
 0x1ff   :  { %v441_v6 = vpop.permute.xlu2 %440 }
 0x200   :  { %v446_v7 = vmul.f32 %v441_v6, %v380_v5 }
 0x202   :  { %448 = vst.msk [vmem:[#allocation2] sm:$0xff] %vm175_vm0, %v446_v7 }
 0x207   :  { %v443_v14 = vpop.permute.xlu2 %442 }
 0x208   :  { %v447_v15 = vmul.f32 %v443_v14, %v410_v13 }
 0x20a   :  { %449 = vst.msk [vmem:[#allocation2 + $0x8] sm:$0xff] %vm175_vm0, %v447_v15  ;;  %v450_v17 = vpack.c.bf16 %v447_v15, %v446_v7 }
 0x20c   :  { %6177 = vmatmul.msk.bf16.vlgmr.msra.gmra.mxu2 %vm175_vm0, %v450_v17  ;;  %6178 = vmatmul.msk.bf16.vlgmr.msra.gmra.mxu3 %vm175_vm0, %v450_v17 }
 0x20d   :  { %828 = vmatpush.bf16.msra.mxu3 %v7629_v18  ;;  %814 = vmatpush.bf16.msra.mxu2 %v7627_v16 }
 0x211   :  { %829 = vmatpush.bf16.msra.mxu3 %v7647_v44  ;;  %815 = vmatpush.bf16.msra.mxu2 %v7645_v38 }
 0x215   :  { %830 = vmatpush.bf16.msra.mxu3 %v7654_v48  ;;  %816 = vmatpush.bf16.msra.mxu2 %v7650_v43 }
 0x219   :  { %831 = vmatpush.bf16.msra.mxu3 %v7661_v57  ;;  %817 = vmatpush.bf16.msra.mxu2 %v7659_v54 }
 0x28f   :  { %v517_v33 = vpop.f32.mrf.mxu3  ;;  %v503_v45 = vpop.f32.mrf.mxu2 }
 0x290   :  { %v7689_v34 = vadd.f32 %v526_v28, %v517_v33  ;;  %v529_v41 = vadd.f32 %v525_v46, %v503_v45 }
 0x292   :  { %6696 = vtanh.f32 %v7689_v34  ;;  %v6179_v47 = vmul.f32 -1.442695, %v529_v41 }
 0x297   :  { %v519_v40 = vpop.f32.mrf.mxu3  ;;  %v505_v49 = vpop.f32.mrf.mxu2 }
 0x298   :  { %v6697_v42 = vpop.eup %6696  ;;  %v7692_v35 = vadd.f32 %v528_v39, %v519_v40  ;;  %v531_v51 = vadd.f32 %v527_v50, %v505_v49  ;;  %v110_v40 = vld [vmem:[#allocation5 + $0x20] sm:$0xff] }
 0x299   :  { %615 = vrot.lane.b32.xlu0 %v6697_v42, %s7550_s2  ;;  %v111_v42 = vld [vmem:[#allocation5 + $0x28] sm:$0xff] }
 0x29a   :  { %6698 = vtanh.f32 %v7692_v35  ;;  %v6181_v52 = vmul.f32 -1.442695, %v531_v51  ;;  %v6182_v33 = vmul.f32 -1.442695, %v7692_v35 }
 0x29b   :  { %6700 = vpow2.f32 %v6179_v47 }
 0x29c   :  { %6702 = vpow2.f32 %v6181_v52 }
 0x2a0   :  { %v6699_v36 = vpop.eup %6698 }
 0x2a1   :  { %617 = vrot.lane.b32.xlu1 %v6699_v36, %s7550_s2  ;;  %v6701_v53 = vpop.eup %6700 }
 0x2a2   :  { %v545_v55 = vadd.f32 1.0, %v6701_v53  ;;  %v6703_v56 = vpop.eup %6702 }
 0x2a3   :  { %v547_v58 = vadd.f32 1.0, %v6703_v56 }
 0x2a4   :  { %6704 = vrcp.f32 %v545_v55  ;;  %v560_v3 = vand.u32 2147483648, %v545_v55  ;;  %vm554_vm3 = vweird.f32 %v545_v55  ;;  %v558_v4 = vand.u32 2147483647, %v545_v55 }
 0x2a5   :  { %6706 = vrcp.f32 %v547_v58  ;;  %v590_v12 = vand.u32 2147483648, %v547_v58  ;;  %vm584_vm7 = vweird.f32 %v547_v58  ;;  %v588_v13 = vand.u32 2147483647, %v547_v58 }
 0x2a6   :  { %v561_v7 = vor.u32 1.1754944e-38, %v560_v3  ;;  %vm559_vm5 = vcmp.eq.f32.partialorder %v558_v4, 8.507059e+37 }
 0x2a7   :  { %v591_v15 = vor.u32 1.1754944e-38, %v590_v12  ;;  %vm589_vm9 = vcmp.eq.f32.partialorder %v588_v13, 8.507059e+37 }
 0x2aa   :  { %v6705_v59 = vpop.eup %6704 }
 0x2ab   :  { %v550_v60 = vmul.f32 %v6705_v59, %v545_v55  ;;  %v6707_v62 = vpop.eup %6706  ;;  %vm555_vm2 = vweird.f32 %v6705_v59 }
 0x2ac   :  { %v580_v0 = vmul.f32 %v6707_v62, %v547_v58  ;;  %vm556_vm4 = vmor %vm554_vm3, %vm555_vm2  ;;  %vm585_vm6 = vweird.f32 %v6707_v62 }
 0x2ad   :  { %v551_v61 = vsub.f32 1.0, %v550_v60  ;;  %vm586_vm8 = vmor %vm584_vm7, %vm585_vm6 }
 0x2ae   :  { %v581_v2 = vsub.f32 1.0, %v580_v0 }
 0x2af   :  { %v552_v63 = vmul.f32 %v6705_v59, %v551_v61 }
 0x2b0   :  { %v582_v6 = vmul.f32 %v6707_v62, %v581_v2 }
 0x2b1   :  { %v553_v1 = vadd.f32 %v6705_v59, %v552_v63 }
 0x2b2   :  { %v583_v11 = vadd.f32 %v6707_v62, %v582_v6 }
 0x2b3   :  { %v557_v5 = vsel %vm556_vm4, %v6705_v59, %v553_v1 }
 0x2b4   :  { %v562_v9 = vsel %vm559_vm5, %v561_v7, %v557_v5  ;;  %v587_v14 = vsel %vm586_vm8, %v6707_v62, %v583_v11 }
 0x2b5   :  { %v592_v19 = vsel %vm589_vm9, %v591_v15, %v587_v14  ;;  %v611_v22 = vmul.f32 %v562_v9, %v7633_v21  ;;  %v6180_v21 = vmul.f32 -1.442695, %v7689_v34 }
 0x2b6   :  { %v612_v27 = vmul.f32 %v592_v19, %v7636_v25  ;;  %v124_v25 = vpack.c.bf16 %v111_v42, %v110_v40 }
 0x2b8   :  { %6127 = vmatmul.msk.bf16.gmra.mxu0 %vm175_vm0, %v124_v25  ;;  %6135 = vmatmul.msk.bf16.gmra.mxu1 %vm175_vm0, %v124_v25 }
 0x30b   :  { %v616_v8 = vpop.permute.xlu0 %615 }
 0x30c   :  { %v621_v10 = vmul.f32 %v616_v8, %v562_v9 }
 0x30e   :  { %625 = vrot.lane.b32.xlu2 %v621_v10, %s7550_s2 }
 0x313   :  { %v618_v17 = vpop.permute.xlu1 %617 }
 0x314   :  { %v622_v20 = vmul.f32 %v618_v17, %v592_v19 }
 0x316   :  { %627 = vrot.lane.b32.xlu0 %v622_v20, %s7550_s2 }
 0x335   :  { %v219_v7 = vpop.f32.mrf.mxu0  ;;  %v268_v8 = vpop.f32.mrf.mxu1 }
 0x336   :  { %v220_v9 = vadd.f32 %v219_v7, %v7603_v29  ;;  %v269_v10 = vadd.f32 %v268_v8, %v7605_v30 }
 0x338   :  { %v302_v11 = vpack.c.bf16 %v269_v10, %v220_v9 }
 0x33a   :  { %v684_v14 = vunpack.c.h.bf16 %v302_v11 }
 0x33d   :  { %v221_v12 = vpop.f32.mrf.mxu0  ;;  %v270_v13 = vpop.f32.mrf.mxu1 }
 0x33e   :  { %v222_v15 = vadd.f32 %v221_v12, %v7603_v29  ;;  %v271_v17 = vadd.f32 %v270_v13, %v7605_v30 }
 0x368   :  { %v626_v23 = vpop.permute.xlu2 %625 }
 0x369   :  { %v7700_v24 = vadd.f32 %v626_v23, %v611_v22  ;;  %v303_v22 = vpack.c.bf16 %v271_v17, %v222_v15 }
 0x36b   :  { %6708 = vtanh.f32 %v7700_v24  ;;  %v686_v23 = vunpack.c.h.bf16 %v303_v22  ;;  %v685_v42 = vunpack.c.l.bf16 %v303_v22 }
 0x371   :  { %v6709_v26 = vpop.eup %6708 }
 0x372   :  { %637 = vrot.lane.b32.xlu1 %v6709_v26, %s7550_s2 }
 0x388   :  { %v628_v28 = vpop.permute.xlu0 %627 }
 0x389   :  { %v7705_v31 = vadd.f32 %v628_v28, %v612_v27 }
 0x38b   :  { %6710 = vtanh.f32 %v7705_v31 }
 0x38c   :  { %6712 = vpow2.f32 %v6180_v21 }
 0x38d   :  { %6714 = vpow2.f32 %v6182_v33  ;;  %v683_v33 = vunpack.c.l.bf16 %v302_v11 }
 0x391   :  { %v6711_v32 = vpop.eup %6710 }
 0x392   :  { %639 = vrot.lane.b32.xlu2 %v6711_v32, %s7550_s2  ;;  %v6713_v37 = vpop.eup %6712 }
 0x393   :  { %v546_v39 = vadd.f32 1.0, %v6713_v37  ;;  %v6715_v36 = vpop.eup %6714 }
 0x394   :  { %v548_v45 = vadd.f32 1.0, %v6715_v36 }
 0x395   :  { %6716 = vrcp.f32 %v546_v39  ;;  %v575_v52 = vand.u32 2147483648, %v546_v39  ;;  %vm569_vm11 = vweird.f32 %v546_v39  ;;  %v573_v53 = vand.u32 2147483647, %v546_v39 }
 0x396   :  { %6718 = vrcp.f32 %v548_v45  ;;  %v605_v63 = vand.u32 2147483648, %v548_v45  ;;  %vm599_vm15 = vweird.f32 %v548_v45  ;;  %v603_v0 = vand.u32 2147483647, %v548_v45 }
 0x397   :  { %v576_v58 = vor.u32 1.1754944e-38, %v575_v52  ;;  %vm574_vm13 = vcmp.eq.f32.partialorder %v573_v53, 8.507059e+37 }
 0x398   :  { %v606_v2 = vor.u32 1.1754944e-38, %v605_v63  ;;  %vm604_vm2 = vcmp.eq.f32.partialorder %v603_v0, 8.507059e+37 }
 0x39b   :  { %v6717_v46 = vpop.eup %6716 }
 0x39c   :  { %v565_v41 = vmul.f32 %v6717_v46, %v546_v39  ;;  %v6719_v47 = vpop.eup %6718  ;;  %vm570_vm10 = vweird.f32 %v6717_v46 }
 0x39d   :  { %v595_v35 = vmul.f32 %v6719_v47, %v548_v45  ;;  %vm571_vm12 = vmor %vm569_vm11, %vm570_vm10  ;;  %vm600_vm14 = vweird.f32 %v6719_v47 }
 0x39e   :  { %v566_v34 = vsub.f32 1.0, %v565_v41  ;;  %vm601_vm1 = vmor %vm599_vm15, %vm600_vm14 }
 0x39f   :  { %v596_v51 = vsub.f32 1.0, %v595_v35 }
 0x3a0   :  { %v567_v49 = vmul.f32 %v6717_v46, %v566_v34 }
 0x3a1   :  { %v597_v56 = vmul.f32 %v6719_v47, %v596_v51 }
 0x3a2   :  { %v568_v50 = vadd.f32 %v6717_v46, %v567_v49 }
 0x3a3   :  { %v598_v62 = vadd.f32 %v6719_v47, %v597_v56 }
 0x3a4   :  { %v572_v55 = vsel %vm571_vm12, %v6717_v46, %v568_v50 }
 0x3a5   :  { %v577_v59 = vsel %vm574_vm13, %v576_v58, %v572_v55  ;;  %v602_v1 = vsel %vm601_vm1, %v6719_v47, %v598_v62 }
 0x3a6   :  { %v607_v3 = vsel %vm604_vm2, %v606_v2, %v602_v1 }
 0x3e4   :  { %v638_v60 = vpop.permute.xlu1 %637 }
 0x3e5   :  { %v643_v61 = vmul.f32 %v638_v60, %v577_v59 }
 0x3e7   :  { %646 = vst.msk [vmem:[#allocation2 + $0x10] sm:$0xff] %vm175_vm0, %v643_v61 }
 0x3ec   :  { %v640_v4 = vpop.permute.xlu2 %639 }
 0x3ed   :  { %v644_v5 = vmul.f32 %v640_v4, %v607_v3 }
 0x3ef   :  { %647 = vst.msk [vmem:[#allocation2 + $0x18] sm:$0xff] %vm175_vm0, %v644_v5  ;;  %v648_v6 = vpack.c.bf16 %v644_v5, %v643_v61 }
 0x3f1   :  { %6183 = vmatmul.msk.bf16.vlgmr.msrb.gmra.mxu2 %vm175_vm0, %v648_v6  ;;  %6184 = vmatmul.msk.bf16.vlgmr.msrb.gmra.mxu3 %vm175_vm0, %v648_v6 }
 0x3f2   :  { %986 = vmatpush.bf16.msrb.mxu3 %v7629_v18  ;;  %972 = vmatpush.bf16.msrb.mxu2 %v7627_v16 }
 0x3f6   :  { %987 = vmatpush.bf16.msrb.mxu3 %v7647_v44  ;;  %973 = vmatpush.bf16.msrb.mxu2 %v7645_v38 }
 0x3fa   :  { %988 = vmatpush.bf16.msrb.mxu3 %v7654_v48  ;;  %974 = vmatpush.bf16.msrb.mxu2 %v7650_v43 }
 0x3fe   :  { %989 = vmatpush.bf16.msrb.mxu3 %v7661_v57  ;;  %975 = vmatpush.bf16.msrb.mxu2 %v7659_v54 }
 0x474   :  { %v675_v19 = vpop.f32.mrf.mxu3  ;;  %v661_v21 = vpop.f32.mrf.mxu2 }
 0x475   :  { %v7729_v20 = vadd.f32 %v684_v14, %v675_v19  ;;  %v687_v37 = vadd.f32 %v683_v33, %v661_v21 }
 0x477   :  { %6720 = vtanh.f32 %v7729_v20  ;;  %v6185_v39 = vmul.f32 -1.442695, %v687_v37 }
 0x47c   :  { %v677_v26 = vpop.f32.mrf.mxu3  ;;  %v663_v40 = vpop.f32.mrf.mxu2 }
 0x47d   :  { %v6721_v27 = vpop.eup %6720  ;;  %v7732_v28 = vadd.f32 %v686_v23, %v677_v26  ;;  %v689_v25 = vadd.f32 %v685_v42, %v663_v40  ;;  %v112_v26 = vld [vmem:[#allocation5 + $0x30] sm:$0xff] }
 0x47e   :  { %773 = vrot.lane.b32.xlu0 %v6721_v27, %s7550_s2  ;;  %v113_v27 = vld [vmem:[#allocation5 + $0x38] sm:$0xff] }
 0x47f   :  { %6722 = vtanh.f32 %v7732_v28  ;;  %v6187_v36 = vmul.f32 -1.442695, %v689_v25  ;;  %v6188_v19 = vmul.f32 -1.442695, %v7732_v28 }
 0x480   :  { %6724 = vpow2.f32 %v6185_v39 }
 0x481   :  { %6726 = vpow2.f32 %v6187_v36 }
 0x485   :  { %v6723_v32 = vpop.eup %6722 }
 0x486   :  { %775 = vrot.lane.b32.xlu1 %v6723_v32, %s7550_s2  ;;  %v6725_v45 = vpop.eup %6724 }
 0x487   :  { %v703_v46 = vadd.f32 1.0, %v6725_v45  ;;  %v6727_v41 = vpop.eup %6726 }
 0x488   :  { %v705_v34 = vadd.f32 1.0, %v6727_v41 }
 0x489   :  { %6728 = vrcp.f32 %v703_v46  ;;  %v718_v56 = vand.u32 2147483648, %v703_v46  ;;  %vm712_vm4 = vweird.f32 %v703_v46  ;;  %v716_v58 = vand.u32 2147483647, %v703_v46 }
 0x48a   :  { %6730 = vrcp.f32 %v705_v34  ;;  %v748_v2 = vand.u32 2147483648, %v705_v34  ;;  %vm742_vm8 = vweird.f32 %v705_v34  ;;  %v746_v3 = vand.u32 2147483647, %v705_v34 }
 0x48b   :  { %v719_v61 = vor.u32 1.1754944e-38, %v718_v56  ;;  %vm717_vm6 = vcmp.eq.f32.partialorder %v716_v58, 8.507059e+37 }
 0x48c   :  { %v749_v5 = vor.u32 1.1754944e-38, %v748_v2  ;;  %vm747_vm10 = vcmp.eq.f32.partialorder %v746_v3, 8.507059e+37 }
 0x48f   :  { %v6729_v47 = vpop.eup %6728 }
 0x490   :  { %v708_v49 = vmul.f32 %v6729_v47, %v703_v46  ;;  %v6731_v50 = vpop.eup %6730  ;;  %vm713_vm3 = vweird.f32 %v6729_v47 }
 0x491   :  { %v738_v52 = vmul.f32 %v6731_v50, %v705_v34  ;;  %vm714_vm5 = vmor %vm712_vm4, %vm713_vm3  ;;  %vm743_vm7 = vweird.f32 %v6731_v50 }
 0x492   :  { %v709_v35 = vsub.f32 1.0, %v708_v49  ;;  %vm744_vm9 = vmor %vm742_vm8, %vm743_vm7 }
 0x493   :  { %v739_v55 = vsub.f32 1.0, %v738_v52 }
 0x494   :  { %v710_v51 = vmul.f32 %v6729_v47, %v709_v35 }
 0x495   :  { %v740_v60 = vmul.f32 %v6731_v50, %v739_v55 }
 0x496   :  { %v711_v53 = vadd.f32 %v6729_v47, %v710_v51 }
 0x497   :  { %v741_v1 = vadd.f32 %v6731_v50, %v740_v60 }
 0x498   :  { %v715_v59 = vsel %vm714_vm5, %v6729_v47, %v711_v53 }
 0x499   :  { %v720_v63 = vsel %vm717_vm6, %v719_v61, %v715_v59  ;;  %v745_v4 = vsel %vm744_vm9, %v6731_v50, %v741_v1 }
 0x49a   :  { %v750_v7 = vsel %vm747_vm10, %v749_v5, %v745_v4  ;;  %v769_v9 = vmul.f32 %v720_v63, %v7700_v24  ;;  %v6186_v24 = vmul.f32 -1.442695, %v7729_v20 }
 0x49b   :  { %v770_v13 = vmul.f32 %v750_v7, %v7705_v31  ;;  %v125_v31 = vpack.c.bf16 %v113_v27, %v112_v26 }
 0x49d   :  { %6128 = vmatmul.msk.bf16.gmra.mxu0 %vm175_vm0, %v125_v31  ;;  %6136 = vmatmul.msk.bf16.gmra.mxu1 %vm175_vm0, %v125_v31 }
 0x4f0   :  { %v774_v62 = vpop.permute.xlu0 %773 }
 0x4f1   :  { %v779_v0 = vmul.f32 %v774_v62, %v720_v63 }
 0x4f3   :  { %783 = vrot.lane.b32.xlu2 %v779_v0, %s7550_s2 }
 0x4f8   :  { %v776_v6 = vpop.permute.xlu1 %775 }
 0x4f9   :  { %v780_v8 = vmul.f32 %v776_v6, %v750_v7 }
 0x4fb   :  { %785 = vrot.lane.b32.xlu0 %v780_v8, %s7550_s2 }
 0x51a   :  { %v224_v61 = vpop.f32.mrf.mxu0  ;;  %v273_v62 = vpop.f32.mrf.mxu1 }
 0x51b   :  { %v225_v63 = vadd.f32 %v224_v61, %v7603_v29  ;;  %v274_v0 = vadd.f32 %v273_v62, %v7605_v30 }
 0x51d   :  { %v304_v1 = vpack.c.bf16 %v274_v0, %v225_v63 }
 0x51f   :  { %v842_v4 = vunpack.c.h.bf16 %v304_v1 }
 0x522   :  { %v226_v2 = vpop.f32.mrf.mxu0  ;;  %v275_v3 = vpop.f32.mrf.mxu1 }
 0x523   :  { %v227_v5 = vadd.f32 %v226_v2, %v7603_v29  ;;  %v276_v6 = vadd.f32 %v275_v3, %v7605_v30 }
 0x54d   :  { %v784_v10 = vpop.permute.xlu2 %783 }
 0x54e   :  { %v7740_v11 = vadd.f32 %v784_v10, %v769_v9  ;;  %v305_v9 = vpack.c.bf16 %v276_v6, %v227_v5 }
 0x550   :  { %6732 = vtanh.f32 %v7740_v11  ;;  %v844_v10 = vunpack.c.h.bf16 %v305_v9  ;;  %v843_v27 = vunpack.c.l.bf16 %v305_v9 }
 0x556   :  { %v6733_v12 = vpop.eup %6732 }
 0x557   :  { %795 = vrot.lane.b32.xlu1 %v6733_v12, %s7550_s2 }
 0x56d   :  { %v786_v14 = vpop.permute.xlu0 %785 }
 0x56e   :  { %v7745_v15 = vadd.f32 %v786_v14, %v770_v13 }
 0x570   :  { %6734 = vtanh.f32 %v7745_v15 }
 0x571   :  { %6736 = vpow2.f32 %v6186_v24 }
 0x572   :  { %6738 = vpow2.f32 %v6188_v19  ;;  %v841_v19 = vunpack.c.l.bf16 %v304_v1 }
 0x576   :  { %v6735_v17 = vpop.eup %6734 }
 0x577   :  { %797 = vrot.lane.b32.xlu2 %v6735_v17, %s7550_s2  ;;  %v6737_v22 = vpop.eup %6736 }
 0x578   :  { %v704_v23 = vadd.f32 1.0, %v6737_v22  ;;  %v6739_v32 = vpop.eup %6738 }
 0x579   :  { %v706_v21 = vadd.f32 1.0, %v6739_v32 }
 0x57a   :  { %6740 = vrcp.f32 %v704_v23  ;;  %v733_v36 = vand.u32 2147483648, %v704_v23  ;;  %vm727_vm12 = vweird.f32 %v704_v23  ;;  %v731_v45 = vand.u32 2147483647, %v704_v23 }
 0x57b   :  { %6742 = vrcp.f32 %v706_v21  ;;  %v763_v51 = vand.u32 2147483648, %v706_v21  ;;  %vm757_vm1 = vweird.f32 %v706_v21  ;;  %v761_v52 = vand.u32 2147483647, %v706_v21 }
 0x57c   :  { %v734_v34 = vor.u32 1.1754944e-38, %v733_v36  ;;  %vm732_vm14 = vcmp.eq.f32.partialorder %v731_v45, 8.507059e+37 }
 0x57d   :  { %v764_v55 = vor.u32 1.1754944e-38, %v763_v51  ;;  %vm762_vm3 = vcmp.eq.f32.partialorder %v761_v52, 8.507059e+37 }
 0x580   :  { %v6741_v33 = vpop.eup %6740 }
 0x581   :  { %v723_v37 = vmul.f32 %v6741_v33, %v704_v23  ;;  %v6743_v39 = vpop.eup %6742  ;;  %vm728_vm11 = vweird.f32 %v6741_v33 }
 0x582   :  { %v753_v28 = vmul.f32 %v6743_v39, %v706_v21  ;;  %vm729_vm13 = vmor %vm727_vm12, %vm728_vm11  ;;  %vm758_vm15 = vweird.f32 %v6743_v39 }
 0x583   :  { %v724_v20 = vsub.f32 1.0, %v723_v37  ;;  %vm759_vm2 = vmor %vm757_vm1, %vm758_vm15 }
 0x584   :  { %v754_v25 = vsub.f32 1.0, %v753_v28 }
 0x585   :  { %v725_v40 = vmul.f32 %v6741_v33, %v724_v20 }
 0x586   :  { %v755_v41 = vmul.f32 %v6743_v39, %v754_v25 }
 0x587   :  { %v726_v42 = vadd.f32 %v6741_v33, %v725_v40 }
 0x588   :  { %v756_v50 = vadd.f32 %v6743_v39, %v755_v41 }
 0x589   :  { %v730_v46 = vsel %vm729_vm13, %v6741_v33, %v726_v42 }
 0x58a   :  { %v735_v47 = vsel %vm732_vm14, %v734_v34, %v730_v46  ;;  %v760_v53 = vsel %vm759_vm2, %v6743_v39, %v756_v50 }
 0x58b   :  { %v765_v56 = vsel %vm762_vm3, %v764_v55, %v760_v53 }
 0x5c9   :  { %v796_v49 = vpop.permute.xlu1 %795 }
 0x5ca   :  { %v801_v35 = vmul.f32 %v796_v49, %v735_v47 }
 0x5cc   :  { %804 = vst.msk [vmem:[#allocation2 + $0x20] sm:$0xff] %vm175_vm0, %v801_v35 }
 0x5d1   :  { %v798_v58 = vpop.permute.xlu2 %797 }
 0x5d2   :  { %v802_v59 = vmul.f32 %v798_v58, %v765_v56 }
 0x5d4   :  { %805 = vst.msk [vmem:[#allocation2 + $0x28] sm:$0xff] %vm175_vm0, %v802_v59  ;;  %v806_v60 = vpack.c.bf16 %v802_v59, %v801_v35 }
 0x5d6   :  { %6189 = vmatmul.msk.bf16.vlgmr.msra.gmra.mxu2 %vm175_vm0, %v806_v60  ;;  %6190 = vmatmul.msk.bf16.vlgmr.msra.gmra.mxu3 %vm175_vm0, %v806_v60 }
 0x5d7   :  { %1144 = vmatpush.bf16.msra.mxu3 %v7629_v18  ;;  %1130 = vmatpush.bf16.msra.mxu2 %v7627_v16 }
 0x5db   :  { %1145 = vmatpush.bf16.msra.mxu3 %v7647_v44  ;;  %1131 = vmatpush.bf16.msra.mxu2 %v7645_v38 }
 0x5df   :  { %1146 = vmatpush.bf16.msra.mxu3 %v7654_v48  ;;  %1132 = vmatpush.bf16.msra.mxu2 %v7650_v43 }
 0x5e3   :  { %1147 = vmatpush.bf16.msra.mxu3 %v7661_v57  ;;  %1133 = vmatpush.bf16.msra.mxu2 %v7659_v54 }
 0x659   :  { %v833_v7 = vpop.f32.mrf.mxu3  ;;  %v819_v24 = vpop.f32.mrf.mxu2 }
 0x65a   :  { %v7769_v8 = vadd.f32 %v842_v4, %v833_v7  ;;  %v845_v22 = vadd.f32 %v841_v19, %v819_v24 }
 0x65c   :  { %6744 = vtanh.f32 %v7769_v8  ;;  %v6191_v23 = vmul.f32 -1.442695, %v845_v22 }
 0x661   :  { %v835_v12 = vpop.f32.mrf.mxu3  ;;  %v821_v26 = vpop.f32.mrf.mxu2 }
 0x662   :  { %v6745_v13 = vpop.eup %6744  ;;  %v7772_v14 = vadd.f32 %v844_v10, %v835_v12  ;;  %v847_v31 = vadd.f32 %v843_v27, %v821_v26  ;;  %v114_v12 = vld [vmem:[#allocation5 + $0x40] sm:$0xff] }
 0x663   :  { %931 = vrot.lane.b32.xlu0 %v6745_v13, %s7550_s2  ;;  %v115_v13 = vld [vmem:[#allocation5 + $0x48] sm:$0xff] }
 0x664   :  { %6746 = vtanh.f32 %v7772_v14  ;;  %v6193_v32 = vmul.f32 -1.442695, %v847_v31  ;;  %v6194_v7 = vmul.f32 -1.442695, %v7772_v14 }
 0x665   :  { %6748 = vpow2.f32 %v6191_v23 }
 0x666   :  { %6750 = vpow2.f32 %v6193_v32 }
 0x66a   :  { %v6747_v17 = vpop.eup %6746 }
 0x66b   :  { %933 = vrot.lane.b32.xlu1 %v6747_v17, %s7550_s2  ;;  %v6749_v21 = vpop.eup %6748 }
 0x66c   :  { %v861_v33 = vadd.f32 1.0, %v6749_v21  ;;  %v6751_v37 = vpop.eup %6750 }
 0x66d   :  { %v863_v20 = vadd.f32 1.0, %v6751_v37 }
 0x66e   :  { %6752 = vrcp.f32 %v861_v33  ;;  %v876_v41 = vand.u32 2147483648, %v861_v33  ;;  %vm870_vm5 = vweird.f32 %v861_v33  ;;  %v874_v34 = vand.u32 2147483647, %v861_v33 }
 0x66f   :  { %6754 = vrcp.f32 %v863_v20  ;;  %v906_v55 = vand.u32 2147483648, %v863_v20  ;;  %vm900_vm9 = vweird.f32 %v863_v20  ;;  %v904_v56 = vand.u32 2147483647, %v863_v20 }
 0x670   :  { %v877_v35 = vor.u32 1.1754944e-38, %v876_v41  ;;  %vm875_vm7 = vcmp.eq.f32.partialorder %v874_v34, 8.507059e+37 }
 0x671   :  { %v907_v59 = vor.u32 1.1754944e-38, %v906_v55  ;;  %vm905_vm11 = vcmp.eq.f32.partialorder %v904_v56, 8.507059e+37 }
 0x674   :  { %v6753_v39 = vpop.eup %6752 }
 0x675   :  { %v866_v40 = vmul.f32 %v6753_v39, %v861_v33  ;;  %v6755_v42 = vpop.eup %6754  ;;  %vm871_vm4 = vweird.f32 %v6753_v39 }
 0x676   :  { %v896_v36 = vmul.f32 %v6755_v42, %v863_v20  ;;  %vm872_vm6 = vmor %vm870_vm5, %vm871_vm4  ;;  %vm901_vm8 = vweird.f32 %v6755_v42 }
 0x677   :  { %v867_v28 = vsub.f32 1.0, %v866_v40  ;;  %vm902_vm10 = vmor %vm900_vm9, %vm901_vm8 }
 0x678   :  { %v897_v46 = vsub.f32 1.0, %v896_v36 }
 0x679   :  { %v868_v25 = vmul.f32 %v6753_v39, %v867_v28 }
 0x67a   :  { %v898_v49 = vmul.f32 %v6755_v42, %v897_v46 }
 0x67b   :  { %v869_v45 = vadd.f32 %v6753_v39, %v868_v25 }
 0x67c   :  { %v899_v53 = vadd.f32 %v6755_v42, %v898_v49 }
 0x67d   :  { %v873_v47 = vsel %vm872_vm6, %v6753_v39, %v869_v45 }
 0x67e   :  { %v878_v51 = vsel %vm875_vm7, %v877_v35, %v873_v47  ;;  %v903_v58 = vsel %vm902_vm10, %v6755_v42, %v899_v53 }
 0x67f   :  { %v908_v61 = vsel %vm905_vm11, %v907_v59, %v903_v58  ;;  %v927_v63 = vmul.f32 %v878_v51, %v7740_v11  ;;  %v6192_v11 = vmul.f32 -1.442695, %v7769_v8 }
 0x680   :  { %v928_v3 = vmul.f32 %v908_v61, %v7745_v15  ;;  %v126_v15 = vpack.c.bf16 %v115_v13, %v114_v12 }
 0x682   :  { %6129 = vmatmul.msk.bf16.gmra.mxu0 %vm175_vm0, %v126_v15  ;;  %6137 = vmatmul.msk.bf16.gmra.mxu1 %vm175_vm0, %v126_v15 }
 0x6d5   :  { %v932_v50 = vpop.permute.xlu0 %931 }
 0x6d6   :  { %v937_v52 = vmul.f32 %v932_v50, %v878_v51 }
 0x6d8   :  { %941 = vrot.lane.b32.xlu2 %v937_v52, %s7550_s2 }
 0x6dd   :  { %v934_v60 = vpop.permute.xlu1 %933 }
 0x6de   :  { %v938_v62 = vmul.f32 %v934_v60, %v908_v61 }
 0x6e0   :  { %943 = vrot.lane.b32.xlu0 %v938_v62, %s7550_s2 }
 0x6ff   :  { %v229_v35 = vpop.f32.mrf.mxu0  ;;  %v278_v50 = vpop.f32.mrf.mxu1 }
 0x700   :  { %v230_v51 = vadd.f32 %v229_v35, %v7603_v29  ;;  %v279_v52 = vadd.f32 %v278_v50, %v7605_v30 }
 0x702   :  { %v306_v53 = vpack.c.bf16 %v279_v52, %v230_v51 }
 0x704   :  { %v1000_v58 = vunpack.c.h.bf16 %v306_v53 }
 0x707   :  { %v231_v55 = vpop.f32.mrf.mxu0  ;;  %v280_v56 = vpop.f32.mrf.mxu1 }
 0x708   :  { %v232_v59 = vadd.f32 %v231_v55, %v7603_v29  ;;  %v281_v60 = vadd.f32 %v280_v56, %v7605_v30 }
 0x732   :  { %v942_v0 = vpop.permute.xlu2 %941 }
 0x733   :  { %v7780_v1 = vadd.f32 %v942_v0, %v927_v63  ;;  %v307_v63 = vpack.c.bf16 %v281_v60, %v232_v59 }
 0x735   :  { %6756 = vtanh.f32 %v7780_v1  ;;  %v1002_v0 = vunpack.c.h.bf16 %v307_v63  ;;  %v1001_v13 = vunpack.c.l.bf16 %v307_v63 }
 0x73b   :  { %v6757_v2 = vpop.eup %6756 }
 0x73c   :  { %953 = vrot.lane.b32.xlu1 %v6757_v2, %s7550_s2 }
 0x752   :  { %v944_v4 = vpop.permute.xlu0 %943 }
 0x753   :  { %v7785_v5 = vadd.f32 %v944_v4, %v928_v3 }
 0x755   :  { %6758 = vtanh.f32 %v7785_v5 }
 0x756   :  { %6760 = vpow2.f32 %v6192_v11 }
 0x757   :  { %6762 = vpow2.f32 %v6194_v7  ;;  %v999_v7 = vunpack.c.l.bf16 %v306_v53 }
 0x75b   :  { %v6759_v6 = vpop.eup %6758 }
 0x75c   :  { %955 = vrot.lane.b32.xlu2 %v6759_v6, %s7550_s2  ;;  %v6761_v9 = vpop.eup %6760 }
 0x75d   :  { %v862_v10 = vadd.f32 1.0, %v6761_v9  ;;  %v6763_v17 = vpop.eup %6762 }
 0x75e   :  { %v864_v24 = vadd.f32 1.0, %v6763_v17 }
 0x75f   :  { %6764 = vrcp.f32 %v862_v10  ;;  %v891_v32 = vand.u32 2147483648, %v862_v10  ;;  %vm885_vm13 = vweird.f32 %v862_v10  ;;  %v889_v21 = vand.u32 2147483647, %v862_v10 }
 0x760   :  { %6766 = vrcp.f32 %v864_v24  ;;  %v921_v25 = vand.u32 2147483648, %v864_v24  ;;  %vm915_vm2 = vweird.f32 %v864_v24  ;;  %v919_v36 = vand.u32 2147483647, %v864_v24 }
 0x761   :  { %v892_v20 = vor.u32 1.1754944e-38, %v891_v32  ;;  %vm890_vm15 = vcmp.eq.f32.partialorder %v889_v21, 8.507059e+37 }
 0x762   :  { %v922_v46 = vor.u32 1.1754944e-38, %v921_v25  ;;  %vm920_vm4 = vcmp.eq.f32.partialorder %v919_v36, 8.507059e+37 }
 0x765   :  { %v6765_v19 = vpop.eup %6764 }
 0x766   :  { %v881_v22 = vmul.f32 %v6765_v19, %v862_v10  ;;  %v6767_v23 = vpop.eup %6766  ;;  %vm886_vm12 = vweird.f32 %v6765_v19 }
 0x767   :  { %v911_v14 = vmul.f32 %v6767_v23, %v864_v24  ;;  %vm887_vm14 = vmor %vm885_vm13, %vm886_vm12  ;;  %vm916_vm1 = vweird.f32 %v6767_v23 }
 0x768   :  { %v882_v8 = vsub.f32 1.0, %v881_v22  ;;  %vm917_vm3 = vmor %vm915_vm2, %vm916_vm1 }
 0x769   :  { %v912_v31 = vsub.f32 1.0, %v911_v14 }
 0x76a   :  { %v883_v26 = vmul.f32 %v6765_v19, %v882_v8 }
 0x76b   :  { %v913_v37 = vmul.f32 %v6767_v23, %v912_v31 }
 0x76c   :  { %v884_v27 = vadd.f32 %v6765_v19, %v883_v26 }
 0x76d   :  { %v914_v42 = vadd.f32 %v6767_v23, %v913_v37 }
 0x76e   :  { %v888_v33 = vsel %vm887_vm14, %v6765_v19, %v884_v27 }
 0x76f   :  { %v893_v39 = vsel %vm890_vm15, %v892_v20, %v888_v33  ;;  %v918_v45 = vsel %vm917_vm3, %v6767_v23, %v914_v42 }
 0x770   :  { %v923_v41 = vsel %vm920_vm4, %v922_v46, %v918_v45 }
 0x7ae   :  { %v954_v40 = vpop.permute.xlu1 %953 }
 0x7af   :  { %v959_v28 = vmul.f32 %v954_v40, %v893_v39 }
 0x7b1   :  { %962 = vst.msk [vmem:[#allocation2 + $0x30] sm:$0xff] %vm175_vm0, %v959_v28 }
 0x7b6   :  { %v956_v34 = vpop.permute.xlu2 %955 }
 0x7b7   :  { %v960_v47 = vmul.f32 %v956_v34, %v923_v41 }
 0x7b9   :  { %963 = vst.msk [vmem:[#allocation2 + $0x38] sm:$0xff] %vm175_vm0, %v960_v47  ;;  %v964_v49 = vpack.c.bf16 %v960_v47, %v959_v28 }
 0x7bb   :  { %6195 = vmatmul.msk.bf16.vlgmr.msrb.gmra.mxu2 %vm175_vm0, %v964_v49  ;;  %6196 = vmatmul.msk.bf16.vlgmr.msrb.gmra.mxu3 %vm175_vm0, %v964_v49 }
 0x7bc   :  { %1302 = vmatpush.bf16.msrb.mxu3 %v7629_v18  ;;  %1288 = vmatpush.bf16.msrb.mxu2 %v7627_v16 }
 0x7c0   :  { %1303 = vmatpush.bf16.msrb.mxu3 %v7647_v44  ;;  %1289 = vmatpush.bf16.msrb.mxu2 %v7645_v38 }
 0x7c4   :  { %1304 = vmatpush.bf16.msrb.mxu3 %v7654_v48  ;;  %1290 = vmatpush.bf16.msrb.mxu2 %v7650_v43 }
 0x7c8   :  { %1305 = vmatpush.bf16.msrb.mxu3 %v7661_v57  ;;  %1291 = vmatpush.bf16.msrb.mxu2 %v7659_v54 }
 0x83e   :  { %v991_v61 = vpop.f32.mrf.mxu3  ;;  %v977_v11 = vpop.f32.mrf.mxu2 }
 0x83f   :  { %v7809_v62 = vadd.f32 %v1000_v58, %v991_v61  ;;  %v1003_v9 = vadd.f32 %v999_v7, %v977_v11 }
 0x841   :  { %6768 = vtanh.f32 %v7809_v62  ;;  %v6197_v10 = vmul.f32 -1.442695, %v1003_v9 }
 0x846   :  { %v993_v2 = vpop.f32.mrf.mxu3  ;;  %v979_v12 = vpop.f32.mrf.mxu2 }
 0x847   :  { %v6769_v3 = vpop.eup %6768  ;;  %v7812_v4 = vadd.f32 %v1002_v0, %v993_v2  ;;  %v1005_v15 = vadd.f32 %v1001_v13, %v979_v12  ;;  %v116_v2 = vld [vmem:[#allocation5 + $0x50] sm:$0xff] }
 0x848   :  { %1089 = vrot.lane.b32.xlu0 %v6769_v3, %s7550_s2  ;;  %v117_v3 = vld [vmem:[#allocation5 + $0x58] sm:$0xff] }
 0x849   :  { %6770 = vtanh.f32 %v7812_v4  ;;  %v6199_v17 = vmul.f32 -1.442695, %v1005_v15  ;;  %v6200_v61 = vmul.f32 -1.442695, %v7812_v4 }
 0x84a   :  { %6772 = vpow2.f32 %v6197_v10 }
 0x84b   :  { %6774 = vpow2.f32 %v6199_v17 }
 0x84f   :  { %v6771_v6 = vpop.eup %6770 }
 0x850   :  { %1091 = vrot.lane.b32.xlu1 %v6771_v6, %s7550_s2  ;;  %v6773_v24 = vpop.eup %6772 }
 0x851   :  { %v1019_v19 = vadd.f32 1.0, %v6773_v24  ;;  %v6775_v22 = vpop.eup %6774 }
 0x852   :  { %v1021_v8 = vadd.f32 1.0, %v6775_v22 }
 0x853   :  { %6776 = vrcp.f32 %v1019_v19  ;;  %v1034_v37 = vand.u32 2147483648, %v1019_v19  ;;  %vm1028_vm6 = vweird.f32 %v1019_v19  ;;  %v1032_v20 = vand.u32 2147483647, %v1019_v19 }
 0x854   :  { %6778 = vrcp.f32 %v1021_v8  ;;  %v1064_v46 = vand.u32 2147483648, %v1021_v8  ;;  %vm1058_vm10 = vweird.f32 %v1021_v8  ;;  %v1062_v41 = vand.u32 2147483647, %v1021_v8 }
 0x855   :  { %v1035_v28 = vor.u32 1.1754944e-38, %v1034_v37  ;;  %vm1033_vm8 = vcmp.eq.f32.partialorder %v1032_v20, 8.507059e+37 }
 0x856   :  { %v1065_v47 = vor.u32 1.1754944e-38, %v1064_v46  ;;  %vm1063_vm12 = vcmp.eq.f32.partialorder %v1062_v41, 8.507059e+37 }
 0x859   :  { %v6777_v23 = vpop.eup %6776 }
 0x85a   :  { %v1024_v26 = vmul.f32 %v6777_v23, %v1019_v19  ;;  %v6779_v27 = vpop.eup %6778  ;;  %vm1029_vm5 = vweird.f32 %v6777_v23 }
 0x85b   :  { %v1054_v32 = vmul.f32 %v6779_v27, %v1021_v8  ;;  %vm1030_vm7 = vmor %vm1028_vm6, %vm1029_vm5  ;;  %vm1059_vm9 = vweird.f32 %v6779_v27 }
 0x85c   :  { %v1025_v14 = vsub.f32 1.0, %v1024_v26  ;;  %vm1060_vm11 = vmor %vm1058_vm10, %vm1059_vm9 }
 0x85d   :  { %v1055_v33 = vsub.f32 1.0, %v1054_v32 }
 0x85e   :  { %v1026_v31 = vmul.f32 %v6777_v23, %v1025_v14 }
 0x85f   :  { %v1056_v40 = vmul.f32 %v6779_v27, %v1055_v33 }
 0x860   :  { %v1027_v21 = vadd.f32 %v6777_v23, %v1026_v31 }
 0x861   :  { %v1057_v45 = vadd.f32 %v6779_v27, %v1056_v40 }
 0x862   :  { %v1031_v39 = vsel %vm1030_vm7, %v6777_v23, %v1027_v21 }
 0x863   :  { %v1036_v25 = vsel %vm1033_vm8, %v1035_v28, %v1031_v39  ;;  %v1061_v34 = vsel %vm1060_vm11, %v6779_v27, %v1057_v45 }
 0x864   :  { %v1066_v35 = vsel %vm1063_vm12, %v1065_v47, %v1061_v34  ;;  %v1085_v51 = vmul.f32 %v1036_v25, %v7780_v1  ;;  %v6198_v1 = vmul.f32 -1.442695, %v7809_v62 }
 0x865   :  { %v1086_v56 = vmul.f32 %v1066_v35, %v7785_v5  ;;  %v127_v5 = vpack.c.bf16 %v117_v3, %v116_v2 }
 0x867   :  { %6130 = vmatmul.msk.bf16.gmra.mxu0 %vm175_vm0, %v127_v5  ;;  %6138 = vmatmul.msk.bf16.gmra.mxu1 %vm175_vm0, %v127_v5 }
 0x8ba   :  { %v1090_v42 = vpop.permute.xlu0 %1089 }
 0x8bb   :  { %v1095_v36 = vmul.f32 %v1090_v42, %v1036_v25 }
 0x8bd   :  { %1099 = vrot.lane.b32.xlu2 %v1095_v36, %s7550_s2 }
 0x8c2   :  { %v1092_v49 = vpop.permute.xlu1 %1091 }
 0x8c3   :  { %v1096_v50 = vmul.f32 %v1092_v49, %v1066_v35 }
 0x8c5   :  { %1101 = vrot.lane.b32.xlu0 %v1096_v50, %s7550_s2 }
 0x8e4   :  { %v234_v28 = vpop.f32.mrf.mxu0  ;;  %v283_v42 = vpop.f32.mrf.mxu1 }
 0x8e5   :  { %v235_v25 = vadd.f32 %v234_v28, %v7603_v29 }
 0x8ec   :  { %v285_v45 = vpop.f32.mrf.mxu1 }
 0x917   :  { %v1100_v52 = vpop.permute.xlu2 %1099 }
 0x918   :  { %v7820_v53 = vadd.f32 %v1100_v52, %v1085_v51 }
 0x91a   :  { %6780 = vtanh.f32 %v7820_v53 }
 0x920   :  { %v6781_v55 = vpop.eup %6780 }
 0x921   :  { %1111 = vrot.lane.b32.xlu1 %v6781_v55, %s7550_s2 }
 0x937   :  { %v1102_v58 = vpop.permute.xlu0 %1101 }
 0x938   :  { %v7825_v59 = vadd.f32 %v1102_v58, %v1086_v56 }
 0x93a   :  { %6782 = vtanh.f32 %v7825_v59 }
 0x93b   :  { %6784 = vpow2.f32 %v6198_v1 }
 0x93c   :  { %6786 = vpow2.f32 %v6200_v61 }
 0x940   :  { %v6783_v60 = vpop.eup %6782 }
 0x941   :  { %1113 = vrot.lane.b32.xlu2 %v6783_v60, %s7550_s2  ;;  %v6785_v63 = vpop.eup %6784 }
 0x942   :  { %v1020_v0 = vadd.f32 1.0, %v6785_v63  ;;  %v6787_v6 = vpop.eup %6786 }
 0x943   :  { %v1022_v11 = vadd.f32 1.0, %v6787_v6 }
 0x944   :  { %6788 = vrcp.f32 %v1020_v0  ;;  %v1049_v17 = vand.u32 2147483648, %v1020_v0  ;;  %vm1043_vm14 = vweird.f32 %v1020_v0  ;;  %v1047_v24 = vand.u32 2147483647, %v1020_v0 }
 0x945   :  { %6790 = vrcp.f32 %v1022_v11  ;;  %v1079_v31 = vand.u32 2147483648, %v1022_v11  ;;  %vm1073_vm3 = vweird.f32 %v1022_v11  ;;  %v1077_v32 = vand.u32 2147483647, %v1022_v11 }
 0x946   :  { %v1050_v8 = vor.u32 1.1754944e-38, %v1049_v17  ;;  %vm1048_vm1 = vcmp.eq.f32.partialorder %v1047_v24, 8.507059e+37 }
 0x947   :  { %v1080_v33 = vor.u32 1.1754944e-38, %v1079_v31  ;;  %vm1078_vm5 = vcmp.eq.f32.partialorder %v1077_v32, 8.507059e+37 }
 0x94a   :  { %v6789_v7 = vpop.eup %6788 }
 0x94b   :  { %v1039_v9 = vmul.f32 %v6789_v7, %v1020_v0  ;;  %v6791_v10 = vpop.eup %6790  ;;  %vm1044_vm13 = vweird.f32 %v6789_v7 }
 0x94c   :  { %v1069_v4 = vmul.f32 %v6791_v10, %v1022_v11  ;;  %vm1045_vm15 = vmor %vm1043_vm14, %vm1044_vm13  ;;  %vm1074_vm2 = vweird.f32 %v6791_v10 }
 0x94d   :  { %v1040_v62 = vsub.f32 1.0, %v1039_v9  ;;  %vm1075_vm4 = vmor %vm1073_vm3, %vm1074_vm2 }
 0x94e   :  { %v1070_v15 = vsub.f32 1.0, %v1069_v4 }
 0x94f   :  { %v1041_v12 = vmul.f32 %v6789_v7, %v1040_v62 }
 0x950   :  { %v1071_v22 = vmul.f32 %v6791_v10, %v1070_v15 }
 0x951   :  { %v1042_v13 = vadd.f32 %v6789_v7, %v1041_v12 }
 0x952   :  { %v1072_v27 = vadd.f32 %v6791_v10, %v1071_v22 }
 0x953   :  { %v1046_v19 = vsel %vm1045_vm15, %v6789_v7, %v1042_v13 }
 0x954   :  { %v1051_v23 = vsel %vm1048_vm1, %v1050_v8, %v1046_v19  ;;  %v1076_v21 = vsel %vm1075_vm4, %v6791_v10, %v1072_v27 }
 0x955   :  { %v1081_v37 = vsel %vm1078_vm5, %v1080_v33, %v1076_v21 }
 0x993   :  { %v1112_v26 = vpop.permute.xlu1 %1111 }
 0x994   :  { %v1117_v14 = vmul.f32 %v1112_v26, %v1051_v23 }
 0x996   :  { %1120 = vst.msk [vmem:[#allocation2 + $0x40] sm:$0xff] %vm175_vm0, %v1117_v14 }
 0x99b   :  { %v1114_v20 = vpop.permute.xlu2 %1113 }
 0x99c   :  { %v1118_v39 = vmul.f32 %v1114_v20, %v1081_v37 }
 0x99e   :  { %1121 = vst.msk [vmem:[#allocation2 + $0x48] sm:$0xff] %vm175_vm0, %v1118_v39  ;;  %v1122_v40 = vpack.c.bf16 %v1118_v39, %v1117_v14 }
 0x9a0   :  { %6201 = vmatmul.msk.bf16.vlgmr.msra.gmra.mxu2 %vm175_vm0, %v1122_v40  ;;  %6202 = vmatmul.msk.bf16.vlgmr.msra.gmra.mxu3 %vm175_vm0, %v1122_v40 }
 0x9a1   :  { %1446 = vmatpush.bf16.msra.mxu2 %v7627_v16  ;;  %1460 = vmatpush.bf16.msra.mxu3 %v7629_v18  ;;  %v284_v16 = vadd.f32 %v283_v42, %v7605_v30  ;;  %v236_v18 = vpop.f32.mrf.mxu0 }
 0x9a3   :  { %v308_v36 = vpack.c.bf16 %v284_v16, %v235_v25 }
 0x9a5   :  { %1447 = vmatpush.bf16.msra.mxu2 %v7645_v38  ;;  %1461 = vmatpush.bf16.msra.mxu3 %v7647_v44  ;;  %v1158_v38 = vunpack.c.h.bf16 %v308_v36  ;;  %v237_v44 = vadd.f32 %v236_v18, %v7603_v29  ;;  %v1157_v50 = vunpack.c.l.bf16 %v308_v36  ;;  %v118_v18 = vld [vmem:[#allocation5 + $0x60] sm:$0xff] }
 0x9a9   :  { %1448 = vmatpush.bf16.msra.mxu2 %v7650_v43  ;;  %1462 = vmatpush.bf16.msra.mxu3 %v7654_v48  ;;  %v286_v43 = vadd.f32 %v285_v45, %v7605_v30  ;;  %v119_v45 = vld [vmem:[#allocation5 + $0x68] sm:$0xff] }
 0x9ad   :  { %1449 = vmatpush.bf16.msra.mxu2 %v7659_v54  ;;  %1463 = vmatpush.bf16.msra.mxu3 %v7661_v57  ;;  %v309_v54 = vpack.c.bf16 %v286_v43, %v237_v44 }
 0x9af   :  { %v1160_v57 = vunpack.c.h.bf16 %v309_v54  ;;  %v1159_v56 = vunpack.c.l.bf16 %v309_v54 }
 0xa23   :  { %v1149_v46 = vpop.f32.mrf.mxu3  ;;  %v1135_v35 = vpop.f32.mrf.mxu2 }
 0xa24   :  { %v7849_v48 = vadd.f32 %v1158_v38, %v1149_v46  ;;  %v1161_v51 = vadd.f32 %v1157_v50, %v1135_v35 }
 0xa26   :  { %6792 = vtanh.f32 %v7849_v48  ;;  %v6203_v52 = vmul.f32 -1.442695, %v1161_v51 }
 0xa2b   :  { %v1151_v41 = vpop.f32.mrf.mxu3  ;;  %v1137_v55 = vpop.f32.mrf.mxu2 }
 0xa2c   :  { %v6793_v34 = vpop.eup %6792  ;;  %v7852_v47 = vadd.f32 %v1160_v57, %v1151_v41  ;;  %v1163_v58 = vadd.f32 %v1159_v56, %v1137_v55 }
 0xa2d   :  { %1247 = vrot.lane.b32.xlu0 %v6793_v34, %s7550_s2 }
 0xa2e   :  { %6794 = vtanh.f32 %v7852_v47  ;;  %v6205_v60 = vmul.f32 -1.442695, %v1163_v58  ;;  %v6206_v25 = vmul.f32 -1.442695, %v7852_v47 }
 0xa2f   :  { %6796 = vpow2.f32 %v6203_v52 }
 0xa30   :  { %6798 = vpow2.f32 %v6205_v60 }
 0xa34   :  { %v6795_v49 = vpop.eup %6794 }
 0xa35   :  { %1249 = vrot.lane.b32.xlu1 %v6795_v49, %s7550_s2  ;;  %v6797_v1 = vpop.eup %6796 }
 0xa36   :  { %v1177_v61 = vadd.f32 1.0, %v6797_v1  ;;  %v6799_v63 = vpop.eup %6798 }
 0xa37   :  { %v1179_v0 = vadd.f32 1.0, %v6799_v63 }
 0xa38   :  { %6800 = vrcp.f32 %v1177_v61  ;;  %v1192_v10 = vand.u32 2147483648, %v1177_v61  ;;  %vm1186_vm7 = vweird.f32 %v1177_v61  ;;  %v1190_v12 = vand.u32 2147483647, %v1177_v61 }
 0xa39   :  { %6802 = vrcp.f32 %v1179_v0  ;;  %v1222_v8 = vand.u32 2147483648, %v1179_v0  ;;  %vm1216_vm11 = vweird.f32 %v1179_v0  ;;  %v1220_v23 = vand.u32 2147483647, %v1179_v0 }
 0xa3a   :  { %v1193_v15 = vor.u32 1.1754944e-38, %v1192_v10  ;;  %vm1191_vm9 = vcmp.eq.f32.partialorder %v1190_v12, 8.507059e+37 }
 0xa3b   :  { %v1223_v14 = vor.u32 1.1754944e-38, %v1222_v8  ;;  %vm1221_vm13 = vcmp.eq.f32.partialorder %v1220_v23, 8.507059e+37 }
 0xa3e   :  { %v6801_v2 = vpop.eup %6800 }
 0xa3f   :  { %v1182_v3 = vmul.f32 %v6801_v2, %v1177_v61  ;;  %v6803_v6 = vpop.eup %6802  ;;  %vm1187_vm6 = vweird.f32 %v6801_v2 }
 0xa40   :  { %v1212_v7 = vmul.f32 %v6803_v6, %v1179_v0  ;;  %vm1188_vm8 = vmor %vm1186_vm7, %vm1187_vm6  ;;  %vm1217_vm10 = vweird.f32 %v6803_v6 }
 0xa41   :  { %v1183_v5 = vsub.f32 1.0, %v1182_v3  ;;  %vm1218_vm12 = vmor %vm1216_vm11, %vm1217_vm10 }
 0xa42   :  { %v1213_v62 = vsub.f32 1.0, %v1212_v7 }
 0xa43   :  { %v1184_v11 = vmul.f32 %v6801_v2, %v1183_v5 }
 0xa44   :  { %v1214_v13 = vmul.f32 %v6803_v6, %v1213_v62 }
 0xa45   :  { %v1185_v9 = vadd.f32 %v6801_v2, %v1184_v11 }
 0xa46   :  { %v1215_v22 = vadd.f32 %v6803_v6, %v1214_v13 }
 0xa47   :  { %v1189_v4 = vsel %vm1188_vm8, %v6801_v2, %v1185_v9 }
 0xa48   :  { %v1194_v24 = vsel %vm1191_vm9, %v1193_v15, %v1189_v4  ;;  %v1219_v26 = vsel %vm1218_vm12, %v6803_v6, %v1215_v22 }
 0xa49   :  { %v1224_v31 = vsel %vm1221_vm13, %v1223_v14, %v1219_v26  ;;  %v1243_v21 = vmul.f32 %v1194_v24, %v7820_v53  ;;  %v6204_v53 = vmul.f32 -1.442695, %v7849_v48 }
 0xa4a   :  { %v1244_v39 = vmul.f32 %v1224_v31, %v7825_v59  ;;  %v128_v59 = vpack.c.bf16 %v119_v45, %v118_v18 }
 0xa4c   :  { %6131 = vmatmul.msk.bf16.gmra.mxu0 %vm175_vm0, %v128_v59  ;;  %6139 = vmatmul.msk.bf16.gmra.mxu1 %vm175_vm0, %v128_v59 }
 0xa9f   :  { %v1248_v17 = vpop.permute.xlu0 %1247 }
 0xaa0   :  { %v1253_v19 = vmul.f32 %v1248_v17, %v1194_v24 }
 0xaa2   :  { %1257 = vrot.lane.b32.xlu2 %v1253_v19, %s7550_s2 }
 0xaa7   :  { %v1250_v27 = vpop.permute.xlu1 %1249 }
 0xaa8   :  { %v1254_v32 = vmul.f32 %v1250_v27, %v1224_v31 }
 0xaaa   :  { %1259 = vrot.lane.b32.xlu0 %v1254_v32, %s7550_s2 }
 0xac9   :  { %v239_v11 = vpop.f32.mrf.mxu0  ;;  %v288_v7 = vpop.f32.mrf.mxu1 }
 0xaca   :  { %v240_v9 = vadd.f32 %v239_v11, %v7603_v29  ;;  %v289_v62 = vadd.f32 %v288_v7, %v7605_v30 }
 0xacc   :  { %v310_v10 = vpack.c.bf16 %v289_v62, %v240_v9 }
 0xace   :  { %v1316_v13 = vunpack.c.h.bf16 %v310_v10  ;;  %v1315_v32 = vunpack.c.l.bf16 %v310_v10 }
 0xad1   :  { %v241_v12 = vpop.f32.mrf.mxu0  ;;  %v290_v4 = vpop.f32.mrf.mxu1 }
 0xad2   :  { %v242_v15 = vadd.f32 %v241_v12, %v7603_v29  ;;  %v291_v17 = vadd.f32 %v290_v4, %v7605_v30 }
 0xad4   :  { %v311_v22 = vpack.c.bf16 %v291_v17, %v242_v15  ;;  %v121_v15 = vld [vmem:[#allocation5 + $0x78] sm:$0xff] }
 0xad6   :  { %v1318_v8 = vunpack.c.h.bf16 %v311_v22 }
 0xafc   :  { %v1258_v33 = vpop.permute.xlu2 %1257 }
 0xafd   :  { %v7860_v37 = vadd.f32 %v1258_v33, %v1243_v21 }
 0xaff   :  { %6804 = vtanh.f32 %v7860_v37 }
 0xb05   :  { %v6805_v20 = vpop.eup %6804 }
 0xb06   :  { %1269 = vrot.lane.b32.xlu1 %v6805_v20, %s7550_s2 }
 0xb1c   :  { %v1260_v40 = vpop.permute.xlu0 %1259 }
 0xb1d   :  { %v7865_v28 = vadd.f32 %v1260_v40, %v1244_v39  ;;  %v1317_v39 = vunpack.c.l.bf16 %v311_v22  ;;  %v6245_v22 = vld [vmem:[#allocation7 + $0x70] sm:$0xf] }
 0xb1f   :  { %6806 = vtanh.f32 %v7865_v28 }
 0xb20   :  { %6808 = vpow2.f32 %v6204_v53 }
 0xb21   :  { %6810 = vpow2.f32 %v6206_v25 }
 0xb25   :  { %v6807_v42 = vpop.eup %6806 }
 0xb26   :  { %1271 = vrot.lane.b32.xlu2 %v6807_v42, %s7550_s2  ;;  %v6809_v16 = vpop.eup %6808 }
 0xb27   :  { %v1178_v36 = vadd.f32 1.0, %v6809_v16  ;;  %v6811_v38 = vpop.eup %6810 }
 0xb28   :  { %v1180_v44 = vadd.f32 1.0, %v6811_v38 }
 0xb29   :  { %6812 = vrcp.f32 %v1178_v36  ;;  %v1207_v49 = vand.u32 2147483648, %v1178_v36  ;;  %vm1201_vm15 = vweird.f32 %v1178_v36  ;;  %v1205_v35 = vand.u32 2147483647, %v1178_v36 }
 0xb2a   :  { %6814 = vrcp.f32 %v1180_v44  ;;  %v1237_v1 = vand.u32 2147483648, %v1180_v44  ;;  %vm1231_vm4 = vweird.f32 %v1180_v44  ;;  %v1235_v61 = vand.u32 2147483647, %v1180_v44 }
 0xb2b   :  { %v1208_v52 = vor.u32 1.1754944e-38, %v1207_v49  ;;  %vm1206_vm2 = vcmp.eq.f32.partialorder %v1205_v35, 8.507059e+37 }
 0xb2c   :  { %v1238_v0 = vor.u32 1.1754944e-38, %v1237_v1  ;;  %vm1236_vm6 = vcmp.eq.f32.partialorder %v1235_v61, 8.507059e+37 }
 0xb2f   :  { %v6813_v43 = vpop.eup %6812 }
 0xb30   :  { %v1197_v46 = vmul.f32 %v6813_v43, %v1178_v36  ;;  %v6815_v54 = vpop.eup %6814  ;;  %vm1202_vm14 = vweird.f32 %v6813_v43 }
 0xb31   :  { %v1227_v41 = vmul.f32 %v6815_v54, %v1180_v44  ;;  %vm1203_vm1 = vmor %vm1201_vm15, %vm1202_vm14  ;;  %vm1232_vm3 = vweird.f32 %v6815_v54 }
 0xb32   :  { %v1198_v48 = vsub.f32 1.0, %v1197_v46  ;;  %vm1233_vm5 = vmor %vm1231_vm4, %vm1232_vm3 }
 0xb33   :  { %v1228_v47 = vsub.f32 1.0, %v1227_v41 }
 0xb34   :  { %v1199_v57 = vmul.f32 %v6813_v43, %v1198_v48 }
 0xb35   :  { %v1229_v51 = vmul.f32 %v6815_v54, %v1228_v47 }
 0xb36   :  { %v1200_v34 = vadd.f32 %v6813_v43, %v1199_v57 }
 0xb37   :  { %v1230_v60 = vadd.f32 %v6815_v54, %v1229_v51 }
 0xb38   :  { %v1204_v50 = vsel %vm1203_vm1, %v6813_v43, %v1200_v34 }
 0xb39   :  { %v1209_v55 = vsel %vm1206_vm2, %v1208_v52, %v1204_v50  ;;  %v1234_v63 = vsel %vm1233_vm5, %v6815_v54, %v1230_v60 }
 0xb3a   :  { %v1239_v2 = vsel %vm1236_vm6, %v1238_v0, %v1234_v63 }
 0xb78   :  { %v1270_v56 = vpop.permute.xlu1 %1269 }
 0xb79   :  { %v1275_v58 = vmul.f32 %v1270_v56, %v1209_v55 }
 0xb7b   :  { %1278 = vst.msk [vmem:[#allocation2 + $0x50] sm:$0xff] %vm175_vm0, %v1275_v58 }
 0xb80   :  { %v1272_v3 = vpop.permute.xlu2 %1271 }
 0xb81   :  { %v1276_v5 = vmul.f32 %v1272_v3, %v1239_v2 }
 0xb83   :  { %1279 = vst.msk [vmem:[#allocation2 + $0x58] sm:$0xff] %vm175_vm0, %v1276_v5  ;;  %v1280_v6 = vpack.c.bf16 %v1276_v5, %v1275_v58 }
 0xb85   :  { %6207 = vmatmul.msk.bf16.vlgmr.msrb.gmra.mxu2 %vm175_vm0, %v1280_v6  ;;  %6208 = vmatmul.msk.bf16.vlgmr.msrb.gmra.mxu3 %vm175_vm0, %v1280_v6 }
 0xc08   :  { %v1307_v24 = vpop.f32.mrf.mxu3  ;;  %v1293_v31 = vpop.f32.mrf.mxu2 }
 0xc09   :  { %v7881_v19 = vadd.f32 %v1316_v13, %v1307_v24  ;;  %v1319_v21 = vadd.f32 %v1315_v32, %v1293_v31  ;;  %v120_v13 = vld [vmem:[#allocation5 + $0x70] sm:$0xff]  ;;  %v6617_v32 = vld [vmem:[#allocation7 + $0x64] sm:$0xf] }
 0xc0a   :  { %v129_v17 = vpack.c.bf16 %v121_v15, %v120_v13  ;;  %v1623_v13 = vld [vmem:[#allocation2 + $0x38] sm:$0xff]  ;;  %v1622_v15 = vld [vmem:[#allocation2 + $0x30] sm:$0xff] }
 0xc0b   :  { %6816 = vtanh.f32 %v7881_v19  ;;  %v6209_v33 = vmul.f32 -1.442695, %v1319_v21  ;;  %v6239_v21 = vld [vmem:[#allocation7 + $0x68] sm:$0xf0] }
 0xc0c   :  { %6132 = vmatmul.msk.bf16.gmra.mxu0 %vm175_vm0, %v129_v17  ;;  %6140 = vmatmul.msk.bf16.gmra.mxu1 %vm175_vm0, %v129_v17  ;;  %v1635_v17 = vpack.c.bf16 %v1623_v13, %v1622_v15 }
 0xc10   :  { %v1309_v23 = vpop.f32.mrf.mxu3  ;;  %v1295_v20 = vpop.f32.mrf.mxu2 }
 0xc11   :  { %v6817_v26 = vpop.eup %6816  ;;  %v7884_v14 = vadd.f32 %v1318_v8, %v1309_v23  ;;  %v1321_v40 = vadd.f32 %v1317_v39, %v1295_v20  ;;  %v6620_v8 = vld [vmem:[#allocation7 + $0x74] sm:$0xf0]  ;;  %v6242_v39 = vor.u32 %v6617_v32, %v6239_v21 }
 0xc12   :  { %1405 = vrot.lane.b32.xlu0 %v6817_v26, %s7550_s2  ;;  %v6246_v23 = vor.u32 %v6620_v8, %v6245_v22  ;;  %v6247_v26 = vld [vmem:[#allocation7 + $0x78] sm:$0xf0] }
 0xc13   :  { %6818 = vtanh.f32 %v7884_v14  ;;  %v6211_v42 = vmul.f32 -1.442695, %v1321_v40  ;;  %v6212_v9 = vmul.f32 -1.442695, %v7884_v14  ;;  %v6237_v14 = vld [vmem:[#allocation7 + $0x60] sm:$0xf] }
 0xc14   :  { %6820 = vpow2.f32 %v6209_v33  ;;  %1713 = vmatpush.bf16.msrb.mxu2 %v6246_v23  ;;  %v6229_v40 = vld [vmem:[#allocation7 + $0x50] sm:$0xf]  ;;  %v1624_v22 = vld [vmem:[#allocation2 + $0x40] sm:$0xff] }
 0xc15   :  { %6822 = vpow2.f32 %v6211_v42  ;;  %v6616_v42 = vld [vmem:[#allocation7 + $0x54] sm:$0xf0]  ;;  %v1626_v23 = vld [vmem:[#allocation2 + $0x50] sm:$0xff] }
 0xc19   :  { %v6819_v27 = vpop.eup %6818 }
 0xc1a   :  { %1407 = vrot.lane.b32.xlu1 %v6819_v27, %s7550_s2  ;;  %v6821_v53 = vpop.eup %6820  ;;  %v6618_v27 = vld [vmem:[#allocation7 + $0x64] sm:$0xf0] }
 0xc1b   :  { %v1335_v25 = vadd.f32 1.0, %v6821_v53  ;;  %v6823_v16 = vpop.eup %6822  ;;  %v6238_v33 = vor.u32 %v6618_v27, %v6237_v14 }
 0xc1c   :  { %v1337_v36 = vadd.f32 1.0, %v6823_v16  ;;  %v6231_v16 = vld [vmem:[#allocation7 + $0x58] sm:$0xf0] }
 0xc1d   :  { %6824 = vrcp.f32 %v1335_v25  ;;  %v1350_v54 = vand.u32 2147483648, %v1335_v25  ;;  %vm1344_vm8 = vweird.f32 %v1335_v25  ;;  %v1348_v57 = vand.u32 2147483647, %v1335_v25  ;;  %1714 = vmatpush.bf16.msrb.mxu2 %v6238_v33 }
 0xc1e   :  { %6826 = vrcp.f32 %v1337_v36  ;;  %v1380_v52 = vand.u32 2147483648, %v1337_v36  ;;  %vm1374_vm12 = vweird.f32 %v1337_v36  ;;  %v1378_v55 = vand.u32 2147483647, %v1337_v36 }
 0xc1f   :  { %v1351_v47 = vor.u32 1.1754944e-38, %v1350_v54  ;;  %vm1349_vm10 = vcmp.eq.f32.partialorder %v1348_v57, 8.507059e+37 }
 0xc20   :  { %v1381_v58 = vor.u32 1.1754944e-38, %v1380_v52  ;;  %vm1379_vm14 = vcmp.eq.f32.partialorder %v1378_v55, 8.507059e+37 }
 0xc23   :  { %v6825_v18 = vpop.eup %6824 }
 0xc24   :  { %v1340_v45 = vmul.f32 %v6825_v18, %v1335_v25  ;;  %v6827_v38 = vpop.eup %6826  ;;  %vm1345_vm7 = vweird.f32 %v6825_v18  ;;  %v6615_v25 = vld [vmem:[#allocation7 + $0x54] sm:$0xf] }
 0xc25   :  { %v1370_v43 = vmul.f32 %v6827_v38, %v1337_v36  ;;  %vm1346_vm9 = vmor %vm1344_vm8, %vm1345_vm7  ;;  %vm1375_vm11 = vweird.f32 %v6827_v38  ;;  %v6230_v36 = vor.u32 %v6616_v42, %v6229_v40 }
 0xc26   :  { %v1341_v59 = vsub.f32 1.0, %v1340_v45  ;;  %vm1376_vm13 = vmor %vm1374_vm12, %vm1375_vm11 }
 0xc27   :  { %v1371_v48 = vsub.f32 1.0, %v1370_v43  ;;  %v6613_v43 = vld [vmem:[#allocation7 + $0x44] sm:$0xf]  ;;  %1715 = vmatpush.bf16.msrb.mxu2 %v6230_v36 }
 0xc28   :  { %v1342_v44 = vmul.f32 %v6825_v18, %v1341_v59  ;;  %v6234_v59 = vor.u32 %v6615_v25, %v6231_v16 }
 0xc29   :  { %v1372_v34 = vmul.f32 %v6827_v38, %v1371_v48 }
 0xc2a   :  { %v1343_v46 = vadd.f32 %v6825_v18, %v1342_v44  ;;  %v6614_v44 = vld [vmem:[#allocation7 + $0x44] sm:$0xf0] }
 0xc2b   :  { %v1373_v51 = vadd.f32 %v6827_v38, %v1372_v34 }
 0xc2c   :  { %v1347_v41 = vsel %vm1346_vm9, %v6825_v18, %v1343_v46  ;;  %v6223_v46 = vld [vmem:[#allocation7 + $0x48] sm:$0xf0] }
 0xc2d   :  { %v1352_v35 = vsel %vm1349_vm10, %v1351_v47, %v1347_v41  ;;  %v1377_v56 = vsel %vm1376_vm13, %v6827_v38, %v1373_v51  ;;  %v6221_v38 = vld [vmem:[#allocation7 + $0x40] sm:$0xf]  ;;  %v6226_v41 = vor.u32 %v6613_v43, %v6223_v46 }
 0xc2e   :  { %v1382_v1 = vsel %vm1379_vm14, %v1381_v58, %v1377_v56  ;;  %v1401_v63 = vmul.f32 %v1352_v35, %v7860_v37  ;;  %v6210_v37 = vmul.f32 -1.442695, %v7881_v19  ;;  %v6619_v19 = vld [vmem:[#allocation7 + $0x74] sm:$0xf]  ;;  %v6222_v48 = vor.u32 %v6614_v44, %v6221_v38 }
 0xc2f   :  { %v1402_v5 = vmul.f32 %v1382_v1, %v7865_v28  ;;  %v6250_v31 = vor.u32 %v6619_v19, %v6247_v26  ;;  %v1627_v19 = vld [vmem:[#allocation2 + $0x58] sm:$0xff] }
 0xc30   :  { %1716 = vmatpush.bf16.msrb.mxu2 %v6222_v48  ;;  %v1637_v26 = vpack.c.bf16 %v1627_v19, %v1626_v23 }
 0xc31   :  { %1762 = vmatpush.bf16.msrb.mxu3 %v6250_v31 }
 0xc35   :  { %1763 = vmatpush.bf16.msrb.mxu3 %v6242_v39 }
 0xc39   :  { %1764 = vmatpush.bf16.msrb.mxu3 %v6234_v59  ;;  %v1615_v59 = vld [vmem:[#allocation10 + $0x2] sm:$0x3] }
 0xc3a   :  { %v7940_v38 = vperm.slane %v1615_v59, 0  ;;  %v7942_v44 = vperm.slane %v1615_v59, 1  ;;  %v6291_v59 = vld [vmem:[#allocation9 + $0x68] sm:$0xf0] }
 0xc3d   :  { %1765 = vmatpush.bf16.msrb.mxu3 %v6226_v41 }
 0xc84   :  { %v1406_v49 = vpop.permute.xlu0 %1405 }
 0xc85   :  { %v1411_v50 = vmul.f32 %v1406_v49, %v1352_v35 }
 0xc87   :  { %1415 = vrot.lane.b32.xlu2 %v1411_v50, %s7550_s2 }
 0xc89   :  { %v244_v14 = vpop.f32.mrf.mxu0  ;;  %v293_v27 = vpop.f32.mrf.mxu1 }
 0xc8a   :  { %v245_v31 = vadd.f32 %v244_v14, %v7603_v29  ;;  %v294_v32 = vadd.f32 %v293_v27, %v7605_v30 }
 0xc8c   :  { %v1408_v60 = vpop.permute.xlu1 %1407  ;;  %v312_v21 = vpack.c.bf16 %v294_v32, %v245_v31 }
 0xc8d   :  { %v1412_v61 = vmul.f32 %v1408_v60, %v1382_v1 }
 0xc8e   :  { %v1473_v40 = vunpack.c.l.bf16 %v312_v21  ;;  %v1474_v42 = vunpack.c.h.bf16 %v312_v21 }
 0xc8f   :  { %1417 = vrot.lane.b32.xlu0 %v1412_v61, %s7550_s2 }
 0xce1   :  { %v1416_v0 = vpop.permute.xlu2 %1415 }
 0xce2   :  { %v7892_v2 = vadd.f32 %v1416_v0, %v1401_v63 }
 0xce4   :  { %6828 = vtanh.f32 %v7892_v2 }
 0xcea   :  { %v6829_v3 = vpop.eup %6828 }
 0xceb   :  { %1427 = vrot.lane.b32.xlu1 %v6829_v3, %s7550_s2 }
 0xd01   :  { %v1418_v6 = vpop.permute.xlu0 %1417 }
 0xd02   :  { %v7897_v11 = vadd.f32 %v1418_v6, %v1402_v5  ;;  %v1617_v6 = vld [vmem:[#allocation2 + $0x8] sm:$0xff] }
 0xd04   :  { %6830 = vtanh.f32 %v7897_v11 }
 0xd05   :  { %6832 = vpow2.f32 %v6210_v37 }
 0xd06   :  { %6834 = vpow2.f32 %v6212_v9  ;;  %v1619_v9 = vld [vmem:[#allocation2 + $0x18] sm:$0xff] }
 0xd0a   :  { %v6831_v7 = vpop.eup %6830 }
 0xd0b   :  { %1429 = vrot.lane.b32.xlu2 %v6831_v7, %s7550_s2  ;;  %v6833_v62 = vpop.eup %6832  ;;  %v1616_v7 = vld [vmem:[#allocation2] sm:$0xff] }
 0xd0c   :  { %v1336_v10 = vadd.f32 1.0, %v6833_v62  ;;  %v6835_v12 = vpop.eup %6834  ;;  %v1632_v37 = vpack.c.bf16 %v1617_v6, %v1616_v7  ;;  %v1618_v62 = vld [vmem:[#allocation2 + $0x10] sm:$0xff] }
 0xd0d   :  { %v7903_v4 = vadd.f32 1.0, %v6835_v12  ;;  %v1621_v12 = vld [vmem:[#allocation2 + $0x28] sm:$0xff] }
 0xd0e   :  { %6836 = vrcp.f32 %v1336_v10  ;;  %v1365_v34 = vand.u32 2147483648, %v1336_v10  ;;  %vm1359_vm1 = vweird.f32 %v1336_v10  ;;  %v1363_v47 = vand.u32 2147483647, %v1336_v10 }
 0xd0f   :  { %6838 = vrcp.f32 %v7903_v4  ;;  %v1395_v58 = vand.u32 2147483648, %v7903_v4  ;;  %vm1389_vm5 = vweird.f32 %v7903_v4  ;;  %v1393_v60 = vand.u32 2147483647, %v7903_v4 }
 0xd10   :  { %v1366_v50 = vor.u32 1.1754944e-38, %v1365_v34  ;;  %vm1364_vm3 = vcmp.eq.f32.partialorder %v1363_v47, 8.507059e+37 }
 0xd11   :  { %v1396_v61 = vor.u32 1.1754944e-38, %v1395_v58  ;;  %vm1394_vm7 = vcmp.eq.f32.partialorder %v1393_v60, 8.507059e+37 }
 0xd14   :  { %v6837_v28 = vpop.eup %6836 }
 0xd15   :  { %v1355_v24 = vmul.f32 %v6837_v28, %v1336_v10  ;;  %v6839_v53 = vpop.eup %6838  ;;  %vm1360_vm15 = vweird.f32 %v6837_v28  ;;  %v1633_v10 = vpack.c.bf16 %v1619_v9, %v1618_v62 }
 0xd16   :  { %v1385_v45 = vmul.f32 %v6839_v53, %v7903_v4  ;;  %vm1361_vm2 = vmor %vm1359_vm1, %vm1360_vm15  ;;  %vm1390_vm4 = vweird.f32 %v6839_v53  ;;  %v1620_v4 = vld [vmem:[#allocation2 + $0x20] sm:$0xff] }
 0xd17   :  { %v1356_v20 = vsub.f32 1.0, %v1355_v24  ;;  %vm1391_vm6 = vmor %vm1389_vm5, %vm1390_vm4  ;;  %v1625_v24 = vld [vmem:[#allocation2 + $0x48] sm:$0xff] }
 0xd18   :  { %v1386_v57 = vsub.f32 1.0, %v1385_v45  ;;  %v1636_v8 = vpack.c.bf16 %v1625_v24, %v1624_v22 }
 0xd19   :  { %v1357_v18 = vmul.f32 %v6837_v28, %v1356_v20 }
 0xd1a   :  { %v1387_v35 = vmul.f32 %v6839_v53, %v1386_v57 }
 0xd1b   :  { %v1358_v54 = vadd.f32 %v6837_v28, %v1357_v18 }
 0xd1c   :  { %v1388_v56 = vadd.f32 %v6839_v53, %v1387_v35 }
 0xd1d   :  { %v1362_v49 = vsel %vm1361_vm2, %v6837_v28, %v1358_v54  ;;  %v1634_v28 = vpack.c.bf16 %v1621_v12, %v1620_v4 }
 0xd1e   :  { %v1367_v51 = vsel %vm1364_vm3, %v1366_v50, %v1362_v49  ;;  %v1392_v1 = vsel %vm1391_vm6, %v6839_v53, %v1388_v56 }
 0xd1f   :  { %v1397_v63 = vsel %vm1394_vm7, %v1396_v61, %v1392_v1 }
 0xd5d   :  { %v1428_v52 = vpop.permute.xlu1 %1427 }
 0xd5e   :  { %v1433_v55 = vmul.f32 %v1428_v52, %v1367_v51 }
 0xd60   :  { %1436 = vst.msk [vmem:[#allocation2 + $0x60] sm:$0xff] %vm175_vm0, %v1433_v55 }
 0xd65   :  { %v1430_v0 = vpop.permute.xlu2 %1429 }
 0xd66   :  { %v1434_v3 = vmul.f32 %v1430_v0, %v1397_v63 }
 0xd67   :  { %v1628_v20 = vld [vmem:[#allocation2 + $0x60] sm:$0xff] }
 0xd68   :  { %1437 = vst.msk [vmem:[#allocation2 + $0x68] sm:$0xff] %vm175_vm0, %v1434_v3  ;;  %v1438_v5 = vpack.c.bf16 %v1434_v3, %v1433_v55 }
 0xd6a   :  { %6213 = vmatmul.msk.bf16.vlgmr.msra.gmra.mxu2 %vm175_vm0, %v1438_v5  ;;  %6214 = vmatmul.msk.bf16.vlgmr.msra.gmra.mxu3 %vm175_vm0, %v1438_v5 }
 0xd6f   :  { %v1629_v33 = vld [vmem:[#allocation2 + $0x68] sm:$0xff] }
 0xd70   :  { %v1638_v39 = vpack.c.bf16 %v1629_v33, %v1628_v20  ;;  %v6627_v33 = vld [vmem:[#allocation9 + $0x74] sm:$0xf]  ;;  %v6299_v20 = vld [vmem:[#allocation9 + $0x78] sm:$0xf0] }
 0xd7a   :  { %6251 = vmatmul.msk.bf16.vlgmr.msrb.gmra.mxu2 %vm175_vm0, %v1632_v37  ;;  %6259 = vmatmul.msk.bf16.vlgmr.msrb.gmra.mxu3 %vm175_vm0, %v1632_v37 }
 0xd8a   :  { %6252 = vmatmul.msk.bf16.gmra.mxu2 %vm175_vm0, %v1633_v10  ;;  %6260 = vmatmul.msk.bf16.gmra.mxu3 %vm175_vm0, %v1633_v10 }
 0xd9a   :  { %6253 = vmatmul.msk.bf16.gmra.mxu2 %vm175_vm0, %v1634_v28  ;;  %6261 = vmatmul.msk.bf16.gmra.mxu3 %vm175_vm0, %v1634_v28 }
 0xdaa   :  { %6254 = vmatmul.msk.bf16.gmra.mxu2 %vm175_vm0, %v1635_v17  ;;  %6262 = vmatmul.msk.bf16.gmra.mxu3 %vm175_vm0, %v1635_v17 }
 0xdba   :  { %6255 = vmatmul.msk.bf16.gmra.mxu2 %vm175_vm0, %v1636_v8  ;;  %6263 = vmatmul.msk.bf16.gmra.mxu3 %vm175_vm0, %v1636_v8 }
 0xdca   :  { %6256 = vmatmul.msk.bf16.gmra.mxu2 %vm175_vm0, %v1637_v26  ;;  %6264 = vmatmul.msk.bf16.gmra.mxu3 %vm175_vm0, %v1637_v26 }
 0xdda   :  { %6257 = vmatmul.msk.bf16.gmra.mxu2 %vm175_vm0, %v1638_v39  ;;  %6265 = vmatmul.msk.bf16.gmra.mxu3 %vm175_vm0, %v1638_v39  ;;  %v7964_v39 = vor.u32 %v6627_v33, %v6299_v20 }
 0xddc   :  { %2021 = vmatpush.bf16.msrb.mxu1 %v7964_v39 }
 0xded   :  { %v1451_v53 = vpop.f32.mrf.mxu2  ;;  %v1465_v25 = vpop.f32.mrf.mxu3 }
 0xdee   :  { %v7932_v16 = vadd.f32 %v1473_v40, %v1451_v53  ;;  %v7934_v36 = vadd.f32 %v1474_v42, %v1465_v25  ;;  %v6625_v25 = vld [vmem:[#allocation9 + $0x64] sm:$0xf] }
 0xdf5   :  { %v7936_v18 = vpop.f32.mrf.mxu2  ;;  %v7938_v45 = vpop.f32.mrf.mxu3 }
 0xdfd   :  { %v1718_v43 = vpop.f32.mrf.mxu2  ;;  %v1767_v46 = vpop.f32.mrf.mxu3 }
 0xdfe   :  { %v1719_v48 = vadd.f32 %v1718_v43, %v7940_v38  ;;  %v1768_v54 = vadd.f32 %v1767_v46, %v7942_v44  ;;  %v7970_v43 = vor.u32 %v6625_v25, %v6291_v59 }
 0xe00   :  { %v7946_v57 = vpack.c.bf16 %v1768_v54, %v1719_v48  ;;  %2022 = vmatpush.bf16.msrb.mxu1 %v7970_v43  ;;  %v6623_v48 = vld [vmem:[#allocation9 + $0x54] sm:$0xf]  ;;  %v6283_v54 = vld [vmem:[#allocation9 + $0x58] sm:$0xf0] }
 0xe02   :  { %v1842_v41 = vunpack.c.h.bf16 %v7946_v57  ;;  %v1841_v56 = vunpack.c.l.bf16 %v7946_v57 }
 0xe04   :  { %6840 = vtanh.f32 %v1842_v41  ;;  %v6267_v58 = vmul.f32 -1.442695, %v1841_v56 }
 0xe05   :  { %v1720_v34 = vpop.f32.mrf.mxu2  ;;  %v1769_v47 = vpop.f32.mrf.mxu3 }
 0xe06   :  { %v1721_v49 = vadd.f32 %v1720_v34, %v7940_v38  ;;  %v1770_v35 = vadd.f32 %v1769_v47, %v7942_v44  ;;  %v6297_v34 = vld [vmem:[#allocation9 + $0x70] sm:$0xf]  ;;  %v7974_v47 = vor.u32 %v6623_v48, %v6283_v54 }
 0xe08   :  { %v7953_v50 = vpack.c.bf16 %v1770_v35, %v1721_v49  ;;  %v6628_v49 = vld [vmem:[#allocation9 + $0x74] sm:$0xf0]  ;;  %v6621_v35 = vld [vmem:[#allocation9 + $0x44] sm:$0xf]  ;;  %2023 = vmatpush.bf16.msrb.mxu1 %v7974_v47 }
 0xe0a   :  { %v6841_v51 = vpop.eup %6840  ;;  %v1844_v52 = vunpack.c.h.bf16 %v7953_v50  ;;  %v1843_v60 = vunpack.c.l.bf16 %v7953_v50  ;;  %v6273_v50 = vld [vmem:[#allocation9 + $0x40] sm:$0xf] }
 0xe0b   :  { %1927 = vrot.lane.b32.xlu0 %v6841_v51, %s7550_s2  ;;  %v6275_v51 = vld [vmem:[#allocation9 + $0x48] sm:$0xf0] }
 0xe0c   :  { %6842 = vtanh.f32 %v1844_v52  ;;  %v6269_v1 = vmul.f32 -1.442695, %v1843_v60  ;;  %v7979_v56 = vor.u32 %v6621_v35, %v6275_v51 }
 0xe0d   :  { %6844 = vpow2.f32 %v6267_v58 }
 0xe0e   :  { %6846 = vpow2.f32 %v6269_v1  ;;  %2024 = vmatpush.bf16.msrb.mxu1 %v7979_v56 }
 0xe12   :  { %v6843_v55 = vpop.eup %6842  ;;  %2177 = vmatpush.bf16.msra.mxu1 %v7964_v39 }
 0xe13   :  { %1929 = vrot.lane.b32.xlu1 %v6843_v55, %s7550_s2  ;;  %v6845_v61 = vpop.eup %6844  ;;  %v7976_v55 = vor.u32 %v6628_v49, %v6297_v34  ;;  %v1723_v34 = vpop.f32.mrf.mxu2 }
 0xe14   :  { %v1857_v63 = vadd.f32 1.0, %v6845_v61  ;;  %v6847_v0 = vpop.eup %6846  ;;  %v1772_v49 = vpop.f32.mrf.mxu3  ;;  %v1724_v35 = vadd.f32 %v1723_v34, %v7940_v38 }
 0xe15   :  { %v1859_v3 = vadd.f32 1.0, %v6847_v0  ;;  %2007 = vmatpush.bf16.msrb.mxu0 %v7976_v55  ;;  %v6270_v0 = vmul.f32 -1.442695, %v1844_v52  ;;  %v6622_v52 = vld [vmem:[#allocation9 + $0x44] sm:$0xf0]  ;;  %v1773_v51 = vadd.f32 %v1772_v49, %v7942_v44 }
 0xe16   :  { %6848 = vrcp.f32 %v1857_v63  ;;  %v1872_v4 = vand.u32 2147483648, %v1857_v63  ;;  %vm1866_vm9 = vweird.f32 %v1857_v63  ;;  %v1870_v28 = vand.u32 2147483647, %v1857_v63  ;;  %2178 = vmatpush.bf16.msra.mxu1 %v7970_v43 }
 0xe17   :  { %6850 = vrcp.f32 %v1859_v3  ;;  %v1902_v23 = vand.u32 2147483648, %v1859_v3  ;;  %vm1896_vm13 = vweird.f32 %v1859_v3  ;;  %v1900_v26 = vand.u32 2147483647, %v1859_v3 }
 0xe18   :  { %v1873_v17 = vor.u32 1.1754944e-38, %v1872_v4  ;;  %vm1871_vm11 = vcmp.eq.f32.partialorder %v1870_v28, 8.507059e+37  ;;  %v8001_v4 = vor.u32 %v6622_v52, %v6273_v50  ;;  %v8034_v52 = vpop.f32.mrf.mxu0 }
 0xe19   :  { %v1903_v27 = vor.u32 1.1754944e-38, %v1902_v23  ;;  %vm1901_vm15 = vcmp.eq.f32.partialorder %v1900_v26, 8.507059e+37 }
 0xe1a   :  { %2179 = vmatpush.bf16.msra.mxu1 %v7974_v47 }
 0xe1c   :  { %v6849_v5 = vpop.eup %6848 }
 0xe1d   :  { %v1862_v6 = vmul.f32 %v6849_v5, %v1857_v63  ;;  %v6851_v37 = vpop.eup %6850  ;;  %vm1867_vm8 = vweird.f32 %v6849_v5  ;;  %v6268_v63 = vmul.f32 -1.442695, %v1842_v41 }
 0xe1e   :  { %v1892_v62 = vmul.f32 %v6851_v37, %v1859_v3  ;;  %vm1868_vm10 = vmor %vm1866_vm9, %vm1867_vm8  ;;  %vm1897_vm12 = vweird.f32 %v6851_v37  ;;  %2180 = vmatpush.bf16.msra.mxu1 %v7979_v56 }
 0xe1f   :  { %v1863_v7 = vsub.f32 1.0, %v1862_v6  ;;  %vm1898_vm14 = vmor %vm1896_vm13, %vm1897_vm12  ;;  %v6289_v6 = vld [vmem:[#allocation9 + $0x60] sm:$0xf] }
 0xe20   :  { %v1893_v12 = vsub.f32 1.0, %v1892_v62  ;;  %v6624_v62 = vld [vmem:[#allocation9 + $0x54] sm:$0xf0] }
 0xe21   :  { %v1864_v9 = vmul.f32 %v6849_v5, %v1863_v7  ;;  %v6626_v7 = vld [vmem:[#allocation9 + $0x64] sm:$0xf0] }
 0xe22   :  { %v1894_v15 = vmul.f32 %v6851_v37, %v1893_v12 }
 0xe23   :  { %v1865_v10 = vadd.f32 %v6849_v5, %v1864_v9  ;;  %v7995_v9 = vor.u32 %v6626_v7, %v6289_v6 }
 0xe24   :  { %v1895_v19 = vadd.f32 %v6851_v37, %v1894_v15 }
 0xe25   :  { %v1869_v13 = vsel %vm1868_vm10, %v6849_v5, %v1865_v10  ;;  %2008 = vmatpush.bf16.msrb.mxu0 %v7995_v9 }
 0xe26   :  { %v1874_v22 = vsel %vm1871_vm11, %v1873_v17, %v1869_v13  ;;  %v1899_v14 = vsel %vm1898_vm14, %v6851_v37, %v1895_v19  ;;  %v6281_v37 = vld [vmem:[#allocation9 + $0x50] sm:$0xf] }
 0xe27   :  { %v1904_v32 = vsel %vm1901_vm15, %v1903_v27, %v1899_v14  ;;  %v1923_v40 = vmul.f32 0.0, %v1874_v22  ;;  %v7998_v12 = vor.u32 %v6624_v62, %v6281_v37 }
 0xe28   :  { %v1924_v58 = vmul.f32 0.0, %v1904_v32 }
 0xe29   :  { %2009 = vmatpush.bf16.msrb.mxu0 %v7998_v12 }
 0xe2d   :  { %2010 = vmatpush.bf16.msrb.mxu0 %v8001_v4 }
 0xe31   :  { %2163 = vmatpush.bf16.msra.mxu0 %v7976_v55 }
 0xe35   :  { %2164 = vmatpush.bf16.msra.mxu0 %v7995_v9 }
 0xe39   :  { %2165 = vmatpush.bf16.msra.mxu0 %v7998_v12 }
 0xe3d   :  { %2166 = vmatpush.bf16.msra.mxu0 %v8001_v4 }
 0xe7d   :  { %v1928_v24 = vpop.permute.xlu0 %1927 }
 0xe7e   :  { %v1933_v8 = vmul.f32 %v1928_v24, %v1874_v22 }
 0xe80   :  { %1937 = vrot.lane.b32.xlu2 %v1933_v8, %s7550_s2 }
 0xe85   :  { %v1930_v31 = vpop.permute.xlu1 %1929 }
 0xe86   :  { %v1934_v21 = vmul.f32 %v1930_v31, %v1904_v32 }
 0xe88   :  { %1939 = vrot.lane.b32.xlu0 %v1934_v21, %s7550_s2 }
 0xeda   :  { %v1938_v42 = vpop.permute.xlu2 %1937 }
 0xedb   :  { %v7967_v53 = vadd.f32 %v1938_v42, %v1923_v40 }
 0xedd   :  { %6852 = vtanh.f32 %v7967_v53 }
 0xee3   :  { %v6853_v46 = vpop.eup %6852 }
 0xee4   :  { %1949 = vrot.lane.b32.xlu1 %v6853_v46, %s7550_s2 }
 0xefa   :  { %v1940_v60 = vpop.permute.xlu0 %1939 }
 0xefb   :  { %v7987_v1 = vadd.f32 %v1940_v60, %v1924_v58  ;;  %v8022_v58 = vpop.f32.mrf.mxu1  ;;  %v1809_v60 = vpack.c.bf16 %v1773_v51, %v1724_v35 }
 0xefd   :  { %6854 = vtanh.f32 %v7987_v1 }
 0xefe   :  { %6856 = vpow2.f32 %v6268_v63  ;;  %v1774_v63 = vpop.f32.mrf.mxu3 }
 0xeff   :  { %6858 = vpow2.f32 %v6270_v0 }
 0xf03   :  { %v6855_v61 = vpop.eup %6854 }
 0xf04   :  { %1951 = vrot.lane.b32.xlu2 %v6855_v61, %s7550_s2  ;;  %v6857_v3 = vpop.eup %6856  ;;  %v1725_v61 = vpop.f32.mrf.mxu2 }
 0xf05   :  { %v1858_v5 = vadd.f32 1.0, %v6857_v3  ;;  %v6859_v10 = vpop.eup %6858  ;;  %v1726_v0 = vadd.f32 %v1725_v61, %v7940_v38  ;;  %v1775_v3 = vadd.f32 %v1774_v63, %v7942_v44 }
 0xf06   :  { %v1860_v57 = vadd.f32 1.0, %v6859_v10 }
 0xf07   :  { %6860 = vrcp.f32 %v1858_v5  ;;  %v1887_v19 = vand.u32 2147483648, %v1858_v5  ;;  %vm1881_vm2 = vweird.f32 %v1858_v5  ;;  %v1885_v23 = vand.u32 2147483647, %v1858_v5 }
 0xf08   :  { %6862 = vrcp.f32 %v1860_v57  ;;  %v1917_v20 = vand.u32 2147483648, %v1860_v57  ;;  %vm1911_vm6 = vweird.f32 %v1860_v57  ;;  %v1915_v40 = vand.u32 2147483647, %v1860_v57 }
 0xf09   :  { %v1888_v27 = vor.u32 1.1754944e-38, %v1887_v19  ;;  %vm1886_vm4 = vcmp.eq.f32.partialorder %v1885_v23, 8.507059e+37  ;;  %v1810_v37 = vpack.c.bf16 %v1775_v3, %v1726_v0 }
 0xf0a   :  { %v1918_v25 = vor.u32 1.1754944e-38, %v1917_v20  ;;  %vm1916_vm8 = vcmp.eq.f32.partialorder %v1915_v40, 8.507059e+37 }
 0xf0b   :  { %v2036_v62 = vunpack.c.h.bf16 %v1810_v37 }
 0xf0d   :  { %v6861_v41 = vpop.eup %6860 }
 0xf0e   :  { %v1877_v28 = vmul.f32 %v6861_v41, %v1858_v5  ;;  %v6863_v15 = vpop.eup %6862  ;;  %vm1882_vm1 = vweird.f32 %v6861_v41  ;;  %v2034_v5 = vunpack.c.h.bf16 %v1809_v60 }
 0xf0f   :  { %v1907_v24 = vmul.f32 %v6863_v15, %v1860_v57  ;;  %vm1883_vm3 = vmor %vm1881_vm2, %vm1882_vm1  ;;  %vm1912_vm5 = vweird.f32 %v6863_v15 }
 0xf10   :  { %v1878_v13 = vsub.f32 1.0, %v1877_v28  ;;  %vm1913_vm7 = vmor %vm1911_vm6, %vm1912_vm5 }
 0xf11   :  { %v1908_v8 = vsub.f32 1.0, %v1907_v24 }
 0xf12   :  { %v1879_v17 = vmul.f32 %v6861_v41, %v1878_v13  ;;  %v2033_v13 = vunpack.c.l.bf16 %v1809_v60 }
 0xf13   :  { %v1909_v14 = vmul.f32 %v6863_v15, %v1908_v8 }
 0xf14   :  { %v1880_v22 = vadd.f32 %v6861_v41, %v1879_v17 }
 0xf15   :  { %v1910_v33 = vadd.f32 %v6863_v15, %v1909_v14 }
 0xf16   :  { %v1884_v26 = vsel %vm1883_vm3, %v6861_v41, %v1880_v22  ;;  %v2035_v22 = vunpack.c.l.bf16 %v1810_v37 }
 0xf17   :  { %v1889_v31 = vsel %vm1886_vm4, %v1888_v27, %v1884_v26  ;;  %v1914_v42 = vsel %vm1913_vm7, %v6863_v15, %v1910_v33 }
 0xf18   :  { %v1919_v59 = vsel %vm1916_vm8, %v1918_v25, %v1914_v42 }
 0xf56   :  { %v1950_v32 = vpop.permute.xlu1 %1949 }
 0xf57   :  { %v1955_v21 = vmul.f32 %v1950_v32, %v1889_v31 }
 0xf59   :  { %1957 = vst.msk [vmem:[#allocation2] sm:$0xff] %vm175_vm0, %v1955_v21 }
 0xf5e   :  { %v1952_v46 = vpop.permute.xlu2 %1951 }
 0xf5f   :  { %v1956_v48 = vmul.f32 %v1952_v46, %v1919_v59 }
 0xf61   :  { %1958 = vst.msk [vmem:[#allocation2 + $0x8] sm:$0xff] %vm175_vm0, %v1956_v48  ;;  %v1959_v54 = vpack.c.bf16 %v1956_v48, %v1955_v21 }
 0xf63   :  { %6303 = vmatmul.msk.bf16.vlgmr.msrb.gmra.mxu0 %vm175_vm0, %v1959_v54  ;;  %6304 = vmatmul.msk.bf16.vlgmr.msrb.gmra.mxu1 %vm175_vm0, %v1959_v54 }
 0xf64   :  { %2333 = vmatpush.bf16.msrb.mxu1 %v7964_v39  ;;  %2319 = vmatpush.bf16.msrb.mxu0 %v7976_v55 }
 0xf68   :  { %2334 = vmatpush.bf16.msrb.mxu1 %v7970_v43  ;;  %2320 = vmatpush.bf16.msrb.mxu0 %v7995_v9 }
 0xf6c   :  { %2335 = vmatpush.bf16.msrb.mxu1 %v7974_v47  ;;  %2321 = vmatpush.bf16.msrb.mxu0 %v7998_v12 }
 0xf70   :  { %2336 = vmatpush.bf16.msrb.mxu1 %v7979_v56  ;;  %2322 = vmatpush.bf16.msrb.mxu0 %v8001_v4 }
 0xfe0   :  { %v2026_v6 = vpop.f32.mrf.mxu1  ;;  %v2012_v28 = vpop.f32.mrf.mxu0 }
 0xfe1   :  { %v8026_v7 = vadd.f32 %v2034_v5, %v2026_v6  ;;  %v2037_v15 = vadd.f32 %v2033_v13, %v2012_v28 }
 0xfe3   :  { %6864 = vtanh.f32 %v8026_v7  ;;  %v6305_v17 = vmul.f32 -1.442695, %v2037_v15 }
 0xfe8   :  { %v2028_v10 = vpop.f32.mrf.mxu1  ;;  %v2014_v24 = vpop.f32.mrf.mxu0 }
 0xfe9   :  { %v6865_v57 = vpop.eup %6864  ;;  %v8029_v41 = vadd.f32 %v2036_v62, %v2028_v10  ;;  %v2039_v8 = vadd.f32 %v2035_v22, %v2014_v24 }
 0xfea   :  { %2123 = vrot.lane.b32.xlu0 %v6865_v57, %s7550_s2 }
 0xfeb   :  { %6866 = vtanh.f32 %v8029_v41  ;;  %v6307_v19 = vmul.f32 -1.442695, %v2039_v8  ;;  %v6308_v24 = vmul.f32 -1.442695, %v8029_v41 }
 0xfec   :  { %6868 = vpow2.f32 %v6305_v17 }
 0xfed   :  { %6870 = vpow2.f32 %v6307_v19 }
 0xff1   :  { %v6867_v50 = vpop.eup %6866 }
 0xff2   :  { %2125 = vrot.lane.b32.xlu1 %v6867_v50, %s7550_s2  ;;  %v6869_v23 = vpop.eup %6868 }
 0xff3   :  { %v2053_v26 = vadd.f32 1.0, %v6869_v23  ;;  %v6871_v14 = vpop.eup %6870 }
 0xff4   :  { %v2055_v27 = vadd.f32 1.0, %v6871_v14 }
 0xff5   :  { %6872 = vrcp.f32 %v2053_v26  ;;  %v2068_v59 = vand.u32 2147483648, %v2053_v26  ;;  %vm2062_vm10 = vweird.f32 %v2053_v26  ;;  %v2066_v46 = vand.u32 2147483647, %v2053_v26 }
 0xff6   :  { %6874 = vrcp.f32 %v2055_v27  ;;  %v2098_v61 = vand.u32 2147483648, %v2055_v27  ;;  %vm2092_vm14 = vweird.f32 %v2055_v27  ;;  %v2096_v63 = vand.u32 2147483647, %v2055_v27 }
 0xff7   :  { %v2069_v34 = vor.u32 1.1754944e-38, %v2068_v59  ;;  %vm2067_vm12 = vcmp.eq.f32.partialorder %v2066_v46, 8.507059e+37 }
 0xff8   :  { %v2099_v3 = vor.u32 1.1754944e-38, %v2098_v61  ;;  %vm2097_vm1 = vcmp.eq.f32.partialorder %v2096_v63, 8.507059e+37 }
 0xffb   :  { %v6873_v31 = vpop.eup %6872 }
 0xffc   :  { %v2058_v32 = vmul.f32 %v6873_v31, %v2053_v26  ;;  %v6875_v33 = vpop.eup %6874  ;;  %vm2063_vm9 = vweird.f32 %v6873_v31 }
 0xffd   :  { %v2088_v40 = vmul.f32 %v6875_v33, %v2055_v27  ;;  %vm2064_vm11 = vmor %vm2062_vm10, %vm2063_vm9  ;;  %vm2093_vm13 = vweird.f32 %v6875_v33 }
 0xffe   :  { %v2059_v21 = vsub.f32 1.0, %v2058_v32  ;;  %vm2094_vm15 = vmor %vm2092_vm14, %vm2093_vm13 }
 0xfff   :  { %v2089_v25 = vsub.f32 1.0, %v2088_v40 }
0x1000   :  { %v2060_v20 = vmul.f32 %v6873_v31, %v2059_v21 }
0x1001   :  { %v2090_v54 = vmul.f32 %v6875_v33, %v2089_v25 }
0x1002   :  { %v2061_v42 = vadd.f32 %v6873_v31, %v2060_v20 }
0x1003   :  { %v2091_v60 = vadd.f32 %v6875_v33, %v2090_v54 }
0x1004   :  { %v2065_v48 = vsel %vm2064_vm11, %v6873_v31, %v2061_v42 }
0x1005   :  { %v2070_v35 = vsel %vm2067_vm12, %v2069_v34, %v2065_v48  ;;  %v2095_v0 = vsel %vm2094_vm15, %v6875_v33, %v2091_v60 }
0x1006   :  { %v2100_v6 = vsel %vm2097_vm1, %v2099_v3, %v2095_v0  ;;  %v2119_v62 = vmul.f32 %v2070_v35, %v7967_v53  ;;  %v6306_v53 = vmul.f32 -1.442695, %v8026_v7  ;;  %v1728_v0 = vpop.f32.mrf.mxu2  ;;  %v1777_v3 = vpop.f32.mrf.mxu3 }
0x1007   :  { %v2120_v28 = vmul.f32 %v2100_v6, %v7987_v1 }
0x105c   :  { %v2124_v49 = vpop.permute.xlu0 %2123 }
0x105d   :  { %v2129_v51 = vmul.f32 %v2124_v49, %v2070_v35 }
0x105f   :  { %2133 = vrot.lane.b32.xlu2 %v2129_v51, %s7550_s2 }
0x1064   :  { %v2126_v5 = vpop.permute.xlu1 %2125 }
0x1065   :  { %v2130_v37 = vmul.f32 %v2126_v5, %v2100_v6  ;;  %v1729_v5 = vadd.f32 %v1728_v0, %v7940_v38  ;;  %v1778_v6 = vadd.f32 %v1777_v3, %v7942_v44 }
0x1067   :  { %2135 = vrot.lane.b32.xlu0 %v2130_v37, %s7550_s2  ;;  %v1811_v37 = vpack.c.bf16 %v1778_v6, %v1729_v5 }
0x10b9   :  { %v2134_v10 = vpop.permute.xlu2 %2133 }
0x10ba   :  { %v8039_v57 = vadd.f32 %v2134_v10, %v2119_v62  ;;  %v1730_v62 = vpop.f32.mrf.mxu2  ;;  %v1779_v10 = vpop.f32.mrf.mxu3 }
0x10bc   :  { %6876 = vtanh.f32 %v8039_v57 }
0x10c2   :  { %v6877_v50 = vpop.eup %6876 }
0x10c3   :  { %2145 = vrot.lane.b32.xlu1 %v6877_v50, %s7550_s2  ;;  %v1731_v50 = vadd.f32 %v1730_v62, %v7940_v38 }
0x10d9   :  { %v2136_v13 = vpop.permute.xlu0 %2135 }
0x10da   :  { %v8044_v15 = vadd.f32 %v2136_v13, %v2120_v28  ;;  %v1780_v28 = vadd.f32 %v1779_v10, %v7942_v44  ;;  %v2190_v13 = vunpack.c.h.bf16 %v1811_v37 }
0x10dc   :  { %6878 = vtanh.f32 %v8044_v15 }
0x10dd   :  { %6880 = vpow2.f32 %v6306_v53 }
0x10de   :  { %6882 = vpow2.f32 %v6308_v24  ;;  %v1812_v24 = vpack.c.bf16 %v1780_v28, %v1731_v50 }
0x10e2   :  { %v6879_v17 = vpop.eup %6878 }
0x10e3   :  { %2147 = vrot.lane.b32.xlu2 %v6879_v17, %s7550_s2  ;;  %v6881_v22 = vpop.eup %6880 }
0x10e4   :  { %v2054_v8 = vadd.f32 1.0, %v6881_v22  ;;  %v6883_v19 = vpop.eup %6882  ;;  %v2192_v22 = vunpack.c.h.bf16 %v1812_v24 }
0x10e5   :  { %v2056_v23 = vadd.f32 1.0, %v6883_v19 }
0x10e6   :  { %6884 = vrcp.f32 %v2054_v8  ;;  %v2083_v7 = vand.u32 2147483648, %v2054_v8  ;;  %vm2077_vm3 = vweird.f32 %v2054_v8  ;;  %v2081_v20 = vand.u32 2147483647, %v2054_v8 }
0x10e7   :  { %6886 = vrcp.f32 %v2056_v23  ;;  %v2113_v54 = vand.u32 2147483648, %v2056_v23  ;;  %vm2107_vm7 = vweird.f32 %v2056_v23  ;;  %v2111_v34 = vand.u32 2147483647, %v2056_v23 }
0x10e8   :  { %v2084_v42 = vor.u32 1.1754944e-38, %v2083_v7  ;;  %vm2082_vm5 = vcmp.eq.f32.partialorder %v2081_v20, 8.507059e+37 }
0x10e9   :  { %v2114_v35 = vor.u32 1.1754944e-38, %v2113_v54  ;;  %vm2112_vm9 = vcmp.eq.f32.partialorder %v2111_v34, 8.507059e+37 }
0x10ec   :  { %v6885_v1 = vpop.eup %6884 }
0x10ed   :  { %v2073_v26 = vmul.f32 %v6885_v1, %v2054_v8  ;;  %v6887_v27 = vpop.eup %6886  ;;  %vm2078_vm2 = vweird.f32 %v6885_v1 }
0x10ee   :  { %v2103_v32 = vmul.f32 %v6887_v27, %v2056_v23  ;;  %vm2079_vm4 = vmor %vm2077_vm3, %vm2078_vm2  ;;  %vm2108_vm6 = vweird.f32 %v6887_v27 }
0x10ef   :  { %v2074_v14 = vsub.f32 1.0, %v2073_v26  ;;  %vm2109_vm8 = vmor %vm2107_vm7, %vm2108_vm6 }
0x10f0   :  { %v2104_v33 = vsub.f32 1.0, %v2103_v32 }
0x10f1   :  { %v2075_v31 = vmul.f32 %v6885_v1, %v2074_v14  ;;  %v2189_v14 = vunpack.c.l.bf16 %v1811_v37 }
0x10f2   :  { %v2105_v40 = vmul.f32 %v6887_v27, %v2104_v33 }
0x10f3   :  { %v2076_v21 = vadd.f32 %v6885_v1, %v2075_v31 }
0x10f4   :  { %v2106_v48 = vadd.f32 %v6887_v27, %v2105_v40 }
0x10f5   :  { %v2080_v41 = vsel %vm2079_vm4, %v6885_v1, %v2076_v21  ;;  %v2191_v21 = vunpack.c.l.bf16 %v1812_v24 }
0x10f6   :  { %v2085_v25 = vsel %vm2082_vm5, %v2084_v42, %v2080_v41  ;;  %v2110_v49 = vsel %vm2109_vm8, %v6887_v27, %v2106_v48 }
0x10f7   :  { %v2115_v51 = vsel %vm2112_vm9, %v2114_v35, %v2110_v49 }
0x1135   :  { %v2146_v59 = vpop.permute.xlu1 %2145 }
0x1136   :  { %v2151_v46 = vmul.f32 %v2146_v59, %v2085_v25 }
0x1138   :  { %2153 = vst.msk [vmem:[#allocation2 + $0x10] sm:$0xff] %vm175_vm0, %v2151_v46 }
0x113d   :  { %v2148_v60 = vpop.permute.xlu2 %2147 }
0x113e   :  { %v2152_v61 = vmul.f32 %v2148_v60, %v2115_v51 }
0x1140   :  { %2154 = vst.msk [vmem:[#allocation2 + $0x18] sm:$0xff] %vm175_vm0, %v2152_v61  ;;  %v2155_v63 = vpack.c.bf16 %v2152_v61, %v2151_v46 }
0x1142   :  { %6309 = vmatmul.msk.bf16.vlgmr.msra.gmra.mxu0 %vm175_vm0, %v2155_v63  ;;  %6310 = vmatmul.msk.bf16.vlgmr.msra.gmra.mxu1 %vm175_vm0, %v2155_v63 }
0x1143   :  { %2489 = vmatpush.bf16.msra.mxu1 %v7964_v39  ;;  %2475 = vmatpush.bf16.msra.mxu0 %v7976_v55 }
0x1147   :  { %2490 = vmatpush.bf16.msra.mxu1 %v7970_v43  ;;  %2476 = vmatpush.bf16.msra.mxu0 %v7995_v9 }
0x114b   :  { %2491 = vmatpush.bf16.msra.mxu1 %v7974_v47  ;;  %2477 = vmatpush.bf16.msra.mxu0 %v7998_v12 }
0x114f   :  { %2492 = vmatpush.bf16.msra.mxu1 %v7979_v56  ;;  %2478 = vmatpush.bf16.msra.mxu0 %v8001_v4 }
0x11bf   :  { %v2182_v17 = vpop.f32.mrf.mxu1  ;;  %v2168_v26 = vpop.f32.mrf.mxu0 }
0x11c0   :  { %v8066_v53 = vadd.f32 %v2190_v13, %v2182_v17  ;;  %v2193_v27 = vadd.f32 %v2189_v14, %v2168_v26 }
0x11c2   :  { %6888 = vtanh.f32 %v8066_v53  ;;  %v6311_v31 = vmul.f32 -1.442695, %v2193_v27 }
0x11c7   :  { %v2184_v8 = vpop.f32.mrf.mxu1  ;;  %v2170_v32 = vpop.f32.mrf.mxu0 }
0x11c8   :  { %v6889_v19 = vpop.eup %6888  ;;  %v8069_v23 = vadd.f32 %v2192_v22, %v2184_v8  ;;  %v2195_v33 = vadd.f32 %v2191_v21, %v2170_v32 }
0x11c9   :  { %2279 = vrot.lane.b32.xlu0 %v6889_v19, %s7550_s2 }
0x11ca   :  { %6890 = vtanh.f32 %v8069_v23  ;;  %v6313_v7 = vmul.f32 -1.442695, %v2195_v33  ;;  %v6314_v32 = vmul.f32 -1.442695, %v8069_v23 }
0x11cb   :  { %6892 = vpow2.f32 %v6311_v31 }
0x11cc   :  { %6894 = vpow2.f32 %v6313_v7 }
0x11d0   :  { %v6891_v1 = vpop.eup %6890 }
0x11d1   :  { %2281 = vrot.lane.b32.xlu1 %v6891_v1, %s7550_s2  ;;  %v6893_v20 = vpop.eup %6892 }
0x11d2   :  { %v2209_v41 = vadd.f32 1.0, %v6893_v20  ;;  %v6895_v40 = vpop.eup %6894 }
0x11d3   :  { %v2211_v42 = vadd.f32 1.0, %v6895_v40 }
0x11d4   :  { %6896 = vrcp.f32 %v2209_v41  ;;  %v2224_v51 = vand.u32 2147483648, %v2209_v41  ;;  %vm2218_vm11 = vweird.f32 %v2209_v41  ;;  %v2222_v60 = vand.u32 2147483647, %v2209_v41 }
0x11d5   :  { %6898 = vrcp.f32 %v2211_v42  ;;  %v2254_v62 = vand.u32 2147483648, %v2211_v42  ;;  %vm2248_vm15 = vweird.f32 %v2211_v42  ;;  %v2252_v10 = vand.u32 2147483647, %v2211_v42 }
0x11d6   :  { %v2225_v0 = vor.u32 1.1754944e-38, %v2224_v51  ;;  %vm2223_vm13 = vcmp.eq.f32.partialorder %v2222_v60, 8.507059e+37 }
0x11d7   :  { %v2255_v28 = vor.u32 1.1754944e-38, %v2254_v62  ;;  %vm2253_vm2 = vcmp.eq.f32.partialorder %v2252_v10, 8.507059e+37 }
0x11da   :  { %v6897_v25 = vpop.eup %6896 }
0x11db   :  { %v2214_v59 = vmul.f32 %v6897_v25, %v2209_v41  ;;  %v6899_v48 = vpop.eup %6898  ;;  %vm2219_vm10 = vweird.f32 %v6897_v25 }
0x11dc   :  { %v2244_v34 = vmul.f32 %v6899_v48, %v2211_v42  ;;  %vm2220_vm12 = vmor %vm2218_vm11, %vm2219_vm10  ;;  %vm2249_vm14 = vweird.f32 %v6899_v48 }
0x11dd   :  { %v2215_v46 = vsub.f32 1.0, %v2214_v59  ;;  %vm2250_vm1 = vmor %vm2248_vm15, %vm2249_vm14 }
0x11de   :  { %v2245_v35 = vsub.f32 1.0, %v2244_v34 }
0x11df   :  { %v2216_v54 = vmul.f32 %v6897_v25, %v2215_v46 }
0x11e0   :  { %v2246_v63 = vmul.f32 %v6899_v48, %v2245_v35 }
0x11e1   :  { %v2217_v49 = vadd.f32 %v6897_v25, %v2216_v54 }
0x11e2   :  { %v2247_v37 = vadd.f32 %v6899_v48, %v2246_v63 }
0x11e3   :  { %v2221_v61 = vsel %vm2220_vm12, %v6897_v25, %v2217_v49 }
0x11e4   :  { %v2226_v5 = vsel %vm2223_vm13, %v2225_v0, %v2221_v61  ;;  %v2251_v50 = vsel %vm2250_vm1, %v6899_v48, %v2247_v37 }
0x11e5   :  { %v2256_v17 = vsel %vm2253_vm2, %v2255_v28, %v2251_v50  ;;  %v2275_v22 = vmul.f32 %v2226_v5, %v8039_v57  ;;  %v6312_v57 = vmul.f32 -1.442695, %v8066_v53  ;;  %v1733_v50 = vpop.f32.mrf.mxu2  ;;  %v1782_v28 = vpop.f32.mrf.mxu3 }
0x11e6   :  { %v2276_v26 = vmul.f32 %v2256_v17, %v8044_v15 }
0x123b   :  { %v2280_v3 = vpop.permute.xlu0 %2279 }
0x123c   :  { %v2285_v6 = vmul.f32 %v2280_v3, %v2226_v5 }
0x123e   :  { %2289 = vrot.lane.b32.xlu2 %v2285_v6, %s7550_s2 }
0x1243   :  { %v2282_v13 = vpop.permute.xlu1 %2281 }
0x1244   :  { %v2286_v24 = vmul.f32 %v2282_v13, %v2256_v17  ;;  %v1734_v13 = vadd.f32 %v1733_v50, %v7940_v38  ;;  %v1783_v17 = vadd.f32 %v1782_v28, %v7942_v44 }
0x1246   :  { %2291 = vrot.lane.b32.xlu0 %v2286_v24, %s7550_s2  ;;  %v1813_v24 = vpack.c.bf16 %v1783_v17, %v1734_v13 }
0x1298   :  { %v2290_v8 = vpop.permute.xlu2 %2289 }
0x1299   :  { %v8077_v19 = vadd.f32 %v2290_v8, %v2275_v22  ;;  %v1735_v22 = vpop.f32.mrf.mxu2  ;;  %v1784_v8 = vpop.f32.mrf.mxu3 }
0x129b   :  { %6900 = vtanh.f32 %v8077_v19 }
0x12a1   :  { %v6901_v1 = vpop.eup %6900 }
0x12a2   :  { %2301 = vrot.lane.b32.xlu1 %v6901_v1, %s7550_s2  ;;  %v1736_v1 = vadd.f32 %v1735_v22, %v7940_v38 }
0x12b8   :  { %v2292_v14 = vpop.permute.xlu0 %2291 }
0x12b9   :  { %v8082_v27 = vadd.f32 %v2292_v14, %v2276_v26  ;;  %v1785_v26 = vadd.f32 %v1784_v8, %v7942_v44  ;;  %v2346_v14 = vunpack.c.h.bf16 %v1813_v24 }
0x12bb   :  { %6902 = vtanh.f32 %v8082_v27 }
0x12bc   :  { %6904 = vpow2.f32 %v6312_v57 }
0x12bd   :  { %6906 = vpow2.f32 %v6314_v32  ;;  %v1814_v32 = vpack.c.bf16 %v1785_v26, %v1736_v1 }
0x12c1   :  { %v6903_v31 = vpop.eup %6902 }
0x12c2   :  { %2303 = vrot.lane.b32.xlu2 %v6903_v31, %s7550_s2  ;;  %v6905_v21 = vpop.eup %6904 }
0x12c3   :  { %v2210_v33 = vadd.f32 1.0, %v6905_v21  ;;  %v6907_v7 = vpop.eup %6906  ;;  %v2348_v21 = vunpack.c.h.bf16 %v1814_v32 }
0x12c4   :  { %v2212_v20 = vadd.f32 1.0, %v6907_v7 }
0x12c5   :  { %6908 = vrcp.f32 %v2210_v33  ;;  %v2239_v53 = vand.u32 2147483648, %v2210_v33  ;;  %vm2233_vm4 = vweird.f32 %v2210_v33  ;;  %v2237_v54 = vand.u32 2147483647, %v2210_v33 }
0x12c6   :  { %6910 = vrcp.f32 %v2212_v20  ;;  %v2269_v63 = vand.u32 2147483648, %v2212_v20  ;;  %vm2263_vm8 = vweird.f32 %v2212_v20  ;;  %v2267_v0 = vand.u32 2147483647, %v2212_v20 }
0x12c7   :  { %v2240_v49 = vor.u32 1.1754944e-38, %v2239_v53  ;;  %vm2238_vm6 = vcmp.eq.f32.partialorder %v2237_v54, 8.507059e+37 }
0x12c8   :  { %v2270_v5 = vor.u32 1.1754944e-38, %v2269_v63  ;;  %vm2268_vm10 = vcmp.eq.f32.partialorder %v2267_v0, 8.507059e+37 }
0x12cb   :  { %v6909_v15 = vpop.eup %6908 }
0x12cc   :  { %v2229_v41 = vmul.f32 %v6909_v15, %v2210_v33  ;;  %v6911_v42 = vpop.eup %6910  ;;  %vm2234_vm3 = vweird.f32 %v6909_v15 }
0x12cd   :  { %v2259_v59 = vmul.f32 %v6911_v42, %v2212_v20  ;;  %vm2235_vm5 = vmor %vm2233_vm4, %vm2234_vm3  ;;  %vm2264_vm7 = vweird.f32 %v6911_v42 }
0x12ce   :  { %v2230_v40 = vsub.f32 1.0, %v2229_v41  ;;  %vm2265_vm9 = vmor %vm2263_vm8, %vm2264_vm7 }
0x12cf   :  { %v2260_v48 = vsub.f32 1.0, %v2259_v59 }
0x12d0   :  { %v2231_v25 = vmul.f32 %v6909_v15, %v2230_v40  ;;  %v2345_v40 = vunpack.c.l.bf16 %v1813_v24 }
0x12d1   :  { %v2261_v34 = vmul.f32 %v6911_v42, %v2260_v48 }
0x12d2   :  { %v2232_v46 = vadd.f32 %v6909_v15, %v2231_v25 }
0x12d3   :  { %v2262_v61 = vadd.f32 %v6911_v42, %v2261_v34 }
0x12d4   :  { %v2236_v23 = vsel %vm2235_vm5, %v6909_v15, %v2232_v46  ;;  %v2347_v46 = vunpack.c.l.bf16 %v1814_v32 }
0x12d5   :  { %v2241_v35 = vsel %vm2238_vm6, %v2240_v49, %v2236_v23  ;;  %v2266_v3 = vsel %vm2265_vm9, %v6911_v42, %v2262_v61 }
0x12d6   :  { %v2271_v6 = vsel %vm2268_vm10, %v2270_v5, %v2266_v3 }
0x1314   :  { %v2302_v51 = vpop.permute.xlu1 %2301 }
0x1315   :  { %v2307_v60 = vmul.f32 %v2302_v51, %v2241_v35 }
0x1317   :  { %2309 = vst.msk [vmem:[#allocation2 + $0x20] sm:$0xff] %vm175_vm0, %v2307_v60 }
0x131c   :  { %v2304_v37 = vpop.permute.xlu2 %2303 }
0x131d   :  { %v2308_v62 = vmul.f32 %v2304_v37, %v2271_v6 }
0x131f   :  { %2310 = vst.msk [vmem:[#allocation2 + $0x28] sm:$0xff] %vm175_vm0, %v2308_v62  ;;  %v2311_v10 = vpack.c.bf16 %v2308_v62, %v2307_v60 }
0x1321   :  { %6315 = vmatmul.msk.bf16.vlgmr.msrb.gmra.mxu0 %vm175_vm0, %v2311_v10  ;;  %6316 = vmatmul.msk.bf16.vlgmr.msrb.gmra.mxu1 %vm175_vm0, %v2311_v10 }
0x1322   :  { %2645 = vmatpush.bf16.msrb.mxu1 %v7964_v39  ;;  %2631 = vmatpush.bf16.msrb.mxu0 %v7976_v55 }
0x1326   :  { %2646 = vmatpush.bf16.msrb.mxu1 %v7970_v43  ;;  %2632 = vmatpush.bf16.msrb.mxu0 %v7995_v9 }
0x132a   :  { %2647 = vmatpush.bf16.msrb.mxu1 %v7974_v47  ;;  %2633 = vmatpush.bf16.msrb.mxu0 %v7998_v12 }
0x132e   :  { %2648 = vmatpush.bf16.msrb.mxu1 %v7979_v56  ;;  %2634 = vmatpush.bf16.msrb.mxu0 %v8001_v4 }
0x139e   :  { %v2338_v31 = vpop.f32.mrf.mxu1  ;;  %v2324_v41 = vpop.f32.mrf.mxu0 }
0x139f   :  { %v8104_v57 = vadd.f32 %v2346_v14, %v2338_v31  ;;  %v2349_v42 = vadd.f32 %v2345_v40, %v2324_v41 }
0x13a1   :  { %6912 = vtanh.f32 %v8104_v57  ;;  %v6317_v25 = vmul.f32 -1.442695, %v2349_v42 }
0x13a6   :  { %v2340_v33 = vpop.f32.mrf.mxu1  ;;  %v2326_v59 = vpop.f32.mrf.mxu0 }
0x13a7   :  { %v6913_v7 = vpop.eup %6912  ;;  %v8107_v20 = vadd.f32 %v2348_v21, %v2340_v33  ;;  %v2351_v48 = vadd.f32 %v2347_v46, %v2326_v59 }
0x13a8   :  { %2435 = vrot.lane.b32.xlu0 %v6913_v7, %s7550_s2 }
0x13a9   :  { %6914 = vtanh.f32 %v8107_v20  ;;  %v6319_v53 = vmul.f32 -1.442695, %v2351_v48  ;;  %v6320_v59 = vmul.f32 -1.442695, %v8107_v20 }
0x13aa   :  { %6916 = vpow2.f32 %v6317_v25 }
0x13ab   :  { %6918 = vpow2.f32 %v6319_v53 }
0x13af   :  { %v6915_v15 = vpop.eup %6914 }
0x13b0   :  { %2437 = vrot.lane.b32.xlu1 %v6915_v15, %s7550_s2  ;;  %v6917_v54 = vpop.eup %6916 }
0x13b1   :  { %v2365_v23 = vadd.f32 1.0, %v6917_v54  ;;  %v6919_v34 = vpop.eup %6918 }
0x13b2   :  { %v2367_v49 = vadd.f32 1.0, %v6919_v34 }
0x13b3   :  { %6920 = vrcp.f32 %v2365_v23  ;;  %v2380_v6 = vand.u32 2147483648, %v2365_v23  ;;  %vm2374_vm12 = vweird.f32 %v2365_v23  ;;  %v2378_v37 = vand.u32 2147483647, %v2365_v23 }
0x13b4   :  { %6922 = vrcp.f32 %v2367_v49  ;;  %v2410_v22 = vand.u32 2147483648, %v2367_v49  ;;  %vm2404_vm1 = vweird.f32 %v2367_v49  ;;  %v2408_v8 = vand.u32 2147483647, %v2367_v49 }
0x13b5   :  { %v2381_v50 = vor.u32 1.1754944e-38, %v2380_v6  ;;  %vm2379_vm14 = vcmp.eq.f32.partialorder %v2378_v37, 8.507059e+37 }
0x13b6   :  { %v2411_v26 = vor.u32 1.1754944e-38, %v2410_v22  ;;  %vm2409_vm3 = vcmp.eq.f32.partialorder %v2408_v8, 8.507059e+37 }
0x13b9   :  { %v6921_v35 = vpop.eup %6920 }
0x13ba   :  { %v2370_v51 = vmul.f32 %v6921_v35, %v2365_v23  ;;  %v6923_v61 = vpop.eup %6922  ;;  %vm2375_vm11 = vweird.f32 %v6921_v35 }
0x13bb   :  { %v2400_v0 = vmul.f32 %v6923_v61, %v2367_v49  ;;  %vm2376_vm13 = vmor %vm2374_vm12, %vm2375_vm11  ;;  %vm2405_vm15 = vweird.f32 %v6923_v61 }
0x13bc   :  { %v2371_v60 = vsub.f32 1.0, %v2370_v51  ;;  %vm2406_vm2 = vmor %vm2404_vm1, %vm2405_vm15 }
0x13bd   :  { %v2401_v5 = vsub.f32 1.0, %v2400_v0 }
0x13be   :  { %v2372_v63 = vmul.f32 %v6921_v35, %v2371_v60 }
0x13bf   :  { %v2402_v10 = vmul.f32 %v6923_v61, %v2401_v5 }
0x13c0   :  { %v2373_v3 = vadd.f32 %v6921_v35, %v2372_v63 }
0x13c1   :  { %v2403_v24 = vadd.f32 %v6923_v61, %v2402_v10 }
0x13c2   :  { %v2377_v62 = vsel %vm2376_vm13, %v6921_v35, %v2373_v3 }
0x13c3   :  { %v2382_v13 = vsel %vm2379_vm14, %v2381_v50, %v2377_v62  ;;  %v2407_v1 = vsel %vm2406_vm2, %v6923_v61, %v2403_v24 }
0x13c4   :  { %v2412_v31 = vsel %vm2409_vm3, %v2411_v26, %v2407_v1  ;;  %v2431_v21 = vmul.f32 %v2382_v13, %v8077_v19  ;;  %v6318_v19 = vmul.f32 -1.442695, %v8104_v57  ;;  %v1738_v1 = vpop.f32.mrf.mxu2  ;;  %v1787_v26 = vpop.f32.mrf.mxu3 }
0x13c5   :  { %v2432_v41 = vmul.f32 %v2412_v31, %v8082_v27 }
0x141a   :  { %v2436_v28 = vpop.permute.xlu0 %2435 }
0x141b   :  { %v2441_v17 = vmul.f32 %v2436_v28, %v2382_v13 }
0x141d   :  { %2445 = vrot.lane.b32.xlu2 %v2441_v17, %s7550_s2 }
0x1422   :  { %v2438_v14 = vpop.permute.xlu1 %2437 }
0x1423   :  { %v2442_v32 = vmul.f32 %v2438_v14, %v2412_v31  ;;  %v1739_v14 = vadd.f32 %v1738_v1, %v7940_v38  ;;  %v1788_v31 = vadd.f32 %v1787_v26, %v7942_v44 }
0x1425   :  { %2447 = vrot.lane.b32.xlu0 %v2442_v32, %s7550_s2  ;;  %v1815_v32 = vpack.c.bf16 %v1788_v31, %v1739_v14 }
0x1477   :  { %v2446_v33 = vpop.permute.xlu2 %2445 }
0x1478   :  { %v8115_v7 = vadd.f32 %v2446_v33, %v2431_v21  ;;  %v1740_v21 = vpop.f32.mrf.mxu2  ;;  %v1789_v33 = vpop.f32.mrf.mxu3 }
0x147a   :  { %6924 = vtanh.f32 %v8115_v7 }
0x1480   :  { %v6925_v15 = vpop.eup %6924 }
0x1481   :  { %2457 = vrot.lane.b32.xlu1 %v6925_v15, %s7550_s2  ;;  %v1741_v15 = vadd.f32 %v1740_v21, %v7940_v38 }
0x1497   :  { %v2448_v40 = vpop.permute.xlu0 %2447 }
0x1498   :  { %v8120_v42 = vadd.f32 %v2448_v40, %v2432_v41  ;;  %v1790_v41 = vadd.f32 %v1789_v33, %v7942_v44  ;;  %v2502_v40 = vunpack.c.h.bf16 %v1815_v32 }
0x149a   :  { %6926 = vtanh.f32 %v8120_v42 }
0x149b   :  { %6928 = vpow2.f32 %v6318_v19 }
0x149c   :  { %6930 = vpow2.f32 %v6320_v59  ;;  %v1816_v59 = vpack.c.bf16 %v1790_v41, %v1741_v15 }
0x14a0   :  { %v6927_v25 = vpop.eup %6926 }
0x14a1   :  { %2459 = vrot.lane.b32.xlu2 %v6927_v25, %s7550_s2  ;;  %v6929_v46 = vpop.eup %6928 }
0x14a2   :  { %v2366_v48 = vadd.f32 1.0, %v6929_v46  ;;  %v6931_v53 = vpop.eup %6930  ;;  %v2504_v46 = vunpack.c.h.bf16 %v1816_v59 }
0x14a3   :  { %v2368_v54 = vadd.f32 1.0, %v6931_v53 }
0x14a4   :  { %6932 = vrcp.f32 %v2366_v48  ;;  %v2395_v57 = vand.u32 2147483648, %v2366_v48  ;;  %vm2389_vm5 = vweird.f32 %v2366_v48  ;;  %v2393_v63 = vand.u32 2147483647, %v2366_v48 }
0x14a5   :  { %6934 = vrcp.f32 %v2368_v54  ;;  %v2425_v10 = vand.u32 2147483648, %v2368_v54  ;;  %vm2419_vm9 = vweird.f32 %v2368_v54  ;;  %v2423_v50 = vand.u32 2147483647, %v2368_v54 }
0x14a6   :  { %v2396_v3 = vor.u32 1.1754944e-38, %v2395_v57  ;;  %vm2394_vm7 = vcmp.eq.f32.partialorder %v2393_v63, 8.507059e+37 }
0x14a7   :  { %v2426_v13 = vor.u32 1.1754944e-38, %v2425_v10  ;;  %vm2424_vm11 = vcmp.eq.f32.partialorder %v2423_v50, 8.507059e+37 }
0x14aa   :  { %v6933_v27 = vpop.eup %6932 }
0x14ab   :  { %v2385_v23 = vmul.f32 %v6933_v27, %v2366_v48  ;;  %v6935_v49 = vpop.eup %6934  ;;  %vm2390_vm4 = vweird.f32 %v6933_v27 }
0x14ac   :  { %v2415_v51 = vmul.f32 %v6935_v49, %v2368_v54  ;;  %vm2391_vm6 = vmor %vm2389_vm5, %vm2390_vm4  ;;  %vm2420_vm8 = vweird.f32 %v6935_v49 }
0x14ad   :  { %v2386_v34 = vsub.f32 1.0, %v2385_v23  ;;  %vm2421_vm10 = vmor %vm2419_vm9, %vm2420_vm8 }
0x14ae   :  { %v2416_v61 = vsub.f32 1.0, %v2415_v51 }
0x14af   :  { %v2387_v35 = vmul.f32 %v6933_v27, %v2386_v34  ;;  %v2501_v34 = vunpack.c.l.bf16 %v1815_v32 }
0x14b0   :  { %v2417_v0 = vmul.f32 %v6935_v49, %v2416_v61 }
0x14b1   :  { %v2388_v60 = vadd.f32 %v6933_v27, %v2387_v35 }
0x14b2   :  { %v2418_v62 = vadd.f32 %v6935_v49, %v2417_v0 }
0x14b3   :  { %v2392_v20 = vsel %vm2391_vm6, %v6933_v27, %v2388_v60  ;;  %v2503_v60 = vunpack.c.l.bf16 %v1816_v59 }
0x14b4   :  { %v2397_v5 = vsel %vm2394_vm7, %v2396_v3, %v2392_v20  ;;  %v2422_v28 = vsel %vm2421_vm10, %v6935_v49, %v2418_v62 }
0x14b5   :  { %v2427_v17 = vsel %vm2424_vm11, %v2426_v13, %v2422_v28 }
0x14f3   :  { %v2458_v6 = vpop.permute.xlu1 %2457 }
0x14f4   :  { %v2463_v37 = vmul.f32 %v2458_v6, %v2397_v5 }
0x14f6   :  { %2465 = vst.msk [vmem:[#allocation2 + $0x30] sm:$0xff] %vm175_vm0, %v2463_v37 }
0x14fb   :  { %v2460_v24 = vpop.permute.xlu2 %2459 }
0x14fc   :  { %v2464_v22 = vmul.f32 %v2460_v24, %v2427_v17 }
0x14fe   :  { %2466 = vst.msk [vmem:[#allocation2 + $0x38] sm:$0xff] %vm175_vm0, %v2464_v22  ;;  %v2467_v8 = vpack.c.bf16 %v2464_v22, %v2463_v37 }
0x1500   :  { %6321 = vmatmul.msk.bf16.vlgmr.msra.gmra.mxu0 %vm175_vm0, %v2467_v8  ;;  %6322 = vmatmul.msk.bf16.vlgmr.msra.gmra.mxu1 %vm175_vm0, %v2467_v8 }
0x1501   :  { %2801 = vmatpush.bf16.msra.mxu1 %v7964_v39  ;;  %2787 = vmatpush.bf16.msra.mxu0 %v7976_v55 }
0x1505   :  { %2802 = vmatpush.bf16.msra.mxu1 %v7970_v43  ;;  %2788 = vmatpush.bf16.msra.mxu0 %v7995_v9 }
0x1509   :  { %2803 = vmatpush.bf16.msra.mxu1 %v7974_v47  ;;  %2789 = vmatpush.bf16.msra.mxu0 %v7998_v12 }
0x150d   :  { %2804 = vmatpush.bf16.msra.mxu1 %v7979_v56  ;;  %2790 = vmatpush.bf16.msra.mxu0 %v8001_v4 }
0x157d   :  { %v2494_v25 = vpop.f32.mrf.mxu1  ;;  %v2480_v23 = vpop.f32.mrf.mxu0 }
0x157e   :  { %v8142_v19 = vadd.f32 %v2502_v40, %v2494_v25  ;;  %v2505_v49 = vadd.f32 %v2501_v34, %v2480_v23 }
0x1580   :  { %6936 = vtanh.f32 %v8142_v19  ;;  %v6323_v35 = vmul.f32 -1.442695, %v2505_v49 }
0x1585   :  { %v2496_v48 = vpop.f32.mrf.mxu1  ;;  %v2482_v51 = vpop.f32.mrf.mxu0 }
0x1586   :  { %v6937_v53 = vpop.eup %6936  ;;  %v8145_v54 = vadd.f32 %v2504_v46, %v2496_v48  ;;  %v2507_v61 = vadd.f32 %v2503_v60, %v2482_v51 }
0x1587   :  { %2591 = vrot.lane.b32.xlu0 %v6937_v53, %s7550_s2 }
0x1588   :  { %6938 = vtanh.f32 %v8145_v54  ;;  %v6325_v57 = vmul.f32 -1.442695, %v2507_v61  ;;  %v6326_v51 = vmul.f32 -1.442695, %v8145_v54 }
0x1589   :  { %6940 = vpow2.f32 %v6323_v35 }
0x158a   :  { %6942 = vpow2.f32 %v6325_v57 }
0x158e   :  { %v6939_v27 = vpop.eup %6938 }
0x158f   :  { %2593 = vrot.lane.b32.xlu1 %v6939_v27, %s7550_s2  ;;  %v6941_v63 = vpop.eup %6940 }
0x1590   :  { %v2521_v20 = vadd.f32 1.0, %v6941_v63  ;;  %v6943_v0 = vpop.eup %6942 }
0x1591   :  { %v2523_v3 = vadd.f32 1.0, %v6943_v0 }
0x1592   :  { %6944 = vrcp.f32 %v2521_v20  ;;  %v2536_v17 = vand.u32 2147483648, %v2521_v20  ;;  %vm2530_vm13 = vweird.f32 %v2521_v20  ;;  %v2534_v24 = vand.u32 2147483647, %v2521_v20 }
0x1593   :  { %6946 = vrcp.f32 %v2523_v3  ;;  %v2566_v21 = vand.u32 2147483648, %v2523_v3  ;;  %vm2560_vm2 = vweird.f32 %v2523_v3  ;;  %v2564_v33 = vand.u32 2147483647, %v2523_v3 }
0x1594   :  { %v2537_v1 = vor.u32 1.1754944e-38, %v2536_v17  ;;  %vm2535_vm15 = vcmp.eq.f32.partialorder %v2534_v24, 8.507059e+37 }
0x1595   :  { %v2567_v41 = vor.u32 1.1754944e-38, %v2566_v21  ;;  %vm2565_vm4 = vcmp.eq.f32.partialorder %v2564_v33, 8.507059e+37 }
0x1598   :  { %v6945_v5 = vpop.eup %6944 }
0x1599   :  { %v2526_v6 = vmul.f32 %v6945_v5, %v2521_v20  ;;  %v6947_v62 = vpop.eup %6946  ;;  %vm2531_vm12 = vweird.f32 %v6945_v5 }
0x159a   :  { %v2556_v50 = vmul.f32 %v6947_v62, %v2523_v3  ;;  %vm2532_vm14 = vmor %vm2530_vm13, %vm2531_vm12  ;;  %vm2561_vm1 = vweird.f32 %v6947_v62 }
0x159b   :  { %v2527_v37 = vsub.f32 1.0, %v2526_v6  ;;  %vm2562_vm3 = vmor %vm2560_vm2, %vm2561_vm1 }
0x159c   :  { %v2557_v13 = vsub.f32 1.0, %v2556_v50 }
0x159d   :  { %v2528_v10 = vmul.f32 %v6945_v5, %v2527_v37 }
0x159e   :  { %v2558_v8 = vmul.f32 %v6947_v62, %v2557_v13 }
0x159f   :  { %v2529_v28 = vadd.f32 %v6945_v5, %v2528_v10 }
0x15a0   :  { %v2559_v32 = vadd.f32 %v6947_v62, %v2558_v8 }
0x15a1   :  { %v2533_v22 = vsel %vm2532_vm14, %v6945_v5, %v2529_v28 }
0x15a2   :  { %v2538_v14 = vsel %vm2535_vm15, %v2537_v1, %v2533_v22  ;;  %v2563_v15 = vsel %vm2562_vm3, %v6947_v62, %v2559_v32 }
0x15a3   :  { %v2568_v25 = vsel %vm2565_vm4, %v2567_v41, %v2563_v15  ;;  %v2587_v46 = vmul.f32 %v2538_v14, %v8115_v7  ;;  %v6324_v7 = vmul.f32 -1.442695, %v8142_v19  ;;  %v1743_v15 = vpop.f32.mrf.mxu2  ;;  %v1792_v41 = vpop.f32.mrf.mxu3 }
0x15a4   :  { %v2588_v23 = vmul.f32 %v2568_v25, %v8120_v42 }
0x15f9   :  { %v2592_v26 = vpop.permute.xlu0 %2591 }
0x15fa   :  { %v2597_v31 = vmul.f32 %v2592_v26, %v2538_v14 }
0x15fc   :  { %2601 = vrot.lane.b32.xlu2 %v2597_v31, %s7550_s2 }
0x1601   :  { %v2594_v40 = vpop.permute.xlu1 %2593 }
0x1602   :  { %v2598_v59 = vmul.f32 %v2594_v40, %v2568_v25  ;;  %v1744_v40 = vadd.f32 %v1743_v15, %v7940_v38 }
0x1604   :  { %2603 = vrot.lane.b32.xlu0 %v2598_v59, %s7550_s2  ;;  %v1794_v59 = vpop.f32.mrf.mxu3 }
0x1656   :  { %v2602_v48 = vpop.permute.xlu2 %2601 }
0x1657   :  { %v8153_v53 = vadd.f32 %v2602_v48, %v2587_v46 }
0x1659   :  { %6948 = vtanh.f32 %v8153_v53 }
0x165f   :  { %v6949_v27 = vpop.eup %6948 }
0x1660   :  { %2613 = vrot.lane.b32.xlu1 %v6949_v27, %s7550_s2 }
0x1676   :  { %v2604_v34 = vpop.permute.xlu0 %2603 }
0x1677   :  { %v8158_v49 = vadd.f32 %v2604_v34, %v2588_v23 }
0x1679   :  { %6950 = vtanh.f32 %v8158_v49 }
0x167a   :  { %6952 = vpow2.f32 %v6324_v7 }
0x167b   :  { %6954 = vpow2.f32 %v6326_v51 }
0x167f   :  { %v6951_v35 = vpop.eup %6950 }
0x1680   :  { %2615 = vrot.lane.b32.xlu2 %v6951_v35, %s7550_s2  ;;  %v6953_v60 = vpop.eup %6952 }
0x1681   :  { %v2522_v61 = vadd.f32 1.0, %v6953_v60  ;;  %v6955_v57 = vpop.eup %6954 }
0x1682   :  { %v2524_v63 = vadd.f32 1.0, %v6955_v57 }
0x1683   :  { %6956 = vrcp.f32 %v2522_v61  ;;  %v2551_v19 = vand.u32 2147483648, %v2522_v61  ;;  %vm2545_vm6 = vweird.f32 %v2522_v61  ;;  %v2549_v10 = vand.u32 2147483647, %v2522_v61 }
0x1684   :  { %6958 = vrcp.f32 %v2524_v63  ;;  %v2581_v8 = vand.u32 2147483648, %v2524_v63  ;;  %vm2575_vm10 = vweird.f32 %v2524_v63  ;;  %v2579_v1 = vand.u32 2147483647, %v2524_v63 }
0x1685   :  { %v2552_v28 = vor.u32 1.1754944e-38, %v2551_v19  ;;  %vm2550_vm8 = vcmp.eq.f32.partialorder %v2549_v10, 8.507059e+37 }
0x1686   :  { %v2582_v14 = vor.u32 1.1754944e-38, %v2581_v8  ;;  %vm2580_vm12 = vcmp.eq.f32.partialorder %v2579_v1, 8.507059e+37 }
0x1689   :  { %v6957_v42 = vpop.eup %6956 }
0x168a   :  { %v2541_v20 = vmul.f32 %v6957_v42, %v2522_v61  ;;  %v6959_v3 = vpop.eup %6958  ;;  %vm2546_vm5 = vweird.f32 %v6957_v42 }
0x168b   :  { %v2571_v6 = vmul.f32 %v6959_v3, %v2524_v63  ;;  %vm2547_vm7 = vmor %vm2545_vm6, %vm2546_vm5  ;;  %vm2576_vm9 = vweird.f32 %v6959_v3 }
0x168c   :  { %v2542_v0 = vsub.f32 1.0, %v2541_v20  ;;  %vm2577_vm11 = vmor %vm2575_vm10, %vm2576_vm9 }
0x168d   :  { %v2572_v62 = vsub.f32 1.0, %v2571_v6 }
0x168e   :  { %v2543_v5 = vmul.f32 %v6957_v42, %v2542_v0 }
0x168f   :  { %v2573_v50 = vmul.f32 %v6959_v3, %v2572_v62 }
0x1690   :  { %v2544_v37 = vadd.f32 %v6957_v42, %v2543_v5 }
0x1691   :  { %v2574_v22 = vadd.f32 %v6959_v3, %v2573_v50 }
0x1692   :  { %v2548_v54 = vsel %vm2547_vm7, %v6957_v42, %v2544_v37 }
0x1693   :  { %v2553_v13 = vsel %vm2550_vm8, %v2552_v28, %v2548_v54  ;;  %v2578_v26 = vsel %vm2577_vm11, %v6959_v3, %v2574_v22 }
0x1694   :  { %v2583_v31 = vsel %vm2580_vm12, %v2582_v14, %v2578_v26 }
0x16d2   :  { %v2614_v17 = vpop.permute.xlu1 %2613 }
0x16d3   :  { %v2619_v24 = vmul.f32 %v2614_v17, %v2553_v13 }
0x16d5   :  { %2621 = vst.msk [vmem:[#allocation2 + $0x40] sm:$0xff] %vm175_vm0, %v2619_v24 }
0x16da   :  { %v2616_v32 = vpop.permute.xlu2 %2615 }
0x16db   :  { %v2620_v21 = vmul.f32 %v2616_v32, %v2583_v31 }
0x16dd   :  { %2622 = vst.msk [vmem:[#allocation2 + $0x48] sm:$0xff] %vm175_vm0, %v2620_v21  ;;  %v2623_v33 = vpack.c.bf16 %v2620_v21, %v2619_v24 }
0x16df   :  { %6327 = vmatmul.msk.bf16.vlgmr.msrb.gmra.mxu0 %vm175_vm0, %v2623_v33  ;;  %6328 = vmatmul.msk.bf16.vlgmr.msrb.gmra.mxu1 %vm175_vm0, %v2623_v33 }
0x16e0   :  { %2943 = vmatpush.bf16.msrb.mxu0 %v7976_v55  ;;  %2957 = vmatpush.bf16.msrb.mxu1 %v7964_v39  ;;  %v1793_v55 = vadd.f32 %v1792_v41, %v7942_v44  ;;  %v1745_v39 = vpop.f32.mrf.mxu2 }
0x16e2   :  { %v1817_v25 = vpack.c.bf16 %v1793_v55, %v1744_v40 }
0x16e4   :  { %2944 = vmatpush.bf16.msrb.mxu0 %v7995_v9  ;;  %2958 = vmatpush.bf16.msrb.mxu1 %v7970_v43  ;;  %v1746_v9 = vadd.f32 %v1745_v39, %v7940_v38  ;;  %v1795_v43 = vadd.f32 %v1794_v59, %v7942_v44  ;;  %v2657_v7 = vunpack.c.l.bf16 %v1817_v25 }
0x16e8   :  { %2945 = vmatpush.bf16.msrb.mxu0 %v7998_v12  ;;  %2959 = vmatpush.bf16.msrb.mxu1 %v7974_v47  ;;  %v2658_v12 = vunpack.c.h.bf16 %v1817_v25 }
0x16ec   :  { %2946 = vmatpush.bf16.msrb.mxu0 %v8001_v4  ;;  %2960 = vmatpush.bf16.msrb.mxu1 %v7979_v56  ;;  %v1818_v4 = vpack.c.bf16 %v1795_v43, %v1746_v9 }
0x16ee   :  { %v2660_v56 = vunpack.c.h.bf16 %v1818_v4  ;;  %v2659_v57 = vunpack.c.l.bf16 %v1818_v4 }
0x175c   :  { %v2650_v46 = vpop.f32.mrf.mxu1  ;;  %v2636_v35 = vpop.f32.mrf.mxu0 }
0x175d   :  { %v8180_v47 = vadd.f32 %v2658_v12, %v2650_v46  ;;  %v2661_v51 = vadd.f32 %v2657_v7, %v2636_v35 }
0x175f   :  { %6960 = vtanh.f32 %v8180_v47  ;;  %v6329_v60 = vmul.f32 -1.442695, %v2661_v51 }
0x1764   :  { %v2652_v48 = vpop.f32.mrf.mxu1  ;;  %v2638_v61 = vpop.f32.mrf.mxu0 }
0x1765   :  { %v6961_v27 = vpop.eup %6960  ;;  %v8183_v23 = vadd.f32 %v2660_v56, %v2652_v48  ;;  %v2663_v63 = vadd.f32 %v2659_v57, %v2638_v61 }
0x1766   :  { %2747 = vrot.lane.b32.xlu0 %v6961_v27, %s7550_s2 }
0x1767   :  { %6962 = vtanh.f32 %v8183_v23  ;;  %v6331_v42 = vmul.f32 -1.442695, %v2663_v63  ;;  %v6332_v56 = vmul.f32 -1.442695, %v8183_v23 }
0x1768   :  { %6964 = vpow2.f32 %v6329_v60 }
0x1769   :  { %6966 = vpow2.f32 %v6331_v42 }
0x176d   :  { %v6963_v34 = vpop.eup %6962 }
0x176e   :  { %2749 = vrot.lane.b32.xlu1 %v6963_v34, %s7550_s2  ;;  %v6965_v20 = vpop.eup %6964 }
0x176f   :  { %v2677_v0 = vadd.f32 1.0, %v6965_v20  ;;  %v6967_v3 = vpop.eup %6966 }
0x1770   :  { %v2679_v5 = vadd.f32 1.0, %v6967_v3 }
0x1771   :  { %6968 = vrcp.f32 %v2677_v0  ;;  %v2692_v13 = vand.u32 2147483648, %v2677_v0  ;;  %vm2686_vm14 = vweird.f32 %v2677_v0  ;;  %v2690_v17 = vand.u32 2147483647, %v2677_v0 }
0x1772   :  { %6970 = vrcp.f32 %v2679_v5  ;;  %v2722_v32 = vand.u32 2147483648, %v2679_v5  ;;  %vm2716_vm3 = vweird.f32 %v2679_v5  ;;  %v2720_v21 = vand.u32 2147483647, %v2679_v5 }
0x1773   :  { %v2693_v8 = vor.u32 1.1754944e-38, %v2692_v13  ;;  %vm2691_vm1 = vcmp.eq.f32.partialorder %v2690_v17, 8.507059e+37 }
0x1774   :  { %v2723_v15 = vor.u32 1.1754944e-38, %v2722_v32  ;;  %vm2721_vm5 = vcmp.eq.f32.partialorder %v2720_v21, 8.507059e+37 }
0x1777   :  { %v6969_v6 = vpop.eup %6968 }
0x1778   :  { %v2682_v37 = vmul.f32 %v6969_v6, %v2677_v0  ;;  %v6971_v19 = vpop.eup %6970  ;;  %vm2687_vm13 = vweird.f32 %v6969_v6 }
0x1779   :  { %v2712_v54 = vmul.f32 %v6971_v19, %v2679_v5  ;;  %vm2688_vm15 = vmor %vm2686_vm14, %vm2687_vm13  ;;  %vm2717_vm2 = vweird.f32 %v6971_v19 }
0x177a   :  { %v2683_v62 = vsub.f32 1.0, %v2682_v37  ;;  %vm2718_vm4 = vmor %vm2716_vm3, %vm2717_vm2 }
0x177b   :  { %v2713_v28 = vsub.f32 1.0, %v2712_v54 }
0x177c   :  { %v2684_v10 = vmul.f32 %v6969_v6, %v2683_v62 }
0x177d   :  { %v2714_v22 = vmul.f32 %v6971_v19, %v2713_v28 }
0x177e   :  { %v2685_v50 = vadd.f32 %v6969_v6, %v2684_v10 }
0x177f   :  { %v2715_v31 = vadd.f32 %v6971_v19, %v2714_v22  ;;  %v1748_v22 = vpop.f32.mrf.mxu2 }
0x1780   :  { %v2689_v24 = vsel %vm2688_vm15, %v6969_v6, %v2685_v50 }
0x1781   :  { %v2694_v26 = vsel %vm2691_vm1, %v2693_v8, %v2689_v24  ;;  %v2719_v33 = vsel %vm2718_vm4, %v6971_v19, %v2715_v31  ;;  %v1797_v8 = vpop.f32.mrf.mxu3 }
0x1782   :  { %v2724_v40 = vsel %vm2721_vm5, %v2723_v15, %v2719_v33  ;;  %v2743_v25 = vmul.f32 %v2694_v26, %v8153_v53  ;;  %v6330_v53 = vmul.f32 -1.442695, %v8180_v47 }
0x1783   :  { %v2744_v43 = vmul.f32 %v2724_v40, %v8158_v49 }
0x1787   :  { %v1750_v31 = vpop.f32.mrf.mxu2 }
0x1788   :  { %v1751_v21 = vadd.f32 %v1750_v31, %v7940_v38  ;;  %v6215_v31 = vmul.f32 -1.442695, %v7932_v16 }
0x1789   :  { %v1799_v32 = vpop.f32.mrf.mxu3 }
0x178a   :  { %v1800_v33 = vadd.f32 %v1799_v32, %v7942_v44  ;;  %v247_v32 = vadd.f32 %v8034_v52, %v7603_v29 }
0x17d8   :  { %v2748_v1 = vpop.permute.xlu0 %2747 }
0x17d9   :  { %v2753_v14 = vmul.f32 %v2748_v1, %v2694_v26  ;;  %v1749_v1 = vadd.f32 %v1748_v22, %v7940_v38  ;;  %v1798_v26 = vadd.f32 %v1797_v8, %v7942_v44 }
0x17db   :  { %2757 = vrot.lane.b32.xlu2 %v2753_v14, %s7550_s2  ;;  %v1819_v14 = vpack.c.bf16 %v1798_v26, %v1749_v1 }
0x17dd   :  { %v2814_v15 = vunpack.c.h.bf16 %v1819_v14 }
0x17e0   :  { %v2750_v41 = vpop.permute.xlu1 %2749 }
0x17e1   :  { %v2754_v55 = vmul.f32 %v2750_v41, %v2724_v40 }
0x17e3   :  { %2759 = vrot.lane.b32.xlu0 %v2754_v55, %s7550_s2  ;;  %v1820_v55 = vpack.c.bf16 %v1800_v33, %v1751_v21  ;;  %v296_v21 = vadd.f32 %v8022_v58, %v7605_v30 }
0x17e5   :  { %v8227_v33 = vpack.c.bf16 %v296_v21, %v247_v32  ;;  %v6347_v32 = vld [vmem:[#allocation7 + $0x80] sm:$0xf]  ;;  %v6630_v21 = vld [vmem:[#allocation7 + $0x84] sm:$0xf0] }
0x1835   :  { %v2758_v39 = vpop.permute.xlu2 %2757 }
0x1836   :  { %v8191_v59 = vadd.f32 %v2758_v39, %v2743_v25  ;;  %v2816_v25 = vunpack.c.h.bf16 %v1820_v55 }
0x1838   :  { %6972 = vtanh.f32 %v8191_v59 }
0x183e   :  { %v6973_v9 = vpop.eup %6972 }
0x183f   :  { %2769 = vrot.lane.b32.xlu1 %v6973_v9, %s7550_s2 }
0x1855   :  { %v2760_v12 = vpop.permute.xlu0 %2759 }
0x1856   :  { %v8196_v46 = vadd.f32 %v2760_v12, %v2744_v43 }
0x1858   :  { %6974 = vtanh.f32 %v8196_v46 }
0x1859   :  { %6976 = vpow2.f32 %v6330_v53  ;;  %v2813_v53 = vunpack.c.l.bf16 %v1819_v14 }
0x185a   :  { %6978 = vpow2.f32 %v6332_v56 }
0x185e   :  { %v6975_v4 = vpop.eup %6974 }
0x185f   :  { %2771 = vrot.lane.b32.xlu2 %v6975_v4, %s7550_s2  ;;  %v6977_v48 = vpop.eup %6976 }
0x1860   :  { %v2678_v27 = vadd.f32 1.0, %v6977_v48  ;;  %v6979_v34 = vpop.eup %6978 }
0x1861   :  { %v2680_v35 = vadd.f32 1.0, %v6979_v34  ;;  %v2815_v34 = vunpack.c.l.bf16 %v1820_v55 }
0x1862   :  { %6980 = vrcp.f32 %v2678_v27  ;;  %v2707_v47 = vand.u32 2147483648, %v2678_v27  ;;  %vm2701_vm7 = vweird.f32 %v2678_v27  ;;  %v2705_v20 = vand.u32 2147483647, %v2678_v27 }
0x1863   :  { %6982 = vrcp.f32 %v2680_v35  ;;  %v2737_v19 = vand.u32 2147483648, %v2680_v35  ;;  %vm2731_vm11 = vweird.f32 %v2680_v35  ;;  %v2735_v10 = vand.u32 2147483647, %v2680_v35 }
0x1864   :  { %v2708_v3 = vor.u32 1.1754944e-38, %v2707_v47  ;;  %vm2706_vm9 = vcmp.eq.f32.partialorder %v2705_v20, 8.507059e+37 }
0x1865   :  { %v2738_v50 = vor.u32 1.1754944e-38, %v2737_v19  ;;  %vm2736_vm13 = vcmp.eq.f32.partialorder %v2735_v10, 8.507059e+37 }
0x1868   :  { %v6981_v49 = vpop.eup %6980 }
0x1869   :  { %v2697_v7 = vmul.f32 %v6981_v49, %v2678_v27  ;;  %v6983_v60 = vpop.eup %6982  ;;  %vm2702_vm6 = vweird.f32 %v6981_v49 }
0x186a   :  { %v2727_v57 = vmul.f32 %v6983_v60, %v2680_v35  ;;  %vm2703_vm8 = vmor %vm2701_vm7, %vm2702_vm6  ;;  %vm2732_vm10 = vweird.f32 %v6983_v60 }
0x186b   :  { %v2698_v51 = vsub.f32 1.0, %v2697_v7  ;;  %vm2733_vm12 = vmor %vm2731_vm11, %vm2732_vm10 }
0x186c   :  { %v2728_v42 = vsub.f32 1.0, %v2727_v57 }
0x186d   :  { %v2699_v61 = vmul.f32 %v6981_v49, %v2698_v51 }
0x186e   :  { %v2729_v0 = vmul.f32 %v6983_v60, %v2728_v42 }
0x186f   :  { %v2700_v63 = vadd.f32 %v6981_v49, %v2699_v61 }
0x1870   :  { %v2730_v62 = vadd.f32 %v6983_v60, %v2729_v0 }
0x1871   :  { %v2704_v23 = vsel %vm2703_vm8, %v6981_v49, %v2700_v63 }
0x1872   :  { %v2709_v5 = vsel %vm2706_vm9, %v2708_v3, %v2704_v23  ;;  %v2734_v54 = vsel %vm2733_vm12, %v6983_v60, %v2730_v62 }
0x1873   :  { %v2739_v28 = vsel %vm2736_vm13, %v2738_v50, %v2734_v54 }
0x18b1   :  { %v2770_v6 = vpop.permute.xlu1 %2769 }
0x18b2   :  { %v2775_v37 = vmul.f32 %v2770_v6, %v2709_v5 }
0x18b4   :  { %2777 = vst.msk [vmem:[#allocation2 + $0x50] sm:$0xff] %vm175_vm0, %v2775_v37 }
0x18b9   :  { %v2772_v13 = vpop.permute.xlu2 %2771 }
0x18ba   :  { %v2776_v17 = vmul.f32 %v2772_v13, %v2739_v28 }
0x18bc   :  { %2778 = vst.msk [vmem:[#allocation2 + $0x58] sm:$0xff] %vm175_vm0, %v2776_v17  ;;  %v2779_v24 = vpack.c.bf16 %v2776_v17, %v2775_v37 }
0x18be   :  { %6333 = vmatmul.msk.bf16.vlgmr.msra.gmra.mxu0 %vm175_vm0, %v2779_v24  ;;  %6334 = vmatmul.msk.bf16.vlgmr.msra.gmra.mxu1 %vm175_vm0, %v2779_v24 }
0x193b   :  { %v2806_v41 = vpop.f32.mrf.mxu1  ;;  %v2792_v4 = vpop.f32.mrf.mxu0 }
0x193c   :  { %v8210_v40 = vadd.f32 %v2814_v15, %v2806_v41  ;;  %v2817_v56 = vadd.f32 %v2813_v53, %v2792_v4 }
0x193e   :  { %6984 = vtanh.f32 %v8210_v40  ;;  %v6335_v48 = vmul.f32 -1.442695, %v2817_v56 }
0x1943   :  { %v2808_v39 = vpop.f32.mrf.mxu1  ;;  %v2794_v27 = vpop.f32.mrf.mxu0 }
0x1944   :  { %v6985_v9 = vpop.eup %6984  ;;  %v8213_v43 = vadd.f32 %v2816_v25, %v2808_v39  ;;  %v2819_v35 = vadd.f32 %v2815_v34, %v2794_v27  ;;  %v1476_v25 = vunpack.c.h.bf16 %v8227_v33 }
0x1945   :  { %2903 = vrot.lane.b32.xlu0 %v6985_v9, %s7550_s2 }
0x1946   :  { %6986 = vtanh.f32 %v8213_v43  ;;  %v6337_v49 = vmul.f32 -1.442695, %v2819_v35  ;;  %v8235_v16 = vadd.f32 %v1476_v25, %v7938_v45  ;;  %v6348_v25 = vor.u32 %v6630_v21, %v6347_v32  ;;  %v3110_v21 = vld [vmem:[#allocation10 + $0x4] sm:$0x3] }
0x1947   :  { %6988 = vpow2.f32 %v6335_v48 }
0x1948   :  { %6990 = vpow2.f32 %v6337_v49 }
0x194c   :  { %v6987_v12 = vpop.eup %6986 }
0x194d   :  { %2905 = vrot.lane.b32.xlu1 %v6987_v12, %s7550_s2  ;;  %v6989_v7 = vpop.eup %6988 }
0x194e   :  { %v2833_v51 = vadd.f32 1.0, %v6989_v7  ;;  %v6991_v60 = vpop.eup %6990 }
0x194f   :  { %v2835_v61 = vadd.f32 1.0, %v6991_v60  ;;  %v6336_v60 = vmul.f32 -1.442695, %v8210_v40  ;;  %v6363_v40 = vld [vmem:[#allocation7 + $0xa0] sm:$0xf] }
0x1950   :  { %6992 = vrcp.f32 %v2833_v51  ;;  %v2848_v5 = vand.u32 2147483648, %v2833_v51  ;;  %vm2842_vm15 = vweird.f32 %v2833_v51  ;;  %v2846_v6 = vand.u32 2147483647, %v2833_v51 }
0x1951   :  { %6994 = vrcp.f32 %v2835_v61  ;;  %v2878_v13 = vand.u32 2147483648, %v2835_v61  ;;  %vm2872_vm4 = vweird.f32 %v2835_v61  ;;  %v2876_v17 = vand.u32 2147483647, %v2835_v61 }
0x1952   :  { %v2849_v19 = vor.u32 1.1754944e-38, %v2848_v5  ;;  %vm2847_vm2 = vcmp.eq.f32.partialorder %v2846_v6, 8.507059e+37  ;;  %6996 = vtanh.f32 %v7934_v36  ;;  %v6635_v5 = vld [vmem:[#allocation7 + $0xb4] sm:$0xf] }
0x1953   :  { %v2879_v22 = vor.u32 1.1754944e-38, %v2878_v13  ;;  %vm2877_vm6 = vcmp.eq.f32.partialorder %v2876_v17, 8.507059e+37  ;;  %6998 = vpow2.f32 %v6215_v31  ;;  %v6355_v13 = vld [vmem:[#allocation7 + $0x90] sm:$0xf]  ;;  %v6632_v17 = vld [vmem:[#allocation7 + $0x94] sm:$0xf0] }
0x1956   :  { %v6993_v57 = vpop.eup %6992 }
0x1957   :  { %v2838_v63 = vmul.f32 %v6993_v57, %v2833_v51  ;;  %v6995_v47 = vpop.eup %6994  ;;  %vm2843_vm14 = vweird.f32 %v6993_v57 }
0x1958   :  { %v2868_v23 = vmul.f32 %v6995_v47, %v2835_v61  ;;  %vm2844_vm1 = vmor %vm2842_vm15, %vm2843_vm14  ;;  %vm2873_vm3 = vweird.f32 %v6995_v47  ;;  %v6997_v14 = vpop.eup %6996  ;;  %v6338_v61 = vmul.f32 -1.442695, %v8213_v43  ;;  %v6633_v43 = vld [vmem:[#allocation7 + $0xa4] sm:$0xf] }
0x1959   :  { %v2839_v42 = vsub.f32 1.0, %v2838_v63  ;;  %vm2874_vm5 = vmor %vm2872_vm4, %vm2873_vm3  ;;  %v6999_v39 = vpop.eup %6998 }
0x195a   :  { %v2869_v3 = vsub.f32 1.0, %v2868_v23  ;;  %v1493_v29 = vadd.f32 1.0, %v6999_v39 }
0x195b   :  { %v2840_v20 = vmul.f32 %v6993_v57, %v2839_v42 }
0x195c   :  { %v2870_v62 = vmul.f32 %v6995_v47, %v2869_v3  ;;  %v1508_v48 = vand.u32 2147483648, %v1493_v29  ;;  %vm1502_vm8 = vweird.f32 %v1493_v29  ;;  %v1506_v27 = vand.u32 2147483647, %v1493_v29  ;;  %v6636_v3 = vld [vmem:[#allocation7 + $0xb4] sm:$0xf0] }
0x195d   :  { %v2841_v0 = vadd.f32 %v6993_v57, %v2840_v20 }
0x195e   :  { %v2871_v28 = vadd.f32 %v6995_v47, %v2870_v62  ;;  %v1509_v35 = vor.u32 1.1754944e-38, %v1508_v48  ;;  %vm1507_vm10 = vcmp.eq.f32.partialorder %v1506_v27, 8.507059e+37  ;;  %v6634_v62 = vld [vmem:[#allocation7 + $0xa4] sm:$0xf0] }
0x195f   :  { %v2845_v37 = vsel %vm2844_vm1, %v6993_v57, %v2841_v0  ;;  %v6371_v0 = vld [vmem:[#allocation7 + $0xb0] sm:$0xf] }
0x1960   :  { %v2850_v54 = vsel %vm2847_vm2, %v2849_v19, %v2845_v37  ;;  %v2875_v24 = vsel %vm2874_vm5, %v6995_v47, %v2871_v28  ;;  %v6372_v6 = vor.u32 %v6636_v3, %v6371_v0  ;;  %v6373_v37 = vld [vmem:[#allocation7 + $0xb8] sm:$0xf0]  ;;  %v3116_v0 = vld [vmem:[#allocation2 + $0x28] sm:$0xff] }
0x1961   :  { %v2880_v1 = vsel %vm2877_vm6, %v2879_v22, %v2875_v24  ;;  %v2899_v15 = vmul.f32 %v2850_v54, %v8191_v59  ;;  %v6376_v19 = vor.u32 %v6635_v5, %v6373_v37  ;;  %v6631_v22 = vld [vmem:[#allocation7 + $0x94] sm:$0xf]  ;;  %v3115_v3 = vld [vmem:[#allocation2 + $0x20] sm:$0xff] }
0x1962   :  { %v2900_v4 = vmul.f32 %v2880_v1, %v8196_v46  ;;  %3208 = vmatpush.bf16.msra.mxu0 %v6372_v6  ;;  %v3129_v5 = vpack.c.bf16 %v3116_v0, %v3115_v3  ;;  %v3118_v6 = vld [vmem:[#allocation2 + $0x38] sm:$0xff]  ;;  %v3117_v37 = vld [vmem:[#allocation2 + $0x30] sm:$0xff] }
0x1963   :  { %3257 = vmatpush.bf16.msra.mxu1 %v6376_v19  ;;  %v3119_v19 = vld [vmem:[#allocation2 + $0x40] sm:$0xff] }
0x19b7   :  { %v2904_v10 = vpop.permute.xlu0 %2903 }
0x19b8   :  { %v2909_v50 = vmul.f32 %v2904_v10, %v2850_v54  ;;  %v6365_v10 = vld [vmem:[#allocation7 + $0xa8] sm:$0xf0]  ;;  %v6364_v54 = vor.u32 %v6634_v62, %v6363_v40  ;;  %v3130_v40 = vpack.c.bf16 %v3118_v6, %v3117_v37 }
0x19b9   :  { %v6368_v28 = vor.u32 %v6633_v43, %v6365_v10  ;;  %v3120_v62 = vld [vmem:[#allocation2 + $0x48] sm:$0xff]  ;;  %v3122_v10 = vld [vmem:[#allocation2 + $0x58] sm:$0xff] }
0x19ba   :  { %2913 = vrot.lane.b32.xlu2 %v2909_v50, %s7550_s2  ;;  %3209 = vmatpush.bf16.msra.mxu0 %v6364_v54  ;;  %v3131_v43 = vpack.c.bf16 %v3120_v62, %v3119_v19  ;;  %v3121_v54 = vld [vmem:[#allocation2 + $0x50] sm:$0xff] }
0x19bb   :  { %3258 = vmatpush.bf16.msra.mxu1 %v6368_v28  ;;  %v1475_v28 = vunpack.c.l.bf16 %v8227_v33 }
0x19bf   :  { %v2906_v8 = vpop.permute.xlu1 %2905 }
0x19c0   :  { %v2910_v26 = vmul.f32 %v2906_v8, %v2880_v1  ;;  %v6357_v8 = vld [vmem:[#allocation7 + $0x98] sm:$0xf0]  ;;  %v6356_v1 = vor.u32 %v6632_v17, %v6355_v13 }
0x19c1   :  { %v6360_v31 = vor.u32 %v6631_v22, %v6357_v8  ;;  %v1479_v22 = vadd.f32 %v1475_v28, %v7936_v18  ;;  %v8286_v18 = vperm.slane %v3110_v21, 0 }
0x19c2   :  { %2915 = vrot.lane.b32.xlu0 %v2910_v26, %s7550_s2  ;;  %3210 = vmatpush.bf16.msra.mxu0 %v6356_v1 }
0x19c3   :  { %3259 = vmatpush.bf16.msra.mxu1 %v6360_v31  ;;  %v6217_v8 = vmul.f32 -1.442695, %v1479_v22 }
0x19c6   :  { %3211 = vmatpush.bf16.msra.mxu0 %v6348_v25 }
0x19ca   :  { %1563 = vrot.lane.b32.xlu0 %v6997_v14, %s7550_s2 }
0x1a14   :  { %v2914_v41 = vpop.permute.xlu2 %2913 }
0x1a15   :  { %v8230_v55 = vadd.f32 %v2914_v41, %v2899_v15  ;;  %v6629_v15 = vld [vmem:[#allocation7 + $0x84] sm:$0xf]  ;;  %v6349_v41 = vld [vmem:[#allocation7 + $0x88] sm:$0xf0] }
0x1a17   :  { %7000 = vtanh.f32 %v8230_v55 }
0x1a18   :  { %7002 = vtanh.f32 %v8235_v16 }
0x1a19   :  { %7004 = vrcp.f32 %v1493_v29 }
0x1a1d   :  { %v7001_v52 = vpop.eup %7000 }
0x1a1e   :  { %2925 = vrot.lane.b32.xlu1 %v7001_v52, %s7550_s2  ;;  %v7003_v30 = vpop.eup %7002  ;;  %v6352_v52 = vor.u32 %v6629_v15, %v6349_v41  ;;  %v8288_v41 = vperm.slane %v3110_v21, 1 }
0x1a1f   :  { %v7005_v58 = vpop.eup %7004 }
0x1a20   :  { %v1498_v59 = vmul.f32 %v7005_v58, %v1493_v29  ;;  %vm1503_vm7 = vweird.f32 %v7005_v58  ;;  %3260 = vmatpush.bf16.msra.mxu1 %v6352_v52 }
0x1a21   :  { %vm1504_vm9 = vmor %vm1502_vm8, %vm1503_vm7 }
0x1a22   :  { %v1499_v9 = vsub.f32 1.0, %v1498_v59 }
0x1a24   :  { %v1500_v12 = vmul.f32 %v7005_v58, %v1499_v9 }
0x1a26   :  { %1565 = vrot.lane.b32.xlu1 %v7003_v30, %s7550_s2  ;;  %v1501_v45 = vadd.f32 %v7005_v58, %v1500_v12 }
0x1a28   :  { %v1505_v34 = vsel %vm1504_vm9, %v7005_v58, %v1501_v45 }
0x1a29   :  { %v8244_v49 = vsel %vm1507_vm10, %v1509_v35, %v1505_v34 }
0x1a34   :  { %v2916_v53 = vpop.permute.xlu0 %2915 }
0x1a35   :  { %v8241_v56 = vadd.f32 %v2916_v53, %v2900_v4 }
0x1a37   :  { %7006 = vtanh.f32 %v8241_v56 }
0x1a38   :  { %7008 = vpow2.f32 %v6336_v60 }
0x1a39   :  { %7010 = vpow2.f32 %v6338_v61 }
0x1a3c   :  { %v1564_v7 = vpop.permute.xlu0 %1563 }
0x1a3d   :  { %v7007_v51 = vpop.eup %7006  ;;  %v1569_v46 = vmul.f32 %v1564_v7, %v8244_v49 }
0x1a3e   :  { %2927 = vrot.lane.b32.xlu2 %v7007_v51, %s7550_s2  ;;  %v7009_v57 = vpop.eup %7008 }
0x1a3f   :  { %1573 = vrot.lane.b32.xlu1 %v1569_v46, %s7550_s2  ;;  %v2834_v63 = vadd.f32 1.0, %v7009_v57  ;;  %v7011_v42 = vpop.eup %7010  ;;  %v3112_v57 = vld [vmem:[#allocation2 + $0x8] sm:$0xff] }
0x1a40   :  { %v8251_v47 = vadd.f32 1.0, %v7011_v42 }
0x1a41   :  { %7012 = vrcp.f32 %v2834_v63  ;;  %v2863_v30 = vand.u32 2147483648, %v2834_v63  ;;  %vm2857_vm12 = vweird.f32 %v2834_v63  ;;  %v2861_v58 = vand.u32 2147483647, %v2834_v63 }
0x1a42   :  { %7014 = vrcp.f32 %v8251_v47  ;;  %v2893_v27 = vand.u32 2147483648, %v8251_v47  ;;  %vm2887_vm1 = vweird.f32 %v8251_v47  ;;  %v2891_v34 = vand.u32 2147483647, %v8251_v47 }
0x1a43   :  { %v2864_v12 = vor.u32 1.1754944e-38, %v2863_v30  ;;  %vm2862_vm14 = vcmp.eq.f32.partialorder %v2861_v58, 8.507059e+37  ;;  %7016 = vpow2.f32 %v6217_v8 }
0x1a44   :  { %v2894_v7 = vor.u32 1.1754944e-38, %v2893_v27  ;;  %vm2892_vm3 = vcmp.eq.f32.partialorder %v2891_v34, 8.507059e+37 }
0x1a47   :  { %v7013_v20 = vpop.eup %7012 }
0x1a48   :  { %v2853_v23 = vmul.f32 %v7013_v20, %v2834_v63  ;;  %v7015_v24 = vpop.eup %7014  ;;  %vm2858_vm11 = vweird.f32 %v7013_v20  ;;  %v3111_v63 = vld [vmem:[#allocation2] sm:$0xff] }
0x1a49   :  { %v2883_v14 = vmul.f32 %v7015_v24, %v8251_v47  ;;  %vm2859_vm13 = vmor %vm2857_vm12, %vm2858_vm11  ;;  %vm2888_vm15 = vweird.f32 %v7015_v24  ;;  %v3127_v42 = vpack.c.bf16 %v3112_v57, %v3111_v63  ;;  %v3114_v47 = vld [vmem:[#allocation2 + $0x18] sm:$0xff]  ;;  %v7017_v1 = vpop.eup %7016 }
0x1a4a   :  { %v2854_v50 = vsub.f32 1.0, %v2853_v23  ;;  %vm2889_vm2 = vmor %vm2887_vm1, %vm2888_vm15  ;;  %v1495_v31 = vadd.f32 1.0, %v7017_v1 }
0x1a4b   :  { %v2884_v29 = vsub.f32 1.0, %v2883_v14 }
0x1a4c   :  { %v2855_v26 = vmul.f32 %v7013_v20, %v2854_v50  ;;  %v3132_v50 = vpack.c.bf16 %v3122_v10, %v3121_v54  ;;  %7018 = vrcp.f32 %v1495_v31  ;;  %vm1532_vm5 = vweird.f32 %v1495_v31 }
0x1a4d   :  { %v2885_v9 = vmul.f32 %v7015_v24, %v2884_v29 }
0x1a4e   :  { %v2856_v39 = vadd.f32 %v7013_v20, %v2855_v26 }
0x1a4f   :  { %v2886_v48 = vadd.f32 %v7015_v24, %v2885_v9 }
0x1a50   :  { %v2860_v59 = vsel %vm2859_vm13, %v7013_v20, %v2856_v39  ;;  %v3113_v20 = vld [vmem:[#allocation2 + $0x10] sm:$0xff] }
0x1a51   :  { %v2865_v4 = vsel %vm2862_vm14, %v2864_v12, %v2860_v59  ;;  %v2890_v35 = vsel %vm2889_vm2, %v7015_v24, %v2886_v48  ;;  %v3128_v23 = vpack.c.bf16 %v3114_v47, %v3113_v20 }
0x1a52   :  { %v2895_v51 = vsel %vm2892_vm3, %v2894_v7, %v2890_v35  ;;  %v7019_v15 = vpop.eup %7018 }
0x1a53   :  { %v1528_v25 = vmul.f32 %v7019_v15, %v1495_v31  ;;  %vm1533_vm4 = vweird.f32 %v7019_v15 }
0x1a54   :  { %vm1534_vm6 = vmor %vm1532_vm5, %vm1533_vm4 }
0x1a55   :  { %v1529_v59 = vsub.f32 1.0, %v1528_v25 }
0x1a90   :  { %v2926_v53 = vpop.permute.xlu1 %2925 }
0x1a91   :  { %v2931_v45 = vmul.f32 %v2926_v53, %v2865_v4  ;;  %v1530_v4 = vmul.f32 %v7019_v15, %v1529_v59 }
0x1a93   :  { %2933 = vst.msk [vmem:[#allocation2 + $0x60] sm:$0xff] %vm175_vm0, %v2931_v45  ;;  %v1531_v35 = vadd.f32 %v7019_v15, %v1530_v4 }
0x1a98   :  { %v2928_v46 = vpop.permute.xlu2 %2927  ;;  %v1566_v12 = vpop.permute.xlu1 %1565 }
0x1a99   :  { %v2932_v60 = vmul.f32 %v2928_v46, %v2895_v51  ;;  %v1538_v51 = vand.u32 2147483648, %v1495_v31 }
0x1a9a   :  { %v3123_v17 = vld [vmem:[#allocation2 + $0x60] sm:$0xff] }
0x1a9b   :  { %2934 = vst.msk [vmem:[#allocation2 + $0x68] sm:$0xff] %vm175_vm0, %v2932_v60  ;;  %v2935_v61 = vpack.c.bf16 %v2932_v60, %v2931_v45  ;;  %v1536_v60 = vand.u32 2147483647, %v1495_v31  ;;  %v1539_v63 = vor.u32 1.1754944e-38, %v1538_v51 }
0x1a9d   :  { %6339 = vmatmul.msk.bf16.vlgmr.msrb.gmra.mxu0 %vm175_vm0, %v2935_v61  ;;  %6340 = vmatmul.msk.bf16.vlgmr.msrb.gmra.mxu1 %vm175_vm0, %v2935_v61  ;;  %v1535_v61 = vsel %vm1534_vm6, %v7019_v15, %v1531_v35  ;;  %vm1537_vm7 = vcmp.eq.f32.partialorder %v1536_v60, 8.507059e+37 }
0x1a9e   :  { %v1540_v47 = vsel %vm1537_vm7, %v1539_v63, %v1535_v61 }
0x1aa2   :  { %v3124_v13 = vld [vmem:[#allocation2 + $0x68] sm:$0xff] }
0x1aa3   :  { %v3133_v24 = vpack.c.bf16 %v3124_v13, %v3123_v17 }
0x1aad   :  { %6377 = vmatmul.msk.bf16.vlgmr.msra.gmra.mxu0 %vm175_vm0, %v3127_v42  ;;  %6385 = vmatmul.msk.bf16.vlgmr.msra.gmra.mxu1 %vm175_vm0, %v3127_v42  ;;  %v1559_v42 = vmul.f32 %v8244_v49, %v7892_v2  ;;  %v6216_v2 = vmul.f32 -1.442695, %v7934_v36 }
0x1ab1   :  { %v1574_v57 = vpop.permute.xlu1 %1573 }
0x1ab2   :  { %v1579_v20 = vadd.f32 %v1574_v57, %v1559_v42 }
0x1abd   :  { %6378 = vmatmul.msk.bf16.gmra.mxu0 %vm175_vm0, %v3128_v23  ;;  %6386 = vmatmul.msk.bf16.gmra.mxu1 %vm175_vm0, %v3128_v23  ;;  %v1570_v23 = vmul.f32 %v1566_v12, %v1540_v47 }
0x1acd   :  { %6379 = vmatmul.msk.bf16.gmra.mxu0 %vm175_vm0, %v3129_v5  ;;  %6387 = vmatmul.msk.bf16.gmra.mxu1 %vm175_vm0, %v3129_v5 }
0x1add   :  { %6380 = vmatmul.msk.bf16.gmra.mxu0 %vm175_vm0, %v3130_v40  ;;  %6388 = vmatmul.msk.bf16.gmra.mxu1 %vm175_vm0, %v3130_v40 }
0x1aed   :  { %6381 = vmatmul.msk.bf16.gmra.mxu0 %vm175_vm0, %v3131_v43  ;;  %6389 = vmatmul.msk.bf16.gmra.mxu1 %vm175_vm0, %v3131_v43 }
0x1afd   :  { %6382 = vmatmul.msk.bf16.gmra.mxu0 %vm175_vm0, %v3132_v50  ;;  %6390 = vmatmul.msk.bf16.gmra.mxu1 %vm175_vm0, %v3132_v50 }
0x1b0d   :  { %6383 = vmatmul.msk.bf16.gmra.mxu0 %vm175_vm0, %v3133_v24  ;;  %6391 = vmatmul.msk.bf16.gmra.mxu1 %vm175_vm0, %v3133_v24 }
0x1b1a   :  { %v8278_v26 = vpop.f32.mrf.mxu0  ;;  %v8280_v14 = vpop.f32.mrf.mxu1 }
0x1b22   :  { %v8282_v32 = vpop.f32.mrf.mxu0  ;;  %v8284_v33 = vpop.f32.mrf.mxu1 }
0x1b2a   :  { %v3213_v39 = vpop.f32.mrf.mxu0  ;;  %v3262_v29 = vpop.f32.mrf.mxu1 }
0x1b2b   :  { %v3214_v52 = vadd.f32 %v3213_v39, %v8286_v18  ;;  %v3263_v30 = vadd.f32 %v3262_v29, %v8288_v41 }
0x1b2d   :  { %v8292_v58 = vpack.c.bf16 %v3263_v30, %v3214_v52  ;;  %v1560_v30 = vmul.f32 %v1540_v47, %v7897_v11 }
0x1b2f   :  { %v3337_v9 = vunpack.c.h.bf16 %v8292_v58  ;;  %v3336_v5 = vunpack.c.l.bf16 %v8292_v58 }
0x1b31   :  { %7020 = vtanh.f32 %v3337_v9  ;;  %v6393_v6 = vmul.f32 -1.442695, %v3336_v5 }
0x1b32   :  { %v3215_v53 = vpop.f32.mrf.mxu0  ;;  %v3264_v45 = vpop.f32.mrf.mxu1 }
0x1b33   :  { %v3216_v48 = vadd.f32 %v3215_v53, %v8286_v18  ;;  %v3265_v27 = vadd.f32 %v3264_v45, %v8288_v41 }
0x1b35   :  { %v8299_v34 = vpack.c.bf16 %v3265_v27, %v3216_v48 }
0x1b37   :  { %v7021_v7 = vpop.eup %7020  ;;  %v3339_v46 = vunpack.c.h.bf16 %v8299_v34  ;;  %v3338_v43 = vunpack.c.l.bf16 %v8299_v34  ;;  %v6399_v34 = vld [vmem:[#allocation9 + $0x80] sm:$0xf] }
0x1b38   :  { %3422 = vrot.lane.b32.xlu2 %v7021_v7, %s7550_s2 }
0x1b39   :  { %7022 = vtanh.f32 %v3339_v46  ;;  %v6395_v50 = vmul.f32 -1.442695, %v3338_v43 }
0x1b3a   :  { %7024 = vtanh.f32 %v1579_v20 }
0x1b3b   :  { %7026 = vpow2.f32 %v6393_v6 }
0x1b3f   :  { %v7023_v0 = vpop.eup %7022 }
0x1b40   :  { %3424 = vrot.lane.b32.xlu0 %v7023_v0, %s7550_s2  ;;  %1575 = vrot.lane.b32.xlu2 %v1570_v23, %s7550_s2  ;;  %v7025_v3 = vpop.eup %7024 }
0x1b41   :  { %v7027_v37 = vpop.eup %7026 }
0x1b42   :  { %v3352_v40 = vadd.f32 1.0, %v7027_v37  ;;  %v6218_v37 = vmul.f32 -1.442695, %v8235_v16 }
0x1b44   :  { %7028 = vrcp.f32 %v3352_v40  ;;  %v3367_v24 = vand.u32 2147483648, %v3352_v40  ;;  %vm3361_vm9 = vweird.f32 %v3352_v40  ;;  %v3365_v22 = vand.u32 2147483647, %v3352_v40 }
0x1b45   :  { %7030 = vpow2.f32 %v6216_v2  ;;  %v6425_v2 = vld [vmem:[#allocation9 + $0xb8] sm:$0xf0] }
0x1b46   :  { %v3368_v31 = vor.u32 1.1754944e-38, %v3367_v24  ;;  %vm3366_vm11 = vcmp.eq.f32.partialorder %v3365_v22, 8.507059e+37  ;;  %v6417_v24 = vld [vmem:[#allocation9 + $0xa8] sm:$0xf0] }
0x1b48   :  { %1585 = vrot.lane.b32.xlu2 %v7025_v3, %s7550_s2 }
0x1b4a   :  { %v7029_v49 = vpop.eup %7028 }
0x1b4b   :  { %v7031_v62 = vpop.eup %7030  ;;  %v3357_v19 = vmul.f32 %v7029_v49, %v3352_v40  ;;  %vm3362_vm8 = vweird.f32 %v7029_v49  ;;  %v6643_v40 = vld [vmem:[#allocation9 + $0xb4] sm:$0xf] }
0x1b4c   :  { %v1494_v10 = vadd.f32 1.0, %v7031_v62  ;;  %vm3363_vm10 = vmor %vm3361_vm9, %vm3362_vm8 }
0x1b4d   :  { %v3358_v54 = vsub.f32 1.0, %v3357_v19 }
0x1b4e   :  { %7032 = vrcp.f32 %v1494_v10  ;;  %v1523_v45 = vand.u32 2147483648, %v1494_v10  ;;  %vm1517_vm13 = vweird.f32 %v1494_v10  ;;  %v1521_v48 = vand.u32 2147483647, %v1494_v10 }
0x1b4f   :  { %v3359_v28 = vmul.f32 %v7029_v49, %v3358_v54  ;;  %7034 = vpow2.f32 %v6395_v50 }
0x1b50   :  { %v1524_v7 = vor.u32 1.1754944e-38, %v1523_v45  ;;  %vm1522_vm15 = vcmp.eq.f32.partialorder %v1521_v48, 8.507059e+37 }
0x1b51   :  { %v3360_v13 = vadd.f32 %v7029_v49, %v3359_v28 }
0x1b53   :  { %v3364_v8 = vsel %vm3363_vm10, %v7029_v49, %v3360_v13  ;;  %v8319_v49 = vor.u32 %v6643_v40, %v6425_v2 }
0x1b54   :  { %v7033_v17 = vpop.eup %7032  ;;  %v3369_v25 = vsel %vm3366_vm11, %v3368_v31, %v3364_v8 }
0x1b55   :  { %v7035_v36 = vpop.eup %7034  ;;  %v1513_v1 = vmul.f32 %v7033_v17, %v1494_v10  ;;  %vm1518_vm12 = vweird.f32 %v7033_v17  ;;  %3516 = vmatpush.bf16.msra.mxu3 %v8319_v49  ;;  %v3418_v54 = vmul.f32 0.0, %v3369_v25 }
0x1b56   :  { %v3354_v21 = vadd.f32 1.0, %v7035_v36  ;;  %vm1519_vm14 = vmor %vm1517_vm13, %vm1518_vm12 }
0x1b57   :  { %v1514_v29 = vsub.f32 1.0, %v1513_v1 }
0x1b58   :  { %7036 = vrcp.f32 %v3354_v21  ;;  %v3397_v47 = vand.u32 2147483648, %v3354_v21  ;;  %vm3391_vm2 = vweird.f32 %v3354_v21  ;;  %v3395_v20 = vand.u32 2147483647, %v3354_v21 }
0x1b59   :  { %v1515_v52 = vmul.f32 %v7033_v17, %v1514_v29  ;;  %v6644_v29 = vld [vmem:[#allocation9 + $0xb4] sm:$0xf0] }
0x1b5a   :  { %v3398_v0 = vor.u32 1.1754944e-38, %v3397_v47  ;;  %vm3396_vm4 = vcmp.eq.f32.partialorder %v3395_v20, 8.507059e+37 }
0x1b5b   :  { %v1516_v53 = vadd.f32 %v7033_v17, %v1515_v52  ;;  %v6637_v52 = vld [vmem:[#allocation9 + $0x84] sm:$0xf] }
0x1b5d   :  { %v1520_v35 = vsel %vm1519_vm14, %v7033_v17, %v1516_v53  ;;  %v6641_v17 = vld [vmem:[#allocation9 + $0xa4] sm:$0xf] }
0x1b5e   :  { %v7037_v12 = vpop.eup %7036  ;;  %v1525_v51 = vsel %vm1522_vm15, %v1524_v7, %v1520_v35  ;;  %v8325_v16 = vor.u32 %v6641_v17, %v6417_v24 }
0x1b5f   :  { %v3387_v27 = vmul.f32 %v7037_v12, %v3354_v21  ;;  %vm3392_vm1 = vweird.f32 %v7037_v12  ;;  %v6639_v21 = vld [vmem:[#allocation9 + $0x94] sm:$0xf] }
0x1b60   :  { %vm3393_vm3 = vmor %vm3391_vm2, %vm3392_vm1  ;;  %3517 = vmatpush.bf16.msra.mxu3 %v8325_v16 }
0x1b61   :  { %v3388_v61 = vsub.f32 1.0, %v3387_v27 }
0x1b63   :  { %v3389_v11 = vmul.f32 %v7037_v12, %v3388_v61 }
0x1b65   :  { %v3390_v42 = vadd.f32 %v7037_v12, %v3389_v11  ;;  %v6394_v11 = vmul.f32 -1.442695, %v3337_v9 }
0x1b67   :  { %v3394_v23 = vsel %vm3393_vm3, %v7037_v12, %v3390_v42  ;;  %v6396_v42 = vmul.f32 -1.442695, %v3339_v46  ;;  %v6638_v46 = vld [vmem:[#allocation9 + $0x84] sm:$0xf0] }
0x1b68   :  { %v3399_v5 = vsel %vm3396_vm4, %v3398_v0, %v3394_v23  ;;  %v6415_v23 = vld [vmem:[#allocation9 + $0xa0] sm:$0xf]  ;;  %v6642_v0 = vld [vmem:[#allocation9 + $0xa4] sm:$0xf0]  ;;  %v8359_v2 = vor.u32 %v6638_v46, %v6399_v34 }
0x1b92   :  { %v3423_v15 = vpop.permute.xlu2 %3422 }
0x1b93   :  { %v3428_v39 = vmul.f32 %v3423_v15, %v3369_v25  ;;  %v6409_v15 = vld [vmem:[#allocation9 + $0x98] sm:$0xf0]  ;;  %v6423_v25 = vld [vmem:[#allocation9 + $0xb0] sm:$0xf] }
0x1b95   :  { %3432 = vrot.lane.b32.xlu0 %v3428_v39, %s7550_s2  ;;  %v8329_v39 = vor.u32 %v6639_v21, %v6409_v15 }
0x1b97   :  { %3518 = vmatpush.bf16.msra.mxu3 %v8329_v39 }
0x1b9a   :  { %v1576_v59 = vpop.permute.xlu2 %1575 }
0x1b9b   :  { %v1580_v4 = vadd.f32 %v1576_v59, %v1560_v30  ;;  %v6401_v30 = vld [vmem:[#allocation9 + $0x88] sm:$0xf0]  ;;  %v8331_v59 = vor.u32 %v6644_v29, %v6423_v25 }
0x1b9d   :  { %7038 = vtanh.f32 %v1580_v4  ;;  %v8334_v4 = vor.u32 %v6637_v52, %v6401_v30  ;;  %3502 = vmatpush.bf16.msra.mxu2 %v8331_v59 }
0x1b9e   :  { %7040 = vpow2.f32 %v6218_v37  ;;  %v6640_v37 = vld [vmem:[#allocation9 + $0x94] sm:$0xf0] }
0x1b9f   :  { %3519 = vmatpush.bf16.msra.mxu3 %v8334_v4 }
0x1ba2   :  { %v1586_v60 = vpop.permute.xlu2 %1585 }
0x1ba3   :  { %v7039_v57 = vpop.eup %7038  ;;  %v1591_v63 = vmul.f32 %v1586_v60, %v1525_v51  ;;  %3672 = vmatpush.bf16.msrb.mxu3 %v8319_v49  ;;  %v3419_v60 = vmul.f32 0.0, %v3399_v5 }
0x1ba4   :  { %1587 = vrot.lane.b32.xlu0 %v7039_v57, %s7550_s2  ;;  %v7041_v62 = vpop.eup %7040 }
0x1ba5   :  { %1594 = vst.msk [vmem:[#allocation2 + $0x70] sm:$0xff] %vm175_vm0, %v1591_v63  ;;  %v1496_v19 = vadd.f32 1.0, %v7041_v62 }
0x1ba7   :  { %7042 = vrcp.f32 %v1496_v19  ;;  %v1551_v8 = vand.u32 2147483647, %v1496_v19  ;;  %v1553_v1 = vand.u32 2147483648, %v1496_v19  ;;  %vm1547_vm6 = vweird.f32 %v1496_v19  ;;  %3673 = vmatpush.bf16.msrb.mxu3 %v8325_v16 }
0x1ba9   :  { %v1554_v53 = vor.u32 1.1754944e-38, %v1553_v1  ;;  %vm1552_vm8 = vcmp.eq.f32.partialorder %v1551_v8, 8.507059e+37 }
0x1bab   :  { %3674 = vmatpush.bf16.msrb.mxu3 %v8329_v39 }
0x1bac   :  { %v1630_v35 = vld [vmem:[#allocation2 + $0x70] sm:$0xff] }
0x1bad   :  { %v7043_v43 = vpop.eup %7042 }
0x1bae   :  { %v1543_v10 = vmul.f32 %v7043_v43, %v1496_v19  ;;  %vm1548_vm5 = vweird.f32 %v7043_v43 }
0x1baf   :  { %vm1549_vm7 = vmor %vm1547_vm6, %vm1548_vm5  ;;  %3675 = vmatpush.bf16.msrb.mxu3 %v8334_v4 }
0x1bb0   :  { %v1544_v28 = vsub.f32 1.0, %v1543_v10 }
0x1bb2   :  { %v3425_v3 = vpop.permute.xlu0 %3424  ;;  %v1545_v22 = vmul.f32 %v7043_v43, %v1544_v28 }
0x1bb3   :  { %v3429_v6 = vmul.f32 %v3425_v3, %v3399_v5  ;;  %v6407_v3 = vld [vmem:[#allocation9 + $0x90] sm:$0xf] }
0x1bb4   :  { %v1546_v36 = vadd.f32 %v7043_v43, %v1545_v22  ;;  %v8356_v40 = vor.u32 %v6640_v37, %v6407_v3 }
0x1bb5   :  { %3434 = vrot.lane.b32.xlu1 %v3429_v6, %s7550_s2  ;;  %v8353_v6 = vor.u32 %v6642_v0, %v6415_v23 }
0x1bb6   :  { %v1550_v12 = vsel %vm1549_vm7, %v7043_v43, %v1546_v36 }
0x1bb7   :  { %v1555_v45 = vsel %vm1552_vm8, %v1554_v53, %v1550_v12  ;;  %3503 = vmatpush.bf16.msra.mxu2 %v8353_v6 }
0x1bbb   :  { %3504 = vmatpush.bf16.msra.mxu2 %v8356_v40 }
0x1bbf   :  { %3505 = vmatpush.bf16.msra.mxu2 %v8359_v2 }
0x1bc3   :  { %3658 = vmatpush.bf16.msrb.mxu2 %v8331_v59 }
0x1bc7   :  { %3659 = vmatpush.bf16.msrb.mxu2 %v8353_v6 }
0x1bcb   :  { %3660 = vmatpush.bf16.msrb.mxu2 %v8356_v40 }
0x1bcf   :  { %3661 = vmatpush.bf16.msrb.mxu2 %v8359_v2 }
0x1c07   :  { %v3433_v50 = vpop.permute.xlu0 %3432 }
0x1c08   :  { %v8322_v13 = vadd.f32 %v3433_v50, %v3418_v54 }
0x1c0a   :  { %7044 = vtanh.f32 %v8322_v13 }
0x1c10   :  { %v7045_v31 = vpop.eup %7044 }
0x1c11   :  { %3444 = vrot.lane.b32.xlu1 %v7045_v31, %s7550_s2 }
0x1c16   :  { %v1588_v48 = vpop.permute.xlu0 %1587 }
0x1c17   :  { %v1592_v27 = vmul.f32 %v1588_v48, %v1555_v45 }
0x1c19   :  { %1595 = vst.msk [vmem:[#allocation2 + $0x78] sm:$0xff] %vm175_vm0, %v1592_v27 }
0x1c20   :  { %v1631_v7 = vld [vmem:[#allocation2 + $0x78] sm:$0xff] }
0x1c21   :  { %v1639_v51 = vpack.c.bf16 %v1631_v7, %v1630_v35 }
0x1c23   :  { %6258 = vmatmul.msk.bf16.gmra.mxu2 %vm175_vm0, %v1639_v51  ;;  %6266 = vmatmul.msk.bf16.gmra.mxu3 %vm175_vm0, %v1639_v51 }
0x1c27   :  { %v3435_v61 = vpop.permute.xlu1 %3434 }
0x1c28   :  { %v8345_v57 = vadd.f32 %v3435_v61, %v3419_v60  ;;  %v3218_v61 = vpop.f32.mrf.mxu0 }
0x1c2a   :  { %7046 = vtanh.f32 %v8345_v57 }
0x1c2b   :  { %7048 = vpow2.f32 %v6394_v11  ;;  %v3219_v11 = vadd.f32 %v3218_v61, %v8286_v18 }
0x1c2c   :  { %7050 = vpow2.f32 %v6396_v42 }
0x1c30   :  { %v7047_v63 = vpop.eup %7046  ;;  %v3220_v23 = vpop.f32.mrf.mxu0 }
0x1c31   :  { %3446 = vrot.lane.b32.xlu2 %v7047_v63, %s7550_s2  ;;  %v7049_v47 = vpop.eup %7048  ;;  %v3267_v63 = vpop.f32.mrf.mxu1  ;;  %v3221_v3 = vadd.f32 %v3220_v23, %v8286_v18 }
0x1c32   :  { %v3353_v20 = vadd.f32 1.0, %v7049_v47  ;;  %v7051_v5 = vpop.eup %7050  ;;  %v3268_v42 = vadd.f32 %v3267_v63, %v8288_v41 }
0x1c33   :  { %v3355_v58 = vadd.f32 1.0, %v7051_v5 }
0x1c34   :  { %7052 = vrcp.f32 %v3353_v20  ;;  %v3382_v17 = vand.u32 2147483648, %v3353_v20  ;;  %vm3376_vm10 = vweird.f32 %v3353_v20  ;;  %v3380_v24 = vand.u32 2147483647, %v3353_v20 }
0x1c35   :  { %7054 = vrcp.f32 %v3355_v58  ;;  %v3412_v25 = vand.u32 2147483648, %v3355_v58  ;;  %vm3406_vm14 = vweird.f32 %v3355_v58  ;;  %v3410_v29 = vand.u32 2147483647, %v3355_v58 }
0x1c36   :  { %v3383_v8 = vor.u32 1.1754944e-38, %v3382_v17  ;;  %vm3381_vm12 = vcmp.eq.f32.partialorder %v3380_v24, 8.507059e+37 }
0x1c37   :  { %v3413_v30 = vor.u32 1.1754944e-38, %v3412_v25  ;;  %vm3411_vm1 = vcmp.eq.f32.partialorder %v3410_v29, 8.507059e+37 }
0x1c39   :  { %v3269_v0 = vpop.f32.mrf.mxu1 }
0x1c3a   :  { %v7053_v9 = vpop.eup %7052  ;;  %v3270_v5 = vadd.f32 %v3269_v0, %v8288_v41 }
0x1c3b   :  { %v3372_v62 = vmul.f32 %v7053_v9, %v3353_v20  ;;  %v7055_v19 = vpop.eup %7054  ;;  %vm3377_vm9 = vweird.f32 %v7053_v9  ;;  %v3304_v20 = vpack.c.bf16 %v3268_v42, %v3219_v11 }
0x1c3c   :  { %v3402_v10 = vmul.f32 %v7055_v19, %v3355_v58  ;;  %vm3378_vm11 = vmor %vm3376_vm10, %vm3377_vm9  ;;  %vm3407_vm13 = vweird.f32 %v7055_v19  ;;  %v3305_v34 = vpack.c.bf16 %v3270_v5, %v3221_v3 }
0x1c3d   :  { %v3373_v43 = vsub.f32 1.0, %v3372_v62  ;;  %vm3408_vm15 = vmor %vm3406_vm14, %vm3407_vm13  ;;  %v3529_v37 = vunpack.c.h.bf16 %v3304_v20 }
0x1c3e   :  { %v3403_v50 = vsub.f32 1.0, %v3402_v10  ;;  %v3531_v46 = vunpack.c.h.bf16 %v3305_v34 }
0x1c3f   :  { %v3374_v54 = vmul.f32 %v7053_v9, %v3373_v43 }
0x1c40   :  { %v3404_v22 = vmul.f32 %v7055_v19, %v3403_v50 }
0x1c41   :  { %v3375_v28 = vadd.f32 %v7053_v9, %v3374_v54 }
0x1c42   :  { %v3405_v21 = vadd.f32 %v7055_v19, %v3404_v22 }
0x1c43   :  { %v3379_v36 = vsel %vm3378_vm11, %v7053_v9, %v3375_v28  ;;  %v3528_v28 = vunpack.c.l.bf16 %v3304_v20 }
0x1c44   :  { %v3384_v1 = vsel %vm3381_vm12, %v3383_v8, %v3379_v36  ;;  %v3409_v52 = vsel %vm3408_vm15, %v7055_v19, %v3405_v21  ;;  %v3530_v36 = vunpack.c.l.bf16 %v3305_v34 }
0x1c45   :  { %v3414_v12 = vsel %vm3411_vm1, %v3413_v30, %v3409_v52 }
0x1c83   :  { %v3445_v31 = vpop.permute.xlu1 %3444 }
0x1c84   :  { %v3450_v15 = vmul.f32 %v3445_v31, %v3384_v1 }
0x1c86   :  { %3452 = vst.msk [vmem:[#allocation2] sm:$0xff] %vm175_vm0, %v3450_v15 }
0x1c8b   :  { %v3447_v53 = vpop.permute.xlu2 %3446 }
0x1c8c   :  { %v3451_v45 = vmul.f32 %v3447_v53, %v3414_v12 }
0x1c8e   :  { %3453 = vst.msk [vmem:[#allocation2 + $0x8] sm:$0xff] %vm175_vm0, %v3451_v45  ;;  %v3454_v48 = vpack.c.bf16 %v3451_v45, %v3450_v15 }
0x1c90   :  { %6429 = vmatmul.msk.bf16.vlgmr.msra.gmra.mxu2 %vm175_vm0, %v3454_v48  ;;  %6430 = vmatmul.msk.bf16.vlgmr.msra.gmra.mxu3 %vm175_vm0, %v3454_v48 }
0x1c91   :  { %3828 = vmatpush.bf16.msra.mxu3 %v8319_v49  ;;  %3814 = vmatpush.bf16.msra.mxu2 %v8331_v59 }
0x1c95   :  { %3829 = vmatpush.bf16.msra.mxu3 %v8325_v16  ;;  %3815 = vmatpush.bf16.msra.mxu2 %v8353_v6 }
0x1c99   :  { %3830 = vmatpush.bf16.msra.mxu3 %v8329_v39  ;;  %3816 = vmatpush.bf16.msra.mxu2 %v8356_v40 }
0x1c9d   :  { %3831 = vmatpush.bf16.msra.mxu3 %v8334_v4  ;;  %3817 = vmatpush.bf16.msra.mxu2 %v8359_v2 }
0x1ca6   :  { %v1753_v27 = vpop.f32.mrf.mxu2  ;;  %v1802_v35 = vpop.f32.mrf.mxu3 }
0x1ca7   :  { %v1754_v7 = vadd.f32 %v1753_v27, %v7940_v38  ;;  %v1803_v51 = vadd.f32 %v1802_v35, %v7942_v44 }
0x1ca9   :  { %v8380_v60 = vpack.c.bf16 %v1803_v51, %v1754_v7 }
0x1cae   :  { %v8384_v47 = vpop.f32.mrf.mxu3  ;;  %v8396_v54 = vpop.f32.mrf.mxu2 }
0x1d13   :  { %v3521_v58 = vpop.f32.mrf.mxu3  ;;  %v3507_v50 = vpop.f32.mrf.mxu2 }
0x1d14   :  { %v8388_v9 = vadd.f32 %v3529_v37, %v3521_v58  ;;  %v3532_v17 = vadd.f32 %v3528_v28, %v3507_v50 }
0x1d16   :  { %7056 = vtanh.f32 %v8388_v9  ;;  %v6431_v24 = vmul.f32 -1.442695, %v3532_v17 }
0x1d1b   :  { %v3523_v62 = vpop.f32.mrf.mxu3  ;;  %v3509_v22 = vpop.f32.mrf.mxu2 }
0x1d1c   :  { %v7057_v19 = vpop.eup %7056  ;;  %v8391_v43 = vadd.f32 %v3531_v46, %v3523_v62  ;;  %v3534_v8 = vadd.f32 %v3530_v36, %v3509_v22 }
0x1d1d   :  { %3618 = vrot.lane.b32.xlu0 %v7057_v19, %s7550_s2 }
0x1d1e   :  { %7058 = vtanh.f32 %v8391_v43  ;;  %v6433_v1 = vmul.f32 -1.442695, %v3534_v8  ;;  %v6434_v36 = vmul.f32 -1.442695, %v8391_v43 }
0x1d1f   :  { %7060 = vpow2.f32 %v6431_v24 }
0x1d20   :  { %7062 = vpow2.f32 %v6433_v1 }
0x1d24   :  { %v7059_v10 = vpop.eup %7058 }
0x1d25   :  { %3620 = vrot.lane.b32.xlu1 %v7059_v10, %s7550_s2  ;;  %v7061_v31 = vpop.eup %7060 }
0x1d26   :  { %v3548_v21 = vadd.f32 1.0, %v7061_v31  ;;  %v7063_v15 = vpop.eup %7062 }
0x1d27   :  { %v3550_v25 = vadd.f32 1.0, %v7063_v15 }
0x1d28   :  { %7064 = vrcp.f32 %v3548_v21  ;;  %v3563_v35 = vand.u32 2147483648, %v3548_v21  ;;  %vm3557_vm3 = vweird.f32 %v3548_v21  ;;  %v3561_v7 = vand.u32 2147483647, %v3548_v21 }
0x1d29   :  { %7066 = vrcp.f32 %v3550_v25  ;;  %v3593_v0 = vand.u32 2147483648, %v3550_v25  ;;  %vm3587_vm7 = vweird.f32 %v3550_v25  ;;  %v3591_v3 = vand.u32 2147483647, %v3550_v25 }
0x1d2a   :  { %v3564_v63 = vor.u32 1.1754944e-38, %v3563_v35  ;;  %vm3562_vm5 = vcmp.eq.f32.partialorder %v3561_v7, 8.507059e+37 }
0x1d2b   :  { %v3594_v37 = vor.u32 1.1754944e-38, %v3593_v0  ;;  %vm3592_vm9 = vcmp.eq.f32.partialorder %v3591_v3, 8.507059e+37 }
0x1d2e   :  { %v7065_v29 = vpop.eup %7064 }
0x1d2f   :  { %v3553_v52 = vmul.f32 %v7065_v29, %v3548_v21  ;;  %v7067_v12 = vpop.eup %7066  ;;  %vm3558_vm2 = vweird.f32 %v7065_v29 }
0x1d30   :  { %v3583_v45 = vmul.f32 %v7067_v12, %v3550_v25  ;;  %vm3559_vm4 = vmor %vm3557_vm3, %vm3558_vm2  ;;  %vm3588_vm6 = vweird.f32 %v7067_v12 }
0x1d31   :  { %v3554_v30 = vsub.f32 1.0, %v3553_v52  ;;  %vm3589_vm8 = vmor %vm3587_vm7, %vm3588_vm6 }
0x1d32   :  { %v3584_v27 = vsub.f32 1.0, %v3583_v45 }
0x1d33   :  { %v3555_v53 = vmul.f32 %v7065_v29, %v3554_v30 }
0x1d34   :  { %v3585_v61 = vmul.f32 %v7067_v12, %v3584_v27 }
0x1d35   :  { %v3556_v48 = vadd.f32 %v7065_v29, %v3555_v53 }
0x1d36   :  { %v3586_v23 = vadd.f32 %v7067_v12, %v3585_v61 }
0x1d37   :  { %v3560_v51 = vsel %vm3559_vm4, %v7065_v29, %v3556_v48 }
0x1d38   :  { %v3565_v42 = vsel %vm3562_vm5, %v3564_v63, %v3560_v51  ;;  %v3590_v5 = vsel %vm3589_vm8, %v7067_v12, %v3586_v23 }
0x1d39   :  { %v3595_v34 = vsel %vm3592_vm9, %v3594_v37, %v3590_v5  ;;  %v3614_v62 = vmul.f32 %v3565_v42, %v8322_v13  ;;  %v6432_v13 = vmul.f32 -1.442695, %v8388_v9  ;;  %v3223_v37 = vpop.f32.mrf.mxu0 }
0x1d3a   :  { %v3615_v28 = vmul.f32 %v3595_v34, %v8345_v57 }
0x1d8f   :  { %v3619_v11 = vpop.permute.xlu0 %3618 }
0x1d90   :  { %v3624_v20 = vmul.f32 %v3619_v11, %v3565_v42 }
0x1d92   :  { %3628 = vrot.lane.b32.xlu2 %v3624_v20, %s7550_s2 }
0x1d97   :  { %v3621_v58 = vpop.permute.xlu1 %3620 }
0x1d98   :  { %v3625_v46 = vmul.f32 %v3621_v58, %v3595_v34  ;;  %v3272_v58 = vpop.f32.mrf.mxu1  ;;  %v3224_v34 = vadd.f32 %v3223_v37, %v8286_v18 }
0x1d9a   :  { %3630 = vrot.lane.b32.xlu0 %v3625_v46, %s7550_s2  ;;  %v3273_v46 = vadd.f32 %v3272_v58, %v8288_v41 }
0x1dec   :  { %v3629_v19 = vpop.permute.xlu2 %3628 }
0x1ded   :  { %v8401_v10 = vadd.f32 %v3629_v19, %v3614_v62  ;;  %v3306_v62 = vpack.c.bf16 %v3273_v46, %v3224_v34  ;;  %v3225_v19 = vpop.f32.mrf.mxu0 }
0x1def   :  { %7068 = vtanh.f32 %v8401_v10 }
0x1df5   :  { %v7069_v50 = vpop.eup %7068 }
0x1df6   :  { %3640 = vrot.lane.b32.xlu1 %v7069_v50, %s7550_s2  ;;  %v3274_v50 = vpop.f32.mrf.mxu1 }
0x1e0c   :  { %v3631_v17 = vpop.permute.xlu0 %3630 }
0x1e0d   :  { %v8406_v24 = vadd.f32 %v3631_v17, %v3615_v28  ;;  %v3226_v28 = vadd.f32 %v3225_v19, %v8286_v18  ;;  %v3275_v17 = vadd.f32 %v3274_v50, %v8288_v41 }
0x1e0f   :  { %7070 = vtanh.f32 %v8406_v24 }
0x1e10   :  { %7072 = vpow2.f32 %v6432_v13 }
0x1e11   :  { %7074 = vpow2.f32 %v6434_v36 }
0x1e15   :  { %v7071_v22 = vpop.eup %7070 }
0x1e16   :  { %3642 = vrot.lane.b32.xlu2 %v7071_v22, %s7550_s2  ;;  %v7073_v8 = vpop.eup %7072  ;;  %v3685_v22 = vunpack.c.h.bf16 %v3306_v62 }
0x1e17   :  { %v3549_v1 = vadd.f32 1.0, %v7073_v8  ;;  %v7075_v31 = vpop.eup %7074  ;;  %v3307_v8 = vpack.c.bf16 %v3275_v17, %v3226_v28 }
0x1e18   :  { %v3551_v21 = vadd.f32 1.0, %v7075_v31 }
0x1e19   :  { %7076 = vrcp.f32 %v3549_v1  ;;  %v3578_v9 = vand.u32 2147483648, %v3549_v1  ;;  %vm3572_vm11 = vweird.f32 %v3549_v1  ;;  %v3576_v45 = vand.u32 2147483647, %v3549_v1 }
0x1e1a   :  { %7078 = vrcp.f32 %v3551_v21  ;;  %v3608_v63 = vand.u32 2147483648, %v3551_v21  ;;  %vm3602_vm15 = vweird.f32 %v3551_v21  ;;  %v3606_v11 = vand.u32 2147483647, %v3551_v21 }
0x1e1b   :  { %v3579_v27 = vor.u32 1.1754944e-38, %v3578_v9  ;;  %vm3577_vm13 = vcmp.eq.f32.partialorder %v3576_v45, 8.507059e+37 }
0x1e1c   :  { %v3609_v20 = vor.u32 1.1754944e-38, %v3608_v63  ;;  %vm3607_vm2 = vcmp.eq.f32.partialorder %v3606_v11, 8.507059e+37 }
0x1e1f   :  { %v7077_v57 = vpop.eup %7076 }
0x1e20   :  { %v3568_v15 = vmul.f32 %v7077_v57, %v3549_v1  ;;  %v7079_v29 = vpop.eup %7078  ;;  %vm3573_vm10 = vweird.f32 %v7077_v57  ;;  %v3687_v1 = vunpack.c.h.bf16 %v3307_v8 }
0x1e21   :  { %v3598_v30 = vmul.f32 %v7079_v29, %v3551_v21  ;;  %vm3574_vm12 = vmor %vm3572_vm11, %vm3573_vm10  ;;  %vm3603_vm14 = vweird.f32 %v7079_v29 }
0x1e22   :  { %v3569_v25 = vsub.f32 1.0, %v3568_v15  ;;  %vm3604_vm1 = vmor %vm3602_vm15, %vm3603_vm14 }
0x1e23   :  { %v3599_v53 = vsub.f32 1.0, %v3598_v30 }
0x1e24   :  { %v3570_v52 = vmul.f32 %v7077_v57, %v3569_v25 }
0x1e25   :  { %v3600_v48 = vmul.f32 %v7079_v29, %v3599_v53  ;;  %v3686_v53 = vunpack.c.l.bf16 %v3307_v8 }
0x1e26   :  { %v3571_v12 = vadd.f32 %v7077_v57, %v3570_v52 }
0x1e27   :  { %v3601_v61 = vadd.f32 %v7079_v29, %v3600_v48 }
0x1e28   :  { %v3575_v43 = vsel %vm3574_vm12, %v7077_v57, %v3571_v12 }
0x1e29   :  { %v3580_v35 = vsel %vm3577_vm13, %v3579_v27, %v3575_v43  ;;  %v3605_v42 = vsel %vm3604_vm1, %v7079_v29, %v3601_v61  ;;  %v3684_v29 = vunpack.c.l.bf16 %v3306_v62 }
0x1e2a   :  { %v3610_v23 = vsel %vm3607_vm2, %v3609_v20, %v3605_v42 }
0x1e68   :  { %v3641_v7 = vpop.permute.xlu1 %3640 }
0x1e69   :  { %v3646_v51 = vmul.f32 %v3641_v7, %v3580_v35 }
0x1e6b   :  { %3648 = vst.msk [vmem:[#allocation2 + $0x10] sm:$0xff] %vm175_vm0, %v3646_v51 }
0x1e70   :  { %v3643_v0 = vpop.permute.xlu2 %3642 }
0x1e71   :  { %v3647_v3 = vmul.f32 %v3643_v0, %v3610_v23 }
0x1e73   :  { %3649 = vst.msk [vmem:[#allocation2 + $0x18] sm:$0xff] %vm175_vm0, %v3647_v3  ;;  %v3650_v5 = vpack.c.bf16 %v3647_v3, %v3646_v51 }
0x1e75   :  { %6435 = vmatmul.msk.bf16.vlgmr.msrb.gmra.mxu2 %vm175_vm0, %v3650_v5  ;;  %6436 = vmatmul.msk.bf16.vlgmr.msrb.gmra.mxu3 %vm175_vm0, %v3650_v5 }
0x1e76   :  { %3984 = vmatpush.bf16.msrb.mxu3 %v8319_v49  ;;  %3970 = vmatpush.bf16.msrb.mxu2 %v8331_v59 }
0x1e7a   :  { %3985 = vmatpush.bf16.msrb.mxu3 %v8325_v16  ;;  %3971 = vmatpush.bf16.msrb.mxu2 %v8353_v6 }
0x1e7e   :  { %3986 = vmatpush.bf16.msrb.mxu3 %v8329_v39  ;;  %3972 = vmatpush.bf16.msrb.mxu2 %v8356_v40 }
0x1e82   :  { %3987 = vmatpush.bf16.msrb.mxu3 %v8334_v4  ;;  %3973 = vmatpush.bf16.msrb.mxu2 %v8359_v2 }
0x1ef8   :  { %v3677_v13 = vpop.f32.mrf.mxu3  ;;  %v3663_v25 = vpop.f32.mrf.mxu2 }
0x1ef9   :  { %v8428_v36 = vadd.f32 %v3685_v22, %v3677_v13  ;;  %v3688_v52 = vadd.f32 %v3684_v29, %v3663_v25 }
0x1efb   :  { %7080 = vtanh.f32 %v8428_v36  ;;  %v6437_v30 = vmul.f32 -1.442695, %v3688_v52 }
0x1f00   :  { %v3679_v31 = vpop.f32.mrf.mxu3  ;;  %v3665_v12 = vpop.f32.mrf.mxu2 }
0x1f01   :  { %v7081_v21 = vpop.eup %7080  ;;  %v8431_v57 = vadd.f32 %v3687_v1, %v3679_v31  ;;  %v3690_v9 = vadd.f32 %v3686_v53, %v3665_v12 }
0x1f02   :  { %3774 = vrot.lane.b32.xlu0 %v7081_v21, %s7550_s2 }
0x1f03   :  { %7082 = vtanh.f32 %v8431_v57  ;;  %v6439_v45 = vmul.f32 -1.442695, %v3690_v9  ;;  %v6440_v53 = vmul.f32 -1.442695, %v8431_v57 }
0x1f04   :  { %7084 = vpow2.f32 %v6437_v30 }
0x1f05   :  { %7086 = vpow2.f32 %v6439_v45 }
0x1f09   :  { %v7083_v15 = vpop.eup %7082 }
0x1f0a   :  { %3776 = vrot.lane.b32.xlu1 %v7083_v15, %s7550_s2  ;;  %v7085_v43 = vpop.eup %7084 }
0x1f0b   :  { %v3704_v48 = vadd.f32 1.0, %v7085_v43  ;;  %v7087_v27 = vpop.eup %7086 }
0x1f0c   :  { %v3706_v35 = vadd.f32 1.0, %v7087_v27 }
0x1f0d   :  { %7088 = vrcp.f32 %v3704_v48  ;;  %v3719_v0 = vand.u32 2147483648, %v3704_v48  ;;  %vm3713_vm4 = vweird.f32 %v3704_v48  ;;  %v3717_v3 = vand.u32 2147483647, %v3704_v48 }
0x1f0e   :  { %7090 = vrcp.f32 %v3706_v35  ;;  %v3749_v50 = vand.u32 2147483648, %v3706_v35  ;;  %vm3743_vm8 = vweird.f32 %v3706_v35  ;;  %v3747_v28 = vand.u32 2147483647, %v3706_v35 }
0x1f0f   :  { %v3720_v58 = vor.u32 1.1754944e-38, %v3719_v0  ;;  %vm3718_vm6 = vcmp.eq.f32.partialorder %v3717_v3, 8.507059e+37 }
0x1f10   :  { %v3750_v22 = vor.u32 1.1754944e-38, %v3749_v50  ;;  %vm3748_vm10 = vcmp.eq.f32.partialorder %v3747_v28, 8.507059e+37 }
0x1f13   :  { %v7089_v7 = vpop.eup %7088 }
0x1f14   :  { %v3709_v51 = vmul.f32 %v7089_v7, %v3704_v48  ;;  %v7091_v63 = vpop.eup %7090  ;;  %vm3714_vm3 = vweird.f32 %v7089_v7 }
0x1f15   :  { %v3739_v42 = vmul.f32 %v7091_v63, %v3706_v35  ;;  %vm3715_vm5 = vmor %vm3713_vm4, %vm3714_vm3  ;;  %vm3744_vm7 = vweird.f32 %v7091_v63 }
0x1f16   :  { %v3710_v61 = vsub.f32 1.0, %v3709_v51  ;;  %vm3745_vm9 = vmor %vm3743_vm8, %vm3744_vm7 }
0x1f17   :  { %v3740_v23 = vsub.f32 1.0, %v3739_v42 }
0x1f18   :  { %v3711_v11 = vmul.f32 %v7089_v7, %v3710_v61 }
0x1f19   :  { %v3741_v37 = vmul.f32 %v7091_v63, %v3740_v23 }
0x1f1a   :  { %v3712_v20 = vadd.f32 %v7089_v7, %v3711_v11 }
0x1f1b   :  { %v3742_v19 = vadd.f32 %v7091_v63, %v3741_v37 }
0x1f1c   :  { %v3716_v5 = vsel %vm3715_vm5, %v7089_v7, %v3712_v20 }
0x1f1d   :  { %v3721_v46 = vsel %vm3718_vm6, %v3720_v58, %v3716_v5  ;;  %v3746_v17 = vsel %vm3745_vm9, %v7091_v63, %v3742_v19 }
0x1f1e   :  { %v3751_v8 = vsel %vm3748_vm10, %v3750_v22, %v3746_v17  ;;  %v3770_v31 = vmul.f32 %v3721_v46, %v8401_v10  ;;  %v6438_v10 = vmul.f32 -1.442695, %v8428_v36  ;;  %v3228_v22 = vpop.f32.mrf.mxu0 }
0x1f1f   :  { %v3771_v29 = vmul.f32 %v3751_v8, %v8406_v24 }
0x1f74   :  { %v3775_v34 = vpop.permute.xlu0 %3774 }
0x1f75   :  { %v3780_v62 = vmul.f32 %v3775_v34, %v3721_v46 }
0x1f77   :  { %3784 = vrot.lane.b32.xlu2 %v3780_v62, %s7550_s2 }
0x1f7c   :  { %v3777_v13 = vpop.permute.xlu1 %3776 }
0x1f7d   :  { %v3781_v1 = vmul.f32 %v3777_v13, %v3751_v8  ;;  %v3277_v13 = vpop.f32.mrf.mxu1  ;;  %v3229_v8 = vadd.f32 %v3228_v22, %v8286_v18 }
0x1f7f   :  { %3786 = vrot.lane.b32.xlu0 %v3781_v1, %s7550_s2  ;;  %v3278_v1 = vadd.f32 %v3277_v13, %v8288_v41 }
0x1fd1   :  { %v3785_v21 = vpop.permute.xlu2 %3784 }
0x1fd2   :  { %v8439_v15 = vadd.f32 %v3785_v21, %v3770_v31  ;;  %v3308_v31 = vpack.c.bf16 %v3278_v1, %v3229_v8  ;;  %v3230_v21 = vpop.f32.mrf.mxu0 }
0x1fd4   :  { %7092 = vtanh.f32 %v8439_v15 }
0x1fda   :  { %v7093_v25 = vpop.eup %7092 }
0x1fdb   :  { %3796 = vrot.lane.b32.xlu1 %v7093_v25, %s7550_s2  ;;  %v3279_v25 = vpop.f32.mrf.mxu1 }
0x1ff1   :  { %v3787_v52 = vpop.permute.xlu0 %3786 }
0x1ff2   :  { %v8444_v30 = vadd.f32 %v3787_v52, %v3771_v29  ;;  %v3231_v29 = vadd.f32 %v3230_v21, %v8286_v18  ;;  %v3280_v52 = vadd.f32 %v3279_v25, %v8288_v41 }
0x1ff4   :  { %7094 = vtanh.f32 %v8444_v30 }
0x1ff5   :  { %7096 = vpow2.f32 %v6438_v10 }
0x1ff6   :  { %7098 = vpow2.f32 %v6440_v53 }
0x1ffa   :  { %v7095_v12 = vpop.eup %7094 }
0x1ffb   :  { %3798 = vrot.lane.b32.xlu2 %v7095_v12, %s7550_s2  ;;  %v7097_v9 = vpop.eup %7096  ;;  %v3841_v12 = vunpack.c.h.bf16 %v3308_v31 }
0x1ffc   :  { %v3705_v45 = vadd.f32 1.0, %v7097_v9  ;;  %v7099_v43 = vpop.eup %7098  ;;  %v3309_v9 = vpack.c.bf16 %v3280_v52, %v3231_v29 }
0x1ffd   :  { %v3707_v48 = vadd.f32 1.0, %v7099_v43 }
0x1ffe   :  { %7100 = vrcp.f32 %v3705_v45  ;;  %v3734_v36 = vand.u32 2147483648, %v3705_v45  ;;  %vm3728_vm12 = vweird.f32 %v3705_v45  ;;  %v3732_v42 = vand.u32 2147483647, %v3705_v45 }
0x1fff   :  { %7102 = vrcp.f32 %v3707_v48  ;;  %v3764_v58 = vand.u32 2147483648, %v3707_v48  ;;  %vm3758_vm1 = vweird.f32 %v3707_v48  ;;  %v3762_v34 = vand.u32 2147483647, %v3707_v48 }
0x2000   :  { %v3735_v23 = vor.u32 1.1754944e-38, %v3734_v36  ;;  %vm3733_vm14 = vcmp.eq.f32.partialorder %v3732_v42, 8.507059e+37 }
0x2001   :  { %v3765_v62 = vor.u32 1.1754944e-38, %v3764_v58  ;;  %vm3763_vm3 = vcmp.eq.f32.partialorder %v3762_v34, 8.507059e+37 }
0x2004   :  { %v7101_v24 = vpop.eup %7100 }
0x2005   :  { %v3724_v27 = vmul.f32 %v7101_v24, %v3705_v45  ;;  %v7103_v7 = vpop.eup %7102  ;;  %vm3729_vm11 = vweird.f32 %v7101_v24  ;;  %v3843_v45 = vunpack.c.h.bf16 %v3309_v9 }
0x2006   :  { %v3754_v61 = vmul.f32 %v7103_v7, %v3707_v48  ;;  %vm3730_vm13 = vmor %vm3728_vm12, %vm3729_vm11  ;;  %vm3759_vm15 = vweird.f32 %v7103_v7 }
0x2007   :  { %v3725_v35 = vsub.f32 1.0, %v3724_v27  ;;  %vm3760_vm2 = vmor %vm3758_vm1, %vm3759_vm15 }
0x2008   :  { %v3755_v11 = vsub.f32 1.0, %v3754_v61 }
0x2009   :  { %v3726_v51 = vmul.f32 %v7101_v24, %v3725_v35 }
0x200a   :  { %v3756_v20 = vmul.f32 %v7103_v7, %v3755_v11  ;;  %v3842_v11 = vunpack.c.l.bf16 %v3309_v9 }
0x200b   :  { %v3727_v63 = vadd.f32 %v7101_v24, %v3726_v51 }
0x200c   :  { %v3757_v37 = vadd.f32 %v7103_v7, %v3756_v20 }
0x200d   :  { %v3731_v57 = vsel %vm3730_vm13, %v7101_v24, %v3727_v63 }
0x200e   :  { %v3736_v0 = vsel %vm3733_vm14, %v3735_v23, %v3731_v57  ;;  %v3761_v46 = vsel %vm3760_vm2, %v7103_v7, %v3757_v37  ;;  %v3840_v7 = vunpack.c.l.bf16 %v3308_v31 }
0x200f   :  { %v3766_v19 = vsel %vm3763_vm3, %v3765_v62, %v3761_v46 }
0x204d   :  { %v3797_v3 = vpop.permute.xlu1 %3796 }
0x204e   :  { %v3802_v5 = vmul.f32 %v3797_v3, %v3736_v0 }
0x2050   :  { %3804 = vst.msk [vmem:[#allocation2 + $0x20] sm:$0xff] %vm175_vm0, %v3802_v5 }
0x2055   :  { %v3799_v50 = vpop.permute.xlu2 %3798 }
0x2056   :  { %v3803_v28 = vmul.f32 %v3799_v50, %v3766_v19 }
0x2058   :  { %3805 = vst.msk [vmem:[#allocation2 + $0x28] sm:$0xff] %vm175_vm0, %v3803_v28  ;;  %v3806_v17 = vpack.c.bf16 %v3803_v28, %v3802_v5 }
0x205a   :  { %6441 = vmatmul.msk.bf16.vlgmr.msra.gmra.mxu2 %vm175_vm0, %v3806_v17  ;;  %6442 = vmatmul.msk.bf16.vlgmr.msra.gmra.mxu3 %vm175_vm0, %v3806_v17 }
0x205b   :  { %4140 = vmatpush.bf16.msra.mxu3 %v8319_v49  ;;  %4126 = vmatpush.bf16.msra.mxu2 %v8331_v59 }
0x205f   :  { %4141 = vmatpush.bf16.msra.mxu3 %v8325_v16  ;;  %4127 = vmatpush.bf16.msra.mxu2 %v8353_v6 }
0x2063   :  { %4142 = vmatpush.bf16.msra.mxu3 %v8329_v39  ;;  %4128 = vmatpush.bf16.msra.mxu2 %v8356_v40 }
0x2067   :  { %4143 = vmatpush.bf16.msra.mxu3 %v8334_v4  ;;  %4129 = vmatpush.bf16.msra.mxu2 %v8359_v2 }
0x20dd   :  { %v3833_v10 = vpop.f32.mrf.mxu3  ;;  %v3819_v35 = vpop.f32.mrf.mxu2 }
0x20de   :  { %v8466_v53 = vadd.f32 %v3841_v12, %v3833_v10  ;;  %v3844_v51 = vadd.f32 %v3840_v7, %v3819_v35 }
0x20e0   :  { %7104 = vtanh.f32 %v8466_v53  ;;  %v6443_v61 = vmul.f32 -1.442695, %v3844_v51 }
0x20e5   :  { %v3835_v43 = vpop.f32.mrf.mxu3  ;;  %v3821_v63 = vpop.f32.mrf.mxu2 }
0x20e6   :  { %v7105_v48 = vpop.eup %7104  ;;  %v8469_v24 = vadd.f32 %v3843_v45, %v3835_v43  ;;  %v3846_v36 = vadd.f32 %v3842_v11, %v3821_v63 }
0x20e7   :  { %3930 = vrot.lane.b32.xlu0 %v7105_v48, %s7550_s2 }
0x20e8   :  { %7106 = vtanh.f32 %v8469_v24  ;;  %v6445_v42 = vmul.f32 -1.442695, %v3846_v36  ;;  %v6446_v11 = vmul.f32 -1.442695, %v8469_v24 }
0x20e9   :  { %7108 = vpow2.f32 %v6443_v61 }
0x20ea   :  { %7110 = vpow2.f32 %v6445_v42 }
0x20ee   :  { %v7107_v27 = vpop.eup %7106 }
0x20ef   :  { %3932 = vrot.lane.b32.xlu1 %v7107_v27, %s7550_s2  ;;  %v7109_v57 = vpop.eup %7108 }
0x20f0   :  { %v3860_v20 = vadd.f32 1.0, %v7109_v57  ;;  %v7111_v23 = vpop.eup %7110 }
0x20f1   :  { %v3862_v0 = vadd.f32 1.0, %v7111_v23 }
0x20f2   :  { %7112 = vrcp.f32 %v3860_v20  ;;  %v3875_v50 = vand.u32 2147483648, %v3860_v20  ;;  %vm3869_vm5 = vweird.f32 %v3860_v20  ;;  %v3873_v28 = vand.u32 2147483647, %v3860_v20 }
0x20f3   :  { %7114 = vrcp.f32 %v3862_v0  ;;  %v3905_v25 = vand.u32 2147483648, %v3862_v0  ;;  %vm3899_vm9 = vweird.f32 %v3862_v0  ;;  %v3903_v29 = vand.u32 2147483647, %v3862_v0 }
0x20f4   :  { %v3876_v13 = vor.u32 1.1754944e-38, %v3875_v50  ;;  %vm3874_vm7 = vcmp.eq.f32.partialorder %v3873_v28, 8.507059e+37 }
0x20f5   :  { %v3906_v12 = vor.u32 1.1754944e-38, %v3905_v25  ;;  %vm3904_vm11 = vcmp.eq.f32.partialorder %v3903_v29, 8.507059e+37 }
0x20f8   :  { %v7113_v3 = vpop.eup %7112 }
0x20f9   :  { %v3865_v5 = vmul.f32 %v7113_v3, %v3860_v20  ;;  %v7115_v58 = vpop.eup %7114  ;;  %vm3870_vm4 = vweird.f32 %v7113_v3 }
0x20fa   :  { %v3895_v46 = vmul.f32 %v7115_v58, %v3862_v0  ;;  %vm3871_vm6 = vmor %vm3869_vm5, %vm3870_vm4  ;;  %vm3900_vm8 = vweird.f32 %v7115_v58 }
0x20fb   :  { %v3866_v37 = vsub.f32 1.0, %v3865_v5  ;;  %vm3901_vm10 = vmor %vm3899_vm9, %vm3900_vm8 }
0x20fc   :  { %v3896_v19 = vsub.f32 1.0, %v3895_v46 }
0x20fd   :  { %v3867_v34 = vmul.f32 %v7113_v3, %v3866_v37 }
0x20fe   :  { %v3897_v22 = vmul.f32 %v7115_v58, %v3896_v19 }
0x20ff   :  { %v3868_v62 = vadd.f32 %v7113_v3, %v3867_v34 }
0x2100   :  { %v3898_v21 = vadd.f32 %v7115_v58, %v3897_v22 }
0x2101   :  { %v3872_v17 = vsel %vm3871_vm6, %v7113_v3, %v3868_v62 }
0x2102   :  { %v3877_v1 = vsel %vm3874_vm7, %v3876_v13, %v3872_v17  ;;  %v3902_v52 = vsel %vm3901_vm10, %v7115_v58, %v3898_v21 }
0x2103   :  { %v3907_v9 = vsel %vm3904_vm11, %v3906_v12, %v3902_v52  ;;  %v3926_v43 = vmul.f32 %v3877_v1, %v8439_v15  ;;  %v6444_v15 = vmul.f32 -1.442695, %v8466_v53  ;;  %v3233_v12 = vpop.f32.mrf.mxu0 }
0x2104   :  { %v3927_v7 = vmul.f32 %v3907_v9, %v8444_v30 }
0x2159   :  { %v3931_v8 = vpop.permute.xlu0 %3930 }
0x215a   :  { %v3936_v31 = vmul.f32 %v3931_v8, %v3877_v1 }
0x215c   :  { %3940 = vrot.lane.b32.xlu2 %v3936_v31, %s7550_s2 }
0x2161   :  { %v3933_v10 = vpop.permute.xlu1 %3932 }
0x2162   :  { %v3937_v45 = vmul.f32 %v3933_v10, %v3907_v9  ;;  %v3282_v10 = vpop.f32.mrf.mxu1  ;;  %v3234_v9 = vadd.f32 %v3233_v12, %v8286_v18 }
0x2164   :  { %3942 = vrot.lane.b32.xlu0 %v3937_v45, %s7550_s2  ;;  %v3283_v45 = vadd.f32 %v3282_v10, %v8288_v41 }
0x21b6   :  { %v3941_v48 = vpop.permute.xlu2 %3940 }
0x21b7   :  { %v8477_v27 = vadd.f32 %v3941_v48, %v3926_v43  ;;  %v3310_v43 = vpack.c.bf16 %v3283_v45, %v3234_v9  ;;  %v3235_v48 = vpop.f32.mrf.mxu0 }
0x21b9   :  { %7116 = vtanh.f32 %v8477_v27 }
0x21bf   :  { %v7117_v35 = vpop.eup %7116 }
0x21c0   :  { %3952 = vrot.lane.b32.xlu1 %v7117_v35, %s7550_s2  ;;  %v3284_v35 = vpop.f32.mrf.mxu1 }
0x21d6   :  { %v3943_v51 = vpop.permute.xlu0 %3942 }
0x21d7   :  { %v8482_v61 = vadd.f32 %v3943_v51, %v3927_v7  ;;  %v3236_v7 = vadd.f32 %v3235_v48, %v8286_v18  ;;  %v3285_v51 = vadd.f32 %v3284_v35, %v8288_v41 }
0x21d9   :  { %7118 = vtanh.f32 %v8482_v61 }
0x21da   :  { %7120 = vpow2.f32 %v6444_v15 }
0x21db   :  { %7122 = vpow2.f32 %v6446_v11 }
0x21df   :  { %v7119_v63 = vpop.eup %7118 }
0x21e0   :  { %3954 = vrot.lane.b32.xlu2 %v7119_v63, %s7550_s2  ;;  %v7121_v36 = vpop.eup %7120  ;;  %v3997_v63 = vunpack.c.h.bf16 %v3310_v43 }
0x21e1   :  { %v3861_v42 = vadd.f32 1.0, %v7121_v36  ;;  %v7123_v57 = vpop.eup %7122  ;;  %v3311_v36 = vpack.c.bf16 %v3285_v51, %v3236_v7 }
0x21e2   :  { %v3863_v20 = vadd.f32 1.0, %v7123_v57 }
0x21e3   :  { %7124 = vrcp.f32 %v3861_v42  ;;  %v3890_v53 = vand.u32 2147483648, %v3861_v42  ;;  %vm3884_vm13 = vweird.f32 %v3861_v42  ;;  %v3888_v46 = vand.u32 2147483647, %v3861_v42 }
0x21e4   :  { %7126 = vrcp.f32 %v3863_v20  ;;  %v3920_v13 = vand.u32 2147483648, %v3863_v20  ;;  %vm3914_vm2 = vweird.f32 %v3863_v20  ;;  %v3918_v8 = vand.u32 2147483647, %v3863_v20 }
0x21e5   :  { %v3891_v19 = vor.u32 1.1754944e-38, %v3890_v53  ;;  %vm3889_vm15 = vcmp.eq.f32.partialorder %v3888_v46, 8.507059e+37 }
0x21e6   :  { %v3921_v31 = vor.u32 1.1754944e-38, %v3920_v13  ;;  %vm3919_vm4 = vcmp.eq.f32.partialorder %v3918_v8, 8.507059e+37 }
0x21e9   :  { %v7125_v30 = vpop.eup %7124 }
0x21ea   :  { %v3880_v23 = vmul.f32 %v7125_v30, %v3861_v42  ;;  %v7127_v3 = vpop.eup %7126  ;;  %vm3885_vm12 = vweird.f32 %v7125_v30  ;;  %v3999_v42 = vunpack.c.h.bf16 %v3311_v36 }
0x21eb   :  { %v3910_v37 = vmul.f32 %v7127_v3, %v3863_v20  ;;  %vm3886_vm14 = vmor %vm3884_vm13, %vm3885_vm12  ;;  %vm3915_vm1 = vweird.f32 %v7127_v3 }
0x21ec   :  { %v3881_v0 = vsub.f32 1.0, %v3880_v23  ;;  %vm3916_vm3 = vmor %vm3914_vm2, %vm3915_vm1 }
0x21ed   :  { %v3911_v34 = vsub.f32 1.0, %v3910_v37 }
0x21ee   :  { %v3882_v5 = vmul.f32 %v7125_v30, %v3881_v0 }
0x21ef   :  { %v3912_v62 = vmul.f32 %v7127_v3, %v3911_v34  ;;  %v3998_v34 = vunpack.c.l.bf16 %v3311_v36 }
0x21f0   :  { %v3883_v58 = vadd.f32 %v7125_v30, %v3882_v5 }
0x21f1   :  { %v3913_v22 = vadd.f32 %v7127_v3, %v3912_v62 }
0x21f2   :  { %v3887_v24 = vsel %vm3886_vm14, %v7125_v30, %v3883_v58 }
0x21f3   :  { %v3892_v50 = vsel %vm3889_vm15, %v3891_v19, %v3887_v24  ;;  %v3917_v1 = vsel %vm3916_vm3, %v7127_v3, %v3913_v22  ;;  %v3996_v3 = vunpack.c.l.bf16 %v3310_v43 }
0x21f4   :  { %v3922_v21 = vsel %vm3919_vm4, %v3921_v31, %v3917_v1 }
0x2232   :  { %v3953_v28 = vpop.permute.xlu1 %3952 }
0x2233   :  { %v3958_v17 = vmul.f32 %v3953_v28, %v3892_v50 }
0x2235   :  { %3960 = vst.msk [vmem:[#allocation2 + $0x30] sm:$0xff] %vm175_vm0, %v3958_v17 }
0x223a   :  { %v3955_v25 = vpop.permute.xlu2 %3954 }
0x223b   :  { %v3959_v29 = vmul.f32 %v3955_v25, %v3922_v21 }
0x223d   :  { %3961 = vst.msk [vmem:[#allocation2 + $0x38] sm:$0xff] %vm175_vm0, %v3959_v29  ;;  %v3962_v52 = vpack.c.bf16 %v3959_v29, %v3958_v17 }
0x223f   :  { %6447 = vmatmul.msk.bf16.vlgmr.msrb.gmra.mxu2 %vm175_vm0, %v3962_v52  ;;  %6448 = vmatmul.msk.bf16.vlgmr.msrb.gmra.mxu3 %vm175_vm0, %v3962_v52 }
0x2240   :  { %4296 = vmatpush.bf16.msrb.mxu3 %v8319_v49  ;;  %4282 = vmatpush.bf16.msrb.mxu2 %v8331_v59 }
0x2244   :  { %4297 = vmatpush.bf16.msrb.mxu3 %v8325_v16  ;;  %4283 = vmatpush.bf16.msrb.mxu2 %v8353_v6 }
0x2248   :  { %4298 = vmatpush.bf16.msrb.mxu3 %v8329_v39  ;;  %4284 = vmatpush.bf16.msrb.mxu2 %v8356_v40 }
0x224c   :  { %4299 = vmatpush.bf16.msrb.mxu3 %v8334_v4  ;;  %4285 = vmatpush.bf16.msrb.mxu2 %v8359_v2 }
0x22c2   :  { %v3989_v15 = vpop.f32.mrf.mxu3  ;;  %v3975_v0 = vpop.f32.mrf.mxu2 }
0x22c3   :  { %v8504_v11 = vadd.f32 %v3997_v63, %v3989_v15  ;;  %v4000_v5 = vadd.f32 %v3996_v3, %v3975_v0 }
0x22c5   :  { %7128 = vtanh.f32 %v8504_v11  ;;  %v6449_v37 = vmul.f32 -1.442695, %v4000_v5 }
0x22ca   :  { %v3991_v57 = vpop.f32.mrf.mxu3  ;;  %v3977_v58 = vpop.f32.mrf.mxu2 }
0x22cb   :  { %v7129_v20 = vpop.eup %7128  ;;  %v8507_v30 = vadd.f32 %v3999_v42, %v3991_v57  ;;  %v4002_v53 = vadd.f32 %v3998_v34, %v3977_v58 }
0x22cc   :  { %4086 = vrot.lane.b32.xlu0 %v7129_v20, %s7550_s2 }
0x22cd   :  { %7130 = vtanh.f32 %v8507_v30  ;;  %v6451_v46 = vmul.f32 -1.442695, %v4002_v53  ;;  %v6452_v34 = vmul.f32 -1.442695, %v8507_v30 }
0x22ce   :  { %7132 = vpow2.f32 %v6449_v37 }
0x22cf   :  { %7134 = vpow2.f32 %v6451_v46 }
0x22d3   :  { %v7131_v23 = vpop.eup %7130 }
0x22d4   :  { %4088 = vrot.lane.b32.xlu1 %v7131_v23, %s7550_s2  ;;  %v7133_v24 = vpop.eup %7132 }
0x22d5   :  { %v4016_v62 = vadd.f32 1.0, %v7133_v24  ;;  %v7135_v19 = vpop.eup %7134 }
0x22d6   :  { %v4018_v50 = vadd.f32 1.0, %v7135_v19 }
0x22d7   :  { %7136 = vrcp.f32 %v4016_v62  ;;  %v4031_v25 = vand.u32 2147483648, %v4016_v62  ;;  %vm4025_vm6 = vweird.f32 %v4016_v62  ;;  %v4029_v29 = vand.u32 2147483647, %v4016_v62 }
0x22d8   :  { %7138 = vrcp.f32 %v4018_v50  ;;  %v4061_v35 = vand.u32 2147483648, %v4018_v50  ;;  %vm4055_vm10 = vweird.f32 %v4018_v50  ;;  %v4059_v7 = vand.u32 2147483647, %v4018_v50 }
0x22d9   :  { %v4032_v10 = vor.u32 1.1754944e-38, %v4031_v25  ;;  %vm4030_vm8 = vcmp.eq.f32.partialorder %v4029_v29, 8.507059e+37 }
0x22da   :  { %v4062_v63 = vor.u32 1.1754944e-38, %v4061_v35  ;;  %vm4060_vm12 = vcmp.eq.f32.partialorder %v4059_v7, 8.507059e+37 }
0x22dd   :  { %v7137_v28 = vpop.eup %7136 }
0x22de   :  { %v4021_v17 = vmul.f32 %v7137_v28, %v4016_v62  ;;  %v7139_v13 = vpop.eup %7138  ;;  %vm4026_vm5 = vweird.f32 %v7137_v28 }
0x22df   :  { %v4051_v1 = vmul.f32 %v7139_v13, %v4018_v50  ;;  %vm4027_vm7 = vmor %vm4025_vm6, %vm4026_vm5  ;;  %vm4056_vm9 = vweird.f32 %v7139_v13 }
0x22e0   :  { %v4022_v22 = vsub.f32 1.0, %v4021_v17  ;;  %vm4057_vm11 = vmor %vm4055_vm10, %vm4056_vm9 }
0x22e1   :  { %v4052_v21 = vsub.f32 1.0, %v4051_v1 }
0x22e2   :  { %v4023_v8 = vmul.f32 %v7137_v28, %v4022_v22 }
0x22e3   :  { %v4053_v12 = vmul.f32 %v7139_v13, %v4052_v21 }
0x22e4   :  { %v4024_v31 = vadd.f32 %v7137_v28, %v4023_v8 }
0x22e5   :  { %v4054_v48 = vadd.f32 %v7139_v13, %v4053_v12 }
0x22e6   :  { %v4028_v52 = vsel %vm4027_vm7, %v7137_v28, %v4024_v31 }
0x22e7   :  { %v4033_v45 = vsel %vm4030_vm8, %v4032_v10, %v4028_v52  ;;  %v4058_v51 = vsel %vm4057_vm11, %v7139_v13, %v4054_v48 }
0x22e8   :  { %v4063_v36 = vsel %vm4060_vm12, %v4062_v63, %v4058_v51  ;;  %v4082_v57 = vmul.f32 %v4033_v45, %v8477_v27  ;;  %v6450_v27 = vmul.f32 -1.442695, %v8504_v11  ;;  %v3238_v63 = vpop.f32.mrf.mxu0 }
0x22e9   :  { %v4083_v3 = vmul.f32 %v4063_v36, %v8482_v61 }
0x233e   :  { %v4087_v9 = vpop.permute.xlu0 %4086 }
0x233f   :  { %v4092_v43 = vmul.f32 %v4087_v9, %v4033_v45 }
0x2341   :  { %4096 = vrot.lane.b32.xlu2 %v4092_v43, %s7550_s2 }
0x2346   :  { %v4089_v15 = vpop.permute.xlu1 %4088 }
0x2347   :  { %v4093_v42 = vmul.f32 %v4089_v15, %v4063_v36  ;;  %v3287_v15 = vpop.f32.mrf.mxu1  ;;  %v3239_v36 = vadd.f32 %v3238_v63, %v8286_v18 }
0x2349   :  { %4098 = vrot.lane.b32.xlu0 %v4093_v42, %s7550_s2 }
0x239b   :  { %v4097_v20 = vpop.permute.xlu2 %4096 }
0x239c   :  { %v8515_v23 = vadd.f32 %v4097_v20, %v4082_v57  ;;  %v3289_v57 = vpop.f32.mrf.mxu1 }
0x239e   :  { %7140 = vtanh.f32 %v8515_v23 }
0x23a4   :  { %v7141_v0 = vpop.eup %7140 }
0x23a5   :  { %4108 = vrot.lane.b32.xlu1 %v7141_v0, %s7550_s2 }
0x23bb   :  { %v4099_v5 = vpop.permute.xlu0 %4098 }
0x23bc   :  { %v8520_v37 = vadd.f32 %v4099_v5, %v4083_v3 }
0x23be   :  { %7142 = vtanh.f32 %v8520_v37 }
0x23bf   :  { %7144 = vpow2.f32 %v6450_v27 }
0x23c0   :  { %7146 = vpow2.f32 %v6452_v34 }
0x23c4   :  { %v7143_v58 = vpop.eup %7142 }
0x23c5   :  { %4110 = vrot.lane.b32.xlu2 %v7143_v58, %s7550_s2  ;;  %v7145_v53 = vpop.eup %7144 }
0x23c6   :  { %v4017_v46 = vadd.f32 1.0, %v7145_v53  ;;  %v7147_v24 = vpop.eup %7146 }
0x23c7   :  { %v4019_v62 = vadd.f32 1.0, %v7147_v24 }
0x23c8   :  { %7148 = vrcp.f32 %v4017_v46  ;;  %v4046_v11 = vand.u32 2147483648, %v4017_v46  ;;  %vm4040_vm14 = vweird.f32 %v4017_v46  ;;  %v4044_v1 = vand.u32 2147483647, %v4017_v46 }
0x23c9   :  { %7150 = vrcp.f32 %v4019_v62  ;;  %v4076_v10 = vand.u32 2147483648, %v4019_v62  ;;  %vm4070_vm3 = vweird.f32 %v4019_v62  ;;  %v4074_v9 = vand.u32 2147483647, %v4019_v62 }
0x23ca   :  { %v4047_v21 = vor.u32 1.1754944e-38, %v4046_v11  ;;  %vm4045_vm1 = vcmp.eq.f32.partialorder %v4044_v1, 8.507059e+37 }
0x23cb   :  { %v4077_v43 = vor.u32 1.1754944e-38, %v4076_v10  ;;  %vm4075_vm5 = vcmp.eq.f32.partialorder %v4074_v9, 8.507059e+37 }
0x23ce   :  { %v7149_v61 = vpop.eup %7148 }
0x23cf   :  { %v4036_v19 = vmul.f32 %v7149_v61, %v4017_v46  ;;  %v7151_v28 = vpop.eup %7150  ;;  %vm4041_vm13 = vweird.f32 %v7149_v61 }
0x23d0   :  { %v4066_v22 = vmul.f32 %v7151_v28, %v4019_v62  ;;  %vm4042_vm15 = vmor %vm4040_vm14, %vm4041_vm13  ;;  %vm4071_vm2 = vweird.f32 %v7151_v28 }
0x23d1   :  { %v4037_v50 = vsub.f32 1.0, %v4036_v19  ;;  %vm4072_vm4 = vmor %vm4070_vm3, %vm4071_vm2 }
0x23d2   :  { %v4067_v8 = vsub.f32 1.0, %v4066_v22 }
0x23d3   :  { %v4038_v17 = vmul.f32 %v7149_v61, %v4037_v50 }
0x23d4   :  { %v4068_v31 = vmul.f32 %v7151_v28, %v4067_v8 }
0x23d5   :  { %v4039_v13 = vadd.f32 %v7149_v61, %v4038_v17 }
0x23d6   :  { %v4069_v12 = vadd.f32 %v7151_v28, %v4068_v31 }
0x23d7   :  { %v4043_v30 = vsel %vm4042_vm15, %v7149_v61, %v4039_v13 }
0x23d8   :  { %v4048_v25 = vsel %vm4045_vm1, %v4047_v21, %v4043_v30  ;;  %v4073_v45 = vsel %vm4072_vm4, %v7151_v28, %v4069_v12 }
0x23d9   :  { %v4078_v48 = vsel %vm4075_vm5, %v4077_v43, %v4073_v45 }
0x2417   :  { %v4109_v29 = vpop.permute.xlu1 %4108 }
0x2418   :  { %v4114_v52 = vmul.f32 %v4109_v29, %v4048_v25 }
0x241a   :  { %4116 = vst.msk [vmem:[#allocation2 + $0x40] sm:$0xff] %vm175_vm0, %v4114_v52 }
0x241f   :  { %v4111_v35 = vpop.permute.xlu2 %4110 }
0x2420   :  { %v4115_v7 = vmul.f32 %v4111_v35, %v4078_v48 }
0x2422   :  { %4117 = vst.msk [vmem:[#allocation2 + $0x48] sm:$0xff] %vm175_vm0, %v4115_v7  ;;  %v4118_v51 = vpack.c.bf16 %v4115_v7, %v4114_v52 }
0x2424   :  { %6453 = vmatmul.msk.bf16.vlgmr.msra.gmra.mxu2 %vm175_vm0, %v4118_v51  ;;  %6454 = vmatmul.msk.bf16.vlgmr.msra.gmra.mxu3 %vm175_vm0, %v4118_v51 }
0x2425   :  { %4438 = vmatpush.bf16.msra.mxu2 %v8331_v59  ;;  %4452 = vmatpush.bf16.msra.mxu3 %v8319_v49  ;;  %v3288_v59 = vadd.f32 %v3287_v15, %v8288_v41  ;;  %v3240_v49 = vpop.f32.mrf.mxu0 }
0x2427   :  { %v3312_v42 = vpack.c.bf16 %v3288_v59, %v3239_v36 }
0x2429   :  { %4439 = vmatpush.bf16.msra.mxu2 %v8353_v6  ;;  %4453 = vmatpush.bf16.msra.mxu3 %v8325_v16  ;;  %v3241_v6 = vadd.f32 %v3240_v49, %v8286_v18  ;;  %v3290_v16 = vadd.f32 %v3289_v57, %v8288_v41  ;;  %v4152_v34 = vunpack.c.l.bf16 %v3312_v42 }
0x242d   :  { %4440 = vmatpush.bf16.msra.mxu2 %v8356_v40  ;;  %4454 = vmatpush.bf16.msra.mxu3 %v8329_v39  ;;  %v4153_v40 = vunpack.c.h.bf16 %v3312_v42 }
0x2431   :  { %4441 = vmatpush.bf16.msra.mxu2 %v8359_v2  ;;  %4455 = vmatpush.bf16.msra.mxu3 %v8334_v4  ;;  %v3313_v2 = vpack.c.bf16 %v3290_v16, %v3241_v6 }
0x2433   :  { %v4155_v4 = vunpack.c.h.bf16 %v3313_v2  ;;  %v4154_v62 = vunpack.c.l.bf16 %v3313_v2 }
0x24a7   :  { %v4145_v20 = vpop.f32.mrf.mxu3  ;;  %v4131_v27 = vpop.f32.mrf.mxu2 }
0x24a8   :  { %v8542_v39 = vadd.f32 %v4153_v40, %v4145_v20  ;;  %v4156_v53 = vadd.f32 %v4152_v34, %v4131_v27 }
0x24aa   :  { %7152 = vtanh.f32 %v8542_v39  ;;  %v6455_v46 = vmul.f32 -1.442695, %v4156_v53 }
0x24af   :  { %v4147_v0 = vpop.f32.mrf.mxu3  ;;  %v4133_v24 = vpop.f32.mrf.mxu2 }
0x24b0   :  { %v7153_v3 = vpop.eup %7152  ;;  %v8545_v5 = vadd.f32 %v4155_v4, %v4147_v0  ;;  %v4158_v61 = vadd.f32 %v4154_v62, %v4133_v24 }
0x24b1   :  { %4242 = vrot.lane.b32.xlu0 %v7153_v3, %s7550_s2 }
0x24b2   :  { %7154 = vtanh.f32 %v8545_v5  ;;  %v6457_v19 = vmul.f32 -1.442695, %v4158_v61  ;;  %v6458_v0 = vmul.f32 -1.442695, %v8545_v5 }
0x24b3   :  { %7156 = vpow2.f32 %v6455_v46 }
0x24b4   :  { %7158 = vpow2.f32 %v6457_v19 }
0x24b8   :  { %v7155_v58 = vpop.eup %7154 }
0x24b9   :  { %4244 = vrot.lane.b32.xlu1 %v7155_v58, %s7550_s2  ;;  %v7157_v50 = vpop.eup %7156 }
0x24ba   :  { %v4172_v28 = vadd.f32 1.0, %v7157_v50  ;;  %v7159_v17 = vpop.eup %7158 }
0x24bb   :  { %v4174_v22 = vadd.f32 1.0, %v7159_v17 }
0x24bc   :  { %7160 = vrcp.f32 %v4172_v28  ;;  %v4187_v29 = vand.u32 2147483648, %v4172_v28  ;;  %vm4181_vm7 = vweird.f32 %v4172_v28  ;;  %v4185_v52 = vand.u32 2147483647, %v4172_v28 }
0x24bd   :  { %7162 = vrcp.f32 %v4174_v22  ;;  %v4217_v7 = vand.u32 2147483648, %v4174_v22  ;;  %vm4211_vm11 = vweird.f32 %v4174_v22  ;;  %v4215_v51 = vand.u32 2147483647, %v4174_v22 }
0x24be   :  { %v4188_v9 = vor.u32 1.1754944e-38, %v4187_v29  ;;  %vm4186_vm9 = vcmp.eq.f32.partialorder %v4185_v52, 8.507059e+37 }
0x24bf   :  { %v4218_v15 = vor.u32 1.1754944e-38, %v4217_v7  ;;  %vm4216_vm13 = vcmp.eq.f32.partialorder %v4215_v51, 8.507059e+37 }
0x24c2   :  { %v7161_v13 = vpop.eup %7160 }
0x24c3   :  { %v4177_v8 = vmul.f32 %v7161_v13, %v4172_v28  ;;  %v7163_v1 = vpop.eup %7162  ;;  %vm4182_vm6 = vweird.f32 %v7161_v13 }
0x24c4   :  { %v4207_v31 = vmul.f32 %v7163_v1, %v4174_v22  ;;  %vm4183_vm8 = vmor %vm4181_vm7, %vm4182_vm6  ;;  %vm4212_vm10 = vweird.f32 %v7163_v1 }
0x24c5   :  { %v4178_v11 = vsub.f32 1.0, %v4177_v8  ;;  %vm4213_vm12 = vmor %vm4211_vm11, %vm4212_vm10 }
0x24c6   :  { %v4208_v25 = vsub.f32 1.0, %v4207_v31 }
0x24c7   :  { %v4179_v30 = vmul.f32 %v7161_v13, %v4178_v11 }
0x24c8   :  { %v4209_v10 = vmul.f32 %v7163_v1, %v4208_v25 }
0x24c9   :  { %v4180_v21 = vadd.f32 %v7161_v13, %v4179_v30 }
0x24ca   :  { %v4210_v35 = vadd.f32 %v7163_v1, %v4209_v10 }
0x24cb   :  { %v4184_v12 = vsel %vm4183_vm8, %v7161_v13, %v4180_v21 }
0x24cc   :  { %v4189_v43 = vsel %vm4186_vm9, %v4188_v9, %v4184_v12  ;;  %v4214_v63 = vsel %vm4213_vm12, %v7163_v1, %v4210_v35  ;;  %v3243_v9 = vpop.f32.mrf.mxu0 }
0x24cd   :  { %v4219_v59 = vsel %vm4216_vm13, %v4218_v15, %v4214_v63  ;;  %v4238_v49 = vmul.f32 %v4189_v43, %v8515_v23  ;;  %v6456_v23 = vmul.f32 -1.442695, %v8542_v39 }
0x24ce   :  { %v4239_v40 = vmul.f32 %v4219_v59, %v8520_v37 }
0x24d4   :  { %v3245_v7 = vpop.f32.mrf.mxu0 }
0x24d5   :  { %v3246_v63 = vadd.f32 %v3245_v7, %v8286_v18 }
0x2523   :  { %v4243_v45 = vpop.permute.xlu0 %4242 }
0x2524   :  { %v4248_v48 = vmul.f32 %v4243_v45, %v4189_v43  ;;  %v3292_v45 = vpop.f32.mrf.mxu1  ;;  %v3244_v43 = vadd.f32 %v3243_v9, %v8286_v18  ;;  %v2970_v9 = vunpack.c.h.bf16 %v8380_v60 }
0x2526   :  { %4252 = vrot.lane.b32.xlu2 %v4248_v48, %s7550_s2  ;;  %v3293_v48 = vadd.f32 %v3292_v45, %v8288_v41 }
0x2528   :  { %v3314_v35 = vpack.c.bf16 %v3293_v48, %v3244_v43  ;;  %v8583_v48 = vadd.f32 %v2970_v9, %v8280_v14  ;;  %v1805_v14 = vadd.f32 %v8384_v47, %v7942_v44 }
0x252b   :  { %v4245_v36 = vpop.permute.xlu1 %4244 }
0x252c   :  { %v4249_v42 = vmul.f32 %v4245_v36, %v4219_v59  ;;  %v3294_v51 = vpop.f32.mrf.mxu1  ;;  %v4309_v36 = vunpack.c.h.bf16 %v3314_v35 }
0x252d   :  { %v3295_v15 = vadd.f32 %v3294_v51, %v8288_v41 }
0x252e   :  { %4254 = vrot.lane.b32.xlu0 %v4249_v42, %s7550_s2 }
0x2580   :  { %v4253_v57 = vpop.permute.xlu2 %4252 }
0x2581   :  { %v8553_v6 = vadd.f32 %v4253_v57, %v4238_v49  ;;  %v3315_v49 = vpack.c.bf16 %v3295_v15, %v3246_v63  ;;  %v2969_v15 = vunpack.c.l.bf16 %v8380_v60 }
0x2583   :  { %7164 = vtanh.f32 %v8553_v6  ;;  %v4311_v57 = vunpack.c.h.bf16 %v3315_v49 }
0x2589   :  { %v7165_v16 = vpop.eup %7164 }
0x258a   :  { %4264 = vrot.lane.b32.xlu1 %v7165_v16, %s7550_s2 }
0x25a0   :  { %v4255_v20 = vpop.permute.xlu0 %4254 }
0x25a1   :  { %v8558_v2 = vadd.f32 %v4255_v20, %v4239_v40 }
0x25a3   :  { %7166 = vtanh.f32 %v8558_v2 }
0x25a4   :  { %7168 = vpow2.f32 %v6456_v23 }
0x25a5   :  { %7170 = vpow2.f32 %v6458_v0  ;;  %v4308_v0 = vunpack.c.l.bf16 %v3314_v35 }
0x25a9   :  { %v7167_v4 = vpop.eup %7166 }
0x25aa   :  { %4266 = vrot.lane.b32.xlu2 %v7167_v4, %s7550_s2  ;;  %v7169_v3 = vpop.eup %7168 }
0x25ab   :  { %v4173_v58 = vadd.f32 1.0, %v7169_v3  ;;  %v7171_v27 = vpop.eup %7170 }
0x25ac   :  { %v4175_v34 = vadd.f32 1.0, %v7171_v27 }
0x25ad   :  { %7172 = vrcp.f32 %v4173_v58  ;;  %v4202_v39 = vand.u32 2147483648, %v4173_v58  ;;  %vm4196_vm15 = vweird.f32 %v4173_v58  ;;  %v4200_v28 = vand.u32 2147483647, %v4173_v58 }
0x25ae   :  { %7174 = vrcp.f32 %v4175_v34  ;;  %v4232_v30 = vand.u32 2147483648, %v4175_v34  ;;  %vm4226_vm4 = vweird.f32 %v4175_v34  ;;  %v4230_v31 = vand.u32 2147483647, %v4175_v34 }
0x25af   :  { %v4203_v22 = vor.u32 1.1754944e-38, %v4202_v39  ;;  %vm4201_vm2 = vcmp.eq.f32.partialorder %v4200_v28, 8.507059e+37 }
0x25b0   :  { %v4233_v25 = vor.u32 1.1754944e-38, %v4232_v30  ;;  %vm4231_vm6 = vcmp.eq.f32.partialorder %v4230_v31, 8.507059e+37 }
0x25b3   :  { %v7173_v37 = vpop.eup %7172 }
0x25b4   :  { %v4192_v53 = vmul.f32 %v7173_v37, %v4173_v58  ;;  %v7175_v24 = vpop.eup %7174  ;;  %vm4197_vm14 = vweird.f32 %v7173_v37 }
0x25b5   :  { %v4222_v61 = vmul.f32 %v7175_v24, %v4175_v34  ;;  %vm4198_vm1 = vmor %vm4196_vm15, %vm4197_vm14  ;;  %vm4227_vm3 = vweird.f32 %v7175_v24  ;;  %v4310_v34 = vunpack.c.l.bf16 %v3315_v49  ;;  %v1756_v49 = vadd.f32 %v8396_v54, %v7940_v38 }
0x25b6   :  { %v4193_v46 = vsub.f32 1.0, %v4192_v53  ;;  %vm4228_vm5 = vmor %vm4226_vm4, %vm4227_vm3 }
0x25b7   :  { %v4223_v50 = vsub.f32 1.0, %v4222_v61 }
0x25b8   :  { %v4194_v62 = vmul.f32 %v7173_v37, %v4193_v46 }
0x25b9   :  { %v4224_v17 = vmul.f32 %v7175_v24, %v4223_v50 }
0x25ba   :  { %v4195_v19 = vadd.f32 %v7173_v37, %v4194_v62 }
0x25bb   :  { %v4225_v1 = vadd.f32 %v7175_v24, %v4224_v17 }
0x25bc   :  { %v4199_v5 = vsel %vm4198_vm1, %v7173_v37, %v4195_v19 }
0x25bd   :  { %v4204_v13 = vsel %vm4201_vm2, %v4203_v22, %v4199_v5  ;;  %v4229_v21 = vsel %vm4228_vm5, %v7175_v24, %v4225_v1 }
0x25be   :  { %v4234_v29 = vsel %vm4231_vm6, %v4233_v25, %v4229_v21 }
0x25fc   :  { %v4265_v8 = vpop.permute.xlu1 %4264 }
0x25fd   :  { %v4270_v11 = vmul.f32 %v4265_v8, %v4204_v13 }
0x25ff   :  { %4272 = vst.msk [vmem:[#allocation2 + $0x50] sm:$0xff] %vm175_vm0, %v4270_v11 }
0x2604   :  { %v4267_v52 = vpop.permute.xlu2 %4266 }
0x2605   :  { %v4271_v12 = vmul.f32 %v4267_v52, %v4234_v29 }
0x2607   :  { %4273 = vst.msk [vmem:[#allocation2 + $0x58] sm:$0xff] %vm175_vm0, %v4271_v12  ;;  %v4274_v10 = vpack.c.bf16 %v4271_v12, %v4270_v11 }
0x2609   :  { %6459 = vmatmul.msk.bf16.vlgmr.msrb.gmra.mxu2 %vm175_vm0, %v4274_v10  ;;  %6460 = vmatmul.msk.bf16.vlgmr.msrb.gmra.mxu3 %vm175_vm0, %v4274_v10 }
0x268c   :  { %v4301_v59 = vpop.f32.mrf.mxu3  ;;  %v4287_v23 = vpop.f32.mrf.mxu2 }
0x268d   :  { %v8572_v42 = vadd.f32 %v4309_v36, %v4301_v59  ;;  %v4312_v3 = vadd.f32 %v4308_v0, %v4287_v23  ;;  %v2973_v36 = vadd.f32 %v2969_v15, %v8278_v26 }
0x268f   :  { %7176 = vtanh.f32 %v8572_v42  ;;  %v6461_v58 = vmul.f32 -1.442695, %v4312_v3  ;;  %v6341_v59 = vmul.f32 -1.442695, %v2973_v36 }
0x2694   :  { %v4303_v16 = vpop.f32.mrf.mxu3  ;;  %v4289_v27 = vpop.f32.mrf.mxu2 }
0x2695   :  { %v7177_v40 = vpop.eup %7176  ;;  %v8575_v20 = vadd.f32 %v4311_v57, %v4303_v16  ;;  %v4314_v37 = vadd.f32 %v4310_v34, %v4289_v27  ;;  %v8594_v57 = vpack.c.bf16 %v1805_v14, %v1756_v49  ;;  %v6473_v49 = vld [vmem:[#allocation7 + $0xc0] sm:$0xf]  ;;  %v6646_v14 = vld [vmem:[#allocation7 + $0xc4] sm:$0xf0] }
0x2696   :  { %4398 = vrot.lane.b32.xlu0 %v7177_v40, %s7550_s2 }
0x2697   :  { %7178 = vtanh.f32 %v8575_v20  ;;  %v6463_v53 = vmul.f32 -1.442695, %v4314_v37  ;;  %v2972_v23 = vunpack.c.h.bf16 %v8594_v57 }
0x2698   :  { %7180 = vpow2.f32 %v6461_v58 }
0x2699   :  { %7182 = vpow2.f32 %v6463_v53  ;;  %v8602_v60 = vadd.f32 %v2972_v23, %v8284_v33  ;;  %v6474_v23 = vor.u32 %v6646_v14, %v6473_v49 }
0x269d   :  { %v7179_v4 = vpop.eup %7178 }
0x269e   :  { %4400 = vrot.lane.b32.xlu1 %v7179_v4, %s7550_s2  ;;  %v7181_v46 = vpop.eup %7180 }
0x269f   :  { %v4328_v24 = vadd.f32 1.0, %v7181_v46  ;;  %v7183_v62 = vpop.eup %7182 }
0x26a0   :  { %v4330_v61 = vadd.f32 1.0, %v7183_v62 }
0x26a1   :  { %7184 = vrcp.f32 %v4328_v24  ;;  %v4343_v8 = vand.u32 2147483648, %v4328_v24  ;;  %vm4337_vm8 = vweird.f32 %v4328_v24  ;;  %v4341_v11 = vand.u32 2147483647, %v4328_v24 }
0x26a2   :  { %7186 = vrcp.f32 %v4330_v61  ;;  %v4373_v12 = vand.u32 2147483648, %v4330_v61  ;;  %vm4367_vm12 = vweird.f32 %v4330_v61  ;;  %v4371_v10 = vand.u32 2147483647, %v4330_v61 }
0x26a3   :  { %v4344_v31 = vor.u32 1.1754944e-38, %v4343_v8  ;;  %vm4342_vm10 = vcmp.eq.f32.partialorder %v4341_v11, 8.507059e+37  ;;  %7188 = vtanh.f32 %v8583_v48  ;;  %v6497_v11 = vld [vmem:[#allocation7 + $0xf0] sm:$0xf] }
0x26a4   :  { %v4374_v43 = vor.u32 1.1754944e-38, %v4373_v12  ;;  %vm4372_vm14 = vcmp.eq.f32.partialorder %v4371_v10, 8.507059e+37  ;;  %7190 = vpow2.f32 %v6341_v59 }
0x26a7   :  { %v7185_v19 = vpop.eup %7184 }
0x26a8   :  { %v4333_v50 = vmul.f32 %v7185_v19, %v4328_v24  ;;  %v7187_v28 = vpop.eup %7186  ;;  %vm4338_vm7 = vweird.f32 %v7185_v19 }
0x26a9   :  { %v4363_v17 = vmul.f32 %v7187_v28, %v4330_v61  ;;  %vm4339_vm9 = vmor %vm4337_vm8, %vm4338_vm7  ;;  %vm4368_vm11 = vweird.f32 %v7187_v28  ;;  %v7189_v63 = vpop.eup %7188 }
0x26aa   :  { %v4334_v39 = vsub.f32 1.0, %v4333_v50  ;;  %vm4369_vm13 = vmor %vm4367_vm12, %vm4368_vm11  ;;  %v7191_v26 = vpop.eup %7190  ;;  %v6462_v50 = vmul.f32 -1.442695, %v8572_v42  ;;  %v6489_v42 = vld [vmem:[#allocation7 + $0xe0] sm:$0xf] }
0x26ab   :  { %v4364_v13 = vsub.f32 1.0, %v4363_v17  ;;  %v2989_v38 = vadd.f32 1.0, %v7191_v26 }
0x26ac   :  { %v4335_v5 = vmul.f32 %v7185_v19, %v4334_v39  ;;  %v6464_v39 = vmul.f32 -1.442695, %v8575_v20  ;;  %v6649_v20 = vld [vmem:[#allocation7 + $0xe4] sm:$0xf] }
0x26ad   :  { %v4365_v30 = vmul.f32 %v7187_v28, %v4364_v13  ;;  %v3004_v37 = vand.u32 2147483648, %v2989_v38  ;;  %vm2998_vm1 = vweird.f32 %v2989_v38  ;;  %v3002_v53 = vand.u32 2147483647, %v2989_v38 }
0x26ae   :  { %v4336_v22 = vadd.f32 %v7185_v19, %v4335_v5 }
0x26af   :  { %v4366_v52 = vadd.f32 %v7187_v28, %v4365_v30  ;;  %v3005_v24 = vor.u32 1.1754944e-38, %v3004_v37  ;;  %vm3003_vm3 = vcmp.eq.f32.partialorder %v3002_v53, 8.507059e+37  ;;  %v6651_v30 = vld [vmem:[#allocation7 + $0xf4] sm:$0xf] }
0x26b0   :  { %v4340_v1 = vsel %vm4339_vm9, %v7185_v19, %v4336_v22 }
0x26b1   :  { %v4345_v25 = vsel %vm4342_vm10, %v4344_v31, %v4340_v1  ;;  %v4370_v45 = vsel %vm4369_vm13, %v7187_v28, %v4366_v52  ;;  %v6652_v1 = vld [vmem:[#allocation7 + $0xf4] sm:$0xf0]  ;;  %v6491_v52 = vld [vmem:[#allocation7 + $0xe8] sm:$0xf0] }
0x26b2   :  { %v4375_v7 = vsel %vm4372_vm14, %v4374_v43, %v4370_v45  ;;  %v4394_v16 = vmul.f32 %v4345_v25, %v8553_v6  ;;  %v6498_v31 = vor.u32 %v6652_v1, %v6497_v11  ;;  %v6494_v9 = vor.u32 %v6649_v20, %v6491_v52  ;;  %v6481_v45 = vld [vmem:[#allocation7 + $0xd0] sm:$0xf]  ;;  %v6648_v43 = vld [vmem:[#allocation7 + $0xd4] sm:$0xf0]  ;;  %v4611_v11 = vld [vmem:[#allocation2 + $0x28] sm:$0xff] }
0x26b3   :  { %v4395_v58 = vmul.f32 %v4375_v7, %v8558_v2  ;;  %v4610_v1 = vld [vmem:[#allocation2 + $0x20] sm:$0xff]  ;;  %v4617_v52 = vld [vmem:[#allocation2 + $0x58] sm:$0xff] }
0x26b4   :  { %4703 = vmatpush.bf16.msrb.mxu2 %v6498_v31  ;;  %v4613_v31 = vld [vmem:[#allocation2 + $0x38] sm:$0xff] }
0x2708   :  { %v4399_v21 = vpop.permute.xlu0 %4398 }
0x2709   :  { %v4404_v29 = vmul.f32 %v4399_v21, %v4345_v25  ;;  %v6499_v21 = vld [vmem:[#allocation7 + $0xf8] sm:$0xf0]  ;;  %v6650_v25 = vld [vmem:[#allocation7 + $0xe4] sm:$0xf0] }
0x270a   :  { %v6490_v12 = vor.u32 %v6650_v25, %v6489_v42  ;;  %v4615_v25 = vld [vmem:[#allocation2 + $0x48] sm:$0xff] }
0x270b   :  { %4408 = vrot.lane.b32.xlu2 %v4404_v29, %s7550_s2  ;;  %v6502_v29 = vor.u32 %v6651_v30, %v6499_v21  ;;  %v4624_v30 = vpack.c.bf16 %v4611_v11, %v4610_v1  ;;  %v4612_v21 = vld [vmem:[#allocation2 + $0x30] sm:$0xff] }
0x270c   :  { %4704 = vmatpush.bf16.msrb.mxu2 %v6490_v12  ;;  %v4625_v42 = vpack.c.bf16 %v4613_v31, %v4612_v21  ;;  %v4616_v12 = vld [vmem:[#allocation2 + $0x50] sm:$0xff] }
0x270d   :  { %4752 = vmatpush.bf16.msrb.mxu3 %v6502_v29  ;;  %v4614_v29 = vld [vmem:[#allocation2 + $0x40] sm:$0xff] }
0x270e   :  { %v4626_v20 = vpack.c.bf16 %v4615_v25, %v4614_v29 }
0x2710   :  { %v4401_v35 = vpop.permute.xlu1 %4400 }
0x2711   :  { %v4405_v51 = vmul.f32 %v4401_v35, %v4375_v7  ;;  %v6647_v7 = vld [vmem:[#allocation7 + $0xd4] sm:$0xf]  ;;  %4753 = vmatpush.bf16.msrb.mxu3 %v6494_v9 }
0x2713   :  { %4410 = vrot.lane.b32.xlu0 %v4405_v51, %s7550_s2  ;;  %v6483_v51 = vld [vmem:[#allocation7 + $0xd8] sm:$0xf0] }
0x2714   :  { %v6486_v59 = vor.u32 %v6647_v7, %v6483_v51 }
0x2716   :  { %4754 = vmatpush.bf16.msrb.mxu3 %v6486_v59 }
0x271b   :  { %3059 = vrot.lane.b32.xlu0 %v7189_v63, %s7550_s2  ;;  %v6482_v63 = vor.u32 %v6648_v43, %v6481_v45 }
0x271d   :  { %4705 = vmatpush.bf16.msrb.mxu2 %v6482_v63 }
0x2721   :  { %4706 = vmatpush.bf16.msrb.mxu2 %v6474_v23 }
0x2765   :  { %v4409_v40 = vpop.permute.xlu2 %4408 }
0x2766   :  { %v8597_v4 = vadd.f32 %v4409_v40, %v4394_v16  ;;  %v6645_v16 = vld [vmem:[#allocation7 + $0xc4] sm:$0xf]  ;;  %v6475_v40 = vld [vmem:[#allocation7 + $0xc8] sm:$0xf0] }
0x2768   :  { %7192 = vtanh.f32 %v8597_v4 }
0x2769   :  { %7194 = vtanh.f32 %v8602_v60 }
0x276a   :  { %7196 = vrcp.f32 %v2989_v38 }
0x276e   :  { %v7193_v54 = vpop.eup %7192 }
0x276f   :  { %4420 = vrot.lane.b32.xlu1 %v7193_v54, %s7550_s2  ;;  %v7195_v44 = vpop.eup %7194  ;;  %v6478_v54 = vor.u32 %v6645_v16, %v6475_v40  ;;  %v4605_v16 = vld [vmem:[#allocation10 + $0x6] sm:$0x3] }
0x2770   :  { %v7197_v47 = vpop.eup %7196  ;;  %v8653_v23 = vperm.slane %v4605_v16, 0 }
0x2771   :  { %v2994_v6 = vmul.f32 %v7197_v47, %v2989_v38  ;;  %vm2999_vm15 = vweird.f32 %v7197_v47  ;;  %4755 = vmatpush.bf16.msrb.mxu3 %v6478_v54 }
0x2772   :  { %vm3000_vm2 = vmor %vm2998_vm1, %vm2999_vm15 }
0x2773   :  { %v2995_v0 = vsub.f32 1.0, %v2994_v6 }
0x2775   :  { %v2996_v3 = vmul.f32 %v7197_v47, %v2995_v0 }
0x2777   :  { %3061 = vrot.lane.b32.xlu1 %v7195_v44, %s7550_s2  ;;  %v2997_v33 = vadd.f32 %v7197_v47, %v2996_v3 }
0x2779   :  { %v3001_v46 = vsel %vm3000_vm2, %v7197_v47, %v2997_v33 }
0x277a   :  { %v8611_v62 = vsel %vm3003_vm3, %v3005_v24, %v3001_v46 }
0x2785   :  { %v4411_v27 = vpop.permute.xlu0 %4410 }
0x2786   :  { %v8608_v34 = vadd.f32 %v4411_v27, %v4395_v58 }
0x2788   :  { %7198 = vtanh.f32 %v8608_v34 }
0x2789   :  { %7200 = vpow2.f32 %v6462_v50 }
0x278a   :  { %7202 = vpow2.f32 %v6464_v39 }
0x278d   :  { %v3060_v61 = vpop.permute.xlu0 %3059 }
0x278e   :  { %v7199_v19 = vpop.eup %7198  ;;  %v3065_v2 = vmul.f32 %v3060_v61, %v8611_v62 }
0x278f   :  { %4422 = vrot.lane.b32.xlu2 %v7199_v19, %s7550_s2  ;;  %v7201_v28 = vpop.eup %7200 }
0x2790   :  { %3069 = vrot.lane.b32.xlu1 %v3065_v2, %s7550_s2  ;;  %v4329_v5 = vadd.f32 1.0, %v7201_v28  ;;  %v7203_v17 = vpop.eup %7202  ;;  %v4607_v28 = vld [vmem:[#allocation2 + $0x8] sm:$0xff] }
0x2791   :  { %v8618_v22 = vadd.f32 1.0, %v7203_v17 }
0x2792   :  { %7204 = vrcp.f32 %v4329_v5  ;;  %v4358_v44 = vand.u32 2147483648, %v4329_v5  ;;  %vm4352_vm5 = vweird.f32 %v4329_v5  ;;  %v4356_v47 = vand.u32 2147483647, %v4329_v5 }
0x2793   :  { %7206 = vrcp.f32 %v8618_v22  ;;  %v4388_v53 = vand.u32 2147483648, %v8618_v22  ;;  %vm4382_vm9 = vweird.f32 %v8618_v22  ;;  %v4386_v46 = vand.u32 2147483647, %v8618_v22 }
0x2794   :  { %v4359_v3 = vor.u32 1.1754944e-38, %v4358_v44  ;;  %vm4357_vm7 = vcmp.eq.f32.partialorder %v4356_v47, 8.507059e+37 }
0x2795   :  { %v4389_v61 = vor.u32 1.1754944e-38, %v4388_v53  ;;  %vm4387_vm11 = vcmp.eq.f32.partialorder %v4386_v46, 8.507059e+37 }
0x2798   :  { %v7205_v13 = vpop.eup %7204 }
0x2799   :  { %v4348_v8 = vmul.f32 %v7205_v13, %v4329_v5  ;;  %v7207_v35 = vpop.eup %7206  ;;  %vm4353_vm4 = vweird.f32 %v7205_v13  ;;  %v4606_v5 = vld [vmem:[#allocation2] sm:$0xff] }
0x279a   :  { %v4378_v36 = vmul.f32 %v7207_v35, %v8618_v22  ;;  %vm4354_vm6 = vmor %vm4352_vm5, %vm4353_vm4  ;;  %vm4383_vm8 = vweird.f32 %v7207_v35  ;;  %v4622_v17 = vpack.c.bf16 %v4607_v28, %v4606_v5  ;;  %v4609_v22 = vld [vmem:[#allocation2 + $0x18] sm:$0xff] }
0x279b   :  { %v4349_v10 = vsub.f32 1.0, %v4348_v8  ;;  %vm4384_vm10 = vmor %vm4382_vm9, %vm4383_vm8 }
0x279c   :  { %v4379_v38 = vsub.f32 1.0, %v4378_v36 }
0x279d   :  { %v4350_v15 = vmul.f32 %v7205_v13, %v4349_v10  ;;  %v4627_v10 = vpack.c.bf16 %v4617_v52, %v4616_v12 }
0x279e   :  { %v4380_v0 = vmul.f32 %v7207_v35, %v4379_v38 }
0x279f   :  { %v4351_v26 = vadd.f32 %v7205_v13, %v4350_v15 }
0x27a0   :  { %v4381_v37 = vadd.f32 %v7207_v35, %v4380_v0 }
0x27a1   :  { %v4355_v6 = vsel %vm4354_vm6, %v7205_v13, %v4351_v26  ;;  %v4608_v13 = vld [vmem:[#allocation2 + $0x10] sm:$0xff] }
0x27a2   :  { %v4360_v58 = vsel %vm4357_vm7, %v4359_v3, %v4355_v6  ;;  %v4385_v24 = vsel %vm4384_vm10, %v7207_v35, %v4381_v37  ;;  %v4623_v8 = vpack.c.bf16 %v4609_v22, %v4608_v13  ;;  %v2971_v35 = vunpack.c.l.bf16 %v8594_v57 }
0x27a3   :  { %v4390_v19 = vsel %vm4387_vm11, %v4389_v61, %v4385_v24  ;;  %v8655_v57 = vperm.slane %v4605_v16, 1 }
0x27a4   :  { %v2975_v7 = vadd.f32 %v2971_v35, %v8282_v32 }
0x27a6   :  { %v6343_v51 = vmul.f32 -1.442695, %v2975_v7 }
0x27a8   :  { %7208 = vpow2.f32 %v6343_v51 }
0x27ae   :  { %v7209_v63 = vpop.eup %7208 }
0x27af   :  { %v2991_v59 = vadd.f32 1.0, %v7209_v63 }
0x27b1   :  { %7210 = vrcp.f32 %v2991_v59  ;;  %vm3028_vm13 = vweird.f32 %v2991_v59 }
0x27b7   :  { %v7211_v40 = vpop.eup %7210 }
0x27b8   :  { %v3024_v32 = vmul.f32 %v7211_v40, %v2991_v59  ;;  %vm3029_vm12 = vweird.f32 %v7211_v40 }
0x27b9   :  { %vm3030_vm14 = vmor %vm3028_vm13, %vm3029_vm12 }
0x27ba   :  { %v3025_v6 = vsub.f32 1.0, %v3024_v32 }
0x27e1   :  { %v4421_v27 = vpop.permute.xlu1 %4420 }
0x27e2   :  { %v4426_v33 = vmul.f32 %v4421_v27, %v4360_v58  ;;  %v3026_v58 = vmul.f32 %v7211_v40, %v3025_v6 }
0x27e4   :  { %4428 = vst.msk [vmem:[#allocation2 + $0x60] sm:$0xff] %vm175_vm0, %v4426_v33  ;;  %v3027_v24 = vadd.f32 %v7211_v40, %v3026_v58 }
0x27e9   :  { %v4423_v2 = vpop.permute.xlu2 %4422  ;;  %v3062_v3 = vpop.permute.xlu1 %3061 }
0x27ea   :  { %v4427_v50 = vmul.f32 %v4423_v2, %v4390_v19  ;;  %v3034_v19 = vand.u32 2147483648, %v2991_v59 }
0x27eb   :  { %v4618_v45 = vld [vmem:[#allocation2 + $0x60] sm:$0xff] }
0x27ec   :  { %4429 = vst.msk [vmem:[#allocation2 + $0x68] sm:$0xff] %vm175_vm0, %v4427_v50  ;;  %v4430_v39 = vpack.c.bf16 %v4427_v50, %v4426_v33  ;;  %v3032_v50 = vand.u32 2147483647, %v2991_v59  ;;  %v3035_v5 = vor.u32 1.1754944e-38, %v3034_v19 }
0x27ee   :  { %6465 = vmatmul.msk.bf16.vlgmr.msra.gmra.mxu2 %vm175_vm0, %v4430_v39  ;;  %6466 = vmatmul.msk.bf16.vlgmr.msra.gmra.mxu3 %vm175_vm0, %v4430_v39  ;;  %v3031_v39 = vsel %vm3030_vm14, %v7211_v40, %v3027_v24  ;;  %vm3033_vm15 = vcmp.eq.f32.partialorder %v3032_v50, 8.507059e+37 }
0x27ef   :  { %v3036_v22 = vsel %vm3033_vm15, %v3035_v5, %v3031_v39 }
0x27f3   :  { %v4619_v9 = vld [vmem:[#allocation2 + $0x68] sm:$0xff] }
0x27f4   :  { %v4628_v43 = vpack.c.bf16 %v4619_v9, %v4618_v45 }
0x27fe   :  { %6503 = vmatmul.msk.bf16.vlgmr.msrb.gmra.mxu2 %vm175_vm0, %v4622_v17  ;;  %6511 = vmatmul.msk.bf16.vlgmr.msrb.gmra.mxu3 %vm175_vm0, %v4622_v17  ;;  %v3055_v17 = vmul.f32 %v8611_v62, %v8230_v55  ;;  %v6342_v55 = vmul.f32 -1.442695, %v8583_v48 }
0x2802   :  { %v3070_v28 = vpop.permute.xlu1 %3069 }
0x2803   :  { %v3075_v13 = vadd.f32 %v3070_v28, %v3055_v17 }
0x280e   :  { %6504 = vmatmul.msk.bf16.gmra.mxu2 %vm175_vm0, %v4623_v8  ;;  %6512 = vmatmul.msk.bf16.gmra.mxu3 %vm175_vm0, %v4623_v8  ;;  %v3066_v8 = vmul.f32 %v3062_v3, %v3036_v22 }
0x281e   :  { %6505 = vmatmul.msk.bf16.gmra.mxu2 %vm175_vm0, %v4624_v30  ;;  %6513 = vmatmul.msk.bf16.gmra.mxu3 %vm175_vm0, %v4624_v30 }
0x282e   :  { %6506 = vmatmul.msk.bf16.gmra.mxu2 %vm175_vm0, %v4625_v42  ;;  %6514 = vmatmul.msk.bf16.gmra.mxu3 %vm175_vm0, %v4625_v42 }
0x283e   :  { %6507 = vmatmul.msk.bf16.gmra.mxu2 %vm175_vm0, %v4626_v20  ;;  %6515 = vmatmul.msk.bf16.gmra.mxu3 %vm175_vm0, %v4626_v20 }
0x284e   :  { %6508 = vmatmul.msk.bf16.gmra.mxu2 %vm175_vm0, %v4627_v10  ;;  %6516 = vmatmul.msk.bf16.gmra.mxu3 %vm175_vm0, %v4627_v10 }
0x285e   :  { %6509 = vmatmul.msk.bf16.gmra.mxu2 %vm175_vm0, %v4628_v43  ;;  %6517 = vmatmul.msk.bf16.gmra.mxu3 %vm175_vm0, %v4628_v43 }
0x2871   :  { %v8645_v15 = vpop.f32.mrf.mxu2  ;;  %v8647_v36 = vpop.f32.mrf.mxu3 }
0x2879   :  { %v8649_v49 = vpop.f32.mrf.mxu2  ;;  %v8651_v14 = vpop.f32.mrf.mxu3 }
0x2881   :  { %v4708_v26 = vpop.f32.mrf.mxu2  ;;  %v4757_v38 = vpop.f32.mrf.mxu3 }
0x2882   :  { %v4709_v54 = vadd.f32 %v4708_v26, %v8653_v23  ;;  %v4758_v44 = vadd.f32 %v4757_v38, %v8655_v57 }
0x2884   :  { %v8659_v47 = vpack.c.bf16 %v4758_v44, %v4709_v54  ;;  %v3056_v44 = vmul.f32 %v3036_v22, %v8241_v56 }
0x2886   :  { %v4832_v0 = vunpack.c.h.bf16 %v8659_v47  ;;  %v4831_v30 = vunpack.c.l.bf16 %v8659_v47 }
0x2888   :  { %7212 = vtanh.f32 %v4832_v0  ;;  %v6519_v31 = vmul.f32 -1.442695, %v4831_v30 }
0x2889   :  { %v4710_v27 = vpop.f32.mrf.mxu2  ;;  %v4759_v33 = vpop.f32.mrf.mxu3 }
0x288a   :  { %v4711_v37 = vadd.f32 %v4710_v27, %v8653_v23  ;;  %v4760_v53 = vadd.f32 %v4759_v33, %v8655_v57 }
0x288c   :  { %v8666_v46 = vpack.c.bf16 %v4760_v53, %v4711_v37 }
0x288e   :  { %v7213_v61 = vpop.eup %7212  ;;  %v4834_v2 = vunpack.c.h.bf16 %v8666_v46  ;;  %v4833_v20 = vunpack.c.l.bf16 %v8666_v46  ;;  %v6654_v46 = vld [vmem:[#allocation9 + $0xc4] sm:$0xf0] }
0x288f   :  { %4917 = vrot.lane.b32.xlu2 %v7213_v61, %s7550_s2 }
0x2890   :  { %7214 = vtanh.f32 %v4834_v2  ;;  %v6521_v10 = vmul.f32 -1.442695, %v4833_v20 }
0x2891   :  { %7216 = vtanh.f32 %v3075_v13 }
0x2892   :  { %7218 = vpow2.f32 %v6519_v31 }
0x2896   :  { %v7215_v11 = vpop.eup %7214 }
0x2897   :  { %4919 = vrot.lane.b32.xlu0 %v7215_v11, %s7550_s2  ;;  %3071 = vrot.lane.b32.xlu2 %v3066_v8, %s7550_s2  ;;  %v7217_v1 = vpop.eup %7216 }
0x2898   :  { %v7219_v21 = vpop.eup %7218 }
0x2899   :  { %v4847_v42 = vadd.f32 1.0, %v7219_v21  ;;  %v6344_v21 = vmul.f32 -1.442695, %v8602_v60 }
0x289b   :  { %7220 = vrcp.f32 %v4847_v42  ;;  %v4862_v35 = vand.u32 2147483648, %v4847_v42  ;;  %vm4856_vm2 = vweird.f32 %v4847_v42  ;;  %v4860_v7 = vand.u32 2147483647, %v4847_v42 }
0x289c   :  { %7222 = vpow2.f32 %v6342_v55  ;;  %v6551_v55 = vld [vmem:[#allocation9 + $0xf8] sm:$0xf0] }
0x289d   :  { %v4863_v59 = vor.u32 1.1754944e-38, %v4862_v35  ;;  %vm4861_vm4 = vcmp.eq.f32.partialorder %v4860_v7, 8.507059e+37  ;;  %v6543_v35 = vld [vmem:[#allocation9 + $0xe8] sm:$0xf0] }
0x289f   :  { %3081 = vrot.lane.b32.xlu2 %v7217_v1, %s7550_s2 }
0x28a1   :  { %v7221_v62 = vpop.eup %7220 }
0x28a2   :  { %v7223_v25 = vpop.eup %7222  ;;  %v4852_v29 = vmul.f32 %v7221_v62, %v4847_v42  ;;  %vm4857_vm1 = vweird.f32 %v7221_v62  ;;  %v6659_v42 = vld [vmem:[#allocation9 + $0xf4] sm:$0xf] }
0x28a3   :  { %v2990_v52 = vadd.f32 1.0, %v7223_v25  ;;  %vm4858_vm3 = vmor %vm4856_vm2, %vm4857_vm1 }
0x28a4   :  { %v4853_v12 = vsub.f32 1.0, %v4852_v29 }
0x28a5   :  { %7224 = vrcp.f32 %v2990_v52  ;;  %v3019_v33 = vand.u32 2147483648, %v2990_v52  ;;  %vm3013_vm6 = vweird.f32 %v2990_v52  ;;  %v3017_v37 = vand.u32 2147483647, %v2990_v52 }
0x28a6   :  { %v4854_v9 = vmul.f32 %v7221_v62, %v4853_v12  ;;  %7226 = vpow2.f32 %v6521_v10 }
0x28a7   :  { %v3020_v61 = vor.u32 1.1754944e-38, %v3019_v33  ;;  %vm3018_vm8 = vcmp.eq.f32.partialorder %v3017_v37, 8.507059e+37 }
0x28a8   :  { %v4855_v45 = vadd.f32 %v7221_v62, %v4854_v9 }
0x28aa   :  { %v4859_v51 = vsel %vm4858_vm3, %v7221_v62, %v4855_v45  ;;  %v8686_v62 = vor.u32 %v6659_v42, %v6551_v55 }
0x28ab   :  { %v7225_v43 = vpop.eup %7224  ;;  %v4864_v32 = vsel %vm4861_vm4, %v4863_v59, %v4859_v51 }
0x28ac   :  { %v7227_v48 = vpop.eup %7226  ;;  %v3009_v63 = vmul.f32 %v7225_v43, %v2990_v52  ;;  %vm3014_vm5 = vweird.f32 %v7225_v43  ;;  %5009 = vmatpush.bf16.msrb.mxu1 %v8686_v62  ;;  %v4913_v12 = vmul.f32 0.0, %v4864_v32 }
0x28ad   :  { %v4849_v16 = vadd.f32 1.0, %v7227_v48  ;;  %vm3015_vm7 = vmor %vm3013_vm6, %vm3014_vm5 }
0x28ae   :  { %v3010_v38 = vsub.f32 1.0, %v3009_v63 }
0x28af   :  { %7228 = vrcp.f32 %v4849_v16  ;;  %v4892_v22 = vand.u32 2147483648, %v4849_v16  ;;  %vm4886_vm10 = vweird.f32 %v4849_v16  ;;  %v4890_v13 = vand.u32 2147483647, %v4849_v16 }
0x28b0   :  { %v3011_v54 = vmul.f32 %v7225_v43, %v3010_v38  ;;  %v6660_v38 = vld [vmem:[#allocation9 + $0xf4] sm:$0xf0] }
0x28b1   :  { %v4893_v11 = vor.u32 1.1754944e-38, %v4892_v22  ;;  %vm4891_vm12 = vcmp.eq.f32.partialorder %v4890_v13, 8.507059e+37  ;;  %v6541_v22 = vld [vmem:[#allocation9 + $0xe0] sm:$0xf]  ;;  %v6658_v13 = vld [vmem:[#allocation9 + $0xe4] sm:$0xf0] }
0x28b2   :  { %v3012_v27 = vadd.f32 %v7225_v43, %v3011_v54  ;;  %v6653_v54 = vld [vmem:[#allocation9 + $0xc4] sm:$0xf] }
0x28b4   :  { %v3016_v24 = vsel %vm3015_vm7, %v7225_v43, %v3012_v27  ;;  %v6657_v43 = vld [vmem:[#allocation9 + $0xe4] sm:$0xf] }
0x28b5   :  { %v7229_v3 = vpop.eup %7228  ;;  %v3021_v19 = vsel %vm3018_vm8, %v3020_v61, %v3016_v24  ;;  %v8692_v60 = vor.u32 %v6657_v43, %v6543_v35 }
0x28b6   :  { %v4882_v53 = vmul.f32 %v7229_v3, %v4849_v16  ;;  %vm4887_vm9 = vweird.f32 %v7229_v3  ;;  %v6655_v16 = vld [vmem:[#allocation9 + $0xd4] sm:$0xf] }
0x28b7   :  { %vm4888_vm11 = vmor %vm4886_vm10, %vm4887_vm9  ;;  %5010 = vmatpush.bf16.msrb.mxu1 %v8692_v60 }
0x28b8   :  { %v4883_v39 = vsub.f32 1.0, %v4882_v53 }
0x28ba   :  { %v4884_v56 = vmul.f32 %v7229_v3, %v4883_v39 }
0x28bc   :  { %v4885_v17 = vadd.f32 %v7229_v3, %v4884_v56  ;;  %v6520_v56 = vmul.f32 -1.442695, %v4832_v0  ;;  %v6525_v0 = vld [vmem:[#allocation9 + $0xc0] sm:$0xf] }
0x28be   :  { %v4889_v8 = vsel %vm4888_vm11, %v7229_v3, %v4885_v17  ;;  %v6522_v17 = vmul.f32 -1.442695, %v4834_v2  ;;  %v8726_v2 = vor.u32 %v6654_v46, %v6525_v0 }
0x28bf   :  { %v4894_v30 = vsel %vm4891_vm12, %v4893_v11, %v4889_v8  ;;  %v6533_v8 = vld [vmem:[#allocation9 + $0xd0] sm:$0xf]  ;;  %v8720_v11 = vor.u32 %v6658_v13, %v6541_v22 }
0x28e9   :  { %v4918_v40 = vpop.permute.xlu2 %4917 }
0x28ea   :  { %v4923_v26 = vmul.f32 %v4918_v40, %v4864_v32  ;;  %v6535_v40 = vld [vmem:[#allocation9 + $0xd8] sm:$0xf0]  ;;  %v6549_v32 = vld [vmem:[#allocation9 + $0xf0] sm:$0xf] }
0x28ec   :  { %4927 = vrot.lane.b32.xlu0 %v4923_v26, %s7550_s2  ;;  %v8696_v26 = vor.u32 %v6655_v16, %v6535_v40 }
0x28ee   :  { %5011 = vmatpush.bf16.msrb.mxu1 %v8696_v26 }
0x28f1   :  { %v3072_v6 = vpop.permute.xlu2 %3071 }
0x28f2   :  { %v3076_v58 = vadd.f32 %v3072_v6, %v3056_v44  ;;  %v6527_v44 = vld [vmem:[#allocation9 + $0xc8] sm:$0xf0]  ;;  %v8698_v6 = vor.u32 %v6660_v38, %v6549_v32 }
0x28f4   :  { %7230 = vtanh.f32 %v3076_v58  ;;  %v8701_v58 = vor.u32 %v6653_v54, %v6527_v44  ;;  %4995 = vmatpush.bf16.msrb.mxu0 %v8698_v6 }
0x28f5   :  { %7232 = vpow2.f32 %v6344_v21 }
0x28f6   :  { %5012 = vmatpush.bf16.msrb.mxu1 %v8701_v58 }
0x28f8   :  { %4996 = vmatpush.bf16.msrb.mxu0 %v8720_v11 }
0x28f9   :  { %v3082_v50 = vpop.permute.xlu2 %3081 }
0x28fa   :  { %v7231_v28 = vpop.eup %7230  ;;  %v3087_v5 = vmul.f32 %v3082_v50, %v3021_v19  ;;  %5163 = vmatpush.bf16.msra.mxu1 %v8686_v62  ;;  %v4914_v50 = vmul.f32 0.0, %v4894_v30 }
0x28fb   :  { %3083 = vrot.lane.b32.xlu0 %v7231_v28, %s7550_s2  ;;  %v7233_v25 = vpop.eup %7232 }
0x28fc   :  { %3089 = vst.msk [vmem:[#allocation2 + $0x70] sm:$0xff] %vm175_vm0, %v3087_v5  ;;  %v2992_v29 = vadd.f32 1.0, %v7233_v25 }
0x28fe   :  { %7234 = vrcp.f32 %v2992_v29  ;;  %v3047_v51 = vand.u32 2147483647, %v2992_v29  ;;  %v3049_v63 = vand.u32 2147483648, %v2992_v29  ;;  %vm3043_vm14 = vweird.f32 %v2992_v29  ;;  %5164 = vmatpush.bf16.msra.mxu1 %v8692_v60 }
0x2900   :  { %v3050_v27 = vor.u32 1.1754944e-38, %v3049_v63  ;;  %vm3048_vm1 = vcmp.eq.f32.partialorder %v3047_v51, 8.507059e+37 }
0x2902   :  { %5165 = vmatpush.bf16.msra.mxu1 %v8696_v26 }
0x2903   :  { %v3125_v24 = vld [vmem:[#allocation2 + $0x70] sm:$0xff] }
0x2904   :  { %v7235_v20 = vpop.eup %7234 }
0x2905   :  { %v3039_v52 = vmul.f32 %v7235_v20, %v2992_v29  ;;  %vm3044_vm13 = vweird.f32 %v7235_v20 }
0x2906   :  { %vm3045_vm15 = vmor %vm3043_vm14, %vm3044_vm13  ;;  %5166 = vmatpush.bf16.msra.mxu1 %v8701_v58 }
0x2907   :  { %v3040_v9 = vsub.f32 1.0, %v3039_v52 }
0x2909   :  { %v4920_v1 = vpop.permute.xlu0 %4919  ;;  %v3041_v7 = vmul.f32 %v7235_v20, %v3040_v9 }
0x290a   :  { %v4924_v31 = vmul.f32 %v4920_v1, %v4894_v30  ;;  %v6656_v1 = vld [vmem:[#allocation9 + $0xd4] sm:$0xf0] }
0x290b   :  { %v3042_v48 = vadd.f32 %v7235_v20, %v3041_v7  ;;  %v8723_v21 = vor.u32 %v6656_v1, %v6533_v8 }
0x290c   :  { %4929 = vrot.lane.b32.xlu1 %v4924_v31, %s7550_s2 }
0x290d   :  { %v3046_v3 = vsel %vm3045_vm15, %v7235_v20, %v3042_v48  ;;  %4997 = vmatpush.bf16.msrb.mxu0 %v8723_v21 }
0x290e   :  { %v3051_v33 = vsel %vm3048_vm1, %v3050_v27, %v3046_v3 }
0x2911   :  { %4998 = vmatpush.bf16.msrb.mxu0 %v8726_v2 }
0x2915   :  { %5149 = vmatpush.bf16.msra.mxu0 %v8698_v6 }
0x2919   :  { %5150 = vmatpush.bf16.msra.mxu0 %v8720_v11 }
0x291d   :  { %5151 = vmatpush.bf16.msra.mxu0 %v8723_v21 }
0x2921   :  { %5152 = vmatpush.bf16.msra.mxu0 %v8726_v2 }
0x295e   :  { %v4928_v10 = vpop.permute.xlu0 %4927 }
0x295f   :  { %v8689_v45 = vadd.f32 %v4928_v10, %v4913_v12 }
0x2961   :  { %7236 = vtanh.f32 %v8689_v45 }
0x2967   :  { %v7237_v59 = vpop.eup %7236 }
0x2968   :  { %4939 = vrot.lane.b32.xlu1 %v7237_v59, %s7550_s2 }
0x296d   :  { %v3084_v37 = vpop.permute.xlu0 %3083 }
0x296e   :  { %v3088_v53 = vmul.f32 %v3084_v37, %v3051_v33 }
0x2970   :  { %3090 = vst.msk [vmem:[#allocation2 + $0x78] sm:$0xff] %vm175_vm0, %v3088_v53 }
0x2977   :  { %v3126_v61 = vld [vmem:[#allocation2 + $0x78] sm:$0xff] }
0x2978   :  { %v3134_v19 = vpack.c.bf16 %v3126_v61, %v3125_v24 }
0x297a   :  { %6384 = vmatmul.msk.bf16.gmra.mxu0 %vm175_vm0, %v3134_v19  ;;  %6392 = vmatmul.msk.bf16.gmra.mxu1 %vm175_vm0, %v3134_v19 }
0x297e   :  { %v4930_v39 = vpop.permute.xlu1 %4929 }
0x297f   :  { %v8712_v28 = vadd.f32 %v4930_v39, %v4914_v50  ;;  %v4713_v39 = vpop.f32.mrf.mxu2 }
0x2981   :  { %7238 = vtanh.f32 %v8712_v28 }
0x2982   :  { %7240 = vpow2.f32 %v6520_v56  ;;  %v4714_v56 = vadd.f32 %v4713_v39, %v8653_v23 }
0x2983   :  { %7242 = vpow2.f32 %v6522_v17 }
0x2987   :  { %v7239_v5 = vpop.eup %7238  ;;  %v4715_v8 = vpop.f32.mrf.mxu2 }
0x2988   :  { %4941 = vrot.lane.b32.xlu2 %v7239_v5, %s7550_s2  ;;  %v7241_v30 = vpop.eup %7240  ;;  %v4762_v5 = vpop.f32.mrf.mxu3 }
0x2989   :  { %v7243_v31 = vpop.eup %7242  ;;  %v4848_v42 = vadd.f32 1.0, %v7241_v30  ;;  %v4763_v17 = vadd.f32 %v4762_v5, %v8655_v57  ;;  %v4716_v30 = vadd.f32 %v4715_v8, %v8653_v23 }
0x298a   :  { %v4850_v47 = vadd.f32 1.0, %v7243_v31 }
0x298b   :  { %7244 = vrcp.f32 %v4848_v42  ;;  %vm4871_vm4 = vweird.f32 %v4848_v42  ;;  %v4877_v7 = vand.u32 2147483648, %v4848_v42  ;;  %v4875_v51 = vand.u32 2147483647, %v4848_v42 }
0x298c   :  { %7246 = vrcp.f32 %v4850_v47  ;;  %v4907_v48 = vand.u32 2147483648, %v4850_v47  ;;  %vm4901_vm6 = vweird.f32 %v4850_v47  ;;  %v4905_v63 = vand.u32 2147483647, %v4850_v47 }
0x298d   :  { %v4878_v40 = vor.u32 1.1754944e-38, %v4877_v7  ;;  %vm4876_vm8 = vcmp.eq.f32.partialorder %v4875_v51, 8.507059e+37  ;;  %v4799_v13 = vpack.c.bf16 %v4763_v17, %v4714_v56 }
0x298e   :  { %v4908_v38 = vor.u32 1.1754944e-38, %v4907_v48  ;;  %vm4906_vm9 = vcmp.eq.f32.partialorder %v4905_v63, 8.507059e+37 }
0x2990   :  { %v4764_v1 = vpop.f32.mrf.mxu3 }
0x2991   :  { %v7245_v55 = vpop.eup %7244  ;;  %v4765_v31 = vadd.f32 %v4764_v1, %v8655_v57 }
0x2992   :  { %v7247_v25 = vpop.eup %7246  ;;  %v4867_v29 = vmul.f32 %v7245_v55, %v4848_v42  ;;  %vm4872_vm2 = vweird.f32 %v7245_v55  ;;  %v5022_v42 = vunpack.c.h.bf16 %v4799_v13 }
0x2993   :  { %v4897_v20 = vmul.f32 %v7247_v25, %v4850_v47  ;;  %vm4902_vm3 = vweird.f32 %v7247_v25  ;;  %vm4873_vm5 = vmor %vm4871_vm4, %vm4872_vm2  ;;  %v4800_v46 = vpack.c.bf16 %v4765_v31, %v4716_v30 }
0x2994   :  { %v4868_v52 = vsub.f32 1.0, %v4867_v29  ;;  %vm4903_vm7 = vmor %vm4901_vm6, %vm4902_vm3 }
0x2995   :  { %v4898_v12 = vsub.f32 1.0, %v4897_v20  ;;  %v5023_v48 = vunpack.c.l.bf16 %v4800_v46 }
0x2996   :  { %v4869_v10 = vmul.f32 %v7245_v55, %v4868_v52 }
0x2997   :  { %v4899_v9 = vmul.f32 %v7247_v25, %v4898_v12 }
0x2998   :  { %v4870_v43 = vadd.f32 %v7245_v55, %v4869_v10 }
0x2999   :  { %v4900_v35 = vadd.f32 %v7247_v25, %v4899_v9  ;;  %v5021_v9 = vunpack.c.l.bf16 %v4799_v13 }
0x299a   :  { %v4874_v59 = vsel %vm4873_vm5, %v7245_v55, %v4870_v43  ;;  %v5024_v55 = vunpack.c.h.bf16 %v4800_v46 }
0x299b   :  { %v4904_v16 = vsel %vm4903_vm7, %v7247_v25, %v4900_v35  ;;  %v4879_v54 = vsel %vm4876_vm8, %v4878_v40, %v4874_v59 }
0x299c   :  { %v4909_v44 = vsel %vm4906_vm9, %v4908_v38, %v4904_v16 }
0x29da   :  { %v4940_v32 = vpop.permute.xlu1 %4939 }
0x29db   :  { %v4945_v27 = vmul.f32 %v4940_v32, %v4879_v54 }
0x29e2   :  { %v4942_v3 = vpop.permute.xlu2 %4941 }
0x29e3   :  { %v4946_v33 = vmul.f32 %v4942_v3, %v4909_v44 }
0x29e5   :  { %v4947_v37 = vpack.c.bf16 %v4946_v33, %v4945_v27 }
0x29e7   :  { %6555 = vmatmul.msk.bf16.vlgmr.msrb.gmra.mxu0 %vm175_vm0, %v4947_v37  ;;  %6556 = vmatmul.msk.bf16.vlgmr.msrb.gmra.mxu1 %vm175_vm0, %v4947_v37 }
0x29e8   :  { %5317 = vmatpush.bf16.msrb.mxu1 %v8686_v62  ;;  %5303 = vmatpush.bf16.msrb.mxu0 %v8698_v6 }
0x29ec   :  { %5318 = vmatpush.bf16.msrb.mxu1 %v8692_v60  ;;  %5304 = vmatpush.bf16.msrb.mxu0 %v8720_v11 }
0x29f0   :  { %5319 = vmatpush.bf16.msrb.mxu1 %v8696_v26  ;;  %5305 = vmatpush.bf16.msrb.mxu0 %v8723_v21 }
0x29f4   :  { %5320 = vmatpush.bf16.msrb.mxu1 %v8701_v58  ;;  %5306 = vmatpush.bf16.msrb.mxu0 %v8726_v2 }
0x29f7   :  { %v3248_v53 = vpop.f32.mrf.mxu0  ;;  %v3297_v24 = vpop.f32.mrf.mxu1 }
0x29f8   :  { %v3249_v61 = vadd.f32 %v3248_v53, %v8286_v18  ;;  %v3298_v19 = vadd.f32 %v3297_v24, %v8288_v41 }
0x29fa   :  { %v8745_v50 = vpack.c.bf16 %v3298_v19, %v3249_v61 }
0x29ff   :  { %v8749_v22 = vpop.f32.mrf.mxu1  ;;  %v8761_v12 = vpop.f32.mrf.mxu0 }
0x2a64   :  { %v5014_v47 = vpop.f32.mrf.mxu1  ;;  %v5000_v10 = vpop.f32.mrf.mxu0 }
0x2a65   :  { %v8753_v0 = vadd.f32 %v5022_v42, %v5014_v47  ;;  %v5025_v43 = vadd.f32 %v5021_v9, %v5000_v10 }
0x2a67   :  { %7248 = vtanh.f32 %v8753_v0  ;;  %v6557_v35 = vmul.f32 -1.442695, %v5025_v43 }
0x2a6c   :  { %v5016_v25 = vpop.f32.mrf.mxu1  ;;  %v5002_v7 = vpop.f32.mrf.mxu0 }
0x2a6d   :  { %v7249_v29 = vpop.eup %7248  ;;  %v8756_v20 = vadd.f32 %v5024_v55, %v5016_v25  ;;  %v5027_v51 = vadd.f32 %v5023_v48, %v5002_v7 }
0x2a6e   :  { %5111 = vrot.lane.b32.xlu0 %v7249_v29, %s7550_s2 }
0x2a6f   :  { %7250 = vtanh.f32 %v8756_v20  ;;  %v6559_v63 = vmul.f32 -1.442695, %v5027_v51  ;;  %v6560_v48 = vmul.f32 -1.442695, %v8756_v20 }
0x2a70   :  { %7252 = vpow2.f32 %v6557_v35 }
0x2a71   :  { %7254 = vpow2.f32 %v6559_v63 }
0x2a75   :  { %v7251_v52 = vpop.eup %7250 }
0x2a76   :  { %5113 = vrot.lane.b32.xlu1 %v7251_v52, %s7550_s2  ;;  %v7253_v59 = vpop.eup %7252 }
0x2a77   :  { %v5041_v16 = vadd.f32 1.0, %v7253_v59  ;;  %v7255_v40 = vpop.eup %7254 }
0x2a78   :  { %v5043_v32 = vadd.f32 1.0, %v7255_v40 }
0x2a79   :  { %7256 = vrcp.f32 %v5041_v16  ;;  %v5056_v24 = vand.u32 2147483648, %v5041_v16  ;;  %vm5050_vm11 = vweird.f32 %v5041_v16  ;;  %v5054_v61 = vand.u32 2147483647, %v5041_v16 }
0x2a7a   :  { %7258 = vrcp.f32 %v5043_v32  ;;  %v5086_v1 = vand.u32 2147483648, %v5043_v32  ;;  %vm5080_vm15 = vweird.f32 %v5043_v32  ;;  %v5084_v30 = vand.u32 2147483647, %v5043_v32 }
0x2a7b   :  { %v5057_v5 = vor.u32 1.1754944e-38, %v5056_v24  ;;  %vm5055_vm13 = vcmp.eq.f32.partialorder %v5054_v61, 8.507059e+37 }
0x2a7c   :  { %v5087_v42 = vor.u32 1.1754944e-38, %v5086_v1  ;;  %vm5085_vm2 = vcmp.eq.f32.partialorder %v5084_v30, 8.507059e+37 }
0x2a7f   :  { %v7257_v38 = vpop.eup %7256 }
0x2a80   :  { %v5046_v54 = vmul.f32 %v7257_v38, %v5041_v16  ;;  %v7259_v3 = vpop.eup %7258  ;;  %vm5051_vm10 = vweird.f32 %v7257_v38 }
0x2a81   :  { %v5076_v33 = vmul.f32 %v7259_v3, %v5043_v32  ;;  %vm5052_vm12 = vmor %vm5050_vm11, %vm5051_vm10  ;;  %vm5081_vm14 = vweird.f32 %v7259_v3 }
0x2a82   :  { %v5047_v44 = vsub.f32 1.0, %v5046_v54  ;;  %vm5082_vm1 = vmor %vm5080_vm15, %vm5081_vm14 }
0x2a83   :  { %v5077_v53 = vsub.f32 1.0, %v5076_v33 }
0x2a84   :  { %v5048_v27 = vmul.f32 %v7257_v38, %v5047_v44 }
0x2a85   :  { %v5078_v39 = vmul.f32 %v7259_v3, %v5077_v53 }
0x2a86   :  { %v5049_v37 = vadd.f32 %v7257_v38, %v5048_v27 }
0x2a87   :  { %v5079_v8 = vadd.f32 %v7259_v3, %v5078_v39 }
0x2a88   :  { %v5053_v19 = vsel %vm5052_vm12, %v7257_v38, %v5049_v37 }
0x2a89   :  { %v5058_v17 = vsel %vm5055_vm13, %v5057_v5, %v5053_v19  ;;  %v5083_v31 = vsel %vm5082_vm1, %v7259_v3, %v5079_v8 }
0x2a8a   :  { %v5088_v46 = vsel %vm5085_vm2, %v5087_v42, %v5083_v31  ;;  %v5107_v25 = vmul.f32 %v5058_v17, %v8689_v45  ;;  %v6558_v45 = vmul.f32 -1.442695, %v8753_v0  ;;  %v4718_v42 = vpop.f32.mrf.mxu2 }
0x2a8b   :  { %v5108_v9 = vmul.f32 %v5088_v46, %v8712_v28 }
0x2ae0   :  { %v5112_v56 = vpop.permute.xlu0 %5111 }
0x2ae1   :  { %v5117_v13 = vmul.f32 %v5112_v56, %v5058_v17 }
0x2ae3   :  { %5121 = vrot.lane.b32.xlu2 %v5117_v13, %s7550_s2 }
0x2ae8   :  { %v5114_v47 = vpop.permute.xlu1 %5113 }
0x2ae9   :  { %v5118_v55 = vmul.f32 %v5114_v47, %v5088_v46  ;;  %v4767_v47 = vpop.f32.mrf.mxu3  ;;  %v4719_v46 = vadd.f32 %v4718_v42, %v8653_v23 }
0x2aeb   :  { %5123 = vrot.lane.b32.xlu0 %v5118_v55, %s7550_s2  ;;  %v4768_v55 = vadd.f32 %v4767_v47, %v8655_v57 }
0x2b3d   :  { %v5122_v29 = vpop.permute.xlu2 %5121 }
0x2b3e   :  { %v8766_v52 = vadd.f32 %v5122_v29, %v5107_v25  ;;  %v4801_v25 = vpack.c.bf16 %v4768_v55, %v4719_v46  ;;  %v4720_v29 = vpop.f32.mrf.mxu2 }
0x2b40   :  { %7260 = vtanh.f32 %v8766_v52 }
0x2b46   :  { %v7261_v10 = vpop.eup %7260 }
0x2b47   :  { %5133 = vrot.lane.b32.xlu1 %v7261_v10, %s7550_s2  ;;  %v4769_v10 = vpop.f32.mrf.mxu3 }
0x2b5d   :  { %v5124_v43 = vpop.permute.xlu0 %5123 }
0x2b5e   :  { %v8771_v35 = vadd.f32 %v5124_v43, %v5108_v9  ;;  %v4721_v9 = vadd.f32 %v4720_v29, %v8653_v23  ;;  %v4770_v43 = vadd.f32 %v4769_v10, %v8655_v57 }
0x2b60   :  { %7262 = vtanh.f32 %v8771_v35 }
0x2b61   :  { %7264 = vpow2.f32 %v6558_v45 }
0x2b62   :  { %7266 = vpow2.f32 %v6560_v48 }
0x2b66   :  { %v7263_v7 = vpop.eup %7262 }
0x2b67   :  { %5135 = vrot.lane.b32.xlu2 %v7263_v7, %s7550_s2  ;;  %v7265_v51 = vpop.eup %7264  ;;  %v5176_v7 = vunpack.c.h.bf16 %v4801_v25 }
0x2b68   :  { %v7267_v63 = vpop.eup %7266  ;;  %v5042_v59 = vadd.f32 1.0, %v7265_v51  ;;  %v4802_v51 = vpack.c.bf16 %v4770_v43, %v4721_v9 }
0x2b69   :  { %v5044_v16 = vadd.f32 1.0, %v7267_v63 }
0x2b6a   :  { %7268 = vrcp.f32 %v5042_v59  ;;  %vm5065_vm5 = vweird.f32 %v5042_v59  ;;  %v5071_v20 = vand.u32 2147483648, %v5042_v59  ;;  %v5069_v53 = vand.u32 2147483647, %v5042_v59 }
0x2b6b   :  { %7270 = vrcp.f32 %v5044_v16  ;;  %v5101_v37 = vand.u32 2147483648, %v5044_v16  ;;  %vm5095_vm7 = vweird.f32 %v5044_v16  ;;  %v5099_v24 = vand.u32 2147483647, %v5044_v16 }
0x2b6c   :  { %v5072_v39 = vor.u32 1.1754944e-38, %v5071_v20  ;;  %vm5070_vm9 = vcmp.eq.f32.partialorder %v5069_v53, 8.507059e+37  ;;  %v5178_v63 = vunpack.c.h.bf16 %v4802_v51 }
0x2b6d   :  { %v5102_v56 = vor.u32 1.1754944e-38, %v5101_v37  ;;  %vm5100_vm10 = vcmp.eq.f32.partialorder %v5099_v24, 8.507059e+37 }
0x2b70   :  { %v7269_v28 = vpop.eup %7268 }
0x2b71   :  { %v7271_v40 = vpop.eup %7270  ;;  %v5061_v32 = vmul.f32 %v7269_v28, %v5042_v59  ;;  %vm5066_vm3 = vweird.f32 %v7269_v28 }
0x2b72   :  { %v5091_v38 = vmul.f32 %v7271_v40, %v5044_v16  ;;  %vm5096_vm4 = vweird.f32 %v7271_v40  ;;  %vm5067_vm6 = vmor %vm5065_vm5, %vm5066_vm3 }
0x2b73   :  { %v5062_v54 = vsub.f32 1.0, %v5061_v32  ;;  %vm5097_vm8 = vmor %vm5095_vm7, %vm5096_vm4 }
0x2b74   :  { %v5092_v44 = vsub.f32 1.0, %v5091_v38  ;;  %v5175_v38 = vunpack.c.l.bf16 %v4801_v25 }
0x2b75   :  { %v5063_v3 = vmul.f32 %v7269_v28, %v5062_v54 }
0x2b76   :  { %v5093_v27 = vmul.f32 %v7271_v40, %v5092_v44 }
0x2b77   :  { %v5064_v0 = vadd.f32 %v7269_v28, %v5063_v3 }
0x2b78   :  { %v5094_v33 = vadd.f32 %v7271_v40, %v5093_v27  ;;  %v5177_v27 = vunpack.c.l.bf16 %v4802_v51 }
0x2b79   :  { %v5068_v61 = vsel %vm5067_vm6, %v7269_v28, %v5064_v0 }
0x2b7a   :  { %v5098_v19 = vsel %vm5097_vm8, %v7271_v40, %v5094_v33  ;;  %v5073_v17 = vsel %vm5070_vm9, %v5072_v39, %v5068_v61 }
0x2b7b   :  { %v5103_v13 = vsel %vm5100_vm10, %v5102_v56, %v5098_v19 }
0x2bb9   :  { %v5134_v5 = vpop.permute.xlu1 %5133 }
0x2bba   :  { %v5139_v1 = vmul.f32 %v5134_v5, %v5073_v17 }
0x2bc1   :  { %v5136_v8 = vpop.permute.xlu2 %5135 }
0x2bc2   :  { %v5140_v30 = vmul.f32 %v5136_v8, %v5103_v13 }
0x2bc4   :  { %v5141_v31 = vpack.c.bf16 %v5140_v30, %v5139_v1 }
0x2bc6   :  { %6561 = vmatmul.msk.bf16.vlgmr.msra.gmra.mxu0 %vm175_vm0, %v5141_v31  ;;  %6562 = vmatmul.msk.bf16.vlgmr.msra.gmra.mxu1 %vm175_vm0, %v5141_v31 }
0x2bc7   :  { %5471 = vmatpush.bf16.msra.mxu1 %v8686_v62  ;;  %5457 = vmatpush.bf16.msra.mxu0 %v8698_v6 }
0x2bcb   :  { %5472 = vmatpush.bf16.msra.mxu1 %v8692_v60  ;;  %5458 = vmatpush.bf16.msra.mxu0 %v8720_v11 }
0x2bcf   :  { %5473 = vmatpush.bf16.msra.mxu1 %v8696_v26  ;;  %5459 = vmatpush.bf16.msra.mxu0 %v8723_v21 }
0x2bd3   :  { %5474 = vmatpush.bf16.msra.mxu1 %v8701_v58  ;;  %5460 = vmatpush.bf16.msra.mxu0 %v8726_v2 }
0x2c43   :  { %v5168_v45 = vpop.f32.mrf.mxu1  ;;  %v5154_v32 = vpop.f32.mrf.mxu0 }
0x2c44   :  { %v8791_v48 = vadd.f32 %v5176_v7, %v5168_v45  ;;  %v5179_v54 = vadd.f32 %v5175_v38, %v5154_v32 }
0x2c46   :  { %7272 = vtanh.f32 %v8791_v48  ;;  %v6563_v44 = vmul.f32 -1.442695, %v5179_v54 }
0x2c4b   :  { %v5170_v59 = vpop.f32.mrf.mxu1  ;;  %v5156_v3 = vpop.f32.mrf.mxu0 }
0x2c4c   :  { %v7273_v16 = vpop.eup %7272  ;;  %v8794_v28 = vadd.f32 %v5178_v63, %v5170_v59  ;;  %v5181_v0 = vadd.f32 %v5177_v27, %v5156_v3 }
0x2c4d   :  { %5265 = vrot.lane.b32.xlu0 %v7273_v16, %s7550_s2 }
0x2c4e   :  { %7274 = vtanh.f32 %v8794_v28  ;;  %v6565_v33 = vmul.f32 -1.442695, %v5181_v0  ;;  %v6566_v27 = vmul.f32 -1.442695, %v8794_v28 }
0x2c4f   :  { %7276 = vpow2.f32 %v6563_v44 }
0x2c50   :  { %7278 = vpow2.f32 %v6565_v33 }
0x2c54   :  { %v7275_v40 = vpop.eup %7274 }
0x2c55   :  { %5267 = vrot.lane.b32.xlu1 %v7275_v40, %s7550_s2  ;;  %v7277_v20 = vpop.eup %7276 }
0x2c56   :  { %v5195_v37 = vadd.f32 1.0, %v7277_v20  ;;  %v7279_v53 = vpop.eup %7278 }
0x2c57   :  { %v5197_v24 = vadd.f32 1.0, %v7279_v53 }
0x2c58   :  { %7280 = vrcp.f32 %v5195_v37  ;;  %v5210_v1 = vand.u32 2147483648, %v5195_v37  ;;  %vm5204_vm12 = vweird.f32 %v5195_v37  ;;  %v5208_v30 = vand.u32 2147483647, %v5195_v37 }
0x2c59   :  { %7282 = vrcp.f32 %v5197_v24  ;;  %v5240_v10 = vand.u32 2147483648, %v5197_v24  ;;  %vm5234_vm1 = vweird.f32 %v5197_v24  ;;  %v5238_v9 = vand.u32 2147483647, %v5197_v24 }
0x2c5a   :  { %v5211_v47 = vor.u32 1.1754944e-38, %v5210_v1  ;;  %vm5209_vm14 = vcmp.eq.f32.partialorder %v5208_v30, 8.507059e+37 }
0x2c5b   :  { %v5241_v7 = vor.u32 1.1754944e-38, %v5240_v10  ;;  %vm5239_vm3 = vcmp.eq.f32.partialorder %v5238_v9, 8.507059e+37 }
0x2c5e   :  { %v7281_v61 = vpop.eup %7280 }
0x2c5f   :  { %v5200_v19 = vmul.f32 %v7281_v61, %v5195_v37  ;;  %v7283_v5 = vpop.eup %7282  ;;  %vm5205_vm11 = vweird.f32 %v7281_v61 }
0x2c60   :  { %v5230_v17 = vmul.f32 %v7283_v5, %v5197_v24  ;;  %vm5206_vm13 = vmor %vm5204_vm12, %vm5205_vm11  ;;  %vm5235_vm15 = vweird.f32 %v7283_v5 }
0x2c61   :  { %v5201_v39 = vsub.f32 1.0, %v5200_v19  ;;  %vm5236_vm2 = vmor %vm5234_vm1, %vm5235_vm15 }
0x2c62   :  { %v5231_v8 = vsub.f32 1.0, %v5230_v17 }
0x2c63   :  { %v5202_v56 = vmul.f32 %v7281_v61, %v5201_v39 }
0x2c64   :  { %v5232_v42 = vmul.f32 %v7283_v5, %v5231_v8 }
0x2c65   :  { %v5203_v13 = vadd.f32 %v7281_v61, %v5202_v56 }
0x2c66   :  { %v5233_v29 = vadd.f32 %v7283_v5, %v5232_v42 }
0x2c67   :  { %v5207_v31 = vsel %vm5206_vm13, %v7281_v61, %v5203_v13 }
0x2c68   :  { %v5212_v55 = vsel %vm5209_vm14, %v5211_v47, %v5207_v31  ;;  %v5237_v43 = vsel %vm5236_vm2, %v7283_v5, %v5233_v29 }
0x2c69   :  { %v5242_v51 = vsel %vm5239_vm3, %v5241_v7, %v5237_v43  ;;  %v5261_v59 = vmul.f32 %v5212_v55, %v8766_v52  ;;  %v6564_v52 = vmul.f32 -1.442695, %v8791_v48  ;;  %v4723_v7 = vpop.f32.mrf.mxu2 }
0x2c6a   :  { %v5262_v38 = vmul.f32 %v5242_v51, %v8771_v35 }
0x2cbf   :  { %v5266_v46 = vpop.permute.xlu0 %5265 }
0x2cc0   :  { %v5271_v25 = vmul.f32 %v5266_v46, %v5212_v55 }
0x2cc2   :  { %5275 = vrot.lane.b32.xlu2 %v5271_v25, %s7550_s2 }
0x2cc7   :  { %v5268_v45 = vpop.permute.xlu1 %5267 }
0x2cc8   :  { %v5272_v63 = vmul.f32 %v5268_v45, %v5242_v51  ;;  %v4772_v45 = vpop.f32.mrf.mxu3  ;;  %v4724_v51 = vadd.f32 %v4723_v7, %v8653_v23 }
0x2cca   :  { %5277 = vrot.lane.b32.xlu0 %v5272_v63, %s7550_s2  ;;  %v4773_v63 = vadd.f32 %v4772_v45, %v8655_v57 }
0x2d1c   :  { %v5276_v16 = vpop.permute.xlu2 %5275 }
0x2d1d   :  { %v8802_v40 = vadd.f32 %v5276_v16, %v5261_v59  ;;  %v4803_v59 = vpack.c.bf16 %v4773_v63, %v4724_v51  ;;  %v4725_v16 = vpop.f32.mrf.mxu2 }
0x2d1f   :  { %7284 = vtanh.f32 %v8802_v40 }
0x2d25   :  { %v7285_v32 = vpop.eup %7284 }
0x2d26   :  { %5287 = vrot.lane.b32.xlu1 %v7285_v32, %s7550_s2  ;;  %v4774_v32 = vpop.f32.mrf.mxu3 }
0x2d3c   :  { %v5278_v54 = vpop.permute.xlu0 %5277 }
0x2d3d   :  { %v8807_v44 = vadd.f32 %v5278_v54, %v5262_v38  ;;  %v4726_v38 = vadd.f32 %v4725_v16, %v8653_v23  ;;  %v4775_v54 = vadd.f32 %v4774_v32, %v8655_v57 }
0x2d3f   :  { %7286 = vtanh.f32 %v8807_v44 }
0x2d40   :  { %7288 = vpow2.f32 %v6564_v52 }
0x2d41   :  { %7290 = vpow2.f32 %v6566_v27 }
0x2d45   :  { %v7287_v3 = vpop.eup %7286 }
0x2d46   :  { %5289 = vrot.lane.b32.xlu2 %v7287_v3, %s7550_s2  ;;  %v7289_v0 = vpop.eup %7288  ;;  %v5330_v3 = vunpack.c.h.bf16 %v4803_v59 }
0x2d47   :  { %v7291_v33 = vpop.eup %7290  ;;  %v5196_v20 = vadd.f32 1.0, %v7289_v0  ;;  %v4804_v0 = vpack.c.bf16 %v4775_v54, %v4726_v38 }
0x2d48   :  { %v5198_v37 = vadd.f32 1.0, %v7291_v33 }
0x2d49   :  { %7292 = vrcp.f32 %v5196_v20  ;;  %vm5219_vm6 = vweird.f32 %v5196_v20  ;;  %v5225_v28 = vand.u32 2147483648, %v5196_v20  ;;  %v5223_v8 = vand.u32 2147483647, %v5196_v20 }
0x2d4a   :  { %7294 = vrcp.f32 %v5198_v37  ;;  %v5255_v13 = vand.u32 2147483648, %v5198_v37  ;;  %vm5249_vm8 = vweird.f32 %v5198_v37  ;;  %v5253_v1 = vand.u32 2147483647, %v5198_v37 }
0x2d4b   :  { %v5226_v42 = vor.u32 1.1754944e-38, %v5225_v28  ;;  %vm5224_vm10 = vcmp.eq.f32.partialorder %v5223_v8, 8.507059e+37  ;;  %v5332_v33 = vunpack.c.h.bf16 %v4804_v0 }
0x2d4c   :  { %v5256_v46 = vor.u32 1.1754944e-38, %v5255_v13  ;;  %vm5254_vm11 = vcmp.eq.f32.partialorder %v5253_v1, 8.507059e+37 }
0x2d4f   :  { %v7293_v35 = vpop.eup %7292 }
0x2d50   :  { %v7295_v53 = vpop.eup %7294  ;;  %v5215_v24 = vmul.f32 %v7293_v35, %v5196_v20  ;;  %vm5220_vm4 = vweird.f32 %v7293_v35 }
0x2d51   :  { %v5245_v61 = vmul.f32 %v7295_v53, %v5198_v37  ;;  %vm5250_vm5 = vweird.f32 %v7295_v53  ;;  %vm5221_vm7 = vmor %vm5219_vm6, %vm5220_vm4 }
0x2d52   :  { %v5216_v19 = vsub.f32 1.0, %v5215_v24  ;;  %vm5251_vm9 = vmor %vm5249_vm8, %vm5250_vm5 }
0x2d53   :  { %v5246_v39 = vsub.f32 1.0, %v5245_v61  ;;  %v5329_v61 = vunpack.c.l.bf16 %v4803_v59 }
0x2d54   :  { %v5217_v5 = vmul.f32 %v7293_v35, %v5216_v19 }
0x2d55   :  { %v5247_v56 = vmul.f32 %v7295_v53, %v5246_v39 }
0x2d56   :  { %v5218_v48 = vadd.f32 %v7293_v35, %v5217_v5 }
0x2d57   :  { %v5248_v17 = vadd.f32 %v7295_v53, %v5247_v56  ;;  %v5331_v56 = vunpack.c.l.bf16 %v4804_v0 }
0x2d58   :  { %v5222_v30 = vsel %vm5221_vm7, %v7293_v35, %v5218_v48 }
0x2d59   :  { %v5252_v31 = vsel %vm5251_vm9, %v7295_v53, %v5248_v17  ;;  %v5227_v55 = vsel %vm5224_vm10, %v5226_v42, %v5222_v30 }
0x2d5a   :  { %v5257_v25 = vsel %vm5254_vm11, %v5256_v46, %v5252_v31 }
0x2d98   :  { %v5288_v47 = vpop.permute.xlu1 %5287 }
0x2d99   :  { %v5293_v10 = vmul.f32 %v5288_v47, %v5227_v55 }
0x2da0   :  { %v5290_v29 = vpop.permute.xlu2 %5289 }
0x2da1   :  { %v5294_v9 = vmul.f32 %v5290_v29, %v5257_v25 }
0x2da3   :  { %v5295_v43 = vpack.c.bf16 %v5294_v9, %v5293_v10 }
0x2da5   :  { %6567 = vmatmul.msk.bf16.vlgmr.msrb.gmra.mxu0 %vm175_vm0, %v5295_v43  ;;  %6568 = vmatmul.msk.bf16.vlgmr.msrb.gmra.mxu1 %vm175_vm0, %v5295_v43 }
0x2da6   :  { %5625 = vmatpush.bf16.msrb.mxu1 %v8686_v62  ;;  %5611 = vmatpush.bf16.msrb.mxu0 %v8698_v6 }
0x2daa   :  { %5626 = vmatpush.bf16.msrb.mxu1 %v8692_v60  ;;  %5612 = vmatpush.bf16.msrb.mxu0 %v8720_v11 }
0x2dae   :  { %5627 = vmatpush.bf16.msrb.mxu1 %v8696_v26  ;;  %5613 = vmatpush.bf16.msrb.mxu0 %v8723_v21 }
0x2db2   :  { %5628 = vmatpush.bf16.msrb.mxu1 %v8701_v58  ;;  %5614 = vmatpush.bf16.msrb.mxu0 %v8726_v2 }
0x2e22   :  { %v5322_v52 = vpop.f32.mrf.mxu1  ;;  %v5308_v24 = vpop.f32.mrf.mxu0 }
0x2e23   :  { %v8827_v27 = vadd.f32 %v5330_v3, %v5322_v52  ;;  %v5333_v19 = vadd.f32 %v5329_v61, %v5308_v24 }
0x2e25   :  { %7296 = vtanh.f32 %v8827_v27  ;;  %v6569_v39 = vmul.f32 -1.442695, %v5333_v19 }
0x2e2a   :  { %v5324_v20 = vpop.f32.mrf.mxu1  ;;  %v5310_v5 = vpop.f32.mrf.mxu0 }
0x2e2b   :  { %v7297_v37 = vpop.eup %7296  ;;  %v8830_v35 = vadd.f32 %v5332_v33, %v5324_v20  ;;  %v5335_v48 = vadd.f32 %v5331_v56, %v5310_v5 }
0x2e2c   :  { %5419 = vrot.lane.b32.xlu0 %v7297_v37, %s7550_s2 }
0x2e2d   :  { %7298 = vtanh.f32 %v8830_v35  ;;  %v6571_v17 = vmul.f32 -1.442695, %v5335_v48  ;;  %v6572_v56 = vmul.f32 -1.442695, %v8830_v35 }
0x2e2e   :  { %7300 = vpow2.f32 %v6569_v39 }
0x2e2f   :  { %7302 = vpow2.f32 %v6571_v17 }
0x2e33   :  { %v7299_v53 = vpop.eup %7298 }
0x2e34   :  { %5421 = vrot.lane.b32.xlu1 %v7299_v53, %s7550_s2  ;;  %v7301_v28 = vpop.eup %7300 }
0x2e35   :  { %v5349_v13 = vadd.f32 1.0, %v7301_v28  ;;  %v7303_v8 = vpop.eup %7302 }
0x2e36   :  { %v5351_v1 = vadd.f32 1.0, %v7303_v8 }
0x2e37   :  { %7304 = vrcp.f32 %v5349_v13  ;;  %v5364_v10 = vand.u32 2147483648, %v5349_v13  ;;  %vm5358_vm13 = vweird.f32 %v5349_v13  ;;  %v5362_v9 = vand.u32 2147483647, %v5349_v13 }
0x2e38   :  { %7306 = vrcp.f32 %v5351_v1  ;;  %v5394_v32 = vand.u32 2147483648, %v5351_v1  ;;  %vm5388_vm2 = vweird.f32 %v5351_v1  ;;  %v5392_v38 = vand.u32 2147483647, %v5351_v1 }
0x2e39   :  { %v5365_v45 = vor.u32 1.1754944e-38, %v5364_v10  ;;  %vm5363_vm15 = vcmp.eq.f32.partialorder %v5362_v9, 8.507059e+37 }
0x2e3a   :  { %v5395_v3 = vor.u32 1.1754944e-38, %v5394_v32  ;;  %vm5393_vm4 = vcmp.eq.f32.partialorder %v5392_v38, 8.507059e+37 }
0x2e3d   :  { %v7305_v30 = vpop.eup %7304 }
0x2e3e   :  { %v5354_v31 = vmul.f32 %v7305_v30, %v5349_v13  ;;  %v7307_v47 = vpop.eup %7306  ;;  %vm5359_vm12 = vweird.f32 %v7305_v30 }
0x2e3f   :  { %v5384_v55 = vmul.f32 %v7307_v47, %v5351_v1  ;;  %vm5360_vm14 = vmor %vm5358_vm13, %vm5359_vm12  ;;  %vm5389_vm1 = vweird.f32 %v7307_v47 }
0x2e40   :  { %v5355_v42 = vsub.f32 1.0, %v5354_v31  ;;  %vm5390_vm3 = vmor %vm5388_vm2, %vm5389_vm1 }
0x2e41   :  { %v5385_v29 = vsub.f32 1.0, %v5384_v55 }
0x2e42   :  { %v5356_v46 = vmul.f32 %v7305_v30, %v5355_v42 }
0x2e43   :  { %v5386_v7 = vmul.f32 %v7307_v47, %v5385_v29 }
0x2e44   :  { %v5357_v25 = vadd.f32 %v7305_v30, %v5356_v46 }
0x2e45   :  { %v5387_v16 = vadd.f32 %v7307_v47, %v5386_v7 }
0x2e46   :  { %v5361_v43 = vsel %vm5360_vm14, %v7305_v30, %v5357_v25 }
0x2e47   :  { %v5366_v63 = vsel %vm5363_vm15, %v5365_v45, %v5361_v43  ;;  %v5391_v54 = vsel %vm5390_vm3, %v7307_v47, %v5387_v16 }
0x2e48   :  { %v5396_v0 = vsel %vm5393_vm4, %v5395_v3, %v5391_v54  ;;  %v5415_v20 = vmul.f32 %v5366_v63, %v8802_v40  ;;  %v6570_v40 = vmul.f32 -1.442695, %v8827_v27  ;;  %v4728_v3 = vpop.f32.mrf.mxu2 }
0x2e49   :  { %v5416_v61 = vmul.f32 %v5396_v0, %v8807_v44 }
0x2e9e   :  { %v5420_v51 = vpop.permute.xlu0 %5419 }
0x2e9f   :  { %v5425_v59 = vmul.f32 %v5420_v51, %v5366_v63 }
0x2ea1   :  { %5429 = vrot.lane.b32.xlu2 %v5425_v59, %s7550_s2 }
0x2ea6   :  { %v5422_v52 = vpop.permute.xlu1 %5421 }
0x2ea7   :  { %v5426_v33 = vmul.f32 %v5422_v52, %v5396_v0  ;;  %v4777_v52 = vpop.f32.mrf.mxu3  ;;  %v4729_v0 = vadd.f32 %v4728_v3, %v8653_v23 }
0x2ea9   :  { %5431 = vrot.lane.b32.xlu0 %v5426_v33, %s7550_s2  ;;  %v4778_v33 = vadd.f32 %v4777_v52, %v8655_v57 }
0x2efb   :  { %v5430_v37 = vpop.permute.xlu2 %5429 }
0x2efc   :  { %v8838_v53 = vadd.f32 %v5430_v37, %v5415_v20  ;;  %v4805_v20 = vpack.c.bf16 %v4778_v33, %v4729_v0  ;;  %v4730_v37 = vpop.f32.mrf.mxu2 }
0x2efe   :  { %7308 = vtanh.f32 %v8838_v53 }
0x2f04   :  { %v7309_v24 = vpop.eup %7308 }
0x2f05   :  { %5441 = vrot.lane.b32.xlu1 %v7309_v24, %s7550_s2  ;;  %v4779_v24 = vpop.f32.mrf.mxu3 }
0x2f1b   :  { %v5432_v19 = vpop.permute.xlu0 %5431 }
0x2f1c   :  { %v8843_v39 = vadd.f32 %v5432_v19, %v5416_v61  ;;  %v4731_v61 = vadd.f32 %v4730_v37, %v8653_v23  ;;  %v4780_v19 = vadd.f32 %v4779_v24, %v8655_v57 }
0x2f1e   :  { %7310 = vtanh.f32 %v8843_v39 }
0x2f1f   :  { %7312 = vpow2.f32 %v6570_v40 }
0x2f20   :  { %7314 = vpow2.f32 %v6572_v56 }
0x2f24   :  { %v7311_v5 = vpop.eup %7310 }
0x2f25   :  { %5443 = vrot.lane.b32.xlu2 %v7311_v5, %s7550_s2  ;;  %v7313_v48 = vpop.eup %7312  ;;  %v5484_v5 = vunpack.c.h.bf16 %v4805_v20 }
0x2f26   :  { %v7315_v17 = vpop.eup %7314  ;;  %v5350_v28 = vadd.f32 1.0, %v7313_v48  ;;  %v4806_v48 = vpack.c.bf16 %v4780_v19, %v4731_v61 }
0x2f27   :  { %v5352_v13 = vadd.f32 1.0, %v7315_v17 }
0x2f28   :  { %7316 = vrcp.f32 %v5350_v28  ;;  %vm5373_vm7 = vweird.f32 %v5350_v28  ;;  %v5379_v35 = vand.u32 2147483648, %v5350_v28  ;;  %v5377_v29 = vand.u32 2147483647, %v5350_v28 }
0x2f29   :  { %7318 = vrcp.f32 %v5352_v13  ;;  %v5409_v25 = vand.u32 2147483648, %v5352_v13  ;;  %vm5403_vm9 = vweird.f32 %v5352_v13  ;;  %v5407_v10 = vand.u32 2147483647, %v5352_v13 }
0x2f2a   :  { %v5380_v7 = vor.u32 1.1754944e-38, %v5379_v35  ;;  %vm5378_vm11 = vcmp.eq.f32.partialorder %v5377_v29, 8.507059e+37  ;;  %v5486_v17 = vunpack.c.h.bf16 %v4806_v48 }
0x2f2b   :  { %v5410_v51 = vor.u32 1.1754944e-38, %v5409_v25  ;;  %vm5408_vm12 = vcmp.eq.f32.partialorder %v5407_v10, 8.507059e+37 }
0x2f2e   :  { %v7317_v44 = vpop.eup %7316 }
0x2f2f   :  { %v7319_v8 = vpop.eup %7318  ;;  %v5369_v1 = vmul.f32 %v7317_v44, %v5350_v28  ;;  %vm5374_vm5 = vweird.f32 %v7317_v44 }
0x2f30   :  { %v5399_v30 = vmul.f32 %v7319_v8, %v5352_v13  ;;  %vm5404_vm6 = vweird.f32 %v7319_v8  ;;  %vm5375_vm8 = vmor %vm5373_vm7, %vm5374_vm5 }
0x2f31   :  { %v5370_v31 = vsub.f32 1.0, %v5369_v1  ;;  %vm5405_vm10 = vmor %vm5403_vm9, %vm5404_vm6 }
0x2f32   :  { %v5400_v42 = vsub.f32 1.0, %v5399_v30  ;;  %v5483_v30 = vunpack.c.l.bf16 %v4805_v20 }
0x2f33   :  { %v5371_v47 = vmul.f32 %v7317_v44, %v5370_v31 }
0x2f34   :  { %v5401_v46 = vmul.f32 %v7319_v8, %v5400_v42 }
0x2f35   :  { %v5372_v27 = vadd.f32 %v7317_v44, %v5371_v47 }
0x2f36   :  { %v5402_v55 = vadd.f32 %v7319_v8, %v5401_v46  ;;  %v5485_v46 = vunpack.c.l.bf16 %v4806_v48 }
0x2f37   :  { %v5376_v9 = vsel %vm5375_vm8, %v7317_v44, %v5372_v27 }
0x2f38   :  { %v5406_v43 = vsel %vm5405_vm10, %v7319_v8, %v5402_v55  ;;  %v5381_v63 = vsel %vm5378_vm11, %v5380_v7, %v5376_v9 }
0x2f39   :  { %v5411_v59 = vsel %vm5408_vm12, %v5410_v51, %v5406_v43 }
0x2f77   :  { %v5442_v45 = vpop.permute.xlu1 %5441 }
0x2f78   :  { %v5447_v32 = vmul.f32 %v5442_v45, %v5381_v63 }
0x2f7f   :  { %v5444_v16 = vpop.permute.xlu2 %5443 }
0x2f80   :  { %v5448_v38 = vmul.f32 %v5444_v16, %v5411_v59 }
0x2f82   :  { %v5449_v54 = vpack.c.bf16 %v5448_v38, %v5447_v32 }
0x2f84   :  { %6573 = vmatmul.msk.bf16.vlgmr.msra.gmra.mxu0 %vm175_vm0, %v5449_v54  ;;  %6574 = vmatmul.msk.bf16.vlgmr.msra.gmra.mxu1 %vm175_vm0, %v5449_v54 }
0x2f85   :  { %5779 = vmatpush.bf16.msra.mxu1 %v8686_v62  ;;  %5765 = vmatpush.bf16.msra.mxu0 %v8698_v6 }
0x2f89   :  { %5780 = vmatpush.bf16.msra.mxu1 %v8692_v60  ;;  %5766 = vmatpush.bf16.msra.mxu0 %v8720_v11 }
0x2f8d   :  { %5781 = vmatpush.bf16.msra.mxu1 %v8696_v26  ;;  %5767 = vmatpush.bf16.msra.mxu0 %v8723_v21 }
0x2f91   :  { %5782 = vmatpush.bf16.msra.mxu1 %v8701_v58  ;;  %5768 = vmatpush.bf16.msra.mxu0 %v8726_v2 }
0x3001   :  { %v5476_v40 = vpop.f32.mrf.mxu1  ;;  %v5462_v1 = vpop.f32.mrf.mxu0 }
0x3002   :  { %v8863_v56 = vadd.f32 %v5484_v5, %v5476_v40  ;;  %v5487_v31 = vadd.f32 %v5483_v30, %v5462_v1 }
0x3004   :  { %7320 = vtanh.f32 %v8863_v56  ;;  %v6575_v42 = vmul.f32 -1.442695, %v5487_v31 }
0x3009   :  { %v5478_v28 = vpop.f32.mrf.mxu1  ;;  %v5464_v47 = vpop.f32.mrf.mxu0 }
0x300a   :  { %v7321_v13 = vpop.eup %7320  ;;  %v8866_v44 = vadd.f32 %v5486_v17, %v5478_v28  ;;  %v5489_v27 = vadd.f32 %v5485_v46, %v5464_v47 }
0x300b   :  { %5573 = vrot.lane.b32.xlu0 %v7321_v13, %s7550_s2 }
0x300c   :  { %7322 = vtanh.f32 %v8866_v44  ;;  %v6577_v55 = vmul.f32 -1.442695, %v5489_v27  ;;  %v6578_v46 = vmul.f32 -1.442695, %v8866_v44 }
0x300d   :  { %7324 = vpow2.f32 %v6575_v42 }
0x300e   :  { %7326 = vpow2.f32 %v6577_v55 }
0x3012   :  { %v7323_v8 = vpop.eup %7322 }
0x3013   :  { %5575 = vrot.lane.b32.xlu1 %v7323_v8, %s7550_s2  ;;  %v7325_v35 = vpop.eup %7324 }
0x3014   :  { %v5503_v25 = vadd.f32 1.0, %v7325_v35  ;;  %v7327_v29 = vpop.eup %7326 }
0x3015   :  { %v5505_v10 = vadd.f32 1.0, %v7327_v29 }
0x3016   :  { %7328 = vrcp.f32 %v5503_v25  ;;  %v5518_v32 = vand.u32 2147483648, %v5503_v25  ;;  %vm5512_vm14 = vweird.f32 %v5503_v25  ;;  %v5516_v38 = vand.u32 2147483647, %v5503_v25 }
0x3017   :  { %7330 = vrcp.f32 %v5505_v10  ;;  %v5548_v24 = vand.u32 2147483648, %v5505_v10  ;;  %vm5542_vm3 = vweird.f32 %v5505_v10  ;;  %v5546_v61 = vand.u32 2147483647, %v5505_v10 }
0x3018   :  { %v5519_v52 = vor.u32 1.1754944e-38, %v5518_v32  ;;  %vm5517_vm1 = vcmp.eq.f32.partialorder %v5516_v38, 8.507059e+37 }
0x3019   :  { %v5549_v5 = vor.u32 1.1754944e-38, %v5548_v24  ;;  %vm5547_vm5 = vcmp.eq.f32.partialorder %v5546_v61, 8.507059e+37 }
0x301c   :  { %v7329_v9 = vpop.eup %7328 }
0x301d   :  { %v5508_v43 = vmul.f32 %v7329_v9, %v5503_v25  ;;  %v7331_v45 = vpop.eup %7330  ;;  %vm5513_vm13 = vweird.f32 %v7329_v9 }
0x301e   :  { %v5538_v63 = vmul.f32 %v7331_v45, %v5505_v10  ;;  %vm5514_vm15 = vmor %vm5512_vm14, %vm5513_vm13  ;;  %vm5543_vm2 = vweird.f32 %v7331_v45 }
0x301f   :  { %v5509_v7 = vsub.f32 1.0, %v5508_v43  ;;  %vm5544_vm4 = vmor %vm5542_vm3, %vm5543_vm2 }
0x3020   :  { %v5539_v16 = vsub.f32 1.0, %v5538_v63 }
0x3021   :  { %v5510_v51 = vmul.f32 %v7329_v9, %v5509_v7 }
0x3022   :  { %v5540_v3 = vmul.f32 %v7331_v45, %v5539_v16 }
0x3023   :  { %v5511_v59 = vadd.f32 %v7329_v9, %v5510_v51 }
0x3024   :  { %v5541_v37 = vadd.f32 %v7331_v45, %v5540_v3 }
0x3025   :  { %v5515_v54 = vsel %vm5514_vm15, %v7329_v9, %v5511_v59 }
0x3026   :  { %v5520_v33 = vsel %vm5517_vm1, %v5519_v52, %v5515_v54  ;;  %v5545_v19 = vsel %vm5544_vm4, %v7331_v45, %v5541_v37 }
0x3027   :  { %v5550_v48 = vsel %vm5547_vm5, %v5549_v5, %v5545_v19  ;;  %v5569_v28 = vmul.f32 %v5520_v33, %v8838_v53  ;;  %v6576_v53 = vmul.f32 -1.442695, %v8863_v56  ;;  %v4733_v5 = vpop.f32.mrf.mxu2 }
0x3028   :  { %v5570_v30 = vmul.f32 %v5550_v48, %v8843_v39 }
0x307d   :  { %v5574_v0 = vpop.permute.xlu0 %5573 }
0x307e   :  { %v5579_v20 = vmul.f32 %v5574_v0, %v5520_v33 }
0x3080   :  { %5583 = vrot.lane.b32.xlu2 %v5579_v20, %s7550_s2 }
0x3085   :  { %v5576_v40 = vpop.permute.xlu1 %5575 }
0x3086   :  { %v5580_v17 = vmul.f32 %v5576_v40, %v5550_v48  ;;  %v4782_v40 = vpop.f32.mrf.mxu3  ;;  %v4734_v48 = vadd.f32 %v4733_v5, %v8653_v23  ;;  %v4465_v5 = vunpack.c.h.bf16 %v8745_v50 }
0x3088   :  { %5585 = vrot.lane.b32.xlu0 %v5580_v17, %s7550_s2 }
0x30da   :  { %v5584_v13 = vpop.permute.xlu2 %5583 }
0x30db   :  { %v8874_v8 = vadd.f32 %v5584_v13, %v5569_v28  ;;  %v4784_v28 = vpop.f32.mrf.mxu3 }
0x30dd   :  { %7332 = vtanh.f32 %v8874_v8 }
0x30e3   :  { %v7333_v1 = vpop.eup %7332 }
0x30e4   :  { %5595 = vrot.lane.b32.xlu1 %v7333_v1, %s7550_s2 }
0x30fa   :  { %v5586_v31 = vpop.permute.xlu0 %5585 }
0x30fb   :  { %v8879_v42 = vadd.f32 %v5586_v31, %v5570_v30 }
0x30fd   :  { %7334 = vtanh.f32 %v8879_v42 }
0x30fe   :  { %7336 = vpow2.f32 %v6576_v53 }
0x30ff   :  { %7338 = vpow2.f32 %v6578_v46 }
0x3103   :  { %v7335_v47 = vpop.eup %7334 }
0x3104   :  { %5597 = vrot.lane.b32.xlu2 %v7335_v47, %s7550_s2  ;;  %v7337_v27 = vpop.eup %7336 }
0x3105   :  { %v7339_v55 = vpop.eup %7338  ;;  %v5504_v35 = vadd.f32 1.0, %v7337_v27 }
0x3106   :  { %v5506_v25 = vadd.f32 1.0, %v7339_v55 }
0x3107   :  { %7340 = vrcp.f32 %v5504_v35  ;;  %vm5527_vm8 = vweird.f32 %v5504_v35  ;;  %v5533_v44 = vand.u32 2147483648, %v5504_v35  ;;  %v5531_v16 = vand.u32 2147483647, %v5504_v35 }
0x3108   :  { %7342 = vrcp.f32 %v5506_v25  ;;  %v5563_v59 = vand.u32 2147483648, %v5506_v25  ;;  %vm5557_vm10 = vweird.f32 %v5506_v25  ;;  %v5561_v32 = vand.u32 2147483647, %v5506_v25 }
0x3109   :  { %v5534_v3 = vor.u32 1.1754944e-38, %v5533_v44  ;;  %vm5532_vm12 = vcmp.eq.f32.partialorder %v5531_v16, 8.507059e+37 }
0x310a   :  { %v5564_v0 = vor.u32 1.1754944e-38, %v5563_v59  ;;  %vm5562_vm13 = vcmp.eq.f32.partialorder %v5561_v32, 8.507059e+37 }
0x310d   :  { %v7341_v39 = vpop.eup %7340 }
0x310e   :  { %v7343_v29 = vpop.eup %7342  ;;  %v5523_v10 = vmul.f32 %v7341_v39, %v5504_v35  ;;  %vm5528_vm6 = vweird.f32 %v7341_v39 }
0x310f   :  { %v5553_v9 = vmul.f32 %v7343_v29, %v5506_v25  ;;  %vm5558_vm7 = vweird.f32 %v7343_v29  ;;  %vm5529_vm9 = vmor %vm5527_vm8, %vm5528_vm6 }
0x3110   :  { %v5524_v43 = vsub.f32 1.0, %v5523_v10  ;;  %vm5559_vm11 = vmor %vm5557_vm10, %vm5558_vm7 }
0x3111   :  { %v5554_v7 = vsub.f32 1.0, %v5553_v9 }
0x3112   :  { %v5525_v45 = vmul.f32 %v7341_v39, %v5524_v43 }
0x3113   :  { %v5555_v51 = vmul.f32 %v7343_v29, %v5554_v7 }
0x3114   :  { %v5526_v56 = vadd.f32 %v7341_v39, %v5525_v45 }
0x3115   :  { %v5556_v63 = vadd.f32 %v7343_v29, %v5555_v51 }
0x3116   :  { %v5530_v38 = vsel %vm5529_vm9, %v7341_v39, %v5526_v56 }
0x3117   :  { %v5560_v54 = vsel %vm5559_vm11, %v7343_v29, %v5556_v63  ;;  %v5535_v33 = vsel %vm5532_vm12, %v5534_v3, %v5530_v38 }
0x3118   :  { %v5565_v20 = vsel %vm5562_vm13, %v5564_v0, %v5560_v54 }
0x3156   :  { %v5596_v52 = vpop.permute.xlu1 %5595 }
0x3157   :  { %v5601_v24 = vmul.f32 %v5596_v52, %v5535_v33 }
0x315e   :  { %v5598_v37 = vpop.permute.xlu2 %5597 }
0x315f   :  { %v5602_v61 = vmul.f32 %v5598_v37, %v5565_v20 }
0x3161   :  { %v5603_v19 = vpack.c.bf16 %v5602_v61, %v5601_v24 }
0x3163   :  { %6579 = vmatmul.msk.bf16.vlgmr.msrb.gmra.mxu0 %vm175_vm0, %v5603_v19  ;;  %6580 = vmatmul.msk.bf16.vlgmr.msrb.gmra.mxu1 %vm175_vm0, %v5603_v19 }
0x3164   :  { %5933 = vmatpush.bf16.msrb.mxu1 %v8686_v62  ;;  %5919 = vmatpush.bf16.msrb.mxu0 %v8698_v6  ;;  %v4783_v62 = vadd.f32 %v4782_v40, %v8655_v57  ;;  %v4735_v6 = vpop.f32.mrf.mxu2 }
0x3166   :  { %v4807_v17 = vpack.c.bf16 %v4783_v62, %v4734_v48  ;;  %v8910_v62 = vadd.f32 %v4465_v5, %v8647_v36  ;;  %v3300_v36 = vadd.f32 %v8749_v22, %v8288_v41 }
0x3168   :  { %5934 = vmatpush.bf16.msrb.mxu1 %v8692_v60  ;;  %5920 = vmatpush.bf16.msrb.mxu0 %v8720_v11  ;;  %v4736_v60 = vadd.f32 %v4735_v6, %v8653_v23  ;;  %v4785_v11 = vadd.f32 %v4784_v28, %v8655_v57  ;;  %v5637_v46 = vunpack.c.l.bf16 %v4807_v17 }
0x316c   :  { %5935 = vmatpush.bf16.msrb.mxu1 %v8696_v26  ;;  %5921 = vmatpush.bf16.msrb.mxu0 %v8723_v21  ;;  %v5638_v26 = vunpack.c.h.bf16 %v4807_v17 }
0x3170   :  { %5936 = vmatpush.bf16.msrb.mxu1 %v8701_v58  ;;  %5922 = vmatpush.bf16.msrb.mxu0 %v8726_v2  ;;  %v4808_v58 = vpack.c.bf16 %v4785_v11, %v4736_v60  ;;  %v4464_v11 = vunpack.c.l.bf16 %v8745_v50 }
0x3172   :  { %v5640_v2 = vunpack.c.h.bf16 %v4808_v58  ;;  %v5639_v25 = vunpack.c.l.bf16 %v4808_v58  ;;  %v3251_v58 = vadd.f32 %v8761_v12, %v8286_v18 }
0x31e0   :  { %v5630_v13 = vpop.f32.mrf.mxu1  ;;  %v5616_v53 = vpop.f32.mrf.mxu0 }
0x31e1   :  { %v8899_v21 = vadd.f32 %v5638_v26, %v5630_v13  ;;  %v5641_v27 = vadd.f32 %v5637_v46, %v5616_v53  ;;  %v4468_v26 = vadd.f32 %v4464_v11, %v8645_v15 }
0x31e3   :  { %7344 = vtanh.f32 %v8899_v21  ;;  %v6581_v55 = vmul.f32 -1.442695, %v5641_v27  ;;  %v6467_v13 = vmul.f32 -1.442695, %v4468_v26 }
0x31e8   :  { %v5632_v1 = vpop.f32.mrf.mxu1  ;;  %v5618_v35 = vpop.f32.mrf.mxu0 }
0x31e9   :  { %v7345_v30 = vpop.eup %7344  ;;  %v8902_v31 = vadd.f32 %v5640_v2, %v5632_v1  ;;  %v5643_v39 = vadd.f32 %v5639_v25, %v5618_v35  ;;  %v8921_v2 = vpack.c.bf16 %v3300_v36, %v3251_v58 }
0x31ea   :  { %5727 = vrot.lane.b32.xlu0 %v7345_v30, %s7550_s2 }
0x31eb   :  { %7346 = vtanh.f32 %v8902_v31  ;;  %v6583_v29 = vmul.f32 -1.442695, %v5643_v39  ;;  %v4467_v53 = vunpack.c.h.bf16 %v8921_v2  ;;  %v4466_v36 = vunpack.c.l.bf16 %v8921_v2 }
0x31ec   :  { %7348 = vpow2.f32 %v6581_v55 }
0x31ed   :  { %7350 = vpow2.f32 %v6583_v29  ;;  %v8929_v50 = vadd.f32 %v4467_v53, %v8651_v14 }
0x31f1   :  { %v7347_v47 = vpop.eup %7346 }
0x31f2   :  { %5729 = vrot.lane.b32.xlu1 %v7347_v47, %s7550_s2  ;;  %v7349_v10 = vpop.eup %7348 }
0x31f3   :  { %v5657_v9 = vadd.f32 1.0, %v7349_v10  ;;  %v7351_v43 = vpop.eup %7350 }
0x31f4   :  { %v5659_v7 = vadd.f32 1.0, %v7351_v43 }
0x31f5   :  { %7352 = vrcp.f32 %v5657_v9  ;;  %v5672_v38 = vand.u32 2147483648, %v5657_v9  ;;  %vm5666_vm15 = vweird.f32 %v5657_v9  ;;  %v5670_v54 = vand.u32 2147483647, %v5657_v9 }
0x31f6   :  { %7354 = vrcp.f32 %v5659_v7  ;;  %v5702_v61 = vand.u32 2147483648, %v5659_v7  ;;  %vm5696_vm4 = vweird.f32 %v5659_v7  ;;  %v5700_v19 = vand.u32 2147483647, %v5659_v7 }
0x31f7   :  { %v5673_v0 = vor.u32 1.1754944e-38, %v5672_v38  ;;  %vm5671_vm2 = vcmp.eq.f32.partialorder %v5670_v54, 8.507059e+37  ;;  %7356 = vtanh.f32 %v8910_v62 }
0x31f8   :  { %v5703_v48 = vor.u32 1.1754944e-38, %v5702_v61  ;;  %vm5701_vm6 = vcmp.eq.f32.partialorder %v5700_v19, 8.507059e+37  ;;  %7358 = vpow2.f32 %v6467_v13 }
0x31fb   :  { %v7353_v45 = vpop.eup %7352 }
0x31fc   :  { %v5662_v51 = vmul.f32 %v7353_v45, %v5657_v9  ;;  %v7355_v63 = vpop.eup %7354  ;;  %vm5667_vm14 = vweird.f32 %v7353_v45 }
0x31fd   :  { %v5692_v59 = vmul.f32 %v7355_v63, %v5659_v7  ;;  %vm5668_vm1 = vmor %vm5666_vm15, %vm5667_vm14  ;;  %vm5697_vm3 = vweird.f32 %v7355_v63  ;;  %v7357_v60 = vpop.eup %7356 }
0x31fe   :  { %v5663_v56 = vsub.f32 1.0, %v5662_v51  ;;  %vm5698_vm5 = vmor %vm5696_vm4, %vm5697_vm3  ;;  %v7359_v15 = vpop.eup %7358  ;;  %v6582_v51 = vmul.f32 -1.442695, %v8899_v21 }
0x31ff   :  { %v5693_v32 = vsub.f32 1.0, %v5692_v59  ;;  %v4484_v18 = vadd.f32 1.0, %v7359_v15 }
0x3200   :  { %v5664_v44 = vmul.f32 %v7353_v45, %v5663_v56  ;;  %v6584_v56 = vmul.f32 -1.442695, %v8902_v31 }
0x3201   :  { %v5694_v52 = vmul.f32 %v7355_v63, %v5693_v32  ;;  %v4499_v39 = vand.u32 2147483648, %v4484_v18  ;;  %vm4493_vm8 = vweird.f32 %v4484_v18  ;;  %v4497_v29 = vand.u32 2147483647, %v4484_v18 }
0x3202   :  { %v5665_v16 = vadd.f32 %v7353_v45, %v5664_v44 }
0x3203   :  { %v5695_v24 = vadd.f32 %v7355_v63, %v5694_v52  ;;  %v4500_v9 = vor.u32 1.1754944e-38, %v4499_v39  ;;  %vm4498_vm10 = vcmp.eq.f32.partialorder %v4497_v29, 8.507059e+37 }
0x3204   :  { %v5669_v3 = vsel %vm5668_vm1, %v7353_v45, %v5665_v16 }
0x3205   :  { %v5674_v20 = vsel %vm5671_vm2, %v5673_v0, %v5669_v3  ;;  %v5699_v40 = vsel %vm5698_vm5, %v7355_v63, %v5695_v24 }
0x3206   :  { %v5704_v6 = vsel %vm5701_vm6, %v5703_v48, %v5699_v40  ;;  %v5723_v1 = vmul.f32 %v5674_v20, %v8874_v8 }
0x3207   :  { %v5724_v55 = vmul.f32 %v5704_v6, %v8879_v42 }
0x325c   :  { %v5728_v33 = vpop.permute.xlu0 %5727 }
0x325d   :  { %v5733_v37 = vmul.f32 %v5728_v33, %v5674_v20 }
0x325f   :  { %5737 = vrot.lane.b32.xlu2 %v5733_v37, %s7550_s2 }
0x3264   :  { %v5730_v17 = vpop.permute.xlu1 %5729 }
0x3265   :  { %v5734_v28 = vmul.f32 %v5730_v17, %v5704_v6 }
0x3267   :  { %5739 = vrot.lane.b32.xlu0 %v5734_v28, %s7550_s2 }
0x326f   :  { %4554 = vrot.lane.b32.xlu0 %v7357_v60, %s7550_s2 }
0x32b9   :  { %v5738_v30 = vpop.permute.xlu2 %5737 }
0x32ba   :  { %v8924_v47 = vadd.f32 %v5738_v30, %v5723_v1  ;;  %v4470_v1 = vadd.f32 %v4466_v36, %v8649_v49 }
0x32bc   :  { %7360 = vtanh.f32 %v8924_v47  ;;  %v6469_v30 = vmul.f32 -1.442695, %v4470_v1 }
0x32bd   :  { %7362 = vtanh.f32 %v8929_v50 }
0x32be   :  { %7364 = vrcp.f32 %v4484_v18 }
0x32c2   :  { %v7361_v12 = vpop.eup %7360 }
0x32c3   :  { %5749 = vrot.lane.b32.xlu1 %v7361_v12, %s7550_s2  ;;  %v7363_v41 = vpop.eup %7362  ;;  %v4787_v12 = vpop.f32.mrf.mxu3 }
0x32c4   :  { %v7365_v22 = vpop.eup %7364 }
0x32c5   :  { %v4489_v8 = vmul.f32 %v7365_v22, %v4484_v18  ;;  %vm4494_vm7 = vweird.f32 %v7365_v22  ;;  %v4738_v18 = vpop.f32.mrf.mxu2 }
0x32c6   :  { %vm4495_vm9 = vmor %vm4493_vm8, %vm4494_vm7 }
0x32c7   :  { %v4490_v46 = vsub.f32 1.0, %v4489_v8 }
0x32c9   :  { %v4491_v27 = vmul.f32 %v7365_v22, %v4490_v46 }
0x32cb   :  { %4556 = vrot.lane.b32.xlu1 %v7363_v41, %s7550_s2  ;;  %v4492_v14 = vadd.f32 %v7365_v22, %v4491_v27  ;;  %v4739_v41 = vadd.f32 %v4738_v18, %v8653_v23 }
0x32cd   :  { %v4496_v10 = vsel %vm4495_vm9, %v7365_v22, %v4492_v14  ;;  %v4788_v22 = vadd.f32 %v4787_v12, %v8655_v57  ;;  %v4740_v27 = vpop.f32.mrf.mxu2 }
0x32ce   :  { %v8938_v43 = vsel %vm4498_vm10, %v4500_v9, %v4496_v10  ;;  %v4741_v2 = vadd.f32 %v4740_v27, %v8653_v23 }
0x32cf   :  { %v4809_v46 = vpack.c.bf16 %v4788_v22, %v4739_v41 }
0x32d1   :  { %v5792_v14 = vunpack.c.h.bf16 %v4809_v46 }
0x32d9   :  { %v5740_v35 = vpop.permute.xlu0 %5739 }
0x32da   :  { %v8935_v25 = vadd.f32 %v5740_v35, %v5724_v55  ;;  %v4789_v55 = vpop.f32.mrf.mxu3 }
0x32db   :  { %v4790_v49 = vadd.f32 %v4789_v55, %v8655_v57 }
0x32dc   :  { %7366 = vtanh.f32 %v8935_v25 }
0x32dd   :  { %7368 = vpow2.f32 %v6582_v51  ;;  %v4810_v9 = vpack.c.bf16 %v4790_v49, %v4741_v2 }
0x32de   :  { %7370 = vpow2.f32 %v6584_v56 }
0x32e1   :  { %v4555_v7 = vpop.permute.xlu0 %4554 }
0x32e2   :  { %v7367_v45 = vpop.eup %7366  ;;  %v4560_v42 = vmul.f32 %v4555_v7, %v8938_v43 }
0x32e3   :  { %5751 = vrot.lane.b32.xlu2 %v7367_v45, %s7550_s2  ;;  %v7369_v63 = vpop.eup %7368 }
0x32e4   :  { %4564 = vrot.lane.b32.xlu1 %v4560_v42, %s7550_s2  ;;  %v7371_v44 = vpop.eup %7370  ;;  %v5658_v59 = vadd.f32 1.0, %v7369_v63  ;;  %v5794_v42 = vunpack.c.h.bf16 %v4810_v9 }
0x32e5   :  { %v5660_v16 = vadd.f32 1.0, %v7371_v44 }
0x32e6   :  { %7372 = vrcp.f32 %v5658_v59  ;;  %vm5681_vm13 = vweird.f32 %v5658_v59  ;;  %v5687_v31 = vand.u32 2147483648, %v5658_v59  ;;  %v5685_v61 = vand.u32 2147483647, %v5658_v59 }
0x32e7   :  { %7374 = vrcp.f32 %v5660_v16  ;;  %v5717_v24 = vand.u32 2147483648, %v5660_v16  ;;  %vm5711_vm15 = vweird.f32 %v5660_v16  ;;  %v5715_v19 = vand.u32 2147483647, %v5660_v16 }
0x32e8   :  { %v5688_v48 = vor.u32 1.1754944e-38, %v5687_v31  ;;  %vm5686_vm2 = vcmp.eq.f32.partialorder %v5685_v61, 8.507059e+37  ;;  %7376 = vpow2.f32 %v6469_v30  ;;  %v5791_v31 = vunpack.c.l.bf16 %v4809_v46 }
0x32e9   :  { %v5718_v6 = vor.u32 1.1754944e-38, %v5717_v24  ;;  %vm5716_vm3 = vcmp.eq.f32.partialorder %v5715_v19, 8.507059e+37 }
0x32ec   :  { %v7373_v32 = vpop.eup %7372 }
0x32ed   :  { %v7375_v38 = vpop.eup %7374  ;;  %v5677_v54 = vmul.f32 %v7373_v32, %v5658_v59  ;;  %vm5682_vm11 = vweird.f32 %v7373_v32 }
0x32ee   :  { %v5707_v3 = vmul.f32 %v7375_v38, %v5660_v16  ;;  %vm5712_vm12 = vweird.f32 %v7375_v38  ;;  %vm5683_vm14 = vmor %vm5681_vm13, %vm5682_vm11  ;;  %v7377_v53 = vpop.eup %7376 }
0x32ef   :  { %v5678_v52 = vsub.f32 1.0, %v5677_v54  ;;  %vm5713_vm1 = vmor %vm5711_vm15, %vm5712_vm12  ;;  %v4486_v15 = vadd.f32 1.0, %v7377_v53 }
0x32f0   :  { %v5708_v0 = vsub.f32 1.0, %v5707_v3  ;;  %v4550_v3 = vmul.f32 %v8938_v43, %v8597_v4  ;;  %v6468_v43 = vmul.f32 -1.442695, %v8910_v62 }
0x32f1   :  { %v5679_v33 = vmul.f32 %v7373_v32, %v5678_v52  ;;  %7378 = vrcp.f32 %v4486_v15  ;;  %v4529_v44 = vand.u32 2147483648, %v4486_v15  ;;  %vm4523_vm5 = vweird.f32 %v4486_v15 }
0x32f2   :  { %v5709_v20 = vmul.f32 %v7375_v38, %v5708_v0  ;;  %v4527_v16 = vand.u32 2147483647, %v4486_v15 }
0x32f3   :  { %v5680_v21 = vadd.f32 %v7373_v32, %v5679_v33  ;;  %v4530_v54 = vor.u32 1.1754944e-38, %v4529_v44 }
0x32f4   :  { %v5710_v37 = vadd.f32 %v7375_v38, %v5709_v20  ;;  %vm4528_vm7 = vcmp.eq.f32.partialorder %v4527_v16, 8.507059e+37 }
0x32f5   :  { %v5684_v5 = vsel %vm5683_vm14, %v7373_v32, %v5680_v21 }
0x32f6   :  { %v5714_v40 = vsel %vm5713_vm1, %v7375_v38, %v5710_v37  ;;  %v5689_v28 = vsel %vm5686_vm2, %v5688_v48, %v5684_v5 }
0x32f7   :  { %v5719_v60 = vsel %vm5716_vm3, %v5718_v6, %v5714_v40  ;;  %v7379_v8 = vpop.eup %7378 }
0x32f8   :  { %v4519_v35 = vmul.f32 %v7379_v8, %v4486_v15  ;;  %vm4524_vm4 = vweird.f32 %v7379_v8 }
0x32f9   :  { %vm4525_vm6 = vmor %vm4523_vm5, %vm4524_vm4 }
0x32fa   :  { %v4520_v39 = vsub.f32 1.0, %v4519_v35 }
0x32fc   :  { %v4521_v7 = vmul.f32 %v7379_v8, %v4520_v39 }
0x32fe   :  { %v4522_v51 = vadd.f32 %v7379_v8, %v4521_v7 }
0x3300   :  { %v4526_v32 = vsel %vm4525_vm6, %v7379_v8, %v4522_v51 }
0x3301   :  { %v4531_v52 = vsel %vm4528_vm7, %v4530_v54, %v4526_v32 }
0x3302   :  { %v4551_v55 = vmul.f32 %v4531_v52, %v8608_v34 }
0x3335   :  { %v5750_v17 = vpop.permute.xlu1 %5749 }
0x3336   :  { %v5755_v26 = vmul.f32 %v5750_v17, %v5689_v28  ;;  %v5793_v17 = vunpack.c.l.bf16 %v4810_v9 }
0x333d   :  { %v5752_v11 = vpop.permute.xlu2 %5751  ;;  %v4557_v45 = vpop.permute.xlu1 %4556 }
0x333e   :  { %v5756_v13 = vmul.f32 %v5752_v11, %v5719_v60  ;;  %v4561_v33 = vmul.f32 %v4557_v45, %v4531_v52 }
0x3340   :  { %v5757_v58 = vpack.c.bf16 %v5756_v13, %v5755_v26 }
0x3342   :  { %6585 = vmatmul.msk.bf16.vlgmr.msra.gmra.mxu0 %vm175_vm0, %v5757_v58  ;;  %6586 = vmatmul.msk.bf16.vlgmr.msra.gmra.mxu1 %vm175_vm0, %v5757_v58 }
0x3356   :  { %v4565_v38 = vpop.permute.xlu1 %4564 }
0x3357   :  { %v4570_v0 = vadd.f32 %v4565_v38, %v4550_v3 }
0x33bf   :  { %v5784_v29 = vpop.f32.mrf.mxu1  ;;  %v5770_v37 = vpop.f32.mrf.mxu0 }
0x33c0   :  { %v8953_v10 = vadd.f32 %v5792_v14, %v5784_v29  ;;  %v5795_v24 = vadd.f32 %v5791_v31, %v5770_v37 }
0x33c2   :  { %7380 = vtanh.f32 %v8953_v10  ;;  %v6587_v61 = vmul.f32 -1.442695, %v5795_v24 }
0x33c7   :  { %v5786_v56 = vpop.f32.mrf.mxu1  ;;  %v5772_v40 = vpop.f32.mrf.mxu0 }
0x33c8   :  { %v7381_v63 = vpop.eup %7380  ;;  %v8956_v59 = vadd.f32 %v5794_v42, %v5786_v56  ;;  %v5797_v28 = vadd.f32 %v5793_v17, %v5772_v40 }
0x33c9   :  { %5881 = vrot.lane.b32.xlu2 %v7381_v63, %s7550_s2 }
0x33ca   :  { %7382 = vtanh.f32 %v8956_v59  ;;  %v6589_v26 = vmul.f32 -1.442695, %v5797_v28 }
0x33cb   :  { %7384 = vtanh.f32 %v4570_v0 }
0x33cc   :  { %7386 = vpow2.f32 %v6587_v61 }
0x33d0   :  { %v7383_v20 = vpop.eup %7382 }
0x33d1   :  { %4566 = vrot.lane.b32.xlu2 %v4561_v33, %s7550_s2  ;;  %5883 = vrot.lane.b32.xlu0 %v7383_v20, %s7550_s2  ;;  %v7385_v21 = vpop.eup %7384  ;;  %v6470_v20 = vmul.f32 -1.442695, %v8929_v50 }
0x33d2   :  { %v7387_v19 = vpop.eup %7386 }
0x33d3   :  { %v5811_v4 = vadd.f32 1.0, %v7387_v19 }
0x33d5   :  { %7388 = vrcp.f32 %v5811_v4  ;;  %v5826_v1 = vand.u32 2147483648, %v5811_v4  ;;  %vm5820_vm9 = vweird.f32 %v5811_v4  ;;  %v5824_v62 = vand.u32 2147483647, %v5811_v4 }
0x33d6   :  { %7390 = vpow2.f32 %v6468_v43 }
0x33d7   :  { %v5827_v18 = vor.u32 1.1754944e-38, %v5826_v1  ;;  %vm5825_vm11 = vcmp.eq.f32.partialorder %v5824_v62, 8.507059e+37 }
0x33d9   :  { %4576 = vrot.lane.b32.xlu2 %v7385_v21, %s7550_s2 }
0x33db   :  { %v7389_v5 = vpop.eup %7388 }
0x33dc   :  { %v7391_v48 = vpop.eup %7390  ;;  %v5816_v6 = vmul.f32 %v7389_v5, %v5811_v4  ;;  %vm5821_vm8 = vweird.f32 %v7389_v5 }
0x33dd   :  { %v4485_v60 = vadd.f32 1.0, %v7391_v48  ;;  %vm5822_vm10 = vmor %vm5820_vm9, %vm5821_vm8 }
0x33de   :  { %v5817_v11 = vsub.f32 1.0, %v5816_v6 }
0x33df   :  { %7392 = vrcp.f32 %v4485_v60  ;;  %v4514_v39 = vand.u32 2147483648, %v4485_v60  ;;  %vm4508_vm13 = vweird.f32 %v4485_v60  ;;  %v4512_v29 = vand.u32 2147483647, %v4485_v60 }
0x33e0   :  { %v5818_v13 = vmul.f32 %v7389_v5, %v5817_v11  ;;  %7394 = vpow2.f32 %v6589_v26 }
0x33e1   :  { %v4515_v45 = vor.u32 1.1754944e-38, %v4514_v39  ;;  %vm4513_vm15 = vcmp.eq.f32.partialorder %v4512_v29, 8.507059e+37 }
0x33e2   :  { %v5819_v58 = vadd.f32 %v7389_v5, %v5818_v13 }
0x33e4   :  { %v5823_v53 = vsel %vm5822_vm10, %v7389_v5, %v5819_v58 }
0x33e5   :  { %v7393_v36 = vpop.eup %7392  ;;  %v5828_v22 = vsel %vm5825_vm11, %v5827_v18, %v5823_v53  ;;  %v6588_v53 = vmul.f32 -1.442695, %v8953_v10 }
0x33e6   :  { %v7395_v30 = vpop.eup %7394  ;;  %v4504_v15 = vmul.f32 %v7393_v36, %v4485_v60  ;;  %vm4509_vm12 = vweird.f32 %v7393_v36  ;;  %v5877_v61 = vmul.f32 %v5828_v22, %v8924_v47 }
0x33e7   :  { %v5813_v12 = vadd.f32 1.0, %v7395_v30  ;;  %vm4510_vm14 = vmor %vm4508_vm13, %vm4509_vm12 }
0x33e8   :  { %v4505_v46 = vsub.f32 1.0, %v4504_v15  ;;  %v6590_v15 = vmul.f32 -1.442695, %v8956_v59 }
0x33e9   :  { %7396 = vrcp.f32 %v5813_v12  ;;  %v5856_v32 = vand.u32 2147483648, %v5813_v12  ;;  %vm5850_vm2 = vweird.f32 %v5813_v12  ;;  %v5854_v38 = vand.u32 2147483647, %v5813_v12 }
0x33ea   :  { %v4506_v27 = vmul.f32 %v7393_v36, %v4505_v46 }
0x33eb   :  { %v5857_v3 = vor.u32 1.1754944e-38, %v5856_v32  ;;  %vm5855_vm4 = vcmp.eq.f32.partialorder %v5854_v38, 8.507059e+37 }
0x33ec   :  { %v4507_v49 = vadd.f32 %v7393_v36, %v4506_v27 }
0x33ee   :  { %v4511_v9 = vsel %vm4510_vm14, %v7393_v36, %v4507_v49 }
0x33ef   :  { %v7397_v14 = vpop.eup %7396  ;;  %v4516_v42 = vsel %vm4513_vm15, %v4515_v45, %v4511_v9 }
0x33f0   :  { %v5846_v7 = vmul.f32 %v7397_v14, %v5813_v12  ;;  %vm5851_vm1 = vweird.f32 %v7397_v14 }
0x33f1   :  { %vm5852_vm3 = vmor %vm5850_vm2, %vm5851_vm1 }
0x33f2   :  { %v5847_v44 = vsub.f32 1.0, %v5846_v7 }
0x33f4   :  { %v5848_v34 = vmul.f32 %v7397_v14, %v5847_v44 }
0x33f6   :  { %v5849_v16 = vadd.f32 %v7397_v14, %v5848_v34 }
0x33f8   :  { %v5853_v54 = vsel %vm5852_vm3, %v7397_v14, %v5849_v16 }
0x33f9   :  { %v5858_v0 = vsel %vm5855_vm4, %v5857_v3, %v5853_v54 }
0x33fa   :  { %v5878_v36 = vmul.f32 %v5858_v0, %v8935_v25 }
0x3423   :  { %v5882_v41 = vpop.permute.xlu2 %5881 }
0x3424   :  { %v5887_v8 = vmul.f32 %v5882_v41, %v5828_v22 }
0x3426   :  { %5891 = vrot.lane.b32.xlu0 %v5887_v8, %s7550_s2 }
0x342b   :  { %v4567_v35 = vpop.permute.xlu2 %4566 }
0x342c   :  { %v4571_v2 = vadd.f32 %v4567_v35, %v4551_v55 }
0x342e   :  { %7398 = vtanh.f32 %v4571_v2 }
0x342f   :  { %7400 = vpow2.f32 %v6470_v20 }
0x3433   :  { %v4577_v51 = vpop.permute.xlu2 %4576 }
0x3434   :  { %v7399_v56 = vpop.eup %7398  ;;  %v4582_v63 = vmul.f32 %v4577_v51, %v4516_v42 }
0x3435   :  { %4578 = vrot.lane.b32.xlu0 %v7399_v56, %s7550_s2  ;;  %v7401_v21 = vpop.eup %7400 }
0x3436   :  { %4584 = vst.msk [vmem:[#allocation2 + $0x70] sm:$0xff] %vm175_vm0, %v4582_v63  ;;  %v4487_v37 = vadd.f32 1.0, %v7401_v21 }
0x3438   :  { %7402 = vrcp.f32 %v4487_v37  ;;  %v4544_v17 = vand.u32 2147483648, %v4487_v37  ;;  %vm4538_vm6 = vweird.f32 %v4487_v37  ;;  %v4542_v50 = vand.u32 2147483647, %v4487_v37 }
0x343a   :  { %v4545_v28 = vor.u32 1.1754944e-38, %v4544_v17  ;;  %vm4543_vm8 = vcmp.eq.f32.partialorder %v4542_v50, 8.507059e+37 }
0x343d   :  { %v4620_v26 = vld [vmem:[#allocation2 + $0x70] sm:$0xff] }
0x343e   :  { %v7403_v31 = vpop.eup %7402 }
0x343f   :  { %v4534_v24 = vmul.f32 %v7403_v31, %v4487_v37  ;;  %vm4539_vm5 = vweird.f32 %v7403_v31 }
0x3440   :  { %vm4540_vm7 = vmor %vm4538_vm6, %vm4539_vm5 }
0x3441   :  { %v4535_v4 = vsub.f32 1.0, %v4534_v24 }
0x3443   :  { %v5884_v52 = vpop.permute.xlu0 %5883  ;;  %v4536_v5 = vmul.f32 %v7403_v31, %v4535_v4 }
0x3444   :  { %v5888_v33 = vmul.f32 %v5884_v52, %v5858_v0 }
0x3445   :  { %v4537_v40 = vadd.f32 %v7403_v31, %v4536_v5 }
0x3446   :  { %5893 = vrot.lane.b32.xlu1 %v5888_v33, %s7550_s2 }
0x3447   :  { %v4541_v6 = vsel %vm4540_vm7, %v7403_v31, %v4537_v40 }
0x3448   :  { %v4546_v47 = vsel %vm4543_vm8, %v4545_v28, %v4541_v6 }
0x3498   :  { %v5892_v19 = vpop.permute.xlu0 %5891 }
0x3499   :  { %v8973_v43 = vadd.f32 %v5892_v19, %v5877_v61 }
0x349b   :  { %7404 = vtanh.f32 %v8973_v43 }
0x34a1   :  { %v7405_v48 = vpop.eup %7404 }
0x34a2   :  { %5903 = vrot.lane.b32.xlu1 %v7405_v48, %s7550_s2 }
0x34a7   :  { %v4579_v60 = vpop.permute.xlu0 %4578 }
0x34a8   :  { %v4583_v11 = vmul.f32 %v4579_v60, %v4546_v47 }
0x34aa   :  { %4585 = vst.msk [vmem:[#allocation2 + $0x78] sm:$0xff] %vm175_vm0, %v4583_v11 }
0x34b1   :  { %v4621_v13 = vld [vmem:[#allocation2 + $0x78] sm:$0xff] }
0x34b2   :  { %v4629_v58 = vpack.c.bf16 %v4621_v13, %v4620_v26 }
0x34b4   :  { %6510 = vmatmul.msk.bf16.gmra.mxu2 %vm175_vm0, %v4629_v58  ;;  %6518 = vmatmul.msk.bf16.gmra.mxu3 %vm175_vm0, %v4629_v58 }
0x34b8   :  { %v5894_v1 = vpop.permute.xlu1 %5893 }
0x34b9   :  { %v8981_v62 = vadd.f32 %v5894_v1, %v5878_v36 }
0x34bb   :  { %7406 = vtanh.f32 %v8981_v62 }
0x34bc   :  { %7408 = vpow2.f32 %v6588_v53 }
0x34bd   :  { %7410 = vpow2.f32 %v6590_v15 }
0x34c1   :  { %v7407_v30 = vpop.eup %7406 }
0x34c2   :  { %5905 = vrot.lane.b32.xlu2 %v7407_v30, %s7550_s2  ;;  %v7409_v18 = vpop.eup %7408 }
0x34c3   :  { %v7411_v12 = vpop.eup %7410  ;;  %v5812_v41 = vadd.f32 1.0, %v7409_v18 }
0x34c4   :  { %v5814_v22 = vadd.f32 1.0, %v7411_v12 }
0x34c5   :  { %7412 = vrcp.f32 %v5812_v41  ;;  %vm5835_vm11 = vweird.f32 %v5812_v41  ;;  %v5841_v59 = vand.u32 2147483648, %v5812_v41  ;;  %v5839_v29 = vand.u32 2147483647, %v5812_v41 }
0x34c6   :  { %7414 = vrcp.f32 %v5814_v22  ;;  %v5871_v39 = vand.u32 2147483648, %v5814_v22  ;;  %vm5865_vm13 = vweird.f32 %v5814_v22  ;;  %v5869_v9 = vand.u32 2147483647, %v5814_v22 }
0x34c7   :  { %v5842_v42 = vor.u32 1.1754944e-38, %v5841_v59  ;;  %vm5840_vm15 = vcmp.eq.f32.partialorder %v5839_v29, 8.507059e+37 }
0x34c8   :  { %v5872_v56 = vor.u32 1.1754944e-38, %v5871_v39  ;;  %vm5870_vm1 = vcmp.eq.f32.partialorder %v5869_v9, 8.507059e+37 }
0x34cb   :  { %v7413_v25 = vpop.eup %7412 }
0x34cc   :  { %v7415_v8 = vpop.eup %7414  ;;  %v5831_v46 = vmul.f32 %v7413_v25, %v5812_v41  ;;  %vm5836_vm9 = vweird.f32 %v7413_v25 }
0x34cd   :  { %v5861_v27 = vmul.f32 %v7415_v8, %v5814_v22  ;;  %vm5866_vm10 = vweird.f32 %v7415_v8  ;;  %vm5837_vm12 = vmor %vm5835_vm11, %vm5836_vm9 }
0x34ce   :  { %v5832_v55 = vsub.f32 1.0, %v5831_v46  ;;  %vm5867_vm14 = vmor %vm5865_vm13, %vm5866_vm10 }
0x34cf   :  { %v5862_v35 = vsub.f32 1.0, %v5861_v27 }
0x34d0   :  { %v5833_v2 = vmul.f32 %v7413_v25, %v5832_v55 }
0x34d1   :  { %v5863_v49 = vmul.f32 %v7415_v8, %v5862_v35 }
0x34d2   :  { %v5834_v10 = vadd.f32 %v7413_v25, %v5833_v2 }
0x34d3   :  { %v5864_v14 = vadd.f32 %v7415_v8, %v5863_v49 }
0x34d4   :  { %v5838_v7 = vsel %vm5837_vm12, %v7413_v25, %v5834_v10 }
0x34d5   :  { %v5868_v45 = vsel %vm5867_vm14, %v7415_v8, %v5864_v14  ;;  %v5843_v63 = vsel %vm5840_vm15, %v5842_v42, %v5838_v7 }
0x34d6   :  { %v5873_v44 = vsel %vm5870_vm1, %v5872_v56, %v5868_v45 }
0x3514   :  { %v5904_v51 = vpop.permute.xlu1 %5903 }
0x3515   :  { %v5909_v16 = vmul.f32 %v5904_v51, %v5843_v63 }
0x351c   :  { %v5906_v34 = vpop.permute.xlu2 %5905 }
0x351d   :  { %v5910_v32 = vmul.f32 %v5906_v34, %v5873_v44 }
0x351f   :  { %v5911_v38 = vpack.c.bf16 %v5910_v32, %v5909_v16 }
0x3521   :  { %6591 = vmatmul.msk.bf16.vlgmr.msrb.gmra.mxu0 %vm175_vm0, %v5911_v38  ;;  %6592 = vmatmul.msk.bf16.vlgmr.msrb.gmra.mxu1 %vm175_vm0, %v5911_v38 }
0x3537   :  { %v4743_v54 = vpop.f32.mrf.mxu2  ;;  %v4792_v3 = vpop.f32.mrf.mxu3 }
0x3538   :  { %v4744_v52 = vadd.f32 %v4743_v54, %v8653_v23  ;;  %v4793_v0 = vadd.f32 %v4792_v3, %v8655_v57 }
0x353a   :  { %v4811_v33 = vpack.c.bf16 %v4793_v0, %v4744_v52 }
0x353c   :  { %v5946_v24 = vunpack.c.h.bf16 %v4811_v33 }
0x353f   :  { %v4745_v20 = vpop.f32.mrf.mxu2  ;;  %v4794_v21 = vpop.f32.mrf.mxu3 }
0x3540   :  { %v4746_v37 = vadd.f32 %v4745_v20, %v8653_v23  ;;  %v4795_v31 = vadd.f32 %v4794_v21, %v8655_v57  ;;  %v5945_v57 = vunpack.c.l.bf16 %v4811_v33 }
0x3542   :  { %v4812_v4 = vpack.c.bf16 %v4795_v31, %v4746_v37 }
0x3544   :  { %v5948_v5 = vunpack.c.h.bf16 %v4812_v4  ;;  %v5947_v60 = vunpack.c.l.bf16 %v4812_v4 }
0x359e   :  { %v5938_v61 = vpop.f32.mrf.mxu1  ;;  %v5924_v23 = vpop.f32.mrf.mxu0 }
0x359f   :  { %v8993_v19 = vadd.f32 %v5946_v24, %v5938_v61  ;;  %v5949_v6 = vadd.f32 %v5945_v57, %v5924_v23 }
0x35a1   :  { %7416 = vtanh.f32 %v8993_v19  ;;  %v6593_v28 = vmul.f32 -1.442695, %v5949_v6  ;;  %v6594_v54 = vmul.f32 -1.442695, %v8993_v19 }
0x35a6   :  { %v5940_v40 = vpop.f32.mrf.mxu1  ;;  %v5926_v47 = vpop.f32.mrf.mxu0 }
0x35a7   :  { %v7417_v48 = vpop.eup %7416  ;;  %v8996_v17 = vadd.f32 %v5948_v5, %v5940_v40  ;;  %v5951_v11 = vadd.f32 %v5947_v60, %v5926_v47 }
0x35a8   :  { %6035 = vrot.lane.b32.xlu0 %v7417_v48, %s7550_s2 }
0x35a9   :  { %7418 = vtanh.f32 %v8996_v17  ;;  %v6595_v26 = vmul.f32 -1.442695, %v5951_v11  ;;  %v6596_v3 = vmul.f32 -1.442695, %v8996_v17 }
0x35aa   :  { %7420 = vpow2.f32 %v6593_v28 }
0x35ab   :  { %7422 = vpow2.f32 %v6595_v26 }
0x35af   :  { %v7419_v50 = vpop.eup %7418 }
0x35b0   :  { %6037 = vrot.lane.b32.xlu1 %v7419_v50, %s7550_s2  ;;  %v7421_v13 = vpop.eup %7420  ;;  %v6670_v50 = vld [vmem:[%s9024_s4] ss:$0 sm:$0xff] }
0x35b1   :  { %v5965_v58 = vadd.f32 1.0, %v7421_v13  ;;  %v7423_v36 = vpop.eup %7422 }
0x35b2   :  { %v5967_v1 = vadd.f32 1.0, %v7423_v36 }
0x35b3   :  { %7424 = vrcp.f32 %v5965_v58  ;;  %v5980_v8 = vand.u32 2147483648, %v5965_v58  ;;  %vm5974_vm3 = vweird.f32 %v5965_v58  ;;  %v5978_v46 = vand.u32 2147483647, %v5965_v58 }
0x35b4   :  { %7426 = vrcp.f32 %v5967_v1  ;;  %v6010_v59 = vand.u32 2147483648, %v5967_v1  ;;  %vm6004_vm7 = vweird.f32 %v5967_v1  ;;  %v6008_v39 = vand.u32 2147483647, %v5967_v1 }
0x35b5   :  { %v5981_v35 = vor.u32 1.1754944e-38, %v5980_v8  ;;  %vm5979_vm5 = vcmp.eq.f32.partialorder %v5978_v46, 8.507059e+37 }
0x35b6   :  { %v6011_v9 = vor.u32 1.1754944e-38, %v6010_v59  ;;  %vm6009_vm9 = vcmp.eq.f32.partialorder %v6008_v39, 8.507059e+37 }
0x35b9   :  { %v7425_v30 = vpop.eup %7424 }
0x35ba   :  { %v5970_v53 = vmul.f32 %v7425_v30, %v5965_v58  ;;  %v7427_v18 = vpop.eup %7426  ;;  %vm5975_vm2 = vweird.f32 %v7425_v30 }
0x35bb   :  { %v6000_v41 = vmul.f32 %v7427_v18, %v5967_v1  ;;  %vm5976_vm4 = vmor %vm5974_vm3, %vm5975_vm2  ;;  %vm6005_vm6 = vweird.f32 %v7427_v18  ;;  %vm6083_vm3 = vcmask 7168  }
0x35bc   :  { %v5971_v15 = vsub.f32 1.0, %v5970_v53  ;;  %vm6006_vm8 = vmor %vm6004_vm7, %vm6005_vm6 }
0x35bd   :  { %v6001_v25 = vsub.f32 1.0, %v6000_v41 }
0x35be   :  { %v5972_v12 = vmul.f32 %v7425_v30, %v5971_v15 }
0x35bf   :  { %v6002_v55 = vmul.f32 %v7427_v18, %v6001_v25 }
0x35c0   :  { %v5973_v22 = vadd.f32 %v7425_v30, %v5972_v12 }
0x35c1   :  { %v6003_v14 = vadd.f32 %v7427_v18, %v6002_v55 }
0x35c2   :  { %v5977_v27 = vsel %vm5976_vm4, %v7425_v30, %v5973_v22 }
0x35c3   :  { %v5982_v49 = vsel %vm5979_vm5, %v5981_v35, %v5977_v27  ;;  %v6007_v29 = vsel %vm6006_vm8, %v7427_v18, %v6003_v14  ;;  %v6671_v18 = vld [vmem:[#allocation4] ss:$0 sm:$0xff] }
0x35c4   :  { %v6012_v45 = vsel %vm6009_vm9, %v6011_v9, %v6007_v29  ;;  %v6031_v51 = vmul.f32 %v5982_v49, %v8973_v43 }
0x35c5   :  { %v6032_v34 = vmul.f32 %v6012_v45, %v8981_v62 }
0x361a   :  { %v6036_v2 = vpop.permute.xlu0 %6035 }
0x361b   :  { %v6041_v10 = vmul.f32 %v6036_v2, %v5982_v49 }
0x361d   :  { %6045 = vrot.lane.b32.xlu2 %v6041_v10, %s7550_s2 }
0x3622   :  { %v6038_v7 = vpop.permute.xlu1 %6037 }
0x3623   :  { %v6042_v42 = vmul.f32 %v6038_v7, %v6012_v45 }
0x3625   :  { %6047 = vrot.lane.b32.xlu0 %v6042_v42, %s7550_s2 }
0x3677   :  { %v6046_v56 = vpop.permute.xlu2 %6045 }
0x3678   :  { %v6051_v63 = vadd.f32 %v6046_v56, %v6031_v51 }
0x367a   :  { %7428 = vtanh.f32 %v6051_v63 }
0x3680   :  { %v7429_v44 = vpop.eup %7428 }
0x3681   :  { %6057 = vrot.lane.b32.xlu1 %v7429_v44, %s7550_s2 }
0x3697   :  { %v6048_v16 = vpop.permute.xlu0 %6047 }
0x3698   :  { %v6052_v32 = vadd.f32 %v6048_v16, %v6032_v34 }
0x369a   :  { %7430 = vtanh.f32 %v6052_v32 }
0x369b   :  { %7432 = vpow2.f32 %v6594_v54 }
0x369c   :  { %7434 = vpow2.f32 %v6596_v3 }
0x36a0   :  { %v7431_v38 = vpop.eup %7430 }
0x36a1   :  { %6059 = vrot.lane.b32.xlu2 %v7431_v38, %s7550_s2  ;;  %v7433_v43 = vpop.eup %7432 }
0x36a2   :  { %v5966_v52 = vadd.f32 1.0, %v7433_v43  ;;  %v7435_v0 = vpop.eup %7434 }
0x36a3   :  { %v5968_v33 = vadd.f32 1.0, %v7435_v0 }
0x36a4   :  { %7436 = vrcp.f32 %v5966_v52  ;;  %v5995_v19 = vand.u32 2147483648, %v5966_v52  ;;  %vm5989_vm11 = vweird.f32 %v5966_v52  ;;  %v5993_v5 = vand.u32 2147483647, %v5966_v52 }
0x36a5   :  { %7438 = vrcp.f32 %v5968_v33  ;;  %v6025_v47 = vand.u32 2147483648, %v5968_v33  ;;  %vm6019_vm15 = vweird.f32 %v5968_v33  ;;  %v6023_v11 = vand.u32 2147483647, %v5968_v33 }
0x36a6   :  { %v5996_v17 = vor.u32 1.1754944e-38, %v5995_v19  ;;  %vm5994_vm13 = vcmp.eq.f32.partialorder %v5993_v5, 8.507059e+37 }
0x36a7   :  { %v6026_v58 = vor.u32 1.1754944e-38, %v6025_v47  ;;  %vm6024_vm2 = vcmp.eq.f32.partialorder %v6023_v11, 8.507059e+37 }
0x36aa   :  { %v7437_v20 = vpop.eup %7436 }
0x36ab   :  { %v5985_v62 = vmul.f32 %v7437_v20, %v5966_v52  ;;  %v7439_v37 = vpop.eup %7438  ;;  %vm5990_vm10 = vweird.f32 %v7437_v20 }
0x36ac   :  { %v6015_v24 = vmul.f32 %v7439_v37, %v5968_v33  ;;  %vm5991_vm12 = vmor %vm5989_vm11, %vm5990_vm10  ;;  %vm6020_vm14 = vweird.f32 %v7439_v37 }
0x36ad   :  { %v5986_v21 = vsub.f32 1.0, %v5985_v62  ;;  %vm6021_vm1 = vmor %vm6019_vm15, %vm6020_vm14 }
0x36ae   :  { %v6016_v4 = vsub.f32 1.0, %v6015_v24 }
0x36af   :  { %v5987_v31 = vmul.f32 %v7437_v20, %v5986_v21 }
0x36b0   :  { %v6017_v48 = vmul.f32 %v7439_v37, %v6016_v4 }
0x36b1   :  { %v5988_v61 = vadd.f32 %v7437_v20, %v5987_v31 }
0x36b2   :  { %v6018_v28 = vadd.f32 %v7439_v37, %v6017_v48 }
0x36b3   :  { %v5992_v40 = vsel %vm5991_vm12, %v7437_v20, %v5988_v61 }
0x36b4   :  { %v5997_v23 = vsel %vm5994_vm13, %v5996_v17, %v5992_v40  ;;  %v6022_v13 = vsel %vm6021_vm1, %v7439_v37, %v6018_v28 }
0x36b5   :  { %v6027_v36 = vsel %vm6024_vm2, %v6026_v58, %v6022_v13 }
0x36f3   :  { %v6058_v57 = vpop.permute.xlu1 %6057 }
0x36f4   :  { %v6063_v6 = vmul.f32 %v6058_v57, %v5997_v23 }
0x36f6   :  { %v6069_v60 = vmul.f32 %v6670_v50, %v6063_v6 }
0x36f8   :  { %v6071_v26 = vsel %vm175_vm0, %v6069_v60, 0.0 }
0x36f9   :  { %6072 = vadd.xlane.f32.xlu0 %v6071_v26 }
0x36fb   :  { %v6060_v1 = vpop.permute.xlu2 %6059 }
0x36fc   :  { %v6064_v30 = vmul.f32 %v6060_v1, %v6027_v36 }
0x36fe   :  { %v6070_v53 = vmul.f32 %v6670_v50, %v6064_v30 }
0x3700   :  { %v6074_v15 = vsel %vm175_vm0, %v6070_v53, 0.0 }
0x3701   :  { %6075 = vadd.xlane.f32.xlu1 %v6074_v15 }
0x376c   :  { %v6073_v12 = vpop.xlane.xlu0 %6072 }
0x376d   :  { %v6081_v41 = vadd.f32 %v6671_v18, %v6073_v12 }
0x376f   :  { %6084 = vst.msk [vmem:[%s9026_s6] sm:$0xff] %vm6083_vm3, %v6081_v41 }
0x3774   :  { %v6076_v22 = vpop.xlane.xlu1 %6075 }
0x3775   :  { %v6082_v25 = vadd.f32 %v6671_v18, %v6076_v22 }
0x3777   :  { %6085 = vst.msk [vmem:[%s9026_s6 + $0x8] sm:$0xff] %vm6083_vm3, %v6082_v25 }
0x3778   :  { %6090 = vsyncpa [#allocation6], 1 }
0x3779   :  { %6091 = vsyncpa [#allocation8], 1 }
0x377a   :  { %6092 = vsyncpa [#allocation11], 1 }

</bundles_post_ra>
